<compile_context>
chip_gen: v7x
topology: tpu7x:2x2x1
jax: 0.10.0
libtpu: 0.0.40
codegen_flags: <defaults>
</compile_context>

<pallas_src>
import jax
import jax.numpy as jnp
from jax.experimental import pallas as pl
from jax.experimental.pallas import tpu as pltpu


# ----------------------------- Pallas kernels ------------------------------
def _conv_relu_pool_kernel(p_ref, w_ref, b_ref, o_ref):
    """Fused conv(as GEMM) + 2x2 max-pool + bias + ReLU.

    p_ref: (4, tm, K) bf16 -- im2col patches for the 4 corners of each pool win
    w_ref: (K, N)     bf16 -- resident conv weight
    b_ref: (1, N)     f32
    o_ref: (tm, N)         -- pooled output rows, ordered (b, hp, wp)
    """
    w = w_ref[...]
    # Running max over the 4 pool-window corners: one f32 accumulator live.
    m = jnp.dot(p_ref[0], w, preferred_element_type=jnp.float32)
    for i in range(1, 4):
        m = jnp.maximum(m, jnp.dot(p_ref[i], w, preferred_element_type=jnp.float32))
    # Bias + ReLU once after the max (commutes with a shared bias).
    o_ref[...] = jnp.maximum(m + b_ref[...], 0.0).astype(o_ref.dtype)


def _fc_fused_kernel(x_ref, w1_ref, b1_ref, w2_ref, b2_ref, o_ref):
    """(conv3 folded into fc1) + ReLU + fc2; the (tm,64) hidden stays in vregs."""
    h = jnp.dot(x_ref[...], w1_ref[...], preferred_element_type=jnp.float32)
    h = jnp.maximum(h + b1_ref[...], 0.0)
    y = jnp.dot(h.astype(w2_ref.dtype), w2_ref[...],
                preferred_element_type=jnp.float32) + b2_ref[...]
    o_ref[...] = y.astype(o_ref.dtype)


# ------------------------------ wrappers ------------------------------------
_CONV_TM_CAP = 1024   # per-block patch buffer <= 4*1024*288*2B ~= 2.4 MB
_FC_TM_CAP = 256      # K=9216: 256*9216*2B ~= 4.6 MB per buffer


def _pick_tm(m, cap):
    """Tile along M: capped, multiple of 8, and >=2 grid blocks when possible
    (so dimension_semantics=('parallel',) can use both v7x TensorCores)."""
    tm = min(cap, pl.cdiv(m, 2))
    tm = min(((tm + 7) // 8) * 8, cap)
    if tm >= m:
        return m          # single full block (block dim == array dim is legal)
    return tm


def conv2d_relu_pool(x_nhwc, w_mat, b):
    """relu(conv2d(x, 3x3, VALID)) followed by max_pool2d(2,2), fused."""
    K, N = w_mat.shape
    patches, (B, Hp, Wp) = _pooled_conv_patches(x_nhwc, pad_k_to=K)
    patches = patches.astype(w_mat.dtype)
    M = patches.shape[1]
    tm = _pick_tm(M, _CONV_TM_CAP)
    out = pl.pallas_call(
        _conv_relu_pool_kernel,
        out_shape=jax.ShapeDtypeStruct((M, N), w_mat.dtype),
        grid=(pl.cdiv(M, tm),),
        in_specs=[
            pl.BlockSpec((4, tm, K), lambda i: (0, i, 0)),
            pl.BlockSpec((K, N), lambda i: (0, 0)),     # resident weight
            pl.BlockSpec((1, N), lambda i: (0, 0)),     # resident bias
        ],
        out_specs=pl.BlockSpec((tm, N), lambda i: (i, 0)),
        compiler_params=pltpu.CompilerParams(
            dimension_semantics=("parallel",),
            allow_input_fusion=[True, False, False],
            vmem_limit_bytes=32 * 1024 * 1024,
        ),
    )(patches, w_mat, b.reshape(1, N))
    return out.reshape(B, Hp, Wp, N)


def fc_fused(x, w1, b1, w2, b2):
    """x:(B,9216) -> relu(x@w1+b1) @ w2 + b2 ; w2/b2 are N-padded to 128."""
    M, K = x.shape
    H = w1.shape[1]
    Np = w2.shape[1]
    tm = _pick_tm(M, _FC_TM_CAP)
    return pl.pallas_call(
        _fc_fused_kernel,
        out_shape=jax.ShapeDtypeStruct((M, Np), jnp.float32),
        grid=(pl.cdiv(M, tm),),
        in_specs=[
            pl.BlockSpec((tm, K), lambda i: (i, 0)),
            pl.BlockSpec((K, H), lambda i: (0, 0)),
            pl.BlockSpec((1, H), lambda i: (0, 0)),
            pl.BlockSpec((H, Np), lambda i: (0, 0)),
            pl.BlockSpec((1, Np), lambda i: (0, 0)),
        ],
        out_specs=pl.BlockSpec((tm, Np), lambda i: (i, 0)),
        compiler_params=pltpu.CompilerParams(
            dimension_semantics=("parallel",),
            allow_input_fusion=[True, False, False, False, False],
            vmem_limit_bytes=32 * 1024 * 1024,
        ),
    )(x, w1, b1.reshape(1, H), w2, b2.reshape(1, Np))


# --------------------------- patch extraction (glue) -------------------------
def _pooled_conv_patches(x, kh=3, kw=3, pad_k_to=None):
    """NHWC x -> (4, B*Hp*Wp, kh*kw*C) patches: the 4 corners of each 2x2
    floor-mode pooling window over the VALID conv output. Column ordering is
    (di, dj, c), matching the prepped weight layout.  With allow_input_fusion
    this producer can be fused into the Pallas input (no HBM slab)."""
    B, H, W, C = x.shape
    Ho, Wo = H - kh + 1, W - kw + 1
    Hp, Wp = Ho // 2, Wo // 2
    K = kh * kw * C
    slabs = []
    for pi in range(2):
        for pj in range(2):
            cols = [
                x[:, pi + di: pi + di + 2 * Hp - 1: 2,
                     pj + dj: pj + dj + 2 * Wp - 1: 2, :]
                for di in range(kh) for dj in range(kw)
            ]
            slabs.append(jnp.stack(cols, axis=3).reshape(B * Hp * Wp, K))
    out = jnp.stack(slabs, axis=0)                       # (4, M, K)
    if pad_k_to is not None and pad_k_to > K:
        out = jnp.pad(out, ((0, 0), (0, 0), (0, pad_k_to - K)))
    return out, (B, Hp, Wp)


def _conv3_fc_patches(x):
    """(B,6,6,C) -> (B, 16*9*C) im2col rows for the folded conv3+fc1 GEMM.
    Flat column order is (h', w', di, dj, c), matching the folded weight."""
    B, H, W, C = x.shape
    Ho, Wo = H - 2, W - 2
    cols = [x[:, di:di + Ho, dj:dj + Wo, :] for di in range(3) for dj in range(3)]
    return jnp.stack(cols, axis=3).reshape(B, Ho * Wo * 9 * C)


# --------------------------------- params ------------------------------------
def init_params(key):
    """Deterministic init; shapes/layout match CNN_CIFAR_dropout (PyTorch)."""
    def uinit(k, shape, fan_in):
        bound = 1.0 / jnp.sqrt(jnp.float32(fan_in))
        return jax.random.uniform(k, shape, jnp.float32, -bound, bound)

    ks = jax.random.split(key, 10)
    return {
        "conv1_w": uinit(ks[0], (32, 3, 3, 3), 3 * 9),
        "conv1_b": uinit(ks[1], (32,), 3 * 9),
        "conv2_w": uinit(ks[2], (64, 32, 3, 3), 32 * 9),
        "conv2_b": uinit(ks[3], (64,), 32 * 9),
        "conv3_w": uinit(ks[4], (64, 64, 3, 3), 64 * 9),
        "conv3_b": uinit(ks[5], (64,), 64 * 9),
        "fc1_w": uinit(ks[6], (64, 4 * 4 * 64), 4 * 4 * 64),
        "fc1_b": uinit(ks[7], (64,), 4 * 4 * 64),
        "fc2_w": uinit(ks[8], (10, 64), 64),
        "fc2_b": uinit(ks[9], (10,), 64),
    }


def prepare_params(p, compute_dtype=jnp.bfloat16):
    """One-time weight layout prep (hoisted out of the forward pass)."""
    def conv_mat(w_oihw, pad_k_to=None):
        Cout, Cin, kh, kw = w_oihw.shape
        w = jnp.transpose(w_oihw, (2, 3, 1, 0)).reshape(kh * kw * Cin, Cout)
        if pad_k_to is not None and pad_k_to > w.shape[0]:
            w = jnp.pad(w, ((0, pad_k_to - w.shape[0]), (0, 0)))
        return w

    # conv3 has no nonlinearity before fc1 (dropout is identity in eval mode),
    # so fold conv3 into fc1:  fc1(flatten(conv3(x))) == patches3 @ Wc + bc.
    # fc1 weight is first permuted so it accepts the (h, w, c)-ordered NHWC
    # flatten, reproducing PyTorch's x.view(-1, 4*4*64) on NCHW exactly.
    w3m = conv_mat(p["conv3_w"])                           # (576, 64), rows (di,dj,c)
    w1p = (p["fc1_w"].reshape(64, 64, 4, 4)                # [n, c, h, w]
           .transpose(2, 3, 1, 0)                          # [h, w, c, n]
           .reshape(16, 64, 64))                           # [s=(h,w), c, n]
    wc = jnp.einsum("kc,scn->skn", w3m, w1p).reshape(16 * 576, 64)  # (9216, 64)
    bc = p["fc1_b"] + jnp.einsum("c,scn->n", p["conv3_b"], w1p)

    # fc2 padded to 128 output lanes for an unmasked lane-dense store.
    w2p = jnp.pad(p["fc2_w"].T, ((0, 0), (0, 128 - 10)))
    b2p = jnp.pad(p["fc2_b"], (0, 128 - 10))

    cd = compute_dtype
    return {
        "c1_w": conv_mat(p["conv1_w"], pad_k_to=32).astype(cd),
        "c1_b": p["conv1_b"].astype(jnp.float32),
        "c2_w": conv_mat(p["conv2_w"]).astype(cd),
        "c2_b": p["conv2_b"].astype(jnp.float32),
        "fc_w1": wc.astype(cd),
        "fc_b1": bc.astype(jnp.float32),
        "fc_w2": w2p.astype(cd),
        "fc_b2": b2p.astype(jnp.float32),
    }


# --------------------------------- forward -----------------------------------
def cnn_cifar_dropout_forward(prepped, x_nchw):
    # TODO(synk): nn.Dropout(p=0.2) treated as identity (eval-mode semantics);
    # PyTorch train-mode dropout RNG cannot be reproduced.
    cd = prepped["c1_w"].dtype
    x = jnp.transpose(x_nchw, (0, 2, 3, 1)).astype(cd)           # NCHW -> NHWC
    x = conv2d_relu_pool(x, prepped["c1_w"], prepped["c1_b"])    # (B,15,15,32)
    x = conv2d_relu_pool(x, prepped["c2_w"], prepped["c2_b"])    # (B, 6, 6,64)
    xf = _conv3_fc_patches(x)                                    # (B, 9216)
    out = fc_fused(xf, prepped["fc_w1"], prepped["fc_b1"],
                   prepped["fc_w2"], prepped["fc_b2"])           # (B, 128) f32
    return out[:, :10]


if __name__ == "__main__":
    key = jax.random.PRNGKey(0)
    pkey, xkey = jax.random.split(key)
    params = init_params(pkey)
    prepped = prepare_params(params)
    # fc1 requires a 4*4*64 flatten -> spatial must be 32x32 with 3 channels.
    x = jax.random.normal(xkey, (2, 3, 32, 32), jnp.float32)
    fwd = jax.jit(cnn_cifar_dropout_forward)
    out = jax.block_until_ready(fwd(prepped, x))
    assert out.shape == (2, 10), out.shape
    assert bool(jnp.all(jnp.isfinite(out)))
    print("KERNEL_OK")
</pallas_src>

<mosaic_0001>
module attributes {stable_mosaic.version = 11 : i64} {
  func.func @_conv_relu_pool_kernel(%arg0: i32, %arg1: memref<4x232x32xbf16, #tpu.memory_space<vmem>>, %arg2: memref<32x32xbf16, #tpu.memory_space<vmem>>, %arg3: memref<1x32xf32, #tpu.memory_space<vmem>>, %arg4: memref<232x32xbf16, #tpu.memory_space<vmem>>) attributes {dimension_semantics = [#tpu.dimension_semantics<parallel>], iteration_bounds = array<i64: 2>, scalar_prefetch = 0 : i64, scratch_operands = 0 : i64, tpu.core_type = #tpu.core_type<tc>, window_params = [{transform_indices = @transform_0, window_bounds = array<i64: 4, 232, 32>}, {pipeline_mode = #tpu.pipeline_mode<synchronous>, transform_indices = @transform_1, window_bounds = array<i64: 32, 32>}, {pipeline_mode = #tpu.pipeline_mode<synchronous>, transform_indices = @transform_2, window_bounds = array<i64: 1, 32>}, {transform_indices = @transform_3, window_bounds = array<i64: 232, 32>}]} {
    %c0 = arith.constant 0 : index
    %c0_0 = arith.constant 0 : index
    %0 = vector.load %arg2[%c0, %c0_0] : memref<32x32xbf16, #tpu.memory_space<vmem>>, vector<32x32xbf16>
    %c0_1 = arith.constant 0 : index
    %c0_2 = arith.constant 0 : index
    %c0_3 = arith.constant 0 : index
    %1 = vector.load %arg1[%c0_1, %c0_2, %c0_3] : memref<4x232x32xbf16, #tpu.memory_space<vmem>>, vector<1x232x32xbf16>
    %2 = vector.shape_cast %1 : vector<1x232x32xbf16> to vector<232x32xbf16>
    %cst = arith.constant dense<0.000000e+00> : vector<232x32xf32>
    %3 = tpu.matmul %2, %0, %cst {dimension_numbers = #tpu.dot_dimension_numbers<[1], [0], [0], [1], [0, 0, 1, 1], [], []>} : vector<232x32xbf16>, vector<32x32xbf16>, vector<232x32xf32> -> vector<232x32xf32>
    %c1 = arith.constant 1 : index
    %c0_4 = arith.constant 0 : index
    %c0_5 = arith.constant 0 : index
    %4 = vector.load %arg1[%c1, %c0_4, %c0_5] : memref<4x232x32xbf16, #tpu.memory_space<vmem>>, vector<1x232x32xbf16>
    %5 = vector.shape_cast %4 : vector<1x232x32xbf16> to vector<232x32xbf16>
    %cst_6 = arith.constant dense<0.000000e+00> : vector<232x32xf32>
    %6 = tpu.matmul %5, %0, %cst_6 {dimension_numbers = #tpu.dot_dimension_numbers<[1], [0], [0], [1], [0, 0, 1, 1], [], []>} : vector<232x32xbf16>, vector<32x32xbf16>, vector<232x32xf32> -> vector<232x32xf32>
    %7 = arith.maximumf %3, %6 : vector<232x32xf32>
    %c2 = arith.constant 2 : index
    %c0_7 = arith.constant 0 : index
    %c0_8 = arith.constant 0 : index
    %8 = vector.load %arg1[%c2, %c0_7, %c0_8] : memref<4x232x32xbf16, #tpu.memory_space<vmem>>, vector<1x232x32xbf16>
    %9 = vector.shape_cast %8 : vector<1x232x32xbf16> to vector<232x32xbf16>
    %cst_9 = arith.constant dense<0.000000e+00> : vector<232x32xf32>
    %10 = tpu.matmul %9, %0, %cst_9 {dimension_numbers = #tpu.dot_dimension_numbers<[1], [0], [0], [1], [0, 0, 1, 1], [], []>} : vector<232x32xbf16>, vector<32x32xbf16>, vector<232x32xf32> -> vector<232x32xf32>
    %11 = arith.maximumf %7, %10 : vector<232x32xf32>
    %c3 = arith.constant 3 : index
    %c0_10 = arith.constant 0 : index
    %c0_11 = arith.constant 0 : index
    %12 = vector.load %arg1[%c3, %c0_10, %c0_11] : memref<4x232x32xbf16, #tpu.memory_space<vmem>>, vector<1x232x32xbf16>
    %13 = vector.shape_cast %12 : vector<1x232x32xbf16> to vector<232x32xbf16>
    %cst_12 = arith.constant dense<0.000000e+00> : vector<232x32xf32>
    %14 = tpu.matmul %13, %0, %cst_12 {dimension_numbers = #tpu.dot_dimension_numbers<[1], [0], [0], [1], [0, 0, 1, 1], [], []>} : vector<232x32xbf16>, vector<32x32xbf16>, vector<232x32xf32> -> vector<232x32xf32>
    %15 = arith.maximumf %11, %14 : vector<232x32xf32>
    %c0_13 = arith.constant 0 : index
    %c0_14 = arith.constant 0 : index
    %16 = vector.load %arg3[%c0_13, %c0_14] : memref<1x32xf32, #tpu.memory_space<vmem>>, vector<1x32xf32>
    %17 = vector.broadcast %16 : vector<1x32xf32> to vector<232x32xf32>
    %18 = arith.addf %15, %17 : vector<232x32xf32>
    %cst_15 = arith.constant 0.000000e+00 : f32
    %19 = vector.broadcast %cst_15 : f32 to vector<232x32xf32>
    %20 = arith.maximumf %18, %19 : vector<232x32xf32>
    %21 = arith.truncf %20 : vector<232x32xf32> to vector<232x32xbf16>
    %c0_16 = arith.constant 0 : index
    %c0_17 = arith.constant 0 : index
    %22 = vector.load %arg4[%c0_16, %c0_17] : memref<232x32xbf16, #tpu.memory_space<vmem>>, vector<232x32xbf16>
    tpu.vector_store %arg4[%c0_16, %c0_17], %21 {strides = array<i32>} : memref<232x32xbf16, #tpu.memory_space<vmem>>, vector<232x32xbf16>,
    return
  }
  func.func @transform_0(%arg0: i32) -> (i32, i32, i32) {
    %c0_i32 = arith.constant 0 : i32
    %c0_i32_0 = arith.constant 0 : i32
    %c0_i32_1 = arith.constant 0 : i32
    return %c0_i32, %arg0, %c0_i32_0 : i32, i32, i32
  }
  func.func @transform_1(%arg0: i32) -> (i32, i32) {
    %c0_i32 = arith.constant 0 : i32
    %c0_i32_0 = arith.constant 0 : i32
    %c0_i32_1 = arith.constant 0 : i32
    return %c0_i32, %c0_i32_0 : i32, i32
  }
  func.func @transform_2(%arg0: i32) -> (i32, i32) {
    %c0_i32 = arith.constant 0 : i32
    %c0_i32_0 = arith.constant 0 : i32
    %c0_i32_1 = arith.constant 0 : i32
    return %c0_i32, %c0_i32_0 : i32, i32
  }
  func.func @transform_3(%arg0: i32) -> (i32, i32) {
    %c0_i32 = arith.constant 0 : i32
    %c0_i32_0 = arith.constant 0 : i32
    return %arg0, %c0_i32 : i32, i32
  }
}

module attributes {stable_mosaic.version = 11 : i64} {
  func.func @_conv_relu_pool_kernel(%arg0: i32, %arg1: memref<4x40x288xbf16, #tpu.memory_space<vmem>>, %arg2: memref<288x64xbf16, #tpu.memory_space<vmem>>, %arg3: memref<1x64xf32, #tpu.memory_space<vmem>>, %arg4: memref<40x64xbf16, #tpu.memory_space<vmem>>) attributes {dimension_semantics = [#tpu.dimension_semantics<parallel>], iteration_bounds = array<i64: 2>, scalar_prefetch = 0 : i64, scratch_operands = 0 : i64, tpu.core_type = #tpu.core_type<tc>, window_params = [{transform_indices = @transform_0, window_bounds = array<i64: 4, 40, 288>}, {pipeline_mode = #tpu.pipeline_mode<synchronous>, transform_indices = @transform_1, window_bounds = array<i64: 288, 64>}, {pipeline_mode = #tpu.pipeline_mode<synchronous>, transform_indices = @transform_2, window_bounds = array<i64: 1, 64>}, {transform_indices = @transform_3, window_bounds = array<i64: 40, 64>}]} {
    %c0 = arith.constant 0 : index
    %c0_0 = arith.constant 0 : index
    %0 = vector.load %arg2[%c0, %c0_0] : memref<288x64xbf16, #tpu.memory_space<vmem>>, vector<288x64xbf16>
    %c0_1 = arith.constant 0 : index
    %c0_2 = arith.constant 0 : index
    %c0_3 = arith.constant 0 : index
    %1 = vector.load %arg1[%c0_1, %c0_2, %c0_3] : memref<4x40x288xbf16, #tpu.memory_space<vmem>>, vector<1x40x288xbf16>
    %2 = vector.shape_cast %1 : vector<1x40x288xbf16> to vector<40x288xbf16>
    %cst = arith.constant dense<0.000000e+00> : vector<40x64xf32>
    %3 = tpu.matmul %2, %0, %cst {dimension_numbers = #tpu.dot_dimension_numbers<[1], [0], [0], [1], [0, 0, 1, 1], [], []>} : vector<40x288xbf16>, vector<288x64xbf16>, vector<40x64xf32> -> vector<40x64xf32>
    %c1 = arith.constant 1 : index
    %c0_4 = arith.constant 0 : index
    %c0_5 = arith.constant 0 : index
    %4 = vector.load %arg1[%c1, %c0_4, %c0_5] : memref<4x40x288xbf16, #tpu.memory_space<vmem>>, vector<1x40x288xbf16>
    %5 = vector.shape_cast %4 : vector<1x40x288xbf16> to vector<40x288xbf16>
    %cst_6 = arith.constant dense<0.000000e+00> : vector<40x64xf32>
    %6 = tpu.matmul %5, %0, %cst_6 {dimension_numbers = #tpu.dot_dimension_numbers<[1], [0], [0], [1], [0, 0, 1, 1], [], []>} : vector<40x288xbf16>, vector<288x64xbf16>, vector<40x64xf32> -> vector<40x64xf32>
    %7 = arith.maximumf %3, %6 : vector<40x64xf32>
    %c2 = arith.constant 2 : index
    %c0_7 = arith.constant 0 : index
    %c0_8 = arith.constant 0 : index
    %8 = vector.load %arg1[%c2, %c0_7, %c0_8] : memref<4x40x288xbf16, #tpu.memory_space<vmem>>, vector<1x40x288xbf16>
    %9 = vector.shape_cast %8 : vector<1x40x288xbf16> to vector<40x288xbf16>
    %cst_9 = arith.constant dense<0.000000e+00> : vector<40x64xf32>
    %10 = tpu.matmul %9, %0, %cst_9 {dimension_numbers = #tpu.dot_dimension_numbers<[1], [0], [0], [1], [0, 0, 1, 1], [], []>} : vector<40x288xbf16>, vector<288x64xbf16>, vector<40x64xf32> -> vector<40x64xf32>
    %11 = arith.maximumf %7, %10 : vector<40x64xf32>
    %c3 = arith.constant 3 : index
    %c0_10 = arith.constant 0 : index
    %c0_11 = arith.constant 0 : index
    %12 = vector.load %arg1[%c3, %c0_10, %c0_11] : memref<4x40x288xbf16, #tpu.memory_space<vmem>>, vector<1x40x288xbf16>
    %13 = vector.shape_cast %12 : vector<1x40x288xbf16> to vector<40x288xbf16>
    %cst_12 = arith.constant dense<0.000000e+00> : vector<40x64xf32>
    %14 = tpu.matmul %13, %0, %cst_12 {dimension_numbers = #tpu.dot_dimension_numbers<[1], [0], [0], [1], [0, 0, 1, 1], [], []>} : vector<40x288xbf16>, vector<288x64xbf16>, vector<40x64xf32> -> vector<40x64xf32>
    %15 = arith.maximumf %11, %14 : vector<40x64xf32>
    %c0_13 = arith.constant 0 : index
    %c0_14 = arith.constant 0 : index
    %16 = vector.load %arg3[%c0_13, %c0_14] : memref<1x64xf32, #tpu.memory_space<vmem>>, vector<1x64xf32>
    %17 = vector.broadcast %16 : vector<1x64xf32> to vector<40x64xf32>
    %18 = arith.addf %15, %17 : vector<40x64xf32>
    %cst_15 = arith.constant 0.000000e+00 : f32
    %19 = vector.broadcast %cst_15 : f32 to vector<40x64xf32>
    %20 = arith.maximumf %18, %19 : vector<40x64xf32>
    %21 = arith.truncf %20 : vector<40x64xf32> to vector<40x64xbf16>
    %c0_16 = arith.constant 0 : index
    %c0_17 = arith.constant 0 : index
    %22 = vector.load %arg4[%c0_16, %c0_17] : memref<40x64xbf16, #tpu.memory_space<vmem>>, vector<40x64xbf16>
    tpu.vector_store %arg4[%c0_16, %c0_17], %21 {strides = array<i32>} : memref<40x64xbf16, #tpu.memory_space<vmem>>, vector<40x64xbf16>,
    return
  }
  func.func @transform_0(%arg0: i32) -> (i32, i32, i32) {
    %c0_i32 = arith.constant 0 : i32
    %c0_i32_0 = arith.constant 0 : i32
    %c0_i32_1 = arith.constant 0 : i32
    return %c0_i32, %arg0, %c0_i32_0 : i32, i32, i32
  }
  func.func @transform_1(%arg0: i32) -> (i32, i32) {
    %c0_i32 = arith.constant 0 : i32
    %c0_i32_0 = arith.constant 0 : i32
    %c0_i32_1 = arith.constant 0 : i32
    return %c0_i32, %c0_i32_0 : i32, i32
  }
  func.func @transform_2(%arg0: i32) -> (i32, i32) {
    %c0_i32 = arith.constant 0 : i32
    %c0_i32_0 = arith.constant 0 : i32
    %c0_i32_1 = arith.constant 0 : i32
    return %c0_i32, %c0_i32_0 : i32, i32
  }
  func.func @transform_3(%arg0: i32) -> (i32, i32) {
    %c0_i32 = arith.constant 0 : i32
    %c0_i32_0 = arith.constant 0 : i32
    return %arg0, %c0_i32 : i32, i32
  }
}

module attributes {stable_mosaic.version = 11 : i64} {
  func.func @_fc_fused_kernel(%arg0: i32, %arg1: memref<2x9216xbf16, #tpu.memory_space<vmem>>, %arg2: memref<9216x64xbf16, #tpu.memory_space<vmem>>, %arg3: memref<1x64xf32, #tpu.memory_space<vmem>>, %arg4: memref<64x128xbf16, #tpu.memory_space<vmem>>, %arg5: memref<1x128xf32, #tpu.memory_space<vmem>>, %arg6: memref<2x128xf32, #tpu.memory_space<vmem>>) attributes {dimension_semantics = [#tpu.dimension_semantics<parallel>], iteration_bounds = array<i64: 1>, scalar_prefetch = 0 : i64, scratch_operands = 0 : i64, tpu.core_type = #tpu.core_type<tc>, window_params = [{transform_indices = @transform_0, window_bounds = array<i64: 2, 9216>}, {pipeline_mode = #tpu.pipeline_mode<synchronous>, transform_indices = @transform_1, window_bounds = array<i64: 9216, 64>}, {pipeline_mode = #tpu.pipeline_mode<synchronous>, transform_indices = @transform_2, window_bounds = array<i64: 1, 64>}, {pipeline_mode = #tpu.pipeline_mode<synchronous>, transform_indices = @transform_3, window_bounds = array<i64: 64, 128>}, {pipeline_mode = #tpu.pipeline_mode<synchronous>, transform_indices = @transform_4, window_bounds = array<i64: 1, 128>}, {transform_indices = @transform_5, window_bounds = array<i64: 2, 128>}]} {
    %c0 = arith.constant 0 : index
    %c0_0 = arith.constant 0 : index
    %0 = vector.load %arg1[%c0, %c0_0] : memref<2x9216xbf16, #tpu.memory_space<vmem>>, vector<2x9216xbf16>
    %c0_1 = arith.constant 0 : index
    %c0_2 = arith.constant 0 : index
    %1 = vector.load %arg2[%c0_1, %c0_2] : memref<9216x64xbf16, #tpu.memory_space<vmem>>, vector<9216x64xbf16>
    %cst = arith.constant dense<0.000000e+00> : vector<2x64xf32>
    %2 = tpu.matmul %0, %1, %cst {dimension_numbers = #tpu.dot_dimension_numbers<[1], [0], [0], [1], [0, 0, 1, 1], [], []>} : vector<2x9216xbf16>, vector<9216x64xbf16>, vector<2x64xf32> -> vector<2x64xf32>
    %c0_3 = arith.constant 0 : index
    %c0_4 = arith.constant 0 : index
    %3 = vector.load %arg3[%c0_3, %c0_4] : memref<1x64xf32, #tpu.memory_space<vmem>>, vector<1x64xf32>
    %4 = vector.broadcast %3 : vector<1x64xf32> to vector<2x64xf32>
    %5 = arith.addf %2, %4 : vector<2x64xf32>
    %cst_5 = arith.constant 0.000000e+00 : f32
    %6 = vector.broadcast %cst_5 : f32 to vector<2x64xf32>
    %7 = arith.maximumf %5, %6 : vector<2x64xf32>
    %8 = arith.truncf %7 : vector<2x64xf32> to vector<2x64xbf16>
    %c0_6 = arith.constant 0 : index
    %c0_7 = arith.constant 0 : index
    %9 = vector.load %arg4[%c0_6, %c0_7] : memref<64x128xbf16, #tpu.memory_space<vmem>>, vector<64x128xbf16>
    %cst_8 = arith.constant dense<0.000000e+00> : vector<2x128xf32>
    %10 = tpu.matmul %8, %9, %cst_8 {dimension_numbers = #tpu.dot_dimension_numbers<[1], [0], [0], [1], [0, 0, 1, 1], [], []>} : vector<2x64xbf16>, vector<64x128xbf16>, vector<2x128xf32> -> vector<2x128xf32>
    %c0_9 = arith.constant 0 : index
    %c0_10 = arith.constant 0 : index
    %11 = vector.load %arg5[%c0_9, %c0_10] : memref<1x128xf32, #tpu.memory_space<vmem>>, vector<1x128xf32>
    %12 = vector.broadcast %11 : vector<1x128xf32> to vector<2x128xf32>
    %13 = arith.addf %10, %12 : vector<2x128xf32>
    %c0_11 = arith.constant 0 : index
    %c0_12 = arith.constant 0 : index
    %14 = vector.load %arg6[%c0_11, %c0_12] : memref<2x128xf32, #tpu.memory_space<vmem>>, vector<2x128xf32>
    tpu.vector_store %arg6[%c0_11, %c0_12], %13 {strides = array<i32>} : memref<2x128xf32, #tpu.memory_space<vmem>>, vector<2x128xf32>,
    return
  }
  func.func @transform_0(%arg0: i32) -> (i32, i32) {
    %c0_i32 = arith.constant 0 : i32
    %c0_i32_0 = arith.constant 0 : i32
    return %arg0, %c0_i32 : i32, i32
  }
  func.func @transform_1(%arg0: i32) -> (i32, i32) {
    %c0_i32 = arith.constant 0 : i32
    %c0_i32_0 = arith.constant 0 : i32
    %c0_i32_1 = arith.constant 0 : i32
    return %c0_i32, %c0_i32_0 : i32, i32
  }
  func.func @transform_2(%arg0: i32) -> (i32, i32) {
    %c0_i32 = arith.constant 0 : i32
    %c0_i32_0 = arith.constant 0 : i32
    %c0_i32_1 = arith.constant 0 : i32
    return %c0_i32, %c0_i32_0 : i32, i32
  }
  func.func @transform_3(%arg0: i32) -> (i32, i32) {
    %c0_i32 = arith.constant 0 : i32
    %c0_i32_0 = arith.constant 0 : i32
    %c0_i32_1 = arith.constant 0 : i32
    return %c0_i32, %c0_i32_0 : i32, i32
  }
  func.func @transform_4(%arg0: i32) -> (i32, i32) {
    %c0_i32 = arith.constant 0 : i32
    %c0_i32_0 = arith.constant 0 : i32
    %c0_i32_1 = arith.constant 0 : i32
    return %c0_i32, %c0_i32_0 : i32, i32
  }
  func.func @transform_5(%arg0: i32) -> (i32, i32) {
    %c0_i32 = arith.constant 0 : i32
    %c0_i32_0 = arith.constant 0 : i32
    return %arg0, %c0_i32 : i32, i32
  }
}

</mosaic_0001>

<bundles_post_ra>
// kernel: cnn_cifar_dropout_forward.6
= control target key start
LH: loop header
LB: loop body
LE: loop exit
PB: predicated region body
PF: predicated region fallthrough
CT: control target
= control target key end

     0   :  { %s14771_s0 = inlined_call_operand.vmem [shape: bf16[32,32], index: 0, kind: input, shape index: {}]   ;;  %s14772_s1 = inlined_call_operand.vmem [shape: f32[1,32], index: 1, kind: input, shape index: {}]   ;;  %s14773_s2 = inlined_call_operand.vmem [shape: bf16[1,450,27], index: 2, kind: input, shape index: {}]   ;;  %s14774_s3 = inlined_call_operand.<no memory space> [shape: bf16[], index: 3, kind: input, shape index: {}]   ;;  %s14775_s4 = inlined_call_operand.vmem [shape: bf16[1,450,27], index: 4, kind: input, shape index: {}]   ;;  %s14776_s5 = inlined_call_operand.vmem [shape: bf16[1,450,27], index: 5, kind: input, shape index: {}]   ;;  %s14777_s6 = inlined_call_operand.<no memory space> [shape: s32[], index: 6, kind: input, shape index: {}]   ;;  %s14778_s7 = inlined_call_operand.vmem [shape: bf16[1,450,27], index: 7, kind: input, shape index: {}]   ;;  %s14779_s8 = inlined_call_operand.<no memory space> [shape: bf16[], index: 8, kind: input, shape index: {}]   ;;  %s14780_s9 = inlined_call_operand.vmem [shape: bf16[450,32], index: 9, kind: output, shape index: {}]  }
   0x1   :  { %v14_v0 = vstv %s14774_s3  ;;  %v35_v2 = vstv %s14779_s8 }
   0x2   :  { %v12246_v3 = vunpack.i.l.bf16 %v14_v0  ;;  %v12248_v4 = vunpack.i.l.bf16 %v35_v2 }
   0x4   :  { %14812 = vst [vmem:[#allocation24_spill] sm:$0xff] %v12246_v3  ;;  %14813 = vst [vmem:[#allocation25_spill] sm:$0xff] %v12248_v4 }
   0x5   :  { %s12250_s15 = smov 0   ;;  %s12252_s16 = smov 0  }
   0x6   :  { %s12254_s17 = smov 0  }
   0x7 LB: > { %s12263_s3 = sadd.s32 4294967295, %s12151_s17   ;;  %s12265_s8 = sadd.s32 1, %s12151_s17   ;;  %s12147_s16 = sphi %s12252_s16, %s14913_s16   ;;  %s12143_s15 = sphi %s12250_s15, %s14912_s15   ;;  %s12151_s17 = sphi %s12254_s17, %s14914_s17  }
   0x8   : > { %s207_s18 = ssub.s32 %s12151_s17, %s12265_s8  ;;  %s210_s19 = sadd.s32 1, %s12147_s16 }
   0x9   : > { %p208_p0 = scmp.eq.s32.totalorder %s207_s18, 0  ;;  %p220_p1 = scmp.ne.s32.totalorder %s12147_s16, %s12143_s15 }
   0xa   : > { %p221_p2 = scmp.eq.s32.totalorder %s12263_s3, 1  ;;  %p10830_p3 = scmp.ge.s32.totalorder %s12151_s17, 1 }
   0xb   : > { %v14814_v4 = vld [vmem:[#allocation25_spill] sm:$0xff]  ;;  %v14815_v3 = vld [vmem:[#allocation24_spill] sm:$0xff]  ;;  %s12273_s20 = scalar_select %p208_p0, %s12147_s16, %s210_s19  }
   0xc   : > { %p12275_p4 = por %p221_p2, %p220_p1  ;;  %p349_p5 = scmp.lt.s32.totalorder %s12151_s17, 3 }
   0xe   : > { %p350_p6 = pnand %p10830_p3, %p349_p5 }
  0x10   : > { %353 = sbr.rel (%p350_p6) target bundleno = 615 (0x267), region = 44 }
  0x17   : > { %v12282_v5 = vld [vmem:[%s14771_s0] sm:$0xff]   ;;  %v592_v6 = vlaneseq  ;;  %v12185_v7 = vmov 0.0   ;;  %v12291_v8 = vld [vmem:[%s14771_s0 + $0x8] sm:$0xff]   ;;  %s12294_s26 = smul.u32 29, %s12263_s3  ;;  %vm12186_vm0 = vmmov 0   ;;  %v14817_v1 = vstv %s14777_s6 }
  0x18   : > { %11681 = vmatprep.subr.bf16.mxu0 %v12185_v7  ;;  %11745 = vmatprep.subr.bf16.mxu1 %v12185_v7  ;;  %s12303_s27 = smul.u32 232, %s12263_s3  ;;  %vm9048_vm7 = vcmask 261120  }
  0x19   : > { %11682 = vmatpush3.bf16.msra.mxu0 %v12282_v5  ;;  %11746 = vmatpush3.bf16.msra.mxu1 %v12282_v5  ;;  %v12296_v9 = vshrl.u32 %v592_v6, 7  ;;  %v12298_v10 = vand.u32 127, %v592_v6  ;;  %p440_p7 = scmp.lt.s32.totalorder %s12294_s26, 56 }
  0x1a   : > { %11683 = vmatprep.subr.bf16.mxu0 %v12185_v7  ;;  %11747 = vmatprep.subr.bf16.mxu1 %v12185_v7  ;;  %v594_v11 = vstv %s12303_s27  ;;  %s11233_s28 = sadd.s32 8, %s12303_s27  ;;  %s11235_s29 = sadd.s32 16, %s12303_s27 }
  0x1b   : > { %11685 = vmatprep.mubr.msk.bf16.mxu0 %vm12186_vm0, %v12185_v7  ;;  %11749 = vmatprep.mubr.msk.bf16.mxu1 %vm12186_vm0, %v12185_v7  ;;  %s441_s30 = scalar_select %p440_p7, %s12294_s26, 56  ;;  %v12317_v12 = vadd.s32 %v594_v11, %v12296_v9  ;;  %vm12324_vm1 = vcmp.lt.s32.totalorder %v12298_v10, %v14817_v1  ;;  %v708_v14 = vstv %s11233_s28  ;;  %v823_v15 = vstv %s11235_s29 }
  0x1c   : > { %v12330_v16 = vadd.s32 %v708_v14, %v12296_v9  ;;  %v12334_v17 = vadd.s32 %v823_v15, %v12296_v9  ;;  %s11237_s12 = sadd.s32 24, %s12303_s27  ;;  %s11239_s13 = sadd.s32 32, %s12303_s27  ;;  %vm601_vm3 = vcmp.lt.s32.totalorder %v12298_v10, 27  ;;  %v12353_v20 = vsel %vm12324_vm1, %v14815_v3, %v14814_v4 }
  0x1d   : > { %11684 = vmatpush3.bf16.msra.mxu0 %v12291_v8  ;;  %11748 = vmatpush3.bf16.msra.mxu1 %v12291_v8  ;;  %s12338_s14 = sshll.u32 %s441_s30, 2  ;;  %v938_v18 = vstv %s11237_s12  ;;  %v1053_v19 = vstv %s11239_s13  ;;  %s11241_s17 = sadd.s32 40, %s12303_s27  ;;  %vm596_vm2 = vcmp.lt.s32.totalorder %v12317_v12, 450 }
  0x1e   : > { %11809 = vmatprep.subr.bf16.mxu0 %v12185_v7  ;;  %11873 = vmatprep.subr.bf16.mxu1 %v12185_v7  ;;  %s12345_s22 = scalar_lea.vmem %s14778_s7, %s12338_s14  ;;  %s12359_s25 = scalar_lea.vmem %s14776_s5, %s12338_s14  ;;  %v12362_v21 = vadd.s32 %v938_v18, %v12296_v9  ;;  %vm710_vm4 = vcmp.lt.s32.totalorder %v12330_v16, 450  ;;  %vm825_vm5 = vcmp.lt.s32.totalorder %v12334_v17, 450  ;;  %v12370_v25 = vadd.s32 %v1053_v19, %v12296_v9 }
  0x1f   : > { %v588_v22 = vld [vmem:[%s12345_s22] sm:$0xff]   ;;  %v10844_v24 = vld [vmem:[%s12345_s22 + $0x8] sm:$0xff]   ;;  %v12372_v26 = vstv %s11241_s17  ;;  %s3749_s28 = sadd.s32 28, %s12294_s26  ;;  %v10854_v19 = vld [vmem:[%s12345_s22 + $0x10] sm:$0xff]   ;;  %s11243_s13 = sadd.s32 48, %s12303_s27 }
  0x20   : > { %v575_v23 = vld [vmem:[%s12359_s25] sm:$0xff]   ;;  %v589_v27 = vunpack.c.l.bf16 %v588_v22  ;;  %v702_v28 = vunpack.c.h.bf16 %v588_v22  ;;  %v10843_v31 = vld [vmem:[%s12359_s25 + $0x8] sm:$0xff]   ;;  %v817_v32 = vunpack.c.l.bf16 %v10844_v24  ;;  %v932_v33 = vunpack.c.h.bf16 %v10844_v24  ;;  %s12463_s29 = ssub.s32 56, %s3749_s28  ;;  %s11245_s18 = sadd.s32 56, %s12303_s27 }
  0x21   : > { %v576_v29 = vunpack.c.l.bf16 %v575_v23  ;;  %v689_v30 = vunpack.c.h.bf16 %v575_v23  ;;  %vm940_vm6 = vcmp.lt.s32.totalorder %v12362_v21, 450  ;;  %v804_v34 = vunpack.c.l.bf16 %v10843_v31  ;;  %p3753_p8 = scmp.lt.s32.totalorder %s12463_s29, 0 }
  0x22   : > { %v597_v35 = vsel %vm596_vm2, %v589_v27, %v14815_v3  ;;  %v711_v36 = vsel %vm710_vm4, %v702_v28, %v14815_v3  ;;  %v826_v51 = vsel %vm825_vm5, %v817_v32, %v14815_v3  ;;  %v941_v52 = vsel %vm940_vm6, %v932_v33, %v14815_v3  ;;  %v10853_v32 = vld [vmem:[%s12359_s25 + $0x10] sm:$0xff]  }
  0x23   : > { %v3927_v37 = vsel %vm596_vm2, %v576_v29, %v14815_v3  ;;  %v3984_v38 = vsel %vm710_vm4, %v689_v30, %v14815_v3  ;;  %v602_v39 = vsel %vm601_vm3, %v597_v35, %v14815_v3  ;;  %v716_v40 = vsel %vm601_vm3, %v711_v36, %v14815_v3  ;;  %s3754_s30 = scalar_select %p3753_p8, 0, 255 }
  0x24   : > { %v3932_v41 = vsel %vm601_vm3, %v3927_v37, %v14815_v3  ;;  %v3989_v42 = vsel %vm601_vm3, %v3984_v38, %v14815_v3  ;;  %v614_v43 = vsel %vm12324_vm1, %v602_v39, %v14814_v4  ;;  %v728_v44 = vsel %vm12324_vm1, %v716_v40, %v14814_v4 }
  0x25   : > { %v3948_v45 = vsel %vm12324_vm1, %v3932_v41, %v14814_v4  ;;  %v4005_v46 = vsel %vm12324_vm1, %v3989_v42, %v14814_v4  ;;  %v622_v47 = vmax.f32 %v614_v43, %v12353_v20  ;;  %v736_v48 = vmax.f32 %v728_v44, %v12353_v20  ;;  %s3755_s10 = sshrl.u32 %s3754_s30, 1 }
  0x26   : > { %v3952_v49 = vmax.f32 %v12353_v20, %v3948_v45  ;;  %v4009_v50 = vmax.f32 %v12353_v20, %v4005_v46  ;;  %v919_v53 = vunpack.c.h.bf16 %v10843_v31  ;;  %v4041_v54 = vsel %vm825_vm5, %v804_v34, %v14815_v3  ;;  %s3756_s11 = sor.u32 %s3755_s10, %s3754_s30  ;;  %s11247_s10 = sadd.s32 64, %s12303_s27 }
  0x27   : > { %v630_v55 = vmax.f32 %v622_v47, %v12353_v20  ;;  %v744_v56 = vmax.f32 %v736_v48, %v12353_v20  ;;  %v831_v59 = vsel %vm601_vm3, %v826_v51, %v14815_v3  ;;  %v946_v60 = vsel %vm601_vm3, %v941_v52, %v14815_v3  ;;  %s3757_s12 = sand.u32 85, %s3756_s11  ;;  %s11249_s11 = sadd.s32 72, %s12303_s27 }
  0x28   : > { %v3960_v57 = vmax.f32 %v3952_v49, %v12353_v20  ;;  %v4017_v58 = vmax.f32 %v4009_v50, %v12353_v20  ;;  %v4046_v61 = vsel %vm601_vm3, %v4041_v54, %v14815_v3  ;;  %v4098_v62 = vsel %vm940_vm6, %v919_v53, %v14815_v3  ;;  %v12505_v54 = vld [vmem:[%s12345_s22 + $0x18] sm:$0xff]   ;;  %s3758_s17 = sshrl.u32 %s3757_s12, 1 }
  0x29   : > { %v638_v63 = vmax.f32 %v630_v55, %v12353_v20  ;;  %v752_v0 = vmax.f32 %v744_v56, %v12353_v20  ;;  %v843_v11 = vsel %vm12324_vm1, %v831_v59, %v14814_v4  ;;  %v958_v14 = vsel %vm12324_vm1, %v946_v60, %v14814_v4  ;;  %v12519_v59 = vld [vmem:[%s12359_s25 + $0x18] sm:$0xff]   ;;  %s3759_s19 = sor.u32 %s3758_s17, %s3757_s12  ;;  %s11251_s12 = sadd.s32 80, %s12303_s27 }
  0x2a   : > { %v3968_v2 = vmax.f32 %v3960_v57, %v12353_v20  ;;  %v4025_v6 = vmax.f32 %v4017_v58, %v12353_v20  ;;  %v4062_v15 = vsel %vm12324_vm1, %v4046_v61, %v14814_v4  ;;  %v4103_v18 = vsel %vm601_vm3, %v4098_v62, %v14815_v3  ;;  %s3760_s23 = sand.u32 51, %s3759_s19  ;;  %s11255_s17 = sadd.s32 96, %s12303_s27 }
  0x2b   : > { %v640_v22 = vpack.c.bf16 %v12185_v7, %v638_v63  ;;  %v755_v23 = vpack.c.bf16 %v12185_v7, %v752_v0  ;;  %v851_v28 = vmax.f32 %v843_v11, %v12353_v20  ;;  %v966_v29 = vmax.f32 %v958_v14, %v12353_v20  ;;  %s3761_s24 = sshrl.u32 %s3760_s23, 2  ;;  %s11259_s19 = sadd.s32 112, %s12303_s27 }
  0x2c   : > { %v3971_v24 = vpack.c.bf16 %v12185_v7, %v3968_v2  ;;  %v4028_v27 = vpack.c.bf16 %v12185_v7, %v4025_v6  ;;  %v4066_v30 = vmax.f32 %v12353_v20, %v4062_v15  ;;  %v4119_v31 = vsel %vm12324_vm1, %v4103_v18, %v14814_v4  ;;  %s3762_s28 = sor.u32 %s3761_s24, %s3760_s23  ;;  %s11261_s23 = sadd.s32 120, %s12303_s27 }
  0x2d   : > { %642 = vst [vmem:[#allocation23] sm:$0xf] %v640_v22  ;;  %757 = vst [vmem:[#allocation23 + $0x4] sm:$0xf] %v755_v23  ;;  %v4123_v33 = vmax.f32 %v12353_v20, %v4119_v31  ;;  %v1047_v34 = vunpack.c.l.bf16 %v10854_v19  ;;  %vm1055_vm8 = vcmp.lt.s32.totalorder %v12370_v25, 450  ;;  %v1162_v35 = vunpack.c.h.bf16 %v10854_v19  ;;  %s12558_s30 = sand.u32 15, %s3762_s28 }
  0x2e   : > { %3973 = vst [vmem:[#allocation23 + $0x74] sm:$0xf] %v3971_v24  ;;  %4030 = vst [vmem:[#allocation23 + $0x78] sm:$0xf] %v4028_v27  ;;  %v859_v36 = vmax.f32 %v851_v28, %v12353_v20  ;;  %v974_v37 = vmax.f32 %v966_v29, %v12353_v20  ;;  %v4074_v38 = vmax.f32 %v4066_v30, %v12353_v20  ;;  %v1034_v42 = vunpack.c.l.bf16 %v10853_v32  ;;  %s11263_s24 = sadd.s32 128, %s12303_s27  ;;  %s11265_s28 = sadd.s32 136, %s12303_s27 }
  0x2f   : > { %v12480_v39 = vadd.s32 %v12372_v26, %v12296_v9  ;;  %v4131_v40 = vmax.f32 %v4123_v33, %v12353_v20  ;;  %v1056_v41 = vsel %vm1055_vm8, %v1047_v34, %v14815_v3  ;;  %v1149_v43 = vunpack.c.h.bf16 %v10853_v32 }
  0x30   : > { %v867_v44 = vmax.f32 %v859_v36, %v12353_v20  ;;  %v982_v45 = vmax.f32 %v974_v37, %v12353_v20  ;;  %v4082_v46 = vmax.f32 %v4074_v38, %v12353_v20  ;;  %v1061_v26 = vsel %vm601_vm3, %v1056_v41, %v14815_v3  ;;  %v12569_v36 = vld [vmem:[%s12345_s22 + $0x20] sm:$0xff]  }
  0x31   : > { %v4139_v47 = vmax.f32 %v4131_v40, %v12353_v20  ;;  %v1073_v48 = vsel %vm12324_vm1, %v1061_v26, %v14814_v4  ;;  %vm1170_vm9 = vcmp.lt.s32.totalorder %v12480_v39, 450  ;;  %v4155_v49 = vsel %vm1055_vm8, %v1034_v42, %v14815_v3 }
  0x32   : > { %v870_v50 = vpack.c.bf16 %v12185_v7, %v867_v44  ;;  %v985_v51 = vpack.c.bf16 %v12185_v7, %v982_v45  ;;  %v4085_v52 = vpack.c.bf16 %v12185_v7, %v4082_v46  ;;  %v1081_v53 = vmax.f32 %v1073_v48, %v12353_v20 }
  0x33   : > { %v4142_v55 = vpack.c.bf16 %v12185_v7, %v4139_v47  ;;  %v1171_v56 = vsel %vm1170_vm9, %v1162_v35, %v14815_v3  ;;  %v4160_v57 = vsel %vm601_vm3, %v4155_v49, %v14815_v3  ;;  %v4212_v58 = vsel %vm1170_vm9, %v1149_v43, %v14815_v3 }
  0x34   : > { %v12031_v60 = vld [vmem:[#allocation23] sm:$0xff]   ;;  %872 = vst [vmem:[#allocation23 + $0x8] sm:$0xf] %v870_v50  ;;  %987 = vst [vmem:[#allocation23 + $0xc] sm:$0xf] %v985_v51  ;;  %v1089_v61 = vmax.f32 %v1081_v53, %v12353_v20  ;;  %v1176_v62 = vsel %vm601_vm3, %v1171_v56, %v14815_v3  ;;  %v4176_v63 = vsel %vm12324_vm1, %v4160_v57, %v14814_v4  ;;  %v1277_v15 = vunpack.c.l.bf16 %v12505_v54  ;;  %v10873_v57 = vld [vmem:[%s12359_s25 + $0x20] sm:$0xff]  }
  0x35   : > { %4087 = vst [vmem:[#allocation23 + $0x7c] sm:$0xf] %v4085_v52  ;;  %v4217_v0 = vsel %vm601_vm3, %v4212_v58, %v14815_v3  ;;  %v12032_v2 = vld [vmem:[#allocation23 + $0x74] sm:$0xff]   ;;  %4144 = vst [vmem:[#allocation23 + $0x80] sm:$0xf] %v4142_v55  ;;  %v1188_v6 = vsel %vm12324_vm1, %v1176_v62, %v14814_v4  ;;  %v4180_v11 = vmax.f32 %v12353_v20, %v4176_v63  ;;  %11686 = vmatmul.mubr.msk.bf16.vlgmr.msra.gmra.mrb[0].mxu0 %vm9048_vm7, %v12031_v60 }
  0x36   : > { %v4233_v14 = vsel %vm12324_vm1, %v4217_v0, %v14814_v4  ;;  %v1097_v18 = vmax.f32 %v1089_v61, %v12353_v20  ;;  %v1196_v19 = vmax.f32 %v1188_v6, %v12353_v20  ;;  %v1283_v23 = vstv %s11243_s13  ;;  %11750 = vmatmul.mubr.msk.bf16.vlgmr.msra.gmra.mrb[0].mxu1 %vm9048_vm7, %v12032_v2  ;;  %11810 = vmatpush3.bf16.msra.mxu0 %v12282_v5  ;;  %s11253_s13 = sadd.s32 88, %s12303_s27 }
  0x37   : > { %v4237_v22 = vmax.f32 %v12353_v20, %v4233_v14  ;;  %v4188_v24 = vmax.f32 %v4180_v11, %v12353_v20  ;;  %v12548_v27 = vadd.s32 %v1283_v23, %v12296_v9  ;;  %v1392_v28 = vunpack.c.h.bf16 %v12505_v54  ;;  %11874 = vmatpush3.bf16.msra.mxu1 %v12282_v5  ;;  %11689 = vmatprep.mubr.msk.bf16.mxu0 %vm12186_vm0, %v12185_v7 }
  0x38   : > { %v1398_v29 = vstv %s11245_s18  ;;  %v1100_v30 = vpack.c.bf16 %v12185_v7, %v1097_v18  ;;  %v1204_v31 = vmax.f32 %v1196_v19, %v12353_v20  ;;  %v1264_v33 = vunpack.c.l.bf16 %v12519_v59  ;;  %11753 = vmatprep.mubr.msk.bf16.mxu1 %vm12186_vm0, %v12185_v7  ;;  %11811 = vmatprep.subr.bf16.mxu0 %v12185_v7  ;;  %s11257_s18 = sadd.s32 104, %s12303_s27 }
  0x39   : > { %v4245_v32 = vmax.f32 %v4237_v22, %v12353_v20  ;;  %v4196_v34 = vmax.f32 %v4188_v24, %v12353_v20  ;;  %vm1285_vm10 = vcmp.lt.s32.totalorder %v12548_v27, 450  ;;  %v12565_v5 = vadd.s32 %v1398_v29, %v12296_v9  ;;  %11875 = vmatprep.subr.bf16.mxu1 %v12185_v7 }
  0x3a   : > { %v1379_v35 = vunpack.c.h.bf16 %v12519_v59  ;;  %1102 = vst [vmem:[#allocation23 + $0x10] sm:$0xf] %v1100_v30  ;;  %v1212_v37 = vmax.f32 %v1204_v31, %v12353_v20  ;;  %v1286_v40 = vsel %vm1285_vm10, %v1277_v15, %v14815_v3  ;;  %v4269_v41 = vsel %vm1285_vm10, %v1264_v33, %v14815_v3  ;;  %11812 = vmatpush3.bf16.msra.mxu0 %v12291_v8  ;;  %v10884_v33 = vld [vmem:[%s12345_s22 + $0x28] sm:$0xff]  }
  0x3b   : > { %v4253_v38 = vmax.f32 %v4245_v32, %v12353_v20  ;;  %v12033_v42 = vld [vmem:[#allocation23 + $0x8] sm:$0xff]   ;;  %v4199_v43 = vpack.c.bf16 %v12185_v7, %v4196_v34  ;;  %v1291_v44 = vsel %vm601_vm3, %v1286_v40, %v14815_v3  ;;  %vm1400_vm11 = vcmp.lt.s32.totalorder %v12565_v5, 450  ;;  %11876 = vmatpush3.bf16.msra.mxu1 %v12291_v8 }
  0x3c   : > { %v4274_v45 = vsel %vm601_vm3, %v4269_v41, %v14815_v3  ;;  %v12034_v46 = vld [vmem:[#allocation23 + $0x7c] sm:$0xff]   ;;  %v1215_v26 = vpack.c.bf16 %v12185_v7, %v1212_v37  ;;  %v1303_v48 = vsel %vm12324_vm1, %v1291_v44, %v14814_v4  ;;  %v1401_v49 = vsel %vm1400_vm11, %v1392_v28, %v14815_v3 }
  0x3d   : > { %v4256_v47 = vpack.c.bf16 %v12185_v7, %v4253_v38  ;;  %4201 = vst [vmem:[#allocation23 + $0x84] sm:$0xf] %v4199_v43  ;;  %v1311_v50 = vmax.f32 %v1303_v48, %v12353_v20  ;;  %v1406_v51 = vsel %vm601_vm3, %v1401_v49, %v14815_v3  ;;  %v4290_v52 = vsel %vm12324_vm1, %v4274_v45, %v14814_v4 }
  0x3e   : > { %v4326_v53 = vsel %vm1400_vm11, %v1379_v35, %v14815_v3  ;;  %11690 = vmatmul.mubr.msk.bf16.gmra.mrb[4].mxu0 %vm9048_vm7, %v12033_v42  ;;  %1217 = vst [vmem:[#allocation23 + $0x14] sm:$0xf] %v1215_v26  ;;  %v1418_v8 = vsel %vm12324_vm1, %v1406_v51, %v14814_v4  ;;  %v4294_v54 = vmax.f32 %v12353_v20, %v4290_v52  ;;  %v1507_v56 = vunpack.c.l.bf16 %v12569_v36  ;;  %v10883_v52 = vld [vmem:[%s12359_s25 + $0x28] sm:$0xff]  }
  0x3f   : > { %4258 = vst [vmem:[#allocation23 + $0x88] sm:$0xf] %v4256_v47  ;;  %v4331_v55 = vsel %vm601_vm3, %v4326_v53, %v14815_v3  ;;  %11754 = vmatmul.mubr.msk.bf16.gmra.mrb[4].mxu1 %vm9048_vm7, %v12034_v46  ;;  %11693 = vmatprep.mubr.msk.bf16.mxu0 %vm12186_vm0, %v12185_v7  ;;  %v1319_v58 = vmax.f32 %v1311_v50, %v12353_v20  ;;  %v1513_v61 = vstv %s11247_s10  ;;  %v1622_v2 = vunpack.c.h.bf16 %v12569_v36  ;;  %s11267_s10 = sadd.s32 144, %s12303_s27 }
  0x40   : > { %v1426_v59 = vmax.f32 %v1418_v8, %v12353_v20  ;;  %v4347_v60 = vsel %vm12324_vm1, %v4331_v55, %v14814_v4  ;;  %11757 = vmatprep.mubr.msk.bf16.mxu1 %vm12186_vm0, %v12185_v7  ;;  %v4302_v62 = vmax.f32 %v4294_v54, %v12353_v20  ;;  %v12634_v0 = vadd.s32 %v1513_v61, %v12296_v9 }
  0x41   : > { %v4351_v63 = vmax.f32 %v12353_v20, %v4347_v60  ;;  %v1327_v6 = vmax.f32 %v1319_v58, %v12353_v20  ;;  %v1628_v14 = vstv %s11249_s11  ;;  %v1494_v15 = vunpack.c.l.bf16 %v10873_v57  ;;  %s11269_s11 = sadd.s32 152, %s12303_s27 }
  0x42   : > { %v1434_v11 = vmax.f32 %v1426_v59, %v12353_v20  ;;  %v4310_v18 = vmax.f32 %v4302_v62, %v12353_v20  ;;  %vm1515_vm12 = vcmp.lt.s32.totalorder %v12634_v0, 450  ;;  %v12643_v22 = vadd.s32 %v1628_v14, %v12296_v9 }
  0x43   : > { %v4359_v19 = vmax.f32 %v4351_v63, %v12353_v20  ;;  %v1330_v23 = vpack.c.bf16 %v12185_v7, %v1327_v6  ;;  %v1516_v28 = vsel %vm1515_vm12, %v1507_v56, %v14815_v3  ;;  %v1609_v29 = vunpack.c.h.bf16 %v10873_v57 }
  0x44   : > { %v1442_v24 = vmax.f32 %v1434_v11, %v12353_v20  ;;  %v4313_v30 = vpack.c.bf16 %v12185_v7, %v4310_v18  ;;  %v1521_v32 = vsel %vm601_vm3, %v1516_v28, %v14815_v3  ;;  %vm14799_vm13 = vcmp.lt.s32.totalorder %v12643_v22, 450 }
  0x45   : > { %v4367_v31 = vmax.f32 %v4359_v19, %v12353_v20  ;;  %v12035_v34 = vld [vmem:[#allocation23 + $0x10] sm:$0xff]   ;;  %1332 = vst [vmem:[#allocation23 + $0x18] sm:$0xf] %v1330_v23  ;;  %v1533_v36 = vsel %vm12324_vm1, %v1521_v32, %v14814_v4  ;;  %v1631_v37 = vsel %vm14799_vm13, %v1622_v2, %v14815_v3  ;;  %v4383_v38 = vsel %vm1515_vm12, %v1494_v15, %v14815_v3  ;;  %v12725_v19 = vld [vmem:[%s12345_s22 + $0x30] sm:$0xff]  }
  0x46   : > { %v1445_v35 = vpack.c.bf16 %v12185_v7, %v1442_v24  ;;  %v12036_v40 = vld [vmem:[#allocation23 + $0x84] sm:$0xff]   ;;  %4315 = vst [vmem:[#allocation23 + $0x8c] sm:$0xf] %v4313_v30  ;;  %v1541_v42 = vmax.f32 %v1533_v36, %v12353_v20  ;;  %v1636_v43 = vsel %vm601_vm3, %v1631_v37, %v14815_v3  ;;  %v4388_v44 = vsel %vm601_vm3, %v4383_v38, %v14815_v3 }
  0x47   : > { %v4370_v41 = vpack.c.bf16 %v12185_v7, %v4367_v31  ;;  %11694 = vmatmul.mubr.msk.bf16.gmra.mrb[8].mxu0 %vm9048_vm7, %v12035_v34  ;;  %v1648_v45 = vsel %vm12324_vm1, %v1636_v43, %v14814_v4  ;;  %v4404_v46 = vsel %vm12324_vm1, %v4388_v44, %v14814_v4  ;;  %v4440_v26 = vsel %vm14799_vm13, %v1609_v29, %v14815_v3 }
  0x48   : > { %1447 = vst [vmem:[#allocation23 + $0x1c] sm:$0xf] %v1445_v35  ;;  %v1737_v47 = vunpack.c.l.bf16 %v10884_v33  ;;  %11758 = vmatmul.mubr.msk.bf16.gmra.mrb[8].mxu1 %vm9048_vm7, %v12036_v40  ;;  %11697 = vmatprep.mubr.msk.bf16.mxu0 %vm12186_vm0, %v12185_v7  ;;  %v1549_v48 = vmax.f32 %v1541_v42, %v12353_v20  ;;  %v1656_v49 = vmax.f32 %v1648_v45, %v12353_v20  ;;  %v1743_v51 = vstv %s11251_s12  ;;  %v10893_v45 = vld [vmem:[%s12359_s25 + $0x30] sm:$0xff]   ;;  %s11271_s12 = sadd.s32 160, %s12303_s27 }
  0x49   : > { %4372 = vst [vmem:[#allocation23 + $0x90] sm:$0xf] %v4370_v41  ;;  %v4408_v50 = vmax.f32 %v12353_v20, %v4404_v46  ;;  %11761 = vmatprep.mubr.msk.bf16.mxu1 %vm12186_vm0, %v12185_v7  ;;  %v4445_v53 = vsel %vm601_vm3, %v4440_v26, %v14815_v3  ;;  %v12700_v8 = vadd.s32 %v1743_v51, %v12296_v9  ;;  %v1852_v54 = vunpack.c.h.bf16 %v10884_v33 }
  0x4a   : > { %v1858_v55 = vstv %s11253_s13  ;;  %v1557_v56 = vmax.f32 %v1549_v48, %v12353_v20  ;;  %v1664_v57 = vmax.f32 %v1656_v49, %v12353_v20  ;;  %v4461_v59 = vsel %vm12324_vm1, %v4445_v53, %v14814_v4  ;;  %s11273_s13 = sadd.s32 168, %s12303_s27 }
  0x4b   : > { %v4416_v58 = vmax.f32 %v4408_v50, %v12353_v20  ;;  %v4465_v60 = vmax.f32 %v12353_v20, %v4461_v59  ;;  %vm14782_vm14 = vcmp.lt.s32.totalorder %v12700_v8, 450  ;;  %v12711_v61 = vadd.s32 %v1858_v55, %v12296_v9 }
  0x4c   : > { %v1724_v62 = vunpack.c.l.bf16 %v10883_v52  ;;  %v1560_v63 = vpack.c.bf16 %v12185_v7, %v1557_v56  ;;  %v1672_v2 = vmax.f32 %v1664_v57, %v12353_v20  ;;  %v1746_v11 = vsel %vm14782_vm14, %v1737_v47, %v14815_v3 }
  0x4d   : > { %v4424_v6 = vmax.f32 %v4416_v58, %v12353_v20  ;;  %v4473_v14 = vmax.f32 %v4465_v60, %v12353_v20  ;;  %v1751_v15 = vsel %vm601_vm3, %v1746_v11, %v14815_v3  ;;  %vm14781_vm15 = vcmp.lt.s32.totalorder %v12711_v61, 450 }
  0x4e   : > { %v1839_v18 = vunpack.c.h.bf16 %v10883_v52  ;;  %1562 = vst [vmem:[#allocation23 + $0x20] sm:$0xf] %v1560_v63  ;;  %v1675_v24 = vpack.c.bf16 %v12185_v7, %v1672_v2  ;;  %v1763_v29 = vsel %vm12324_vm1, %v1751_v15, %v14814_v4  ;;  %v1861_v30 = vsel %vm14781_vm15, %v1852_v54, %v14815_v3 }
  0x4f   : > { %v12037_v23 = vld [vmem:[#allocation23 + $0x18] sm:$0xff]   ;;  %v4427_v28 = vpack.c.bf16 %v12185_v7, %v4424_v6  ;;  %v4481_v32 = vmax.f32 %v4473_v14, %v12353_v20  ;;  %v1771_v33 = vmax.f32 %v1763_v29, %v12353_v20  ;;  %v1866_v34 = vsel %vm601_vm3, %v1861_v30, %v14815_v3 }
  0x50   : > { %v12038_v31 = vld [vmem:[#allocation23 + $0x8c] sm:$0xff]   ;;  %v4497_v35 = vsel %vm14782_vm14, %v1724_v62, %v14815_v3  ;;  %11698 = vmatmul.mubr.msk.bf16.gmra.mrb[12].mxu0 %vm9048_vm7, %v12037_v23  ;;  %1677 = vst [vmem:[#allocation23 + $0x24] sm:$0xf] %v1675_v24  ;;  %v1878_v36 = vsel %vm12324_vm1, %v1866_v34, %v14814_v4  ;;  %v4554_v38 = vsel %vm14781_vm15, %v1839_v18, %v14815_v3  ;;  %v1967_v40 = vunpack.c.l.bf16 %v12725_v19 }
  0x51   : > { %4429 = vst [vmem:[#allocation23 + $0x94] sm:$0xf] %v4427_v28  ;;  %v4502_v37 = vsel %vm601_vm3, %v4497_v35, %v14815_v3  ;;  %11762 = vmatmul.mubr.msk.bf16.gmra.mrb[12].mxu1 %vm9048_vm7, %v12038_v31  ;;  %11701 = vmatprep.mubr.msk.bf16.mxu0 %vm12186_vm0, %v12185_v7  ;;  %v4484_v41 = vpack.c.bf16 %v12185_v7, %v4481_v32  ;;  %v1973_v44 = vstv %s11255_s17  ;;  %v2082_v48 = vunpack.c.h.bf16 %v12725_v19  ;;  %v10904_v28 = vld [vmem:[%s12345_s22 + $0x38] sm:$0xff]   ;;  %s11275_s17 = sadd.s32 176, %s12303_s27 }
  0x52   : > { %v1779_v42 = vmax.f32 %v1771_v33, %v12353_v20  ;;  %v1886_v43 = vmax.f32 %v1878_v36, %v12353_v20  ;;  %11765 = vmatprep.mubr.msk.bf16.mxu1 %vm12186_vm0, %v12185_v7  ;;  %v4518_v46 = vsel %vm12324_vm1, %v4502_v37, %v14814_v4  ;;  %v4559_v26 = vsel %vm601_vm3, %v4554_v38, %v14815_v3 }
  0x53   : > { %v12772_v47 = vadd.s32 %v1973_v44, %v12296_v9  ;;  %4486 = vst [vmem:[#allocation23 + $0x98] sm:$0xf] %v4484_v41  ;;  %v4522_v51 = vmax.f32 %v12353_v20, %v4518_v46  ;;  %v4575_v52 = vsel %vm12324_vm1, %v4559_v26, %v14814_v4  ;;  %v2088_v54 = vstv %s11257_s18  ;;  %v10903_v26 = vld [vmem:[%s12359_s25 + $0x38] sm:$0xff]   ;;  %s11277_s18 = sadd.s32 184, %s12303_s27 }
  0x54   : > { %v1787_v49 = vmax.f32 %v1779_v42, %v12353_v20  ;;  %v1894_v50 = vmax.f32 %v1886_v43, %v12353_v20  ;;  %v4579_v53 = vmax.f32 %v12353_v20, %v4575_v52  ;;  %v1954_v55 = vunpack.c.l.bf16 %v10893_v45 }
  0x55   : > { %vm14784_vm15 = vcmp.lt.s32.totalorder %v12772_v47, 450  ;;  %v4530_v58 = vmax.f32 %v4522_v51, %v12353_v20  ;;  %v12794_v63 = vadd.s32 %v2088_v54, %v12296_v9  ;;  %v2069_v2 = vunpack.c.h.bf16 %v10893_v45 }
  0x56   : > { %v1790_v56 = vpack.c.bf16 %v12185_v7, %v1787_v49  ;;  %v1902_v57 = vmax.f32 %v1894_v50, %v12353_v20  ;;  %v1976_v59 = vsel %vm14784_vm15, %v1967_v40, %v14815_v3  ;;  %v4587_v60 = vmax.f32 %v4579_v53, %v12353_v20 }
  0x57   : > { %v1981_v62 = vsel %vm601_vm3, %v1976_v59, %v14815_v3  ;;  %v12039_v6 = vld [vmem:[#allocation23 + $0x20] sm:$0xff]   ;;  %v4538_v14 = vmax.f32 %v4530_v58, %v12353_v20  ;;  %v4611_v18 = vsel %vm14784_vm15, %v1954_v55, %v14815_v3  ;;  %vm14783_vm14 = vcmp.lt.s32.totalorder %v12794_v63, 450 }
  0x58   : > { %1792 = vst [vmem:[#allocation23 + $0x28] sm:$0xf] %v1790_v56  ;;  %v1905_v11 = vpack.c.bf16 %v12185_v7, %v1902_v57  ;;  %v1993_v15 = vsel %vm12324_vm1, %v1981_v62, %v14814_v4  ;;  %v4595_v19 = vmax.f32 %v4587_v60, %v12353_v20  ;;  %v4616_v24 = vsel %vm601_vm3, %v4611_v18, %v14815_v3  ;;  %v10914_v18 = vld [vmem:[%s12345_s22 + $0x40] sm:$0xff]  }
  0x59   : > { %v2001_v23 = vmax.f32 %v1993_v15, %v12353_v20  ;;  %11702 = vmatmul.mubr.msk.bf16.gmra.mrb[16].mxu0 %vm9048_vm7, %v12039_v6  ;;  %v4541_v29 = vpack.c.bf16 %v12185_v7, %v4538_v14  ;;  %v2091_v30 = vsel %vm14783_vm14, %v2082_v48, %v14815_v3  ;;  %v4632_v31 = vsel %vm12324_vm1, %v4616_v24, %v14814_v4 }
  0x5a   : > { %1907 = vst [vmem:[#allocation23 + $0x2c] sm:$0xf] %v1905_v11  ;;  %v4668_v32 = vsel %vm14783_vm14, %v2069_v2, %v14815_v3  ;;  %v12040_v33 = vld [vmem:[#allocation23 + $0x94] sm:$0xff]   ;;  %11705 = vmatprep.mubr.msk.bf16.mxu0 %vm12186_vm0, %v12185_v7  ;;  %v4598_v34 = vpack.c.bf16 %v12185_v7, %v4595_v19  ;;  %v2096_v36 = vsel %vm601_vm3, %v2091_v30, %v14815_v3  ;;  %v2197_v41 = vunpack.c.l.bf16 %v10904_v28 }
  0x5b   : > { %v2009_v35 = vmax.f32 %v2001_v23, %v12353_v20  ;;  %v4636_v37 = vmax.f32 %v12353_v20, %v4632_v31  ;;  %4543 = vst [vmem:[#allocation23 + $0x9c] sm:$0xf] %v4541_v29  ;;  %v2108_v38 = vsel %vm12324_vm1, %v2096_v36, %v14814_v4  ;;  %v4673_v40 = vsel %vm601_vm3, %v4668_v32, %v14815_v3 }
  0x5c   : > { %v2203_v42 = vstv %s11259_s19  ;;  %11766 = vmatmul.mubr.msk.bf16.gmra.mrb[16].mxu1 %vm9048_vm7, %v12040_v33  ;;  %4600 = vst [vmem:[#allocation23 + $0xa0] sm:$0xf] %v4598_v34  ;;  %v2116_v44 = vmax.f32 %v2108_v38, %v12353_v20  ;;  %v4689_v46 = vsel %vm12324_vm1, %v4673_v40, %v14814_v4  ;;  %v2312_v50 = vunpack.c.h.bf16 %v10904_v28  ;;  %v10913_v38 = vld [vmem:[%s12359_s25 + $0x40] sm:$0xff]   ;;  %s11279_s19 = sadd.s32 192, %s12303_s27 }
  0x5d   : > { %v2017_v43 = vmax.f32 %v2009_v35, %v12353_v20  ;;  %v4644_v45 = vmax.f32 %v4636_v37, %v12353_v20  ;;  %11769 = vmatprep.mubr.msk.bf16.mxu1 %vm12186_vm0, %v12185_v7  ;;  %v4693_v48 = vmax.f32 %v12353_v20, %v4689_v46  ;;  %v12850_v49 = vadd.s32 %v2203_v42, %v12296_v9 }
  0x5e   : > { %v2318_v51 = vstv %s11261_s23  ;;  %v2124_v53 = vmax.f32 %v2116_v44, %v12353_v20  ;;  %v2184_v57 = vunpack.c.l.bf16 %v10903_v26  ;;  %v2299_v58 = vunpack.c.h.bf16 %v10903_v26  ;;  %s11281_s23 = sadd.s32 200, %s12303_s27 }
  0x5f   : > { %v2020_v52 = vpack.c.bf16 %v12185_v7, %v2017_v43  ;;  %v4652_v54 = vmax.f32 %v4644_v45, %v12353_v20  ;;  %v12856_v55 = vadd.s32 %v2318_v51, %v12296_v9  ;;  %v4701_v56 = vmax.f32 %v4693_v48, %v12353_v20 }
  0x60   : > { %vm14786_vm14 = vcmp.lt.s32.totalorder %v12850_v49, 450  ;;  %v2132_v60 = vmax.f32 %v2124_v53, %v12353_v20  ;;  %v2427_v37 = vunpack.c.l.bf16 %v10914_v18  ;;  %v2433_v42 = vstv %s11263_s24  ;;  %s11283_s24 = sadd.s32 208, %s12303_s27 }
  0x61   : > { %v12041_v59 = vld [vmem:[#allocation23 + $0x28] sm:$0xff]   ;;  %2022 = vst [vmem:[#allocation23 + $0x30] sm:$0xf] %v2020_v52  ;;  %v4655_v62 = vpack.c.bf16 %v12185_v7, %v4652_v54  ;;  %v2206_v2 = vsel %vm14786_vm14, %v2197_v41, %v14815_v3  ;;  %vm14785_vm15 = vcmp.lt.s32.totalorder %v12856_v55, 450  ;;  %v4709_v6 = vmax.f32 %v4701_v56, %v12353_v20 }
  0x62   : > { %v2211_v11 = vsel %vm601_vm3, %v2206_v2, %v14815_v3  ;;  %v2321_v14 = vsel %vm14785_vm15, %v2312_v50, %v14815_v3  ;;  %v4725_v15 = vsel %vm14786_vm14, %v2184_v57, %v14815_v3  ;;  %11706 = vmatmul.mubr.msk.bf16.gmra.mrb[20].mxu0 %vm9048_vm7, %v12041_v59  ;;  %v2135_v19 = vpack.c.bf16 %v12185_v7, %v2132_v60 }
  0x63   : > { %4657 = vst [vmem:[#allocation23 + $0xa4] sm:$0xf] %v4655_v62  ;;  %v2223_v23 = vsel %vm12324_vm1, %v2211_v11, %v14814_v4  ;;  %v2326_v24 = vsel %vm601_vm3, %v2321_v14, %v14815_v3  ;;  %v4730_v28 = vsel %vm601_vm3, %v4725_v15, %v14815_v3  ;;  %v12042_v29 = vld [vmem:[#allocation23 + $0x9c] sm:$0xff]   ;;  %11709 = vmatprep.mubr.msk.bf16.mxu0 %vm12186_vm0, %v12185_v7  ;;  %v2542_v43 = vunpack.c.h.bf16 %v10914_v18 }
  0x64   : > { %v4712_v30 = vpack.c.bf16 %v12185_v7, %v4709_v6  ;;  %v2231_v31 = vmax.f32 %v2223_v23, %v12353_v20  ;;  %v2338_v32 = vsel %vm12324_vm1, %v2326_v24, %v14814_v4  ;;  %v4746_v33 = vsel %vm12324_vm1, %v4730_v28, %v14814_v4  ;;  %2137 = vst [vmem:[#allocation23 + $0x34] sm:$0xf] %v2135_v19  ;;  %v12951_v23 = vld [vmem:[%s12345_s22 + $0x48] sm:$0xff]  }
  0x65   : > { %v2346_v34 = vmax.f32 %v2338_v32, %v12353_v20  ;;  %v4750_v35 = vmax.f32 %v12353_v20, %v4746_v33  ;;  %v4782_v36 = vsel %vm14785_vm15, %v2299_v58, %v14815_v3  ;;  %11770 = vmatmul.mubr.msk.bf16.gmra.mrb[20].mxu1 %vm9048_vm7, %v12042_v29  ;;  %v12919_v26 = vadd.s32 %v2433_v42, %v12296_v9 }
  0x66   : > { %4714 = vst [vmem:[#allocation23 + $0xa8] sm:$0xf] %v4712_v30  ;;  %v2239_v40 = vmax.f32 %v2231_v31, %v12353_v20  ;;  %v4787_v41 = vsel %vm601_vm3, %v4782_v36, %v14815_v3  ;;  %11773 = vmatprep.mubr.msk.bf16.mxu1 %vm12186_vm0, %v12185_v7  ;;  %v2548_v51 = vstv %s11265_s28  ;;  %v2414_v52 = vunpack.c.l.bf16 %v10913_v38  ;;  %s11285_s28 = sadd.s32 216, %s12303_s27 }
  0x67   : > { %v2354_v44 = vmax.f32 %v2346_v34, %v12353_v20  ;;  %v4758_v45 = vmax.f32 %v4750_v35, %v12353_v20  ;;  %v4803_v46 = vsel %vm12324_vm1, %v4787_v41, %v14814_v4  ;;  %vm14788_vm15 = vcmp.lt.s32.totalorder %v12919_v26, 450  ;;  %v10923_v41 = vld [vmem:[%s12359_s25 + $0x48] sm:$0xff]  }
  0x68   : > { %v2247_v48 = vmax.f32 %v2239_v40, %v12353_v20  ;;  %v4807_v50 = vmax.f32 %v12353_v20, %v4803_v46  ;;  %v12927_v56 = vadd.s32 %v2548_v51, %v12296_v9  ;;  %v2436_v59 = vsel %vm14788_vm15, %v2427_v37, %v14815_v3 }
  0x69   : > { %v2362_v53 = vmax.f32 %v2354_v44, %v12353_v20  ;;  %v4766_v54 = vmax.f32 %v4758_v45, %v12353_v20  ;;  %v2529_v60 = vunpack.c.h.bf16 %v10913_v38  ;;  %v2441_v6 = vsel %vm601_vm3, %v2436_v59, %v14815_v3 }
  0x6a   : > { %v2250_v57 = vpack.c.bf16 %v12185_v7, %v2247_v48  ;;  %v4815_v58 = vmax.f32 %v4807_v50, %v12353_v20  ;;  %vm14787_vm14 = vcmp.lt.s32.totalorder %v12927_v56, 450  ;;  %v2453_v15 = vsel %vm12324_vm1, %v2441_v6, %v14814_v4 }
  0x6b   : > { %v2365_v62 = vpack.c.bf16 %v12185_v7, %v2362_v53  ;;  %v4769_v2 = vpack.c.bf16 %v12185_v7, %v4766_v54  ;;  %v12043_v11 = vld [vmem:[#allocation23 + $0x30] sm:$0xff]   ;;  %v2551_v18 = vsel %vm14787_vm14, %v2542_v43, %v14815_v3  ;;  %v4839_v19 = vsel %vm14788_vm15, %v2414_v52, %v14815_v3  ;;  %v12995_v52 = vld [vmem:[%s12345_s22 + $0x50] sm:$0xff]  }
  0x6c   : > { %2252 = vst [vmem:[#allocation23 + $0x38] sm:$0xf] %v2250_v57  ;;  %v4823_v14 = vmax.f32 %v4815_v58, %v12353_v20  ;;  %v2461_v28 = vmax.f32 %v2453_v15, %v12353_v20  ;;  %v2556_v29 = vsel %vm601_vm3, %v2551_v18, %v14815_v3  ;;  %v4844_v30 = vsel %vm601_vm3, %v4839_v19, %v14815_v3 }
  0x6d   : > { %v12044_v24 = vld [vmem:[#allocation23 + $0xa4] sm:$0xff]   ;;  %2367 = vst [vmem:[#allocation23 + $0x3c] sm:$0xf] %v2365_v62  ;;  %4771 = vst [vmem:[#allocation23 + $0xac] sm:$0xf] %v4769_v2  ;;  %v4896_v31 = vsel %vm14787_vm14, %v2529_v60, %v14815_v3  ;;  %11710 = vmatmul.mubr.msk.bf16.gmra.mrb[24].mxu0 %vm9048_vm7, %v12043_v11  ;;  %v2568_v33 = vsel %vm12324_vm1, %v2556_v29, %v14814_v4  ;;  %v4860_v34 = vsel %vm12324_vm1, %v4844_v30, %v14814_v4 }
  0x6e   : > { %v4826_v32 = vpack.c.bf16 %v12185_v7, %v4823_v14  ;;  %v4901_v35 = vsel %vm601_vm3, %v4896_v31, %v14815_v3  ;;  %11774 = vmatmul.mubr.msk.bf16.gmra.mrb[24].mxu1 %vm9048_vm7, %v12044_v24  ;;  %11713 = vmatprep.mubr.msk.bf16.mxu0 %vm12186_vm0, %v12185_v7  ;;  %v2469_v36 = vmax.f32 %v2461_v28, %v12353_v20  ;;  %v2657_v40 = vunpack.c.l.bf16 %v12951_v23 }
  0x6f   : > { %v2576_v37 = vmax.f32 %v2568_v33, %v12353_v20  ;;  %v4864_v38 = vmax.f32 %v12353_v20, %v4860_v34  ;;  %11777 = vmatprep.mubr.msk.bf16.mxu1 %vm12186_vm0, %v12185_v7  ;;  %v4917_v42 = vsel %vm12324_vm1, %v4901_v35, %v14814_v4  ;;  %v2663_v43 = vstv %s11267_s10 }
  0x70   : > { %4828 = vst [vmem:[#allocation23 + $0xb0] sm:$0xf] %v4826_v32  ;;  %v2772_v44 = vunpack.c.h.bf16 %v12951_v23  ;;  %v2778_v45 = vstv %s11269_s11  ;;  %v2477_v46 = vmax.f32 %v2469_v36, %v12353_v20  ;;  %v4921_v51 = vmax.f32 %v12353_v20, %v4917_v42 }
  0x71   : > { %v2584_v48 = vmax.f32 %v2576_v37, %v12353_v20  ;;  %v4872_v50 = vmax.f32 %v4864_v38, %v12353_v20  ;;  %v12999_v53 = vadd.s32 %v2663_v43, %v12296_v9  ;;  %v13002_v54 = vadd.s32 %v2778_v45, %v12296_v9 }
  0x72   : > { %v2644_v57 = vunpack.c.l.bf16 %v10923_v41  ;;  %v2759_v58 = vunpack.c.h.bf16 %v10923_v41  ;;  %v2480_v59 = vpack.c.bf16 %v12185_v7, %v2477_v46  ;;  %v4929_v2 = vmax.f32 %v4921_v51, %v12353_v20 }
  0x73   : > { %v2592_v60 = vmax.f32 %v2584_v48, %v12353_v20  ;;  %v4880_v62 = vmax.f32 %v4872_v50, %v12353_v20  ;;  %vm14789_vm14 = vcmp.lt.s32.totalorder %v12999_v53, 450  ;;  %v2887_v11 = vunpack.c.l.bf16 %v12995_v52  ;;  %v10933_v50 = vld [vmem:[%s12359_s25 + $0x50] sm:$0xff]  }
  0x74   : > { %v12045_v6 = vld [vmem:[#allocation23 + $0x38] sm:$0xff]   ;;  %v2893_v14 = vstv %s11271_s12  ;;  %v3002_v15 = vunpack.c.h.bf16 %v12995_v52  ;;  %2482 = vst [vmem:[#allocation23 + $0x40] sm:$0xf] %v2480_v59  ;;  %v4937_v23 = vmax.f32 %v4929_v2, %v12353_v20  ;;  %v2666_v24 = vsel %vm14789_vm14, %v2657_v40, %v14815_v3  ;;  %s13290_s12 = scalar_lea.vmem %s14773_s2, %s12338_s14 }
  0x75   : > { %v2595_v18 = vpack.c.bf16 %v12185_v7, %v2592_v60  ;;  %v4883_v19 = vpack.c.bf16 %v12185_v7, %v4880_v62  ;;  %11714 = vmatmul.mubr.msk.bf16.gmra.mrb[28].mxu0 %vm9048_vm7, %v12045_v6  ;;  %v2671_v28 = vsel %vm601_vm3, %v2666_v24, %v14815_v3  ;;  %vm14790_vm15 = vcmp.lt.s32.totalorder %v13002_v54, 450 }
  0x76   : > { %v4953_v29 = vsel %vm14789_vm14, %v2644_v57, %v14815_v3  ;;  %v13026_v30 = vadd.s32 %v2893_v14, %v12296_v9  ;;  %11717 = vmatprep.mubr.msk.bf16.mxu0 %vm12186_vm0, %v12185_v7  ;;  %v4940_v32 = vpack.c.bf16 %v12185_v7, %v4937_v23  ;;  %v2683_v33 = vsel %vm12324_vm1, %v2671_v28, %v14814_v4 }
  0x77   : > { %v12046_v31 = vld [vmem:[#allocation23 + $0xac] sm:$0xff]   ;;  %2597 = vst [vmem:[#allocation23 + $0x44] sm:$0xf] %v2595_v18  ;;  %4885 = vst [vmem:[#allocation23 + $0xb4] sm:$0xf] %v4883_v19  ;;  %v2781_v34 = vsel %vm14790_vm15, %v2772_v44, %v14815_v3  ;;  %v4958_v35 = vsel %vm601_vm3, %v4953_v29, %v14815_v3  ;;  %v2691_v36 = vmax.f32 %v2683_v33, %v12353_v20  ;;  %v2874_v18 = vunpack.c.l.bf16 %v10933_v50 }
  0x78   : > { %v2786_v37 = vsel %vm601_vm3, %v2781_v34, %v14815_v3  ;;  %v4974_v38 = vsel %vm12324_vm1, %v4958_v35, %v14814_v4  ;;  %v5010_v40 = vsel %vm14790_vm15, %v2759_v58, %v14815_v3  ;;  %11778 = vmatmul.mubr.msk.bf16.gmra.mrb[28].mxu1 %vm9048_vm7, %v12046_v31  ;;  %4942 = vst [vmem:[#allocation23 + $0xb8] sm:$0xf] %v4940_v32  ;;  %vm14792_vm14 = vcmp.lt.s32.totalorder %v13026_v30, 450  ;;  %v10944_v34 = vld [vmem:[%s12345_s22 + $0x58] sm:$0xff]  }
  0x79   : > { %v2798_v41 = vsel %vm12324_vm1, %v2786_v37, %v14814_v4  ;;  %v4978_v42 = vmax.f32 %v12353_v20, %v4974_v38  ;;  %v5015_v43 = vsel %vm601_vm3, %v5010_v40, %v14815_v3  ;;  %11781 = vmatprep.mubr.msk.bf16.mxu1 %vm12186_vm0, %v12185_v7  ;;  %v2699_v44 = vmax.f32 %v2691_v36, %v12353_v20 }
  0x7a   : > { %v2806_v45 = vmax.f32 %v2798_v41, %v12353_v20  ;;  %v5031_v46 = vsel %vm12324_vm1, %v5015_v43, %v14814_v4  ;;  %v2896_v48 = vsel %vm14792_vm14, %v2887_v11, %v14815_v3  ;;  %v3008_v58 = vstv %s11273_s13  ;;  %s3769_s13 = sor.u32 4294967293, %s12463_s29 }
  0x7b   : > { %v4986_v51 = vmax.f32 %v4978_v42, %v12353_v20  ;;  %v5035_v52 = vmax.f32 %v12353_v20, %v5031_v46  ;;  %v2901_v57 = vsel %vm601_vm3, %v2896_v48, %v14815_v3  ;;  %v2707_v59 = vmax.f32 %v2699_v44, %v12353_v20 }
  0x7c   : > { %v2814_v60 = vmax.f32 %v2806_v45, %v12353_v20  ;;  %v2913_v62 = vsel %vm12324_vm1, %v2901_v57, %v14814_v4  ;;  %v13082_v2 = vadd.s32 %v3008_v58, %v12296_v9  ;;  %v2989_v28 = vunpack.c.h.bf16 %v10933_v50  ;;  %v10943_v50 = vld [vmem:[%s12359_s25 + $0x58] sm:$0xff]  }
  0x7d   : > { %v4994_v6 = vmax.f32 %v4986_v51, %v12353_v20  ;;  %v5043_v11 = vmax.f32 %v5035_v52, %v12353_v20  ;;  %v2921_v14 = vmax.f32 %v2913_v62, %v12353_v20  ;;  %v2710_v23 = vpack.c.bf16 %v12185_v7, %v2707_v59 }
  0x7e   : > { %v12047_v19 = vld [vmem:[#allocation23 + $0x40] sm:$0xff]   ;;  %v2822_v24 = vmax.f32 %v2814_v60, %v12353_v20  ;;  %vm14791_vm15 = vcmp.lt.s32.totalorder %v13082_v2, 450  ;;  %v5067_v38 = vsel %vm14792_vm14, %v2874_v18, %v14815_v3  ;;  %v3117_v48 = vunpack.c.l.bf16 %v10944_v34 }
  0x7f   : > { %v4997_v29 = vpack.c.bf16 %v12185_v7, %v4994_v6  ;;  %v5051_v31 = vmax.f32 %v5043_v11, %v12353_v20  ;;  %v2929_v32 = vmax.f32 %v2921_v14, %v12353_v20  ;;  %v3011_v33 = vsel %vm14791_vm15, %v3002_v15, %v14815_v3  ;;  %11718 = vmatmul.mubr.msk.bf16.gmra.mrb[32].mxu0 %vm9048_vm7, %v12047_v19  ;;  %v12048_v35 = vld [vmem:[#allocation23 + $0xb4] sm:$0xff]   ;;  %v13142_v11 = vld [vmem:[%s12345_s22 + $0x60] sm:$0xff]  }
  0x80   : > { %2712 = vst [vmem:[#allocation23 + $0x48] sm:$0xf] %v2710_v23  ;;  %v2825_v36 = vpack.c.bf16 %v12185_v7, %v2822_v24  ;;  %v3016_v37 = vsel %vm601_vm3, %v3011_v33, %v14815_v3  ;;  %v5124_v15 = vsel %vm14791_vm15, %v2989_v28, %v14815_v3  ;;  %11721 = vmatprep.mubr.msk.bf16.mxu0 %vm12186_vm0, %v12185_v7  ;;  %v3123_v58 = vstv %s11275_s17 }
  0x81   : > { %4999 = vst [vmem:[#allocation23 + $0xbc] sm:$0xf] %v4997_v29  ;;  %v5054_v40 = vpack.c.bf16 %v12185_v7, %v5051_v31  ;;  %v2937_v41 = vmax.f32 %v2929_v32, %v12353_v20  ;;  %v3028_v42 = vsel %vm12324_vm1, %v3016_v37, %v14814_v4  ;;  %v5072_v43 = vsel %vm601_vm3, %v5067_v38, %v14815_v3 }
  0x82   : > { %11782 = vmatmul.mubr.msk.bf16.gmra.mrb[32].mxu1 %vm9048_vm7, %v12048_v35  ;;  %2827 = vst [vmem:[#allocation23 + $0x4c] sm:$0xf] %v2825_v36  ;;  %v3036_v44 = vmax.f32 %v3028_v42, %v12353_v20  ;;  %v5088_v45 = vsel %vm12324_vm1, %v5072_v43, %v14814_v4  ;;  %v5129_v46 = vsel %vm601_vm3, %v5124_v15, %v14815_v3  ;;  %v3232_v6 = vunpack.c.h.bf16 %v10944_v34 }
  0x83   : > { %11785 = vmatprep.mubr.msk.bf16.mxu1 %vm12186_vm0, %v12185_v7  ;;  %5056 = vst [vmem:[#allocation23 + $0xc0] sm:$0xf] %v5054_v40  ;;  %v2940_v51 = vpack.c.bf16 %v12185_v7, %v2937_v41  ;;  %v5092_v52 = vmax.f32 %v12353_v20, %v5088_v45  ;;  %v5145_v57 = vsel %vm12324_vm1, %v5129_v46, %v14814_v4  ;;  %v3238_v18 = vstv %s11277_s18 }
  0x84   : > { %v3044_v59 = vmax.f32 %v3036_v44, %v12353_v20  ;;  %v5149_v60 = vmax.f32 %v12353_v20, %v5145_v57  ;;  %v13139_v62 = vadd.s32 %v3123_v58, %v12296_v9  ;;  %v3104_v19 = vunpack.c.l.bf16 %v10943_v50 }
  0x85   : > { %2942 = vst [vmem:[#allocation23 + $0x50] sm:$0xf] %v2940_v51  ;;  %v5100_v14 = vmax.f32 %v5092_v52, %v12353_v20  ;;  %v3219_v23 = vunpack.c.h.bf16 %v10943_v50  ;;  %v13149_v29 = vadd.s32 %v3238_v18, %v12296_v9  ;;  %v3347_v34 = vunpack.c.l.bf16 %v13142_v11 }
  0x86   : > { %v3052_v24 = vmax.f32 %v3044_v59, %v12353_v20  ;;  %v5157_v28 = vmax.f32 %v5149_v60, %v12353_v20  ;;  %vm14794_vm15 = vcmp.lt.s32.totalorder %v13139_v62, 450  ;;  %v3353_v57 = vstv %s11279_s19  ;;  %s13329_s19 = scalar_lea.vmem %s14775_s4, %s12338_s14  ;;  %s11287_s14 = sadd.s32 224, %s12303_s27 }
  0x87   : > { %v5108_v31 = vmax.f32 %v5100_v14, %v12353_v20  ;;  %v3126_v32 = vsel %vm14794_vm15, %v3117_v48, %v14815_v3  ;;  %v5181_v33 = vsel %vm14794_vm15, %v3104_v19, %v14815_v3  ;;  %vm14793_vm14 = vcmp.lt.s32.totalorder %v13149_v29, 450  ;;  %v10953_v14 = vld [vmem:[%s12359_s25 + $0x60] sm:$0xff]   ;;  %s3807_s27 = sor.u32 4294967294, %s12463_s29 }
  0x88   : > { %v3055_v35 = vpack.c.bf16 %v12185_v7, %v3052_v24  ;;  %v5165_v36 = vmax.f32 %v5157_v28, %v12353_v20  ;;  %v3131_v37 = vsel %vm601_vm3, %v3126_v32, %v14815_v3  ;;  %v3241_v41 = vsel %vm14793_vm14, %v3232_v6, %v14815_v3 }
  0x89   : > { %v12049_v38 = vld [vmem:[#allocation23 + $0x48] sm:$0xff]   ;;  %v5111_v15 = vpack.c.bf16 %v12185_v7, %v5108_v31  ;;  %v3143_v40 = vsel %vm12324_vm1, %v3131_v37, %v14814_v4  ;;  %v5186_v42 = vsel %vm601_vm3, %v5181_v33, %v14815_v3  ;;  %v3246_v46 = vsel %vm601_vm3, %v3241_v41, %v14815_v3 }
  0x8a   : > { %v12050_v43 = vld [vmem:[#allocation23 + $0xbc] sm:$0xff]   ;;  %3057 = vst [vmem:[#allocation23 + $0x54] sm:$0xf] %v3055_v35  ;;  %v5168_v44 = vpack.c.bf16 %v12185_v7, %v5165_v36  ;;  %v3151_v45 = vmax.f32 %v3143_v40, %v12353_v20  ;;  %v5202_v48 = vsel %vm12324_vm1, %v5186_v42, %v14814_v4  ;;  %11722 = vmatmul.mubr.msk.bf16.gmra.mrb[36].mxu0 %vm9048_vm7, %v12049_v38  ;;  %v3462_v6 = vunpack.c.h.bf16 %v13142_v11 }
  0x8b   : > { %5113 = vst [vmem:[#allocation23 + $0xc4] sm:$0xf] %v5111_v15  ;;  %v3258_v50 = vsel %vm12324_vm1, %v3246_v46, %v14814_v4  ;;  %v5206_v51 = vmax.f32 %v12353_v20, %v5202_v48  ;;  %v5238_v52 = vsel %vm14793_vm14, %v3219_v23, %v14815_v3  ;;  %11786 = vmatmul.mubr.msk.bf16.gmra.mrb[36].mxu1 %vm9048_vm7, %v12050_v43  ;;  %v3468_v24 = vstv %s11281_s23  ;;  %s10453_s23 = ssub.s32 (%p12275_p4), 57, %s12294_s26 }
  0x8c   : > { %11725 = vmatprep.mubr.msk.bf16.mxu0 %vm12186_vm0, %v12185_v7  ;;  %5170 = vst [vmem:[#allocation23 + $0xc8] sm:$0xf] %v5168_v44  ;;  %v3159_v58 = vmax.f32 %v3151_v45, %v12353_v20  ;;  %v3266_v59 = vmax.f32 %v3258_v50, %v12353_v20  ;;  %v5243_v60 = vsel %vm601_vm3, %v5238_v52, %v14815_v3  ;;  %v3334_v35 = vunpack.c.l.bf16 %v10953_v14  ;;  %p10454_p9 = scmp.lt.s32.totalorder (%p12275_p4), %s10453_s23, 29 }
  0x8d   : > { %11789 = vmatprep.mubr.msk.bf16.mxu1 %vm12186_vm0, %v12185_v7  ;;  %v5214_v18 = vmax.f32 %v5206_v51, %v12353_v20  ;;  %v5259_v19 = vsel %vm12324_vm1, %v5243_v60, %v14814_v4  ;;  %v13210_v23 = vadd.s32 %v3353_v57, %v12296_v9  ;;  %v13216_v32 = vadd.s32 %v3468_v24, %v12296_v9 }
  0x8e   : > { %v3167_v28 = vmax.f32 %v3159_v58, %v12353_v20  ;;  %v3274_v31 = vmax.f32 %v3266_v59, %v12353_v20  ;;  %v5263_v11 = vmax.f32 %v12353_v20, %v5259_v19  ;;  %v3449_v36 = vunpack.c.h.bf16 %v10953_v14  ;;  %v10964_v59 = vld [vmem:[%s12345_s22 + $0x68] sm:$0xff]  }
  0x8f   : > { %v5222_v33 = vmax.f32 %v5214_v18, %v12353_v20  ;;  %vm14798_vm14 = vcmp.lt.s32.totalorder %v13210_v23, 450  ;;  %vm14795_vm15 = vcmp.lt.s32.totalorder %v13216_v32, 450 }
  0x90   : > { %v3170_v37 = vpack.c.bf16 %v12185_v7, %v3167_v28  ;;  %v3282_v38 = vmax.f32 %v3274_v31, %v12353_v20  ;;  %v5271_v15 = vmax.f32 %v5263_v11, %v12353_v20  ;;  %v3356_v40 = vsel %vm14798_vm14, %v3347_v34, %v14815_v3  ;;  %v10963_v11 = vld [vmem:[%s12359_s25 + $0x68] sm:$0xff]  }
  0x91   : > { %v12051_v41 = vld [vmem:[#allocation23 + $0x50] sm:$0xff]   ;;  %v5225_v42 = vpack.c.bf16 %v12185_v7, %v5222_v33  ;;  %v3361_v43 = vsel %vm601_vm3, %v3356_v40, %v14815_v3  ;;  %v5295_v44 = vsel %vm14798_vm14, %v3334_v35, %v14815_v3  ;;  %v3471_v48 = vsel %vm14795_vm15, %v3462_v6, %v14815_v3 }
  0x92   : > { %3172 = vst [vmem:[#allocation23 + $0x58] sm:$0xf] %v3170_v37  ;;  %v3285_v45 = vpack.c.bf16 %v12185_v7, %v3282_v38  ;;  %v5279_v34 = vmax.f32 %v5271_v15, %v12353_v20  ;;  %v3373_v46 = vsel %vm12324_vm1, %v3361_v43, %v14814_v4  ;;  %11726 = vmatmul.mubr.msk.bf16.gmra.mrb[40].mxu0 %vm9048_vm7, %v12051_v41  ;;  %v3577_v35 = vunpack.c.l.bf16 %v10964_v59 }
  0x93   : > { %v12052_v50 = vld [vmem:[#allocation23 + $0xc4] sm:$0xff]   ;;  %5227 = vst [vmem:[#allocation23 + $0xcc] sm:$0xf] %v5225_v42  ;;  %v3381_v51 = vmax.f32 %v3373_v46, %v12353_v20  ;;  %v3476_v52 = vsel %vm601_vm3, %v3471_v48, %v14815_v3  ;;  %v5300_v57 = vsel %vm601_vm3, %v5295_v44, %v14815_v3  ;;  %v5352_v58 = vsel %vm14795_vm15, %v3449_v36, %v14815_v3 }
  0x94   : > { %11729 = vmatprep.mubr.msk.bf16.mxu0 %vm12186_vm0, %v12185_v7  ;;  %3287 = vst [vmem:[#allocation23 + $0x5c] sm:$0xf] %v3285_v45  ;;  %v5282_v60 = vpack.c.bf16 %v12185_v7, %v5279_v34  ;;  %v3488_v6 = vsel %vm12324_vm1, %v3476_v52, %v14814_v4  ;;  %v5316_v14 = vsel %vm12324_vm1, %v5300_v57, %v14814_v4  ;;  %v3583_v36 = vstv %s11283_s24  ;;  %s11496_s24 = smul.u32 (%p12275_p4), 116, %s12263_s3 }
  0x95   : > { %v5357_v18 = vsel %vm601_vm3, %v5352_v58, %v14815_v3  ;;  %11790 = vmatmul.mubr.msk.bf16.gmra.mrb[40].mxu1 %vm9048_vm7, %v12052_v50  ;;  %v3389_v19 = vmax.f32 %v3381_v51, %v12353_v20  ;;  %v3496_v24 = vmax.f32 %v3488_v6, %v12353_v20  ;;  %v5320_v28 = vmax.f32 %v12353_v20, %v5316_v14 }
  0x96   : > { %v5373_v31 = vsel %vm12324_vm1, %v5357_v18, %v14814_v4  ;;  %11793 = vmatprep.mubr.msk.bf16.mxu1 %vm12186_vm0, %v12185_v7  ;;  %5284 = vst [vmem:[#allocation23 + $0xd0] sm:$0xf] %v5282_v60  ;;  %v3692_v37 = vunpack.c.h.bf16 %v10964_v59  ;;  %v13283_v41 = vadd.s32 %v3583_v36, %v12296_v9  ;;  %v3698_v43 = vstv %s11285_s28  ;;  %v10971_v18 = vld [vmem:[%s13290_s12 + $0x70] sm:%s12558_s30]  ;;  %s14654_s11 = scalar_lea.vmem (%p12275_p4), %s14780_s9, %s11496_s24  }
  0x97   : > { %v5377_v33 = vmax.f32 %v12353_v20, %v5373_v31  ;;  %v3397_v38 = vmax.f32 %v3389_v19, %v12353_v20  ;;  %v3504_v15 = vmax.f32 %v3496_v24, %v12353_v20  ;;  %v5328_v40 = vmax.f32 %v5320_v28, %v12353_v20 }
  0x98   : > { %v3564_v44 = vunpack.c.l.bf16 %v10963_v11  ;;  %v3679_v45 = vunpack.c.h.bf16 %v10963_v11  ;;  %vm14796_vm15 = vcmp.lt.s32.totalorder %v13283_v41, 450  ;;  %v13301_v52 = vadd.s32 %v3698_v43, %v12296_v9 }
  0x99   : > { %v5385_v42 = vmax.f32 %v5377_v33, %v12353_v20  ;;  %v3400_v34 = vpack.c.bf16 %v12185_v7, %v3397_v38  ;;  %v3512_v46 = vmax.f32 %v3504_v15, %v12353_v20  ;;  %v5336_v48 = vmax.f32 %v5328_v40, %v12353_v20 }
  0x9a   : > { %v3586_v51 = vsel %vm14796_vm15, %v3577_v35, %v14815_v3  ;;  %v5409_v57 = vsel %vm14796_vm15, %v3564_v44, %v14815_v3  ;;  %vm14797_vm15 = vcmp.lt.s32.totalorder %v13301_v52, 450  ;;  %v13349_v15 = vunpack.c.l.bf16 %v10971_v18 }
  0x9b   : > { %v5393_v50 = vmax.f32 %v5385_v42, %v12353_v20  ;;  %v12053_v58 = vld [vmem:[#allocation23 + $0x58] sm:$0xff]   ;;  %3402 = vst [vmem:[#allocation23 + $0x60] sm:$0xf] %v3400_v34  ;;  %v3515_v59 = vpack.c.bf16 %v12185_v7, %v3512_v46  ;;  %v5339_v60 = vpack.c.bf16 %v12185_v7, %v5336_v48  ;;  %v3591_v6 = vsel %vm601_vm3, %v3586_v51, %v14815_v3 }
  0x9c   : > { %v5414_v14 = vsel %vm601_vm3, %v5409_v57, %v14815_v3  ;;  %v3603_v24 = vsel %vm12324_vm1, %v3591_v6, %v14814_v4  ;;  %11730 = vmatmul.mubr.msk.bf16.gmra.mrb[44].mxu0 %vm9048_vm7, %v12053_v58  ;;  %v3701_v33 = vsel %vm14797_vm15, %v3692_v37, %v14815_v3  ;;  %v5466_v36 = vsel %vm14797_vm15, %v3679_v45, %v14815_v3  ;;  %v13362_v34 = vld [vmem:[%s13329_s19 + $0x70] sm:%s12558_s30] }
  0x9d   : > { %v5396_v19 = vpack.c.bf16 %v12185_v7, %v5393_v50  ;;  %v5430_v28 = vsel %vm12324_vm1, %v5414_v14, %v14814_v4  ;;  %v12054_v31 = vld [vmem:[#allocation23 + $0xcc] sm:$0xff]   ;;  %3517 = vst [vmem:[#allocation23 + $0x64] sm:$0xf] %v3515_v59  ;;  %5341 = vst [vmem:[#allocation23 + $0xd4] sm:$0xf] %v5339_v60  ;;  %v3611_v11 = vmax.f32 %v3603_v24, %v12353_v20  ;;  %11733 = vmatprep.mubr.msk.bf16.mxu0 %vm12186_vm0, %v12185_v7 }
  0x9e   : > { %v5434_v35 = vmax.f32 %v12353_v20, %v5430_v28  ;;  %v3706_v38 = vsel %vm601_vm3, %v3701_v33, %v14815_v3  ;;  %v5471_v37 = vsel %vm601_vm3, %v5466_v36, %v14815_v3  ;;  %v3770_v40 = vstv %s3769_s13  ;;  %11794 = vmatmul.mubr.msk.bf16.gmra.mrb[44].mxu1 %vm9048_vm7, %v12054_v31 }
  0x9f   : > { %5398 = vst [vmem:[#allocation23 + $0xd8] sm:$0xf] %v5396_v19  ;;  %v3619_v42 = vmax.f32 %v3611_v11, %v12353_v20  ;;  %v3718_v43 = vsel %vm12324_vm1, %v3706_v38, %v14814_v4  ;;  %v5487_v45 = vsel %vm12324_vm1, %v5471_v37, %v14814_v4  ;;  %11797 = vmatprep.mubr.msk.bf16.mxu1 %vm12186_vm0, %v12185_v7  ;;  %vm3771_vm15 = vcmp.lt.s32.totalorder %v3770_v40, 0  ;;  %v12091_v37 = vld [vmem:[%s12345_s22 + $0x70] sm:%s12558_s30]  ;;  %s427_s22 = sand.u32 1, %s12143_s15  }
  0xa0   : > { %v5442_v44 = vmax.f32 %v5434_v35, %v12353_v20  ;;  %v3726_v46 = vmax.f32 %v3718_v43, %v12353_v20  ;;  %v5491_v48 = vmax.f32 %v12353_v20, %v5487_v45  ;;  %v3777_v50 = vstv %s11287_s14  ;;  %v559_v43 = vld [vmem:[%s13329_s19] sm:$0xff]  }
  0xa1   : > { %v3627_v51 = vmax.f32 %v3619_v42, %v12353_v20  ;;  %v3772_v58 = vsel %vm3771_vm15, %v14815_v3, %v13349_v15  ;;  %v13374_v59 = vadd.s32 %v3777_v50, %v12296_v9  ;;  %v3803_v14 = vunpack.c.l.bf16 %v13362_v34  ;;  %v543_v50 = vld [vmem:[%s13290_s12] sm:$0xff]  }
  0xa2   : > { %v5450_v57 = vmax.f32 %v5442_v44, %v12353_v20  ;;  %v3734_v60 = vmax.f32 %v3726_v46, %v12353_v20  ;;  %v5499_v6 = vmax.f32 %v5491_v48, %v12353_v20  ;;  %v13379_v18 = vstv %s3807_s27 }
  0xa3   : > { %v3630_v19 = vpack.c.bf16 %v12185_v7, %v3627_v51  ;;  %vm3779_vm15 = vcmp.lt.s32.totalorder %v13374_v59, 450  ;;  %vm3809_vm14 = vcmp.lt.s32.totalorder %v13379_v18, 0  ;;  %v3860_v40 = vunpack.c.l.bf16 %v12091_v37 }
  0xa4   : > { %v5453_v24 = vpack.c.bf16 %v12185_v7, %v5450_v57  ;;  %v12055_v9 = vld [vmem:[#allocation23 + $0x60] sm:$0xff]   ;;  %v3742_v28 = vmax.f32 %v3734_v60, %v12353_v20  ;;  %v5507_v31 = vmax.f32 %v5499_v6, %v12353_v20  ;;  %v3780_v11 = vsel %vm3779_vm15, %v3772_v58, %v14815_v3  ;;  %v13430_v60 = vld [vmem:[%s12359_s25 + $0x70] sm:%s12558_s30]  ;;  %s11937_s30 = smul.u32 116, %s427_s22 }
  0xa5   : > { %v3810_v33 = vsel %vm3809_vm14, %v14815_v3, %v3803_v14  ;;  %3632 = vst [vmem:[#allocation23 + $0x68] sm:$0xf] %v3630_v19  ;;  %v3785_v36 = vsel %vm601_vm3, %v3780_v11, %v14815_v3  ;;  %v3864_v42 = vstv %s12463_s29  ;;  %11734 = vmatmul.mubr.msk.bf16.gmra.mrb[48].mxu0 %vm9048_vm7, %v12055_v9  ;;  %v3841_v6 = vunpack.c.l.bf16 %v13430_v60 }
  0xa6   : > { %v12056_v35 = vld [vmem:[#allocation23 + $0xd4] sm:$0xff]   ;;  %5455 = vst [vmem:[#allocation23 + $0xdc] sm:$0xf] %v5453_v24  ;;  %v3818_v38 = vsel %vm3779_vm15, %v3810_v33, %v14815_v3  ;;  %v3745_v44 = vpack.c.bf16 %v12185_v7, %v3742_v28  ;;  %v5510_v45 = vpack.c.bf16 %v12185_v7, %v5507_v31  ;;  %vm13411_vm13 = vcmp.lt.s32.totalorder %v3864_v42, 0  ;;  %11737 = vmatprep.mubr.msk.bf16.mxu0 %vm12186_vm0, %v12185_v7  ;;  %s14482_s15 = scalar_lea.vmem [#allocation22], %s11937_s30  }
  0xa7   : > { %v3823_v46 = vsel %vm601_vm3, %v3818_v38, %v14815_v3  ;;  %11798 = vmatmul.mubr.msk.bf16.gmra.mrb[48].mxu1 %vm9048_vm7, %v12056_v35  ;;  %v3866_v51 = vsel %vm13411_vm13, %v14815_v3, %v3860_v40  ;;  %v3911_v58 = vsel %vm12324_vm1, %v3785_v36, %v14814_v4  ;;  %v5519_v24 = vsel %vm3809_vm14, %v14815_v3, %v13349_v15 }
  0xa8   : > { %v3903_v57 = vsel %vm12324_vm1, %v3823_v46, %v14814_v4  ;;  %11801 = vmatprep.mubr.msk.bf16.mxu1 %vm12186_vm0, %v12185_v7  ;;  %3747 = vst [vmem:[#allocation23 + $0x6c] sm:$0xf] %v3745_v44  ;;  %5512 = vst [vmem:[#allocation23 + $0xe0] sm:$0xf] %v5510_v45  ;;  %v3874_v19 = vsel %vm3779_vm15, %v3866_v51, %v14815_v3  ;;  %v560_v9 = vunpack.c.l.bf16 %v559_v43  ;;  %v673_v28 = vunpack.c.h.bf16 %v559_v43  ;;  %v10842_v46 = vld [vmem:[%s13329_s19 + $0x8] sm:$0xff]  }
  0xa9   : > { %v3879_v31 = vsel %vm601_vm3, %v3874_v19, %v14815_v3  ;;  %v5527_v11 = vsel %vm3779_vm15, %v5519_v24, %v14815_v3  ;;  %v5541_v33 = vsel %vm13411_vm13, %v14815_v3, %v3841_v6  ;;  %v544_v35 = vunpack.c.l.bf16 %v543_v50 }
  0xaa   : > { %v3891_v36 = vsel %vm12324_vm1, %v3879_v31, %v14814_v4  ;;  %v5532_v38 = vsel %vm601_vm3, %v5527_v11, %v14815_v3  ;;  %v5549_v37 = vsel %vm3779_vm15, %v5541_v33, %v14815_v3  ;;  %v5602_v40 = vsel %vm596_vm2, %v560_v9, %v14815_v3 }
  0xab   : > { %v3899_v42 = vmax.f32 %v3891_v36, %v12353_v20  ;;  %v5554_v43 = vsel %vm601_vm3, %v5549_v37, %v14815_v3  ;;  %v5586_v44 = vsel %vm12324_vm1, %v5532_v38, %v14814_v4  ;;  %v5607_v45 = vsel %vm601_vm3, %v5602_v40, %v14815_v3 }
  0xac   : > { %v5570_v51 = vsel %vm12324_vm1, %v5554_v43, %v14814_v4  ;;  %v5631_v19 = vsel %vm12324_vm1, %v5607_v45, %v14814_v4  ;;  %v5658_v24 = vsel %vm710_vm4, %v673_v28, %v14815_v3  ;;  %v657_v9 = vunpack.c.h.bf16 %v543_v50  ;;  %v10841_v28 = vld [vmem:[%s13290_s12 + $0x8] sm:$0xff]  }
  0xad   : > { %v3907_v31 = vmax.f32 %v3899_v42, %v3903_v57  ;;  %v5574_v11 = vmax.f32 %v12353_v20, %v5570_v51  ;;  %v5635_v33 = vmax.f32 %v12353_v20, %v5631_v19  ;;  %v5663_v36 = vsel %vm601_vm3, %v5658_v24, %v14815_v3 }
  0xae   : > { %v5688_v38 = vsel %vm12324_vm1, %v5663_v36, %v14814_v4  ;;  %v7260_v37 = vsel %vm596_vm2, %v544_v35, %v14815_v3  ;;  %v7315_v50 = vsel %vm710_vm4, %v657_v9, %v14815_v3  ;;  %v788_v57 = vunpack.c.l.bf16 %v10842_v46 }
  0xaf   : > { %v12057_v40 = vld [vmem:[#allocation23 + $0x68] sm:$0xff]   ;;  %v3915_v42 = vmax.f32 %v3907_v31, %v3911_v58  ;;  %v5582_v43 = vmax.f32 %v5574_v11, %v12353_v20  ;;  %v5643_v45 = vmax.f32 %v5635_v33, %v12353_v20  ;;  %v5692_v51 = vmax.f32 %v12353_v20, %v5688_v38  ;;  %v12058_v19 = vld [vmem:[#allocation23 + $0xdc] sm:$0xff]  }
  0xb0   : > { %v7265_v12 = vsel %vm601_vm3, %v7260_v37, %v14815_v3  ;;  %v7320_v16 = vsel %vm601_vm3, %v7315_v50, %v14815_v3  ;;  %v903_v35 = vunpack.c.h.bf16 %v10842_v46  ;;  %v5715_v58 = vsel %vm825_vm5, %v788_v57, %v14815_v3  ;;  %11738 = vmatmul.mubr.msk.bf16.gmra.mrb[52].mxu0 %vm9048_vm7, %v12057_v40  ;;  %11802 = vmatmul.mubr.msk.bf16.gmra.mrb[52].mxu1 %vm9048_vm7, %v12058_v19  ;;  %v10852_v40 = vld [vmem:[%s13329_s19 + $0x10] sm:$0xff]  }
  0xb1   : > { %v3918_v24 = vpack.c.bf16 %v12185_v7, %v3915_v42  ;;  %v5590_v9 = vmax.f32 %v5582_v43, %v5586_v44  ;;  %v5646_v31 = vpack.c.bf16 %v12185_v7, %v5643_v45  ;;  %v5700_v11 = vmax.f32 %v5692_v51, %v12353_v20  ;;  %11741 = vmatprep.mubr.msk.bf16.mxu0 %vm12186_vm0, %v12185_v7 }
  0xb2   : > { %v7297_v46 = vsel %vm12324_vm1, %v7265_v12, %v14814_v4  ;;  %v7354_v33 = vsel %vm12324_vm1, %v7320_v16, %v14814_v4  ;;  %v5720_v44 = vsel %vm601_vm3, %v5715_v58, %v14815_v3  ;;  %v772_v36 = vunpack.c.l.bf16 %v10841_v28  ;;  %11805 = vmatprep.mubr.msk.bf16.mxu1 %vm12186_vm0, %v12185_v7 }
  0xb3   : > { %3920 = vst [vmem:[#allocation23 + $0x70] sm:$0xf] %v3918_v24  ;;  %v5593_v38 = vpack.c.bf16 %v12185_v7, %v5590_v9  ;;  %5648 = vst [vmem:[#allocation23 + $0xe8] sm:$0xf] %v5646_v31  ;;  %v5703_v37 = vpack.c.bf16 %v12185_v7, %v5700_v11  ;;  %v7301_v50 = vmax.f32 %v12353_v20, %v7297_v46  ;;  %v887_v45 = vunpack.c.h.bf16 %v10841_v28 }
  0xb4   : > { %v7358_v57 = vmax.f32 %v12353_v20, %v7354_v33  ;;  %v5745_v42 = vsel %vm12324_vm1, %v5720_v44, %v14814_v4  ;;  %v5772_v43 = vsel %vm940_vm6, %v903_v35, %v14815_v3  ;;  %v7372_v51 = vsel %vm825_vm5, %v772_v36, %v14815_v3  ;;  %v10851_v33 = vld [vmem:[%s13290_s12 + $0x10] sm:$0xff]  }
  0xb5   : > { %5595 = vst [vmem:[#allocation23 + $0xe4] sm:$0xf] %v5593_v38  ;;  %5705 = vst [vmem:[#allocation23 + $0xec] sm:$0xf] %v5703_v37  ;;  %v7304_v19 = vpack.c.bf16 %v12185_v7, %v7301_v50  ;;  %v5749_v16 = vmax.f32 %v12353_v20, %v5745_v42  ;;  %v5777_v58 = vsel %vm601_vm3, %v5772_v43, %v14815_v3  ;;  %v1018_v24 = vunpack.c.l.bf16 %v10852_v40  ;;  %v10862_v43 = vld [vmem:[%s13329_s19 + $0x18] sm:$0xff]  }
  0xb6   : > { %v7361_v12 = vpack.c.bf16 %v12185_v7, %v7358_v57  ;;  %v5802_v28 = vsel %vm12324_vm1, %v5777_v58, %v14814_v4  ;;  %v7377_v17 = vsel %vm601_vm3, %v7372_v51, %v14815_v3  ;;  %v7429_v35 = vsel %vm940_vm6, %v887_v45, %v14815_v3 }
  0xb7   : > { %7306 = vst [vmem:[#allocation23 + $0x15c] sm:$0xf] %v7304_v19  ;;  %v5757_v9 = vmax.f32 %v5749_v16, %v12353_v20  ;;  %v5806_v31 = vmax.f32 %v12353_v20, %v5802_v28  ;;  %v7411_v11 = vsel %vm12324_vm1, %v7377_v17, %v14814_v4  ;;  %v7434_v46 = vsel %vm601_vm3, %v7429_v35, %v14815_v3  ;;  %v10861_v35 = vld [vmem:[%s13290_s12 + $0x18] sm:$0xff]  }
  0xb8   : > { %7363 = vst [vmem:[#allocation23 + $0x160] sm:$0xf] %v7361_v12  ;;  %v7415_v21 = vmax.f32 %v12353_v20, %v7411_v11  ;;  %v7468_v44 = vsel %vm12324_vm1, %v7434_v46, %v14814_v4  ;;  %v1133_v36 = vunpack.c.h.bf16 %v10852_v40  ;;  %v5829_v38 = vsel %vm1055_vm8, %v1018_v24, %v14815_v3 }
  0xb9   : > { %v5760_v37 = vpack.c.bf16 %v12185_v7, %v5757_v9  ;;  %v5814_v50 = vmax.f32 %v5806_v31, %v12353_v20  ;;  %v7472_v57 = vmax.f32 %v12353_v20, %v7468_v44  ;;  %v5834_v42 = vsel %vm601_vm3, %v5829_v38, %v14815_v3 }
  0xba   : > { %v12059_v45 = vld [vmem:[#allocation23 + $0x70] ss:$0 sps:$4 sm:$0xff]   ;;  %v7418_v51 = vpack.c.bf16 %v12185_v7, %v7415_v21  ;;  %v5859_v40 = vsel %vm12324_vm1, %v5834_v42, %v14814_v4  ;;  %v5886_v19 = vsel %vm1170_vm9, %v1133_v36, %v14815_v3  ;;  %v1002_v12 = vunpack.c.l.bf16 %v10851_v33 }
  0xbb   : > { %5762 = vst [vmem:[#allocation23 + $0xf0] sm:$0xf] %v5760_v37  ;;  %v5817_v16 = vpack.c.bf16 %v12185_v7, %v5814_v50  ;;  %v7475_v58 = vpack.c.bf16 %v12185_v7, %v7472_v57  ;;  %v5863_v28 = vmax.f32 %v12353_v20, %v5859_v40  ;;  %v5891_v17 = vsel %vm601_vm3, %v5886_v19, %v14815_v3 }
  0xbc   : > { %11742 = vmatmul.mubr.msk.bf16.gmra.mrb[56].mxu0 %vm9048_vm7, %v12059_v45  ;;  %v12060_v24 = vld [vmem:[#allocation23 + $0xe4] ss:$0 sps:$4 sm:$0xff]   ;;  %7420 = vst [vmem:[#allocation23 + $0x164] sm:$0xf] %v7418_v51  ;;  %v5916_v9 = vsel %vm12324_vm1, %v5891_v17, %v14814_v4  ;;  %v1117_v31 = vunpack.c.h.bf16 %v10851_v33  ;;  %v7486_v11 = vsel %vm1055_vm8, %v1002_v12, %v14815_v3  ;;  %v1248_v46 = vunpack.c.l.bf16 %v10862_v43  ;;  %v12061_v39 = vld [vmem:[#allocation23 + $0xe8] sm:$0xff]  }
  0xbd   : > { %11813 = vmatprep.mubr.msk.bf16.mxu0 %vm12186_vm0, %v12185_v7  ;;  %5819 = vst [vmem:[#allocation23 + $0xf4] sm:$0xf] %v5817_v16  ;;  %7477 = vst [vmem:[#allocation23 + $0x168] sm:$0xf] %v7475_v58  ;;  %v5871_v21 = vmax.f32 %v5863_v28, %v12353_v20  ;;  %v5920_v44 = vmax.f32 %v12353_v20, %v5916_v9  ;;  %v7491_v36 = vsel %vm601_vm3, %v7486_v11, %v14815_v3 }
  0xbe   : > { %v1363_v38 = vunpack.c.h.bf16 %v10862_v43  ;;  %11806 = vmatmul.mubr.msk.bf16.gmra.mrb[56].mxu1 %vm9048_vm7, %v12060_v24  ;;  %v7525_v25 = vsel %vm12324_vm1, %v7491_v36, %v14814_v4  ;;  %v7543_v33 = vsel %vm1170_vm9, %v1117_v31, %v14815_v3  ;;  %v5943_v37 = vsel %vm1285_vm10, %v1248_v46, %v14815_v3  ;;  %v10872_v46 = vld [vmem:[%s13329_s19 + $0x20] sm:$0xff]  }
  0xbf   : > { %v1232_v50 = vunpack.c.l.bf16 %v10861_v35  ;;  %11877 = vmatprep.mubr.msk.bf16.mxu1 %vm12186_vm0, %v12185_v7  ;;  %v5874_v57 = vpack.c.bf16 %v12185_v7, %v5871_v21  ;;  %v5928_v42 = vmax.f32 %v5920_v44, %v12353_v20  ;;  %v7529_v43 = vmax.f32 %v12353_v20, %v7525_v25  ;;  %v12062_v24 = vld [vmem:[#allocation23 + $0x15c] sm:$0xff]  }
  0xc0   : > { %v7548_v45 = vsel %vm601_vm3, %v7543_v33, %v14815_v3  ;;  %v5948_v40 = vsel %vm601_vm3, %v5943_v37, %v14815_v3  ;;  %v6000_v19 = vsel %vm1400_vm11, %v1363_v38, %v14815_v3  ;;  %v1347_v12 = vunpack.c.h.bf16 %v10861_v35  ;;  %v10871_v38 = vld [vmem:[%s13290_s12 + $0x20] sm:$0xff]  }
  0xc1   : > { %v7582_v51 = vsel %vm12324_vm1, %v7548_v45, %v14814_v4  ;;  %5876 = vst [vmem:[#allocation23 + $0xf8] sm:$0xf] %v5874_v57  ;;  %v5931_v16 = vpack.c.bf16 %v12185_v7, %v5928_v42  ;;  %v7532_v58 = vpack.c.bf16 %v12185_v7, %v7529_v43  ;;  %v5973_v17 = vsel %vm12324_vm1, %v5948_v40, %v14814_v4 }
  0xc2   : > { %v7586_v28 = vmax.f32 %v12353_v20, %v7582_v51  ;;  %v5977_v9 = vmax.f32 %v12353_v20, %v5973_v17  ;;  %v6005_v31 = vsel %vm601_vm3, %v6000_v19, %v14815_v3  ;;  %v7600_v35 = vsel %vm1285_vm10, %v1232_v50, %v14815_v3 }
  0xc3   : > { %v7657_v11 = vsel %vm1400_vm11, %v1347_v12, %v14815_v3  ;;  %5933 = vst [vmem:[#allocation23 + $0xfc] sm:$0xf] %v5931_v16  ;;  %7534 = vst [vmem:[#allocation23 + $0x16c] sm:$0xf] %v7532_v58  ;;  %v6030_v44 = vsel %vm12324_vm1, %v6005_v31, %v14814_v4  ;;  %v7605_v36 = vsel %vm601_vm3, %v7600_v35, %v14815_v3  ;;  %v1478_v42 = vunpack.c.l.bf16 %v10872_v46  ;;  %v10882_v35 = vld [vmem:[%s13329_s19 + $0x28] sm:$0xff]  }
  0xc4   : > { %v7589_v21 = vpack.c.bf16 %v12185_v7, %v7586_v28  ;;  %v7662_v27 = vsel %vm601_vm3, %v7657_v11, %v14815_v3  ;;  %11814 = vmatmul.mubr.msk.bf16.vlgmr.msra.gmra.mrb[60].mxu0 %vm9048_vm7, %v12061_v39  ;;  %v5985_v5 = vmax.f32 %v5977_v9, %v12353_v20  ;;  %v6034_v25 = vmax.f32 %v12353_v20, %v6030_v44  ;;  %v12063_v28 = vld [vmem:[#allocation23 + $0xf0] sm:$0xff]  }
  0xc5   : > { %v7639_v33 = vsel %vm12324_vm1, %v7605_v36, %v14814_v4  ;;  %v7696_v37 = vsel %vm12324_vm1, %v7662_v27, %v14814_v4  ;;  %11817 = vmatprep.mubr.msk.bf16.mxu0 %vm12186_vm0, %v12185_v7  ;;  %v1593_v43 = vunpack.c.h.bf16 %v10872_v46  ;;  %v1462_v51 = vunpack.c.l.bf16 %v10871_v38  ;;  %v10881_v44 = vld [vmem:[%s13290_s12 + $0x28] sm:$0xff]   ;;  %v12064_v36 = vld [vmem:[#allocation23 + $0x164] sm:$0xff]  }
  0xc6   : > { %7591 = vst [vmem:[#allocation23 + $0x170] sm:$0xf] %v7589_v21  ;;  %v7643_v50 = vmax.f32 %v12353_v20, %v7639_v33  ;;  %v7700_v57 = vmax.f32 %v12353_v20, %v7696_v37  ;;  %11878 = vmatmul.mubr.msk.bf16.vlgmr.msra.gmra.mrb[60].mxu1 %vm9048_vm7, %v12062_v24  ;;  %v5988_v45 = vpack.c.bf16 %v12185_v7, %v5985_v5  ;;  %v1577_v40 = vunpack.c.h.bf16 %v10871_v38 }
  0xc7   : > { %v6042_v39 = vmax.f32 %v6034_v25, %v12353_v20  ;;  %11881 = vmatprep.mubr.msk.bf16.mxu1 %vm12186_vm0, %v12185_v7  ;;  %v6057_v16 = vsel %vm1515_vm12, %v1478_v42, %v14815_v3  ;;  %vm14822_vm2 = vcmp.lt.s32.totalorder %v12643_v22, 450  ;;  %v7714_v31 = vsel %vm1515_vm12, %v1462_v51, %v14815_v3 }
  0xc8   : > { %v7646_v19 = vpack.c.bf16 %v12185_v7, %v7643_v50  ;;  %v7703_v12 = vpack.c.bf16 %v12185_v7, %v7700_v57  ;;  %v6114_v58 = vsel %vm14822_vm2, %v1593_v43, %v14815_v3  ;;  %5990 = vst [vmem:[#allocation23 + $0x100] sm:$0xf] %v5988_v45  ;;  %v6062_v24 = vsel %vm601_vm3, %v6057_v16, %v14815_v3  ;;  %vm14823_vm4 = vmmov %vm14822_vm2 }
  0xc9   : > { %v6045_v17 = vpack.c.bf16 %v12185_v7, %v6042_v39  ;;  %v6119_v9 = vsel %vm601_vm3, %v6114_v58, %v14815_v3  ;;  %v6087_v11 = vsel %vm12324_vm1, %v6062_v24, %v14814_v4  ;;  %v7719_v21 = vsel %vm601_vm3, %v7714_v31, %v14815_v3 }
  0xca   : > { %7648 = vst [vmem:[#allocation23 + $0x174] sm:$0xf] %v7646_v19  ;;  %7705 = vst [vmem:[#allocation23 + $0x178] sm:$0xf] %v7703_v12  ;;  %v6144_v46 = vsel %vm12324_vm1, %v6119_v9, %v14814_v4  ;;  %v7771_v0 = vsel %vm14823_vm4, %v1577_v40, %v14815_v3  ;;  %v6091_v27 = vmax.f32 %v12353_v20, %v6087_v11  ;;  %v1708_v37 = vunpack.c.l.bf16 %v10882_v35  ;;  %v10891_v11 = vld [vmem:[%s13290_s12 + $0x30] sm:$0xff]  }
  0xcb   : > { %6047 = vst [vmem:[#allocation23 + $0x104] sm:$0xf] %v6045_v17  ;;  %v6148_v38 = vmax.f32 %v12353_v20, %v6144_v46  ;;  %v7753_v5 = vsel %vm12324_vm1, %v7719_v21, %v14814_v4  ;;  %v7776_v25 = vsel %vm601_vm3, %v7771_v0, %v14815_v3  ;;  %v1823_v50 = vunpack.c.h.bf16 %v10882_v35  ;;  %v10892_v17 = vld [vmem:[%s13329_s19 + $0x30] sm:$0xff]  }
  0xcc   : > { %v7757_v33 = vmax.f32 %v12353_v20, %v7753_v5  ;;  %v7810_v22 = vsel %vm12324_vm1, %v7776_v25, %v14814_v4  ;;  %11818 = vmatmul.mubr.msk.bf16.gmra.mrb[64].mxu0 %vm9048_vm7, %v12063_v28  ;;  %v6099_v57 = vmax.f32 %v6091_v27, %v12353_v20  ;;  %v1692_v45 = vunpack.c.l.bf16 %v10881_v44  ;;  %v12065_v46 = vld [vmem:[#allocation23 + $0xf8] sm:$0xff]  }
  0xcd   : > { %v6156_v42 = vmax.f32 %v6148_v38, %v12353_v20  ;;  %v7814_v43 = vmax.f32 %v12353_v20, %v7810_v22  ;;  %11821 = vmatprep.mubr.msk.bf16.mxu0 %vm12186_vm0, %v12185_v7  ;;  %vm14824_vm5 = vcmp.lt.s32.totalorder %v12700_v8, 450  ;;  %vm14825_vm6 = vcmp.lt.s32.totalorder %v12711_v61, 450  ;;  %v12066_v5 = vld [vmem:[#allocation23 + $0x16c] sm:$0xff]  }
  0xce   : > { %v7760_v39 = vpack.c.bf16 %v12185_v7, %v7757_v33  ;;  %v6171_v51 = vsel %vm14824_vm5, %v1708_v37, %v14815_v3  ;;  %v6228_v40 = vsel %vm14825_vm6, %v1823_v50, %v14815_v3  ;;  %v1807_v19 = vunpack.c.h.bf16 %v10881_v44  ;;  %11882 = vmatmul.mubr.msk.bf16.gmra.mrb[64].mxu1 %vm9048_vm7, %v12064_v36  ;;  %vm14826_vm8 = vmmov %vm14824_vm5 }
  0xcf   : > { %v6102_v12 = vpack.c.bf16 %v12185_v7, %v6099_v57  ;;  %v6159_v16 = vpack.c.bf16 %v12185_v7, %v6156_v42  ;;  %v7817_v58 = vpack.c.bf16 %v12185_v7, %v7814_v43  ;;  %v6176_v28 = vsel %vm601_vm3, %v6171_v51, %v14815_v3  ;;  %11885 = vmatprep.mubr.msk.bf16.mxu1 %vm12186_vm0, %v12185_v7  ;;  %vm14827_vm9 = vmmov %vm14825_vm6 }
  0xd0   : > { %7762 = vst [vmem:[#allocation23 + $0x17c] sm:$0xf] %v7760_v39  ;;  %v6201_v24 = vsel %vm12324_vm1, %v6176_v28, %v14814_v4  ;;  %v6233_v9 = vsel %vm601_vm3, %v6228_v40, %v14815_v3  ;;  %v7828_v31 = vsel %vm14826_vm8, %v1692_v45, %v14815_v3  ;;  %v7885_v35 = vsel %vm14827_vm9, %v1807_v19, %v14815_v3  ;;  %v10902_v19 = vld [vmem:[%s13329_s19 + $0x38] sm:$0xff]  }
  0xd1   : > { %6104 = vst [vmem:[#allocation23 + $0x108] sm:$0xf] %v6102_v12  ;;  %6161 = vst [vmem:[#allocation23 + $0x10c] sm:$0xf] %v6159_v16  ;;  %v6205_v21 = vmax.f32 %v12353_v20, %v6201_v24  ;;  %v6258_v0 = vsel %vm12324_vm1, %v6233_v9, %v14814_v4  ;;  %v7833_v8 = vsel %vm601_vm3, %v7828_v31, %v14815_v3  ;;  %v1938_v38 = vunpack.c.l.bf16 %v10892_v17  ;;  %v10901_v31 = vld [vmem:[%s13290_s12 + $0x38] sm:$0xff]  }
  0xd2   : > { %7819 = vst [vmem:[#allocation23 + $0x180] sm:$0xf] %v7817_v58  ;;  %v7890_v61 = vsel %vm601_vm3, %v7885_v35, %v14815_v3  ;;  %v6262_v44 = vmax.f32 %v12353_v20, %v6258_v0  ;;  %v7867_v36 = vsel %vm12324_vm1, %v7833_v8, %v14814_v4  ;;  %v2053_v37 = vunpack.c.h.bf16 %v10892_v17 }
  0xd3   : > { %v7924_v27 = vsel %vm12324_vm1, %v7890_v61, %v14814_v4  ;;  %v6213_v25 = vmax.f32 %v6205_v21, %v12353_v20  ;;  %v7871_v33 = vmax.f32 %v12353_v20, %v7867_v36  ;;  %vm14828_vm10 = vcmp.lt.s32.totalorder %v12772_v47, 450  ;;  %v12067_v21 = vld [vmem:[#allocation23 + $0x100] sm:$0xff]  }
  0xd4   : > { %v7928_v22 = vmax.f32 %v12353_v20, %v7924_v27  ;;  %v6270_v50 = vmax.f32 %v6262_v44, %v12353_v20  ;;  %v6285_v57 = vsel %vm14828_vm10, %v1938_v38, %v14815_v3  ;;  %v1922_v42 = vunpack.c.l.bf16 %v10891_v11  ;;  %11822 = vmatmul.mubr.msk.bf16.gmra.mrb[68].mxu0 %vm9048_vm7, %v12065_v46  ;;  %vm14830_vm12 = vmmov %vm14828_vm10 }
  0xd5   : > { %v2037_v43 = vunpack.c.h.bf16 %v10891_v11  ;;  %v6216_v45 = vpack.c.bf16 %v12185_v7, %v6213_v25  ;;  %v7874_v39 = vpack.c.bf16 %v12185_v7, %v7871_v33  ;;  %v6290_v40 = vsel %vm601_vm3, %v6285_v57, %v14815_v3  ;;  %11825 = vmatprep.mubr.msk.bf16.mxu0 %vm12186_vm0, %v12185_v7  ;;  %v12068_v25 = vld [vmem:[#allocation23 + $0x174] sm:$0xff]   ;;  %v10912_v57 = vld [vmem:[%s13329_s19 + $0x40] sm:$0xff]  }
  0xd6   : > { %v7931_v51 = vpack.c.bf16 %v12185_v7, %v7928_v22  ;;  %v6273_v12 = vpack.c.bf16 %v12185_v7, %v6270_v50  ;;  %v6315_v16 = vsel %vm12324_vm1, %v6290_v40, %v14814_v4  ;;  %vm14829_vm11 = vcmp.lt.s32.totalorder %v12794_v63, 450  ;;  %11886 = vmatmul.mubr.msk.bf16.gmra.mrb[68].mxu1 %vm9048_vm7, %v12066_v5 }
  0xd7   : > { %v6342_v58 = vsel %vm14829_vm11, %v2053_v37, %v14815_v3  ;;  %v7942_v28 = vsel %vm14830_vm12, %v1922_v42, %v14815_v3  ;;  %6218 = vst [vmem:[#allocation23 + $0x110] sm:$0xf] %v6216_v45  ;;  %7876 = vst [vmem:[#allocation23 + $0x184] sm:$0xf] %v7874_v39  ;;  %v6319_v17 = vmax.f32 %v12353_v20, %v6315_v16  ;;  %11889 = vmatprep.mubr.msk.bf16.mxu1 %vm12186_vm0, %v12185_v7 }
  0xd8   : > { %7933 = vst [vmem:[#allocation23 + $0x188] sm:$0xf] %v7931_v51  ;;  %v6347_v24 = vsel %vm601_vm3, %v6342_v58, %v14815_v3  ;;  %v7947_v9 = vsel %vm601_vm3, %v7942_v28, %v14815_v3  ;;  %vm14831_vm2 = vmmov %vm14829_vm11  ;;  %v2168_v63 = vunpack.c.l.bf16 %v10902_v19  ;;  %v2283_v27 = vunpack.c.h.bf16 %v10902_v19 }
  0xd9   : > { %v7999_v47 = vsel %vm14831_vm2, %v2037_v43, %v14815_v3  ;;  %6275 = vst [vmem:[#allocation23 + $0x114] sm:$0xf] %v6273_v12  ;;  %v6372_v35 = vsel %vm12324_vm1, %v6347_v24, %v14814_v4  ;;  %v7981_v11 = vsel %vm12324_vm1, %v7947_v9, %v14814_v4  ;;  %v6327_v0 = vmax.f32 %v6319_v17, %v12353_v20 }
  0xda   : > { %v8004_v46 = vsel %vm601_vm3, %v7999_v47, %v14815_v3  ;;  %v6376_v8 = vmax.f32 %v12353_v20, %v6372_v35  ;;  %v7985_v61 = vmax.f32 %v12353_v20, %v7981_v11  ;;  %vm14832_vm4 = vcmp.lt.s32.totalorder %v12850_v49, 450 }
  0xdb   : > { %v8038_v44 = vsel %vm12324_vm1, %v8004_v46, %v14814_v4  ;;  %v6399_v38 = vsel %vm14832_vm4, %v2168_v63, %v14815_v3  ;;  %v2152_v5 = vunpack.c.l.bf16 %v10901_v31  ;;  %v6330_v33 = vpack.c.bf16 %v12185_v7, %v6327_v0  ;;  %vm14834_vm6 = vmmov %vm14832_vm4  ;;  %v12069_v63 = vld [vmem:[#allocation23 + $0x108] sm:$0xff]  }
  0xdc   : > { %v8042_v36 = vmax.f32 %v12353_v20, %v8038_v44  ;;  %v6384_v22 = vmax.f32 %v6376_v8, %v12353_v20  ;;  %v7988_v37 = vpack.c.bf16 %v12185_v7, %v7985_v61  ;;  %v6404_v50 = vsel %vm601_vm3, %v6399_v38, %v14815_v3  ;;  %11826 = vmatmul.mubr.msk.bf16.gmra.mrb[72].mxu0 %vm9048_vm7, %v12067_v21  ;;  %v10922_v44 = vld [vmem:[%s13329_s19 + $0x48] sm:$0xff]  }
  0xdd   : > { %v6429_v43 = vsel %vm12324_vm1, %v6404_v50, %v14814_v4  ;;  %vm14833_vm5 = vcmp.lt.s32.totalorder %v12856_v55, 450  ;;  %v2267_v39 = vunpack.c.h.bf16 %v10901_v31  ;;  %6332 = vst [vmem:[#allocation23 + $0x118] sm:$0xf] %v6330_v33  ;;  %v8056_v12 = vsel %vm14834_vm6, %v2152_v5, %v14815_v3  ;;  %11829 = vmatprep.mubr.msk.bf16.mxu0 %vm12186_vm0, %v12185_v7  ;;  %v10911_v31 = vld [vmem:[%s13290_s12 + $0x40] sm:$0xff]  }
  0xde   : > { %v8045_v42 = vpack.c.bf16 %v12185_v7, %v8042_v36  ;;  %v6456_v45 = vsel %vm14833_vm5, %v2283_v27, %v14815_v3  ;;  %v6387_v51 = vpack.c.bf16 %v12185_v7, %v6384_v22  ;;  %7990 = vst [vmem:[#allocation23 + $0x18c] sm:$0xf] %v7988_v37  ;;  %v6433_v40 = vmax.f32 %v12353_v20, %v6429_v43  ;;  %vm14835_vm8 = vmmov %vm14833_vm5 }
  0xdf   : > { %v6461_v19 = vsel %vm601_vm3, %v6456_v45, %v14815_v3  ;;  %v8061_v58 = vsel %vm601_vm3, %v8056_v12, %v14815_v3  ;;  %v8113_v28 = vsel %vm14835_vm8, %v2267_v39, %v14815_v3  ;;  %v2398_v17 = vunpack.c.l.bf16 %v10912_v57  ;;  %11890 = vmatmul.mubr.msk.bf16.gmra.mrb[72].mxu1 %vm9048_vm7, %v12068_v25  ;;  %v12070_v25 = vld [vmem:[#allocation23 + $0x17c] sm:$0xff]  }
  0xe0   : > { %8047 = vst [vmem:[#allocation23 + $0x190] sm:$0xf] %v8045_v42  ;;  %v6486_v16 = vsel %vm12324_vm1, %v6461_v19, %v14814_v4  ;;  %6389 = vst [vmem:[#allocation23 + $0x11c] sm:$0xf] %v6387_v51  ;;  %v6441_v49 = vmax.f32 %v6433_v40, %v12353_v20  ;;  %v8095_v9 = vsel %vm12324_vm1, %v8061_v58, %v14814_v4  ;;  %11893 = vmatprep.mubr.msk.bf16.mxu1 %vm12186_vm0, %v12185_v7 }
  0xe1   : > { %v6490_v24 = vmax.f32 %v12353_v20, %v6486_v16  ;;  %v8118_v47 = vsel %vm601_vm3, %v8113_v28, %v14815_v3  ;;  %v8099_v55 = vmax.f32 %v12353_v20, %v8095_v9  ;;  %v2513_v11 = vunpack.c.h.bf16 %v10912_v57  ;;  %v10921_v57 = vld [vmem:[%s13290_s12 + $0x48] sm:$0xff]  }
  0xe2   : > { %v8152_v35 = vsel %vm12324_vm1, %v8118_v47, %v14814_v4  ;;  %vm14836_vm9 = vcmp.lt.s32.totalorder %v12919_v26, 450  ;;  %v6444_v21 = vpack.c.bf16 %v12185_v7, %v6441_v49  ;;  %vm14837_vm10 = vcmp.lt.s32.totalorder %v12927_v56, 450 }
  0xe3   : > { %v6513_v46 = vsel %vm14836_vm9, %v2398_v17, %v14815_v3  ;;  %v6498_v0 = vmax.f32 %v6490_v24, %v12353_v20  ;;  %v8156_v8 = vmax.f32 %v12353_v20, %v8152_v35  ;;  %v8102_v36 = vpack.c.bf16 %v12185_v7, %v8099_v55  ;;  %vm14838_vm11 = vmmov %vm14836_vm9  ;;  %v12071_v35 = vld [vmem:[#allocation23 + $0x110] sm:$0xff]  }
  0xe4   : > { %v6518_v61 = vsel %vm601_vm3, %v6513_v46, %v14815_v3  ;;  %v6570_v38 = vsel %vm14837_vm10, %v2513_v11, %v14815_v3  ;;  %v2382_v5 = vunpack.c.l.bf16 %v10911_v31  ;;  %6446 = vst [vmem:[#allocation23 + $0x120] sm:$0xf] %v6444_v21  ;;  %v2497_v43 = vunpack.c.h.bf16 %v10911_v31  ;;  %11830 = vmatmul.mubr.msk.bf16.gmra.mrb[76].mxu0 %vm9048_vm7, %v12069_v63  ;;  %vm14839_vm12 = vmmov %vm14837_vm10 }
  0xe5   : > { %v6543_v27 = vsel %vm12324_vm1, %v6518_v61, %v14814_v4  ;;  %v6501_v33 = vpack.c.bf16 %v12185_v7, %v6498_v0  ;;  %v8159_v22 = vpack.c.bf16 %v12185_v7, %v8156_v8  ;;  %v6575_v50 = vsel %vm601_vm3, %v6570_v38, %v14815_v3  ;;  %8104 = vst [vmem:[#allocation23 + $0x194] sm:$0xf] %v8102_v36  ;;  %v10932_v36 = vld [vmem:[%s13329_s19 + $0x50] sm:$0xff]  }
  0xe6   : > { %v6547_v37 = vmax.f32 %v12353_v20, %v6543_v27  ;;  %v6600_v42 = vsel %vm12324_vm1, %v6575_v50, %v14814_v4  ;;  %v8170_v45 = vsel %vm14838_vm11, %v2382_v5, %v14815_v3  ;;  %v2628_v39 = vunpack.c.l.bf16 %v10922_v44  ;;  %11833 = vmatprep.mubr.msk.bf16.mxu0 %vm12186_vm0, %v12185_v7  ;;  %v12072_v27 = vld [vmem:[#allocation23 + $0x184] sm:$0xff]  }
  0xe7   : > { %6503 = vst [vmem:[#allocation23 + $0x124] sm:$0xf] %v6501_v33  ;;  %8161 = vst [vmem:[#allocation23 + $0x198] sm:$0xf] %v8159_v22  ;;  %v6604_v40 = vmax.f32 %v12353_v20, %v6600_v42  ;;  %v8175_v19 = vsel %vm601_vm3, %v8170_v45, %v14815_v3  ;;  %v2743_v12 = vunpack.c.h.bf16 %v10922_v44  ;;  %v8227_v16 = vsel %vm14839_vm12, %v2497_v43, %v14815_v3 }
  0xe8   : > { %v6555_v51 = vmax.f32 %v6547_v37, %v12353_v20  ;;  %v8209_v26 = vsel %vm12324_vm1, %v8175_v19, %v14814_v4  ;;  %vm14840_vm2 = vcmp.lt.s32.totalorder %v12999_v53, 450  ;;  %v2612_v28 = vunpack.c.l.bf16 %v10921_v57  ;;  %11894 = vmatmul.mubr.msk.bf16.gmra.mrb[76].mxu1 %vm9048_vm7, %v12070_v25 }
  0xe9   : > { %v6627_v58 = vsel %vm14840_vm2, %v2628_v39, %v14815_v3  ;;  %v6612_v49 = vmax.f32 %v6604_v40, %v12353_v20  ;;  %v8213_v24 = vmax.f32 %v12353_v20, %v8209_v26  ;;  %v8232_v9 = vsel %vm601_vm3, %v8227_v16, %v14815_v3  ;;  %11897 = vmatprep.mubr.msk.bf16.mxu1 %vm12186_vm0, %v12185_v7  ;;  %vm14842_vm5 = vmmov %vm14840_vm2 }
  0xea   : > { %v6558_v17 = vpack.c.bf16 %v12185_v7, %v6555_v51  ;;  %v8266_v56 = vsel %vm12324_vm1, %v8232_v9, %v14814_v4  ;;  %v6632_v47 = vsel %vm601_vm3, %v6627_v58, %v14815_v3  ;;  %vm14841_vm4 = vcmp.lt.s32.totalorder %v13002_v54, 450  ;;  %v10931_v54 = vld [vmem:[%s13290_s12 + $0x50] sm:$0xff]   ;;  %v10942_v9 = vld [vmem:[%s13329_s19 + $0x58] sm:$0xff]  }
  0xeb   : > { %v6684_v31 = vsel %vm14841_vm4, %v2743_v12, %v14815_v3  ;;  %v2727_v55 = vunpack.c.h.bf16 %v10921_v57  ;;  %v6615_v11 = vpack.c.bf16 %v12185_v7, %v6612_v49  ;;  %v8216_v46 = vpack.c.bf16 %v12185_v7, %v8213_v24  ;;  %vm14843_vm6 = vmmov %vm14841_vm4 }
  0xec   : > { %6560 = vst [vmem:[#allocation23 + $0x128] sm:$0xf] %v6558_v17  ;;  %v8270_v63 = vmax.f32 %v12353_v20, %v8266_v56  ;;  %v6657_v21 = vsel %vm12324_vm1, %v6632_v47, %v14814_v4  ;;  %v6689_v8 = vsel %vm601_vm3, %v6684_v31, %v14815_v3  ;;  %v8284_v61 = vsel %vm14842_vm5, %v2612_v28, %v14815_v3  ;;  %v12073_v56 = vld [vmem:[#allocation23 + $0x118] sm:$0xff]  }
  0xed   : > { %v6661_v0 = vmax.f32 %v12353_v20, %v6657_v21  ;;  %v8341_v44 = vsel %vm14843_vm6, %v2727_v55, %v14815_v3  ;;  %6617 = vst [vmem:[#allocation23 + $0x12c] sm:$0xf] %v6615_v11  ;;  %8218 = vst [vmem:[#allocation23 + $0x19c] sm:$0xf] %v8216_v46  ;;  %v6714_v5 = vsel %vm12324_vm1, %v6689_v8, %v14814_v4  ;;  %11834 = vmatmul.mubr.msk.bf16.gmra.mrb[80].mxu0 %vm9048_vm7, %v12071_v35  ;;  %v10941_v35 = vld [vmem:[%s13290_s12 + $0x58] sm:$0xff]  }
  0xee   : > { %v8273_v38 = vpack.c.bf16 %v12185_v7, %v8270_v63  ;;  %v8289_v25 = vsel %vm601_vm3, %v8284_v61, %v14815_v3  ;;  %v8346_v53 = vsel %vm601_vm3, %v8341_v44, %v14815_v3  ;;  %v6718_v22 = vmax.f32 %v12353_v20, %v6714_v5  ;;  %11837 = vmatprep.mubr.msk.bf16.mxu0 %vm12186_vm0, %v12185_v7 }
  0xef   : > { %v6669_v33 = vmax.f32 %v6661_v0, %v12353_v20  ;;  %v8323_v37 = vsel %vm12324_vm1, %v8289_v25, %v14814_v4  ;;  %v8380_v50 = vsel %vm12324_vm1, %v8346_v53, %v14814_v4  ;;  %v2858_v43 = vunpack.c.l.bf16 %v10932_v36  ;;  %v12074_v0 = vld [vmem:[#allocation23 + $0x18c] sm:$0xff]  }
  0xf0   : > { %8275 = vst [vmem:[#allocation23 + $0x1a0] sm:$0xf] %v8273_v38  ;;  %v8327_v57 = vmax.f32 %v12353_v20, %v8323_v37  ;;  %v8384_v42 = vmax.f32 %v12353_v20, %v8380_v50  ;;  %v2973_v45 = vunpack.c.h.bf16 %v10932_v36  ;;  %v6726_v51 = vmax.f32 %v6718_v22, %v12353_v20  ;;  %11898 = vmatmul.mubr.msk.bf16.gmra.mrb[80].mxu1 %vm9048_vm7, %v12072_v27 }
  0xf1   : > { %v6672_v39 = vpack.c.bf16 %v12185_v7, %v6669_v33  ;;  %v2842_v40 = vunpack.c.l.bf16 %v10931_v54  ;;  %v2957_v19 = vunpack.c.h.bf16 %v10931_v54  ;;  %vm14844_vm8 = vcmp.lt.s32.totalorder %v13026_v30, 450  ;;  %11901 = vmatprep.mubr.msk.bf16.mxu1 %vm12186_vm0, %v12185_v7 }
  0xf2   : > { %v8330_v12 = vpack.c.bf16 %v12185_v7, %v8327_v57  ;;  %v8387_v26 = vpack.c.bf16 %v12185_v7, %v8384_v42  ;;  %v6741_v16 = vsel %vm14844_vm8, %v2858_v43, %v14815_v3  ;;  %vm14845_vm9 = vcmp.lt.s32.totalorder %v13082_v2, 450  ;;  %vm14846_vm10 = vmmov %vm14844_vm8  ;;  %v10952_v42 = vld [vmem:[%s13329_s19 + $0x60] sm:$0xff]  }
  0xf3   : > { %v6798_v58 = vsel %vm14845_vm9, %v2973_v45, %v14815_v3  ;;  %6674 = vst [vmem:[#allocation23 + $0x130] sm:$0xf] %v6672_v39  ;;  %v6729_v28 = vpack.c.bf16 %v12185_v7, %v6726_v51  ;;  %v6746_v17 = vsel %vm601_vm3, %v6741_v16, %v14815_v3  ;;  %v8398_v24 = vsel %vm14846_vm10, %v2842_v40, %v14815_v3  ;;  %vm14847_vm11 = vmmov %vm14845_vm9 }
  0xf4   : > { %v6803_v49 = vsel %vm601_vm3, %v6798_v58, %v14815_v3  ;;  %8332 = vst [vmem:[#allocation23 + $0x1a4] sm:$0xf] %v8330_v12  ;;  %8389 = vst [vmem:[#allocation23 + $0x1a8] sm:$0xf] %v8387_v26  ;;  %v6771_v47 = vsel %vm12324_vm1, %v6746_v17, %v14814_v4  ;;  %v8403_v55 = vsel %vm601_vm3, %v8398_v24, %v14815_v3  ;;  %v3088_v61 = vunpack.c.l.bf16 %v10942_v9  ;;  %v10951_v12 = vld [vmem:[%s13290_s12 + $0x60] sm:$0xff]   ;;  %v12075_v26 = vld [vmem:[#allocation23 + $0x120] sm:$0xff]  }
  0xf5   : > { %v6828_v31 = vsel %vm12324_vm1, %v6803_v49, %v14814_v4  ;;  %v8455_v30 = vsel %vm14847_vm11, %v2957_v19, %v14815_v3  ;;  %6731 = vst [vmem:[#allocation23 + $0x134] sm:$0xf] %v6729_v28  ;;  %v6775_v11 = vmax.f32 %v12353_v20, %v6771_v47  ;;  %v8437_v63 = vsel %vm12324_vm1, %v8403_v55, %v14814_v4  ;;  %v12076_v47 = vld [vmem:[#allocation23 + $0x194] sm:$0xff]  }
  0xf6   : > { %v6832_v46 = vmax.f32 %v12353_v20, %v6828_v31  ;;  %v8460_v21 = vsel %vm601_vm3, %v8455_v30, %v14815_v3  ;;  %v8441_v8 = vmax.f32 %v12353_v20, %v8437_v63  ;;  %v3203_v44 = vunpack.c.h.bf16 %v10942_v9  ;;  %11838 = vmatmul.mubr.msk.bf16.gmra.mrb[84].mxu0 %vm9048_vm7, %v12073_v56 }
  0xf7   : > { %v8494_v2 = vsel %vm12324_vm1, %v8460_v21, %v14814_v4  ;;  %v6783_v36 = vmax.f32 %v6775_v11, %v12353_v20  ;;  %v3072_v5 = vunpack.c.l.bf16 %v10941_v35  ;;  %vm14848_vm12 = vcmp.lt.s32.totalorder %v13139_v62, 450  ;;  %11841 = vmatprep.mubr.msk.bf16.mxu0 %vm12186_vm0, %v12185_v7 }
  0xf8   : > { %v6840_v27 = vmax.f32 %v6832_v46, %v12353_v20  ;;  %v8498_v38 = vmax.f32 %v12353_v20, %v8494_v2  ;;  %v8444_v25 = vpack.c.bf16 %v12185_v7, %v8441_v8  ;;  %v6855_v53 = vsel %vm14848_vm12, %v3088_v61, %v14815_v3  ;;  %11902 = vmatmul.mubr.msk.bf16.gmra.mrb[84].mxu1 %vm9048_vm7, %v12074_v0  ;;  %vm14850_vm4 = vmmov %vm14848_vm12  ;;  %v10962_v0 = vld [vmem:[%s13329_s19 + $0x68] sm:$0xff]  }
  0xf9   : > { %vm14849_vm2 = vcmp.lt.s32.totalorder %v13149_v29, 450  ;;  %v3187_v33 = vunpack.c.h.bf16 %v10941_v35  ;;  %v6786_v22 = vpack.c.bf16 %v12185_v7, %v6783_v36  ;;  %v6860_v57 = vsel %vm601_vm3, %v6855_v53, %v14815_v3  ;;  %11905 = vmatprep.mubr.msk.bf16.mxu1 %vm12186_vm0, %v12185_v7 }
  0xfa   : > { %v6912_v54 = vsel %vm14849_vm2, %v3203_v44, %v14815_v3  ;;  %v6843_v37 = vpack.c.bf16 %v12185_v7, %v6840_v27  ;;  %v8501_v50 = vpack.c.bf16 %v12185_v7, %v8498_v38  ;;  %8446 = vst [vmem:[#allocation23 + $0x1ac] sm:$0xf] %v8444_v25  ;;  %v6885_v43 = vsel %vm12324_vm1, %v6860_v57, %v14814_v4  ;;  %vm14851_vm5 = vmmov %vm14849_vm2  ;;  %v12077_v57 = vld [vmem:[#allocation23 + $0x128] sm:$0xff]  }
  0xfb   : > { %v6917_v45 = vsel %vm601_vm3, %v6912_v54, %v14815_v3  ;;  %v8512_v39 = vsel %vm14850_vm4, %v3072_v5, %v14815_v3  ;;  %v8569_v51 = vsel %vm14851_vm5, %v3187_v33, %v14815_v3  ;;  %6788 = vst [vmem:[#allocation23 + $0x138] sm:$0xf] %v6786_v22  ;;  %v6889_v40 = vmax.f32 %v12353_v20, %v6885_v43  ;;  %v10961_v5 = vld [vmem:[%s13290_s12 + $0x68] sm:$0xff]  }
  0xfc   : > { %6845 = vst [vmem:[#allocation23 + $0x13c] sm:$0xf] %v6843_v37  ;;  %8503 = vst [vmem:[#allocation23 + $0x1b0] sm:$0xf] %v8501_v50  ;;  %v6942_v19 = vsel %vm12324_vm1, %v6917_v45, %v14814_v4  ;;  %v8517_v62 = vsel %vm601_vm3, %v8512_v39, %v14815_v3  ;;  %v8574_v29 = vsel %vm601_vm3, %v8569_v51, %v14815_v3  ;;  %v3318_v17 = vunpack.c.l.bf16 %v10952_v42 }
  0xfd   : > { %v6946_v16 = vmax.f32 %v12353_v20, %v6942_v19  ;;  %v8551_v58 = vsel %vm12324_vm1, %v8517_v62, %v14814_v4  ;;  %v8608_v28 = vsel %vm12324_vm1, %v8574_v29, %v14814_v4  ;;  %v6897_v49 = vmax.f32 %v6889_v40, %v12353_v20  ;;  %v12078_v29 = vld [vmem:[#allocation23 + $0x19c] sm:$0xff]  }
  0xfe   : > { %v8555_v24 = vmax.f32 %v12353_v20, %v8551_v58  ;;  %v8612_v9 = vmax.f32 %v12353_v20, %v8608_v28  ;;  %v3433_v56 = vunpack.c.h.bf16 %v10952_v42  ;;  %vm14852_vm6 = vcmp.lt.s32.totalorder %v13210_v23, 450  ;;  %11842 = vmatmul.mubr.msk.bf16.gmra.mrb[88].mxu0 %vm9048_vm7, %v12075_v26 }
  0xff   : > { %v6954_v31 = vmax.f32 %v6946_v16, %v12353_v20  ;;  %v6969_v55 = vsel %vm14852_vm6, %v3318_v17, %v14815_v3  ;;  %v3302_v30 = vunpack.c.l.bf16 %v10951_v12  ;;  %v3417_v35 = vunpack.c.h.bf16 %v10951_v12  ;;  %vm14854_vm9 = vmmov %vm14852_vm6  ;;  %11845 = vmatprep.mubr.msk.bf16.mxu0 %vm12186_vm0, %v12185_v7 }
 0x100   : > { %v6900_v11 = vpack.c.bf16 %v12185_v7, %v6897_v49  ;;  %v8558_v46 = vpack.c.bf16 %v12185_v7, %v8555_v24  ;;  %v8615_v63 = vpack.c.bf16 %v12185_v7, %v8612_v9  ;;  %v6974_v21 = vsel %vm601_vm3, %v6969_v55, %v14815_v3  ;;  %11906 = vmatmul.mubr.msk.bf16.gmra.mrb[88].mxu1 %vm9048_vm7, %v12076_v47 }
 0x101   : > { %v6957_v8 = vpack.c.bf16 %v12185_v7, %v6954_v31  ;;  %v6999_v2 = vsel %vm12324_vm1, %v6974_v21, %v14814_v4  ;;  %vm14853_vm8 = vcmp.lt.s32.totalorder %v13216_v32, 450  ;;  %v8626_v44 = vsel %vm14854_vm9, %v3302_v30, %v14815_v3  ;;  %11909 = vmatprep.mubr.msk.bf16.mxu1 %vm12186_vm0, %v12185_v7 }
 0x102   : > { %v7026_v61 = vsel %vm14853_vm8, %v3433_v56, %v14815_v3  ;;  %6902 = vst [vmem:[#allocation23 + $0x140] sm:$0xf] %v6900_v11  ;;  %8560 = vst [vmem:[#allocation23 + $0x1b4] sm:$0xf] %v8558_v46  ;;  %v7003_v36 = vmax.f32 %v12353_v20, %v6999_v2  ;;  %v8631_v38 = vsel %vm601_vm3, %v8626_v44, %v14815_v3  ;;  %v3548_v33 = vunpack.c.l.bf16 %v10962_v0 }
 0x103   : > { %8617 = vst [vmem:[#allocation23 + $0x1b8] sm:$0xf] %v8615_v63  ;;  %v7031_v27 = vsel %vm601_vm3, %v7026_v61, %v14815_v3  ;;  %vm14855_vm10 = vmmov %vm14853_vm8  ;;  %v8665_v53 = vsel %vm12324_vm1, %v8631_v38, %v14814_v4  ;;  %v3663_v43 = vunpack.c.h.bf16 %v10962_v0  ;;  %vm14856_vm11 = vcmp.lt.s32.totalorder %v13283_v41, 450  ;;  %v12080_v38 = vld [vmem:[#allocation23 + $0x1a4] sm:$0xff]  }
 0x104   : > { %v8683_v23 = vsel %vm14855_vm10, %v3417_v35, %v14815_v3  ;;  %6959 = vst [vmem:[#allocation23 + $0x144] sm:$0xf] %v6957_v8  ;;  %v7056_v25 = vsel %vm12324_vm1, %v7031_v27, %v14814_v4  ;;  %v7011_v32 = vmax.f32 %v7003_v36, %v12353_v20  ;;  %v8669_v37 = vmax.f32 %v12353_v20, %v8665_v53  ;;  %vm14858_vm2 = vmmov %vm14856_vm11  ;;  %v12079_v8 = vld [vmem:[#allocation23 + $0x130] sm:$0xff]  }
 0x105   : > { %v8688_v54 = vsel %vm601_vm3, %v8683_v23, %v14815_v3  ;;  %v7060_v22 = vmax.f32 %v12353_v20, %v7056_v25  ;;  %v7083_v45 = vsel %vm14856_vm11, %v3548_v33, %v14815_v3  ;;  %v3532_v39 = vunpack.c.l.bf16 %v10961_v5 }
 0x106   : > { %v8722_v50 = vsel %vm12324_vm1, %v8688_v54, %v14814_v4  ;;  %v7014_v51 = vpack.c.bf16 %v12185_v7, %v7011_v32  ;;  %v8672_v19 = vpack.c.bf16 %v12185_v7, %v8669_v37  ;;  %v7088_v62 = vsel %vm601_vm3, %v7083_v45, %v14815_v3  ;;  %11846 = vmatmul.mubr.msk.bf16.gmra.mrb[92].mxu0 %vm9048_vm7, %v12077_v57 }
 0x107   : > { %v8726_v42 = vmax.f32 %v12353_v20, %v8722_v50  ;;  %v7068_v40 = vmax.f32 %v7060_v22, %v12353_v20  ;;  %v7113_v26 = vsel %vm12324_vm1, %v7088_v62, %v14814_v4  ;;  %vm14857_vm12 = vcmp.lt.s32.totalorder %v13301_v52, 450  ;;  %11849 = vmatprep.mubr.msk.bf16.mxu0 %vm12186_vm0, %v12185_v7 }
 0x108   : > { %v7140_v16 = vsel %vm14857_vm12, %v3663_v43, %v14815_v3  ;;  %v3647_v58 = vunpack.c.h.bf16 %v10961_v5  ;;  %7016 = vst [vmem:[#allocation23 + $0x148] sm:$0xf] %v7014_v51  ;;  %8674 = vst [vmem:[#allocation23 + $0x1bc] sm:$0xf] %v8672_v19  ;;  %v7117_v17 = vmax.f32 %v12353_v20, %v7113_v26  ;;  %v8740_v24 = vsel %vm14858_vm2, %v3532_v39, %v14815_v3  ;;  %v14239_v23 = vpop.f32.mrb[0].mxu0  ;;  %v12081_v39 = vld [vmem:[#allocation23 + $0x138] sm:$0xff]  }
 0x109   : > { %v8729_v12 = vpack.c.bf16 %v12185_v7, %v8726_v42  ;;  %v7071_v28 = vpack.c.bf16 %v12185_v7, %v7068_v40  ;;  %v7145_v49 = vsel %vm601_vm3, %v7140_v16, %v14815_v3  ;;  %v8745_v56 = vsel %vm601_vm3, %v8740_v24, %v14815_v3  ;;  %vm14859_vm4 = vmmov %vm14857_vm12  ;;  %11910 = vmatmul.mubr.msk.bf16.gmra.mrb[92].mxu1 %vm9048_vm7, %v12078_v29  ;;  %v14244_v60 = vpop.f32.mrb[0].mxu1  ;;  %v11687_v25 = vpop.f32.mrb[1].mxu0  ;;  %v12082_v40 = vld [vmem:[#allocation23 + $0x1ac] sm:$0xff]  }
 0x10a   : > { %v7170_v9 = vsel %vm12324_vm1, %v7145_v49, %v14814_v4  ;;  %v8797_v47 = vsel %vm14859_vm4, %v3647_v58, %v14815_v3  ;;  %v7196_v41 = vsel %vm13411_vm13, %v14815_v3, %v3803_v14  ;;  %v7125_v31 = vmax.f32 %v7117_v17, %v12353_v20  ;;  %11913 = vmatprep.mubr.msk.bf16.mxu1 %vm12186_vm0, %v12185_v7  ;;  %v11751_v54 = vpop.f32.mrb[1].mxu1  ;;  %v14256_v33 = vpop.f32.mrb[2].mxu0  ;;  %v12084_v24 = vld [vmem:[#allocation23 + $0x1b4] sm:$0xff]  }
 0x10b   : > { %8731 = vst [vmem:[#allocation23 + $0x1c0] sm:$0xf] %v8729_v12  ;;  %7073 = vst [vmem:[#allocation23 + $0x14c] sm:$0xf] %v7071_v28  ;;  %v7174_v55 = vmax.f32 %v12353_v20, %v7170_v9  ;;  %v8779_v30 = vsel %vm12324_vm1, %v8745_v56, %v14814_v4  ;;  %v8802_v52 = vsel %vm601_vm3, %v8797_v47, %v14815_v3  ;;  %v14263_v22 = vpop.f32.mrb[2].mxu1  ;;  %v11688_v37 = vpop.f32.mrb[3].mxu0 }
 0x10c   : > { %v8783_v34 = vmax.f32 %v12353_v20, %v8779_v30  ;;  %v8836_v14 = vsel %vm12324_vm1, %v8802_v52, %v14814_v4  ;;  %v7204_v35 = vsel %vm3779_vm15, %v7196_v41, %v14815_v3  ;;  %v8851_v11 = vsel %vm13411_vm13, %v14815_v3, %v13349_v15  ;;  %v11752_v42 = vpop.f32.mrb[3].mxu1  ;;  %v12083_v49 = vld [vmem:[#allocation23 + $0x140] sm:$0xff]  }
 0x10d   : > { %v7128_v46 = vpack.c.bf16 %v12185_v7, %v7125_v31  ;;  %v7182_v63 = vmax.f32 %v7174_v55, %v12353_v20  ;;  %v8840_v21 = vmax.f32 %v12353_v20, %v8836_v14  ;;  %v7209_v0 = vsel %vm601_vm3, %v7204_v35, %v14815_v3 }
 0x10e   : > { %v8786_v2 = vpack.c.bf16 %v12185_v7, %v8783_v34  ;;  %v7236_v15 = vsel %vm12324_vm1, %v7209_v0, %v14814_v4  ;;  %v8859_v48 = vsel %vm3779_vm15, %v8851_v11, %v14815_v3  ;;  %v8874_v61 = vsel %vm3809_vm14, %v14815_v3, %v3841_v6  ;;  %11850 = vmatmul.mubr.msk.bf16.gmra.mrb[96].mxu0 %vm9048_vm7, %v12079_v8 }
 0x10f   : > { %7130 = vst [vmem:[#allocation23 + $0x150] sm:$0xf] %v7128_v46  ;;  %v7185_v44 = vpack.c.bf16 %v12185_v7, %v7182_v63  ;;  %v8843_v36 = vpack.c.bf16 %v12185_v7, %v8840_v21  ;;  %v7240_v27 = vmax.f32 %v12353_v20, %v7236_v15  ;;  %v8882_v5 = vsel %vm3779_vm15, %v8874_v61, %v14815_v3 }
 0x110   : > { %8788 = vst [vmem:[#allocation23 + $0x1c4] sm:$0xf] %v8786_v2  ;;  %v8864_v6 = vsel %vm601_vm3, %v8859_v48, %v14815_v3  ;;  %v8887_v53 = vsel %vm601_vm3, %v8882_v5, %v14815_v3  ;;  %11853 = vmatprep.mubr.msk.bf16.mxu0 %vm12186_vm0, %v12185_v7 }
 0x111   : > { %7187 = vst [vmem:[#allocation23 + $0x154] sm:$0xf] %v7185_v44  ;;  %8845 = vst [vmem:[#allocation23 + $0x1c8] sm:$0xf] %v8843_v36  ;;  %v7248_v18 = vmax.f32 %v7240_v27, %v12353_v20  ;;  %v8903_v32 = vsel %vm12324_vm1, %v8887_v53, %v14814_v4  ;;  %11914 = vmatmul.mubr.msk.bf16.gmra.mrb[96].mxu1 %vm9048_vm7, %v12080_v38  ;;  %v8919_v43 = vsel %vm12324_vm1, %v8864_v6, %v14814_v4  ;;  %v14276_v19 = vpop.f32.mrb[4].mxu0 }
 0x112   : > { %v8907_v50 = vmax.f32 %v12353_v20, %v8903_v32  ;;  %11917 = vmatprep.mubr.msk.bf16.mxu1 %vm12186_vm0, %v12185_v7  ;;  %v14278_v62 = vpop.f32.mrb[4].mxu1  ;;  %v11691_v29 = vpop.f32.mrb[5].mxu0  ;;  %v12085_v35 = vld [vmem:[#allocation23 + $0x148] sm:$0xff]   ;;  %v12086_v11 = vld [vmem:[#allocation23 + $0x1bc] sm:$0xff]  }
 0x113   : > { %v7251_v10 = vpack.c.bf16 %v12185_v7, %v7248_v18  ;;  %v11755_v26 = vpop.f32.mrb[5].mxu1  ;;  %v14284_v16 = vpop.f32.mrb[6].mxu0 }
 0x114   : > { %v8915_v45 = vmax.f32 %v8907_v50, %v12353_v20  ;;  %v14288_v20 = vpop.f32.mrb[6].mxu1  ;;  %v11692_v58 = vpop.f32.mrb[7].mxu0 }
 0x115   : > { %7253 = vst [vmem:[#allocation23 + $0x158] sm:$0xf] %v7251_v10  ;;  %v11756_v17 = vpop.f32.mrb[7].mxu1 }
 0x116   : > { %v8923_v51 = vmax.f32 %v8915_v45, %v8919_v43  ;;  %11854 = vmatmul.mubr.msk.bf16.gmra.mrb[100].mxu0 %vm9048_vm7, %v12081_v39 }
 0x117   : > { %11857 = vmatprep.mubr.msk.bf16.mxu0 %vm12186_vm0, %v12185_v7 }
 0x118   : > { %v8926_v12 = vpack.c.bf16 %v12185_v7, %v8923_v51  ;;  %v12087_v61 = vld [vmem:[#allocation23 + $0x150] sm:$0xff]   ;;  %v12088_v27 = vld [vmem:[#allocation23 + $0x1c4] sm:$0xff]  }
 0x119   : > { %11918 = vmatmul.mubr.msk.bf16.gmra.mrb[100].mxu1 %vm9048_vm7, %v12082_v40 }
 0x11a   : > { %8928 = vst [vmem:[#allocation23 + $0x1cc] sm:$0xf] %v8926_v12  ;;  %11921 = vmatprep.mubr.msk.bf16.mxu1 %vm12186_vm0, %v12185_v7  ;;  %v14295_v9 = vpop.f32.mrb[8].mxu0 }
 0x11b   : > { %v14298_v56 = vpop.f32.mrb[8].mxu1  ;;  %v11695_v47 = vpop.f32.mrb[9].mxu0 }
 0x11c   : > { %v11759_v31 = vpop.f32.mrb[9].mxu1  ;;  %v14304_v55 = vpop.f32.mrb[10].mxu0  ;;  %v12089_v18 = vld [vmem:[#allocation23 + $0x158] ss:$0 sps:$4 sm:$0xff]  }
 0x11d   : > { %v14307_v30 = vpop.f32.mrb[10].mxu1  ;;  %v11696_v52 = vpop.f32.mrb[11].mxu0 }
 0x11e   : > { %11858 = vmatmul.mubr.msk.bf16.gmra.mrb[104].mxu0 %vm9048_vm7, %v12083_v49  ;;  %v11760_v14 = vpop.f32.mrb[11].mxu1 }
 0x11f   : > { %11861 = vmatprep.mubr.msk.bf16.mxu0 %vm12186_vm0, %v12185_v7 }
 0x121   : > { %11922 = vmatmul.mubr.msk.bf16.gmra.mrb[104].mxu1 %vm9048_vm7, %v12084_v24  ;;  %v12090_v37 = vld [vmem:[#allocation23 + $0x1cc] ss:$0 sps:$4 sm:$0xff]  }
 0x122   : > { %11925 = vmatprep.mubr.msk.bf16.mxu1 %vm12186_vm0, %v12185_v7 }
 0x123   : > { %v14314_v46 = vpop.f32.mrb[12].mxu0 }
 0x124   : > { %v14318_v63 = vpop.f32.mrb[12].mxu1  ;;  %v11699_v21 = vpop.f32.mrb[13].mxu0 }
 0x125   : > { %v11763_v8 = vpop.f32.mrb[13].mxu1  ;;  %v14323_v2 = vpop.f32.mrb[14].mxu0 }
 0x126   : > { %11862 = vmatmul.mubr.msk.bf16.gmra.mrb[108].mxu0 %vm9048_vm7, %v12085_v35  ;;  %v14327_v15 = vpop.f32.mrb[14].mxu1  ;;  %v11700_v48 = vpop.f32.mrb[15].mxu0 }
 0x127   : > { %11865 = vmatprep.mubr.msk.bf16.mxu0 %vm12186_vm0, %v12185_v7  ;;  %v11764_v36 = vpop.f32.mrb[15].mxu1 }
 0x129   : > { %11926 = vmatmul.mubr.msk.bf16.gmra.mrb[108].mxu1 %vm9048_vm7, %v12086_v11 }
 0x12a   : > { %11929 = vmatprep.mubr.msk.bf16.mxu1 %vm12186_vm0, %v12185_v7 }
 0x12c   : > { %v14334_v38 = vpop.f32.mrb[16].mxu0 }
 0x12d   : > { %v11703_v5 = vpop.f32.mrb[17].mxu0 }
 0x12e   : > { %11866 = vmatmul.mubr.msk.bf16.gmra.mrb[112].mxu0 %vm9048_vm7, %v12087_v61  ;;  %v14339_v25 = vpop.f32.mrb[18].mxu0 }
 0x12f   : > { %11869 = vmatprep.mubr.msk.bf16.mxu0 %vm12186_vm0, %v12185_v7  ;;  %v14341_v6 = vpop.f32.mrb[16].mxu1  ;;  %v11704_v53 = vpop.f32.mrb[19].mxu0 }
 0x130   : > { %v11767_v32 = vpop.f32.mrb[17].mxu1 }
 0x131   : > { %11930 = vmatmul.mubr.msk.bf16.gmra.mrb[112].mxu1 %vm9048_vm7, %v12088_v27  ;;  %v14345_v10 = vpop.f32.mrb[18].mxu1 }
 0x132   : > { %11933 = vmatprep.mubr.msk.bf16.mxu1 %vm12186_vm0, %v12185_v7  ;;  %v11768_v42 = vpop.f32.mrb[19].mxu1  ;;  %vm10415_vm0 = vcmask 257024  }
 0x135   : > { %v14351_v7 = vpop.f32.mrb[20].mxu0 }
 0x136   : > { %11870 = vmatmul.mubr.msk.bf16.gmra.mrb[116].mxu0 %vm9048_vm7, %v12089_v18  ;;  %v11707_v43 = vpop.f32.mrb[21].mxu0 }
 0x137   : > { %v14353_v45 = vpop.f32.mrb[22].mxu0 }
 0x138   : > { %v14355_v39 = vpop.f32.mrb[20].mxu1  ;;  %v11708_v51 = vpop.f32.mrb[23].mxu0 }
 0x139   : > { %11934 = vmatmul.mubr.msk.bf16.gmra.mrb[116].mxu1 %vm9048_vm7, %v12090_v37  ;;  %v11771_v29 = vpop.f32.mrb[21].mxu1 }
 0x13a   : > { %v14359_v12 = vpop.f32.mrb[22].mxu1 }
 0x13b   : > { %v11772_v58 = vpop.f32.mrb[23].mxu1 }
 0x140   : > { %v14363_v17 = vpop.f32.mrb[24].mxu0 }
 0x141   : > { %v14365_v49 = vpop.f32.mrb[24].mxu1  ;;  %v11711_v24 = vpop.f32.mrb[25].mxu0 }
 0x142   : > { %v11775_v31 = vpop.f32.mrb[25].mxu1  ;;  %v14369_v52 = vpop.f32.mrb[26].mxu0 }
 0x143   : > { %v14371_v14 = vpop.f32.mrb[26].mxu1  ;;  %v11712_v35 = vpop.f32.mrb[27].mxu0 }
 0x144   : > { %v11776_v21 = vpop.f32.mrb[27].mxu1 }
 0x148   : > { %v14375_v8 = vpop.f32.mrb[28].mxu0 }
 0x149   : > { %v11715_v48 = vpop.f32.mrb[29].mxu0 }
 0x14a   : > { %v14377_v61 = vpop.f32.mrb[30].mxu0 }
 0x14b   : > { %v14379_v36 = vpop.f32.mrb[28].mxu1  ;;  %v11716_v27 = vpop.f32.mrb[31].mxu0 }
 0x14c   : > { %v11779_v18 = vpop.f32.mrb[29].mxu1 }
 0x14d   : > { %v14383_v53 = vpop.f32.mrb[30].mxu1 }
 0x14e   : > { %v11780_v37 = vpop.f32.mrb[31].mxu1 }
 0x152   : > { %v14387_v42 = vpop.f32.mrb[32].mxu0 }
 0x153   : > { %v11719_v43 = vpop.f32.mrb[33].mxu0 }
 0x154   : > { %v14391_v29 = vpop.f32.mrb[34].mxu0 }
 0x155   : > { %v14389_v51 = vpop.f32.mrb[32].mxu1  ;;  %v11720_v31 = vpop.f32.mrb[35].mxu0 }
 0x156   : > { %v11783_v24 = vpop.f32.mrb[33].mxu1 }
 0x157   : > { %v14395_v35 = vpop.f32.mrb[34].mxu1 }
 0x158   : > { %v11784_v48 = vpop.f32.mrb[35].mxu1 }
 0x15d   : > { %v14399_v27 = vpop.f32.mrb[36].mxu0 }
 0x15e   : > { %v14401_v18 = vpop.f32.mrb[36].mxu1  ;;  %v11723_v37 = vpop.f32.mrb[37].mxu0 }
 0x15f   : > { %v11787_v1 = vpop.f32.mrb[37].mxu1  ;;  %v14405_v32 = vpop.f32.mrb[38].mxu0 }
 0x160   : > { %v14407_v58 = vpop.f32.mrb[38].mxu1  ;;  %v11724_v24 = vpop.f32.mrb[39].mxu0 }
 0x161   : > { %v11788_v5 = vpop.f32.mrb[39].mxu1 }
 0x165   : > { %v14411_v21 = vpop.f32.mrb[40].mxu0 }
 0x166   : > { %v11727_v48 = vpop.f32.mrb[41].mxu0 }
 0x167   : > { %v14415_v47 = vpop.f32.mrb[42].mxu0 }
 0x168   : > { %v14413_v11 = vpop.f32.mrb[40].mxu1  ;;  %v11728_v43 = vpop.f32.mrb[43].mxu0 }
 0x169   : > { %v11791_v1 = vpop.f32.mrb[41].mxu1 }
 0x16a   : > { %v14419_v26 = vpop.f32.mrb[42].mxu1 }
 0x16b   : > { %v11792_v40 = vpop.f32.mrb[43].mxu1 }
 0x16f   : > { %v14423_v31 = vpop.f32.mrb[44].mxu0 }
 0x170   : > { %v11731_v5 = vpop.f32.mrb[45].mxu0 }
 0x171   : > { %v14425_v50 = vpop.f32.mrb[44].mxu1  ;;  %v14427_v48 = vpop.f32.mrb[46].mxu0 }
 0x172   : > { %v11795_v44 = vpop.f32.mrb[45].mxu1  ;;  %v11732_v37 = vpop.f32.mrb[47].mxu0 }
 0x173   : > { %v14431_v1 = vpop.f32.mrb[46].mxu1 }
 0x174   : > { %v11796_v0 = vpop.f32.mrb[47].mxu1 }
 0x178   : > { %v14435_v24 = vpop.f32.mrb[48].mxu0 }
 0x179   : > { %14860 = vst [vmem:[#allocation26_spill] sm:$0xff] %v14435_v24  ;;  %v11735_v5 = vpop.f32.mrb[49].mxu0 }
 0x17a   : > { %v14437_v40 = vpop.f32.mrb[48].mxu1  ;;  %v14441_v28 = vpop.f32.mrb[50].mxu0 }
 0x17b   : > { %14861 = vst [vmem:[#allocation27_spill] sm:$0xff] %v14437_v40  ;;  %v11799_v41 = vpop.f32.mrb[49].mxu1  ;;  %14862 = vst [vmem:[#allocation28_spill] sm:$0xff] %v14441_v28  ;;  %v11736_v44 = vpop.f32.mrb[51].mxu0 }
 0x17c   : > { %v14443_v54 = vpop.f32.mrb[50].mxu1 }
 0x17d   : > { %14863 = vst [vmem:[#allocation29_spill] sm:$0xff] %v14443_v54  ;;  %v11800_v13 = vpop.f32.mrb[51].mxu1 }
 0x183   : > { %v14447_v43 = vpop.f32.mrb[52].mxu0  ;;  %v14449_v0 = vpop.f32.mrb[52].mxu1 }
 0x184   : > { %14864 = vst [vmem:[#allocation30_spill] sm:$0xff] %v14447_v43  ;;  %14865 = vst [vmem:[#allocation31_spill] sm:$0xff] %v14449_v0  ;;  %v11739_v57 = vpop.f32.mrb[53].mxu0  ;;  %v11803_v59 = vpop.f32.mrb[53].mxu1 }
 0x185   : > { %v14453_v34 = vpop.f32.mrb[54].mxu0  ;;  %v14455_v41 = vpop.f32.mrb[54].mxu1 }
 0x186   : > { %14866 = vst [vmem:[#allocation32_spill] sm:$0xff] %v14453_v34  ;;  %14867 = vst [vmem:[#allocation33_spill] sm:$0xff] %v14455_v41  ;;  %v11740_v3 = vpop.f32.mrb[55].mxu0  ;;  %v11804_v37 = vpop.f32.mrb[55].mxu1 }
 0x187   : > { %v14870_v3 = vmax.f32 %v14239_v23, %v14244_v60 }
 0x18f   : > { %v14459_v13 = vpop.f32.mrb[56].mxu0 }
 0x190   : > { %14868 = vst [vmem:[#allocation34_spill] sm:$0xff] %v14459_v13  ;;  %v11743_v4 = vpop.f32.mrb[57].mxu0 }
 0x191   : > { %v14461_v54 = vpop.f32.mrb[56].mxu1  ;;  %v9243_v57 = vpop.f32.mrb[58].mxu0  ;;  %v14472_v4 = vld [vmem:[%s14772_s1] ss:$0 sm:$0xff] }
 0x192   : > { %14869 = vst [vmem:[#allocation35_spill] sm:$0xff] %v14461_v54  ;;  %v11807_v59 = vpop.f32.mrb[57].mxu1  ;;  %v11744_v0 = vpop.f32.mrb[59].mxu0 }
 0x193   : > { %v9543_v43 = vpop.f32.mrb[58].mxu1 }
 0x194   : > { %v11808_v28 = vpop.f32.mrb[59].mxu1  ;;  %v14871_v43 = vmax.f32 %v14256_v33, %v14263_v22 }
 0x197   : > { %v9757_v40 = vpop.f32.mrb[60].mxu0 }
 0x198   : > { %v9875_v24 = vmax.f32 %v14870_v3, %v9757_v40  ;;  %v11815_v37 = vpop.f32.mrb[61].mxu0 }
 0x199   : > { %v10086_v44 = vpop.f32.mrb[60].mxu1  ;;  %v9760_v57 = vpop.f32.mrb[62].mxu0 }
 0x19a   : > { %v10204_v41 = vmax.f32 %v9875_v24, %v10086_v44  ;;  %v11879_v5 = vpop.f32.mrb[61].mxu1  ;;  %v9876_v28 = vmax.f32 %v14871_v43, %v9760_v57  ;;  %v11816_v0 = vpop.f32.mrb[63].mxu0  ;;  %v14872_v24 = vmax.f32 %v14276_v19, %v14278_v62 }
 0x19b   : > { %v10089_v59 = vpop.f32.mrb[62].mxu1 }
 0x19c   : > { %v10240_v23 = vadd.f32 %v14472_v4, %v10204_v41  ;;  %v10205_v60 = vmax.f32 %v9876_v28, %v10089_v59  ;;  %v11880_v40 = vpop.f32.mrb[63].mxu1  ;;  %v14873_v28 = vmax.f32 %v14284_v16, %v14288_v20  ;;  %v14874_v16 = vmax.f32 %v14295_v9, %v14298_v56 }
 0x19e   : > { %v10269_v3 = vmax.f32 %v10240_v23, 0.0  ;;  %v10241_v37 = vadd.f32 %v14472_v4, %v10205_v60 }
 0x19f   : > { %v9765_v54 = vpop.f32.mrb[64].mxu0 }
 0x1a0   : > { %v11467_v13 = vpack.c.bf16 %v10269_v3, %v10269_v3  ;;  %v10270_v34 = vmax.f32 %v10241_v37, 0.0  ;;  %v9877_v5 = vmax.f32 %v14872_v24, %v9765_v54  ;;  %v11819_v33 = vpop.f32.mrb[65].mxu0 }
 0x1a1   : > { %v10094_v22 = vpop.f32.mrb[64].mxu1  ;;  %v9768_v44 = vpop.f32.mrb[66].mxu0 }
 0x1a2   : > { %10416 = vst.msk [vmem:[%s14482_s15] sm:$0xf] %vm10415_vm0, %v11467_v13  ;;  %v11468_v41 = vpack.c.bf16 %v10270_v34, %v10270_v34  ;;  %v10206_v57 = vmax.f32 %v9877_v5, %v10094_v22  ;;  %v11883_v43 = vpop.f32.mrb[65].mxu1  ;;  %v9878_v0 = vmax.f32 %v14873_v28, %v9768_v44  ;;  %v11820_v59 = vpop.f32.mrb[67].mxu0 }
 0x1a3   : > { %v10097_v19 = vpop.f32.mrb[66].mxu1 }
 0x1a4   : > { %10417 = vst.msk [vmem:[%s14482_s15 + $0x4] sm:$0xf] %vm10415_vm0, %v11468_v41  ;;  %v10242_v62 = vadd.f32 %v14472_v4, %v10206_v57  ;;  %v10207_v54 = vmax.f32 %v9878_v0, %v10097_v19  ;;  %v11884_v23 = vpop.f32.mrb[67].mxu1  ;;  %v14875_v41 = vmax.f32 %v14304_v55, %v14307_v30  ;;  %v14876_v55 = vmax.f32 %v14314_v46, %v14318_v63 }
 0x1a6   : > { %v10271_v60 = vmax.f32 %v10242_v62, 0.0  ;;  %v10243_v13 = vadd.f32 %v14472_v4, %v10207_v54 }
 0x1a7   : > { %v9773_v34 = vpop.f32.mrb[68].mxu0 }
 0x1a8   : > { %v11469_v40 = vpack.c.bf16 %v10271_v60, %v10271_v60  ;;  %v10272_v3 = vmax.f32 %v10243_v13, 0.0  ;;  %v9879_v20 = vmax.f32 %v14874_v16, %v9773_v34  ;;  %v11823_v37 = vpop.f32.mrb[69].mxu0 }
 0x1a9   : > { %v10102_v24 = vpop.f32.mrb[68].mxu1  ;;  %v9776_v5 = vpop.f32.mrb[70].mxu0 }
 0x1aa   : > { %10418 = vst.msk [vmem:[%s14482_s15 + $0x8] sm:$0xf] %vm10415_vm0, %v11469_v40  ;;  %v11470_v33 = vpack.c.bf16 %v10272_v3, %v10272_v3  ;;  %v10208_v22 = vmax.f32 %v9879_v20, %v10102_v24  ;;  %v11887_v44 = vpop.f32.mrb[69].mxu1  ;;  %v9880_v57 = vmax.f32 %v14875_v41, %v9776_v5  ;;  %v11824_v43 = vpop.f32.mrb[71].mxu0  ;;  %v14877_v20 = vmax.f32 %v14323_v2, %v14327_v15 }
 0x1ab   : > { %v10105_v28 = vpop.f32.mrb[70].mxu1  ;;  %v14878_v2 = vmax.f32 %v14334_v38, %v14341_v6 }
 0x1ac   : > { %10419 = vst.msk [vmem:[%s14482_s15 + $0xc] sm:$0xf] %vm10415_vm0, %v11470_v33  ;;  %v10244_v9 = vadd.f32 %v14472_v4, %v10208_v22  ;;  %v10209_v56 = vmax.f32 %v9880_v57, %v10105_v28  ;;  %v11888_v0 = vpop.f32.mrb[71].mxu1 }
 0x1ae   : > { %v10273_v59 = vmax.f32 %v10244_v9, 0.0  ;;  %v10245_v19 = vadd.f32 %v14472_v4, %v10209_v56 }
 0x1af   : > { %v9781_v62 = vpop.f32.mrb[72].mxu0 }
 0x1b0   : > { %v11471_v54 = vpack.c.bf16 %v10273_v59, %v10273_v59  ;;  %v10274_v23 = vmax.f32 %v10245_v19, 0.0  ;;  %v9881_v30 = vmax.f32 %v14876_v55, %v9781_v62  ;;  %v11827_v60 = vpop.f32.mrb[73].mxu0  ;;  %v14879_v62 = vmax.f32 %v14339_v25, %v14345_v10 }
 0x1b1   : > { %v9784_v34 = vpop.f32.mrb[74].mxu0  ;;  %v14880_v25 = vmax.f32 %v14351_v7, %v14355_v39 }
 0x1b2   : > { %v10110_v13 = vpop.f32.mrb[72].mxu1  ;;  %10420 = vst.msk [vmem:[%s14482_s15 + $0x10] sm:$0xf] %vm10415_vm0, %v11471_v54  ;;  %v11472_v40 = vpack.c.bf16 %v10274_v23, %v10274_v23  ;;  %v9882_v37 = vmax.f32 %v14877_v20, %v9784_v34  ;;  %v11828_v24 = vpop.f32.mrb[75].mxu0 }
 0x1b3   : > { %v10210_v3 = vmax.f32 %v9881_v30, %v10110_v13  ;;  %v11891_v16 = vpop.f32.mrb[73].mxu1 }
 0x1b4   : > { %v10113_v5 = vpop.f32.mrb[74].mxu1  ;;  %10421 = vst.msk [vmem:[%s14482_s15 + $0x14] sm:$0xf] %vm10415_vm0, %v11472_v40 }
 0x1b5   : > { %v10246_v46 = vadd.f32 %v14472_v4, %v10210_v3  ;;  %v10211_v63 = vmax.f32 %v9882_v37, %v10113_v5  ;;  %v11892_v33 = vpop.f32.mrb[75].mxu1 }
 0x1b7   : > { %v10275_v22 = vmax.f32 %v10246_v46, 0.0  ;;  %v10247_v44 = vadd.f32 %v14472_v4, %v10211_v63  ;;  %v9789_v41 = vpop.f32.mrb[76].mxu0  ;;  %v14881_v63 = vmax.f32 %v14353_v45, %v14359_v12  ;;  %v14882_v45 = vmax.f32 %v14363_v17, %v14365_v49 }
 0x1b8   : > { %v9883_v15 = vmax.f32 %v14878_v2, %v9789_v41  ;;  %v11831_v28 = vpop.f32.mrb[77].mxu0 }
 0x1b9   : > { %v11473_v57 = vpack.c.bf16 %v10275_v22, %v10275_v22  ;;  %v10276_v43 = vmax.f32 %v10247_v44, 0.0  ;;  %v9792_v56 = vpop.f32.mrb[78].mxu0 }
 0x1ba   : > { %v9884_v54 = vmax.f32 %v14879_v62, %v9792_v56  ;;  %v11832_v23 = vpop.f32.mrb[79].mxu0 }
 0x1bb   : > { %v10118_v9 = vpop.f32.mrb[76].mxu1  ;;  %10422 = vst.msk [vmem:[%s14482_s15 + $0x18] sm:$0xf] %vm10415_vm0, %v11473_v57  ;;  %v11474_v0 = vpack.c.bf16 %v10276_v43, %v10276_v43 }
 0x1bc   : > { %v10212_v59 = vmax.f32 %v9883_v15, %v10118_v9  ;;  %v11895_v19 = vpop.f32.mrb[77].mxu1 }
 0x1bd   : > { %v10121_v55 = vpop.f32.mrb[78].mxu1  ;;  %10423 = vst.msk [vmem:[%s14482_s15 + $0x1c] sm:$0xf] %vm10415_vm0, %v11474_v0 }
 0x1be   : > { %v10248_v38 = vadd.f32 %v14472_v4, %v10212_v59  ;;  %v10213_v6 = vmax.f32 %v9884_v54, %v10121_v55  ;;  %v11896_v30 = vpop.f32.mrb[79].mxu1  ;;  %v14883_v54 = vmax.f32 %v14369_v52, %v14371_v14  ;;  %v14884_v52 = vmax.f32 %v14375_v8, %v14379_v36 }
 0x1c0   : > { %v10277_v60 = vmax.f32 %v10248_v38, 0.0  ;;  %v10249_v13 = vadd.f32 %v14472_v4, %v10213_v6  ;;  %v9797_v34 = vpop.f32.mrb[80].mxu0 }
 0x1c1   : > { %v9885_v10 = vmax.f32 %v14880_v25, %v9797_v34  ;;  %v11835_v16 = vpop.f32.mrb[81].mxu0 }
 0x1c2   : > { %v11475_v40 = vpack.c.bf16 %v10277_v60, %v10277_v60  ;;  %v10278_v3 = vmax.f32 %v10249_v13, 0.0  ;;  %v9800_v37 = vpop.f32.mrb[82].mxu0 }
 0x1c3   : > { %v10126_v20 = vpop.f32.mrb[80].mxu1  ;;  %v9886_v33 = vmax.f32 %v14881_v63, %v9800_v37  ;;  %v11836_v22 = vpop.f32.mrb[83].mxu0 }
 0x1c4   : > { %10424 = vst.msk [vmem:[%s14482_s15 + $0x20] sm:$0xf] %vm10415_vm0, %v11475_v40  ;;  %v11476_v24 = vpack.c.bf16 %v10278_v3, %v10278_v3  ;;  %v10214_v5 = vmax.f32 %v9885_v10, %v10126_v20  ;;  %v11899_v46 = vpop.f32.mrb[81].mxu1 }
 0x1c5   : > { %v10129_v44 = vpop.f32.mrb[82].mxu1 }
 0x1c6   : > { %10425 = vst.msk [vmem:[%s14482_s15 + $0x24] sm:$0xf] %vm10415_vm0, %v11476_v24  ;;  %v10250_v7 = vadd.f32 %v14472_v4, %v10214_v5  ;;  %v10215_v39 = vmax.f32 %v9886_v33, %v10129_v44  ;;  %v11900_v41 = vpop.f32.mrb[83].mxu1  ;;  %v14885_v24 = vmax.f32 %v14377_v61, %v14383_v53  ;;  %v14886_v61 = vmax.f32 %v14387_v42, %v14389_v51 }
 0x1c8   : > { %v10279_v57 = vmax.f32 %v10250_v7, 0.0  ;;  %v10251_v43 = vadd.f32 %v14472_v4, %v10215_v39 }
 0x1c9   : > { %v9805_v2 = vpop.f32.mrb[84].mxu0 }
 0x1ca   : > { %v11477_v15 = vpack.c.bf16 %v10279_v57, %v10279_v57  ;;  %v10280_v28 = vmax.f32 %v10251_v43, 0.0  ;;  %v9887_v12 = vmax.f32 %v14882_v45, %v9805_v2  ;;  %v11839_v9 = vpop.f32.mrb[85].mxu0 }
 0x1cb   : > { %v10134_v56 = vpop.f32.mrb[84].mxu1  ;;  %v9808_v0 = vpop.f32.mrb[86].mxu0 }
 0x1cc   : > { %10426 = vst.msk [vmem:[%s14482_s15 + $0x28] sm:$0xf] %vm10415_vm0, %v11477_v15  ;;  %v11478_v59 = vpack.c.bf16 %v10280_v28, %v10280_v28  ;;  %v10216_v19 = vmax.f32 %v9887_v12, %v10134_v56  ;;  %v11903_v62 = vpop.f32.mrb[85].mxu1  ;;  %v9888_v23 = vmax.f32 %v14883_v54, %v9808_v0  ;;  %v11840_v55 = vpop.f32.mrb[87].mxu0  ;;  %v14887_v12 = vmax.f32 %v14391_v29, %v14395_v35 }
 0x1cd   : > { %v10137_v38 = vpop.f32.mrb[86].mxu1  ;;  %v14888_v29 = vmax.f32 %v14399_v27, %v14401_v18 }
 0x1ce   : > { %10427 = vst.msk [vmem:[%s14482_s15 + $0x2c] sm:$0xf] %vm10415_vm0, %v11478_v59  ;;  %v10252_v17 = vadd.f32 %v14472_v4, %v10216_v19  ;;  %v10217_v49 = vmax.f32 %v9888_v23, %v10137_v38  ;;  %v11904_v6 = vpop.f32.mrb[87].mxu1 }
 0x1d0   : > { %v10281_v30 = vmax.f32 %v10252_v17, 0.0  ;;  %v10253_v60 = vadd.f32 %v14472_v4, %v10217_v49 }
 0x1d1   : > { %v9813_v13 = vpop.f32.mrb[88].mxu0 }
 0x1d2   : > { %v11479_v34 = vpack.c.bf16 %v10281_v30, %v10281_v30  ;;  %v10282_v40 = vmax.f32 %v10253_v60, 0.0  ;;  %v9889_v14 = vmax.f32 %v14884_v52, %v9813_v13  ;;  %v11843_v3 = vpop.f32.mrb[89].mxu0  ;;  %v14889_v13 = vmax.f32 %v14405_v32, %v14407_v58 }
 0x1d3   : > { %v10142_v25 = vpop.f32.mrb[88].mxu1  ;;  %v9816_v10 = vpop.f32.mrb[90].mxu0  ;;  %v14890_v32 = vmax.f32 %v14411_v21, %v14413_v11 }
 0x1d4   : > { %10428 = vst.msk [vmem:[%s14482_s15 + $0x30] sm:$0xf] %vm10415_vm0, %v11479_v34  ;;  %v11480_v16 = vpack.c.bf16 %v10282_v40, %v10282_v40  ;;  %v10218_v20 = vmax.f32 %v9889_v14, %v10142_v25  ;;  %v11907_v37 = vpop.f32.mrb[89].mxu1  ;;  %v9890_v5 = vmax.f32 %v14885_v24, %v9816_v10  ;;  %v11844_v46 = vpop.f32.mrb[91].mxu0 }
 0x1d5   : > { %v10145_v63 = vpop.f32.mrb[90].mxu1 }
 0x1d6   : > { %10429 = vst.msk [vmem:[%s14482_s15 + $0x34] sm:$0xf] %vm10415_vm0, %v11480_v16  ;;  %v10254_v8 = vadd.f32 %v14472_v4, %v10218_v20  ;;  %v10219_v36 = vmax.f32 %v9890_v5, %v10145_v63  ;;  %v11908_v33 = vpop.f32.mrb[91].mxu1 }
 0x1d8   : > { %v10283_v22 = vmax.f32 %v10254_v8, 0.0  ;;  %v10255_v44 = vadd.f32 %v14472_v4, %v10219_v36  ;;  %v14891_v36 = vmax.f32 %v14415_v47, %v14419_v26  ;;  %v14892_v26 = vmax.f32 %v14423_v31, %v14425_v50 }
 0x1d9   : > { %v9821_v7 = vpop.f32.mrb[92].mxu0 }
 0x1da   : > { %v11481_v39 = vpack.c.bf16 %v10283_v22, %v10283_v22  ;;  %v10284_v41 = vmax.f32 %v10255_v44, 0.0  ;;  %v9891_v53 = vmax.f32 %v14886_v61, %v9821_v7  ;;  %v11847_v57 = vpop.f32.mrb[93].mxu0 }
 0x1db   : > { %v9824_v2 = vpop.f32.mrb[94].mxu0 }
 0x1dc   : > { %v10150_v43 = vpop.f32.mrb[92].mxu1  ;;  %10430 = vst.msk [vmem:[%s14482_s15 + $0x38] sm:$0xf] %vm10415_vm0, %v11481_v39  ;;  %v11482_v15 = vpack.c.bf16 %v10284_v41, %v10284_v41  ;;  %v9892_v9 = vmax.f32 %v14887_v12, %v9824_v2  ;;  %v11848_v56 = vpop.f32.mrb[95].mxu0 }
 0x1dd   : > { %v10220_v28 = vmax.f32 %v9891_v53, %v10150_v43  ;;  %v11911_v45 = vpop.f32.mrb[93].mxu1 }
 0x1de   : > { %v10153_v0 = vpop.f32.mrb[94].mxu1  ;;  %10431 = vst.msk [vmem:[%s14482_s15 + $0x3c] sm:$0xf] %vm10415_vm0, %v11482_v15 }
 0x1df   : > { %v10256_v42 = vadd.f32 %v14472_v4, %v10220_v28  ;;  %v10221_v51 = vmax.f32 %v9892_v9, %v10153_v0  ;;  %v11912_v59 = vpop.f32.mrb[95].mxu1  ;;  %v14893_v9 = vmax.f32 %v14427_v48, %v14431_v1 }
 0x1e1   : > { %v10285_v19 = vmax.f32 %v10256_v42, 0.0  ;;  %v10257_v62 = vadd.f32 %v14472_v4, %v10221_v51  ;;  %v9829_v54 = vpop.f32.mrb[96].mxu0 }
 0x1e2   : > { %v9893_v35 = vmax.f32 %v14888_v29, %v9829_v54  ;;  %v11851_v38 = vpop.f32.mrb[97].mxu0  ;;  %v14895_v29 = vld [vmem:[#allocation27_spill] sm:$0xff] }
 0x1e3   : > { %v11483_v23 = vpack.c.bf16 %v10285_v19, %v10285_v19  ;;  %v10286_v55 = vmax.f32 %v10257_v62, 0.0  ;;  %v9832_v49 = vpop.f32.mrb[98].mxu0 }
 0x1e4   : > { %v10158_v17 = vpop.f32.mrb[96].mxu1  ;;  %v9894_v34 = vmax.f32 %v14889_v13, %v9832_v49  ;;  %v11852_v40 = vpop.f32.mrb[99].mxu0  ;;  %v14898_v13 = vld [vmem:[#allocation29_spill] sm:$0xff] }
 0x1e5   : > { %10432 = vst.msk [vmem:[%s14482_s15 + $0x40] sm:$0xf] %vm10415_vm0, %v11483_v23  ;;  %v11484_v6 = vpack.c.bf16 %v10286_v55, %v10286_v55  ;;  %v10222_v30 = vmax.f32 %v9893_v35, %v10158_v17  ;;  %v11915_v60 = vpop.f32.mrb[97].mxu1  ;;  %v14894_v55 = vld [vmem:[#allocation26_spill] sm:$0xff] }
 0x1e6   : > { %v10161_v52 = vpop.f32.mrb[98].mxu1  ;;  %v14896_v48 = vmax.f32 %v14894_v55, %v14895_v29  ;;  %v14897_v60 = vld [vmem:[#allocation28_spill] sm:$0xff] }
 0x1e7   : > { %10433 = vst.msk [vmem:[%s14482_s15 + $0x44] sm:$0xf] %vm10415_vm0, %v11484_v6  ;;  %v10258_v27 = vadd.f32 %v14472_v4, %v10222_v30  ;;  %v10223_v18 = vmax.f32 %v9894_v34, %v10161_v52  ;;  %v11916_v14 = vpop.f32.mrb[99].mxu1  ;;  %v14899_v34 = vmax.f32 %v14897_v60, %v14898_v13 }
 0x1e9   : > { %v10287_v3 = vmax.f32 %v10258_v27, 0.0  ;;  %v10259_v25 = vadd.f32 %v14472_v4, %v10223_v18  ;;  %v9837_v10 = vpop.f32.mrb[100].mxu0 }
 0x1ea   : > { %v9895_v58 = vmax.f32 %v14890_v32, %v9837_v10  ;;  %v11855_v37 = vpop.f32.mrb[101].mxu0 }
 0x1eb   : > { %v11485_v16 = vpack.c.bf16 %v10287_v3, %v10287_v3  ;;  %v10288_v20 = vmax.f32 %v10259_v25, 0.0  ;;  %v9840_v5 = vpop.f32.mrb[102].mxu0  ;;  %v14901_v37 = vld [vmem:[#allocation31_spill] sm:$0xff] }
 0x1ec   : > { %v10166_v24 = vpop.f32.mrb[100].mxu1  ;;  %v9896_v33 = vmax.f32 %v14891_v36, %v9840_v5  ;;  %v11856_v22 = vpop.f32.mrb[103].mxu0 }
 0x1ed   : > { %10434 = vst.msk [vmem:[%s14482_s15 + $0x48] sm:$0xf] %vm10415_vm0, %v11485_v16  ;;  %v11486_v46 = vpack.c.bf16 %v10288_v20, %v10288_v20  ;;  %v10224_v63 = vmax.f32 %v9895_v58, %v10166_v24  ;;  %v11919_v8 = vpop.f32.mrb[101].mxu1  ;;  %v14900_v58 = vld [vmem:[#allocation30_spill] sm:$0xff] }
 0x1ee   : > { %v10169_v44 = vpop.f32.mrb[102].mxu1  ;;  %v14902_v24 = vmax.f32 %v14900_v58, %v14901_v37 }
 0x1ef   : > { %10435 = vst.msk [vmem:[%s14482_s15 + $0x4c] sm:$0xf] %vm10415_vm0, %v11486_v46  ;;  %v10260_v11 = vadd.f32 %v14472_v4, %v10224_v63  ;;  %v10225_v21 = vmax.f32 %v9896_v33, %v10169_v44  ;;  %v11920_v7 = vpop.f32.mrb[103].mxu1  ;;  %v14903_v44 = vld [vmem:[#allocation32_spill] sm:$0xff] }
 0x1f1   : > { %v10289_v39 = vmax.f32 %v10260_v11, 0.0  ;;  %v10261_v41 = vadd.f32 %v14472_v4, %v10225_v21  ;;  %v9845_v61 = vpop.f32.mrb[104].mxu0  ;;  %v14904_v11 = vld [vmem:[#allocation33_spill] sm:$0xff] }
 0x1f2   : > { %v9897_v47 = vmax.f32 %v14892_v26, %v9845_v61  ;;  %v11859_v43 = vpop.f32.mrb[105].mxu0  ;;  %v14905_v21 = vmax.f32 %v14903_v44, %v14904_v11 }
 0x1f3   : > { %v11487_v53 = vpack.c.bf16 %v10289_v39, %v10289_v39  ;;  %v10290_v57 = vmax.f32 %v10261_v41, 0.0  ;;  %v9848_v15 = vpop.f32.mrb[106].mxu0 }
 0x1f4   : > { %v10174_v2 = vpop.f32.mrb[104].mxu1  ;;  %v9898_v56 = vmax.f32 %v14893_v9, %v9848_v15  ;;  %v11860_v0 = vpop.f32.mrb[107].mxu0 }
 0x1f5   : > { %10436 = vst.msk [vmem:[%s14482_s15 + $0x50] sm:$0xf] %vm10415_vm0, %v11487_v53  ;;  %v11488_v28 = vpack.c.bf16 %v10290_v57, %v10290_v57  ;;  %v10226_v45 = vmax.f32 %v9897_v47, %v10174_v2  ;;  %v11923_v12 = vpop.f32.mrb[105].mxu1 }
 0x1f6   : > { %v10177_v42 = vpop.f32.mrb[106].mxu1 }
 0x1f7   : > { %10437 = vst.msk [vmem:[%s14482_s15 + $0x54] sm:$0xf] %vm10415_vm0, %v11488_v28  ;;  %v10262_v50 = vadd.f32 %v14472_v4, %v10226_v45  ;;  %v10227_v31 = vmax.f32 %v9898_v56, %v10177_v42  ;;  %v11924_v51 = vpop.f32.mrb[107].mxu1  ;;  %v14906_v28 = vld [vmem:[#allocation34_spill] sm:$0xff]  ;;  %v14907_v45 = vld [vmem:[#allocation35_spill] sm:$0xff] }
 0x1f8   : > { %v14908_v12 = vmax.f32 %v14906_v28, %v14907_v45 }
 0x1f9   : > { %v10291_v59 = vmax.f32 %v10262_v50, 0.0  ;;  %v10263_v19 = vadd.f32 %v14472_v4, %v10227_v31  ;;  %v9853_v62 = vpop.f32.mrb[108].mxu0 }
 0x1fa   : > { %v9899_v1 = vmax.f32 %v14896_v48, %v9853_v62  ;;  %v11863_v35 = vpop.f32.mrb[109].mxu0 }
 0x1fb   : > { %v11489_v54 = vpack.c.bf16 %v10291_v59, %v10291_v59  ;;  %v10292_v23 = vmax.f32 %v10263_v19, 0.0  ;;  %v9856_v17 = vpop.f32.mrb[110].mxu0 }
 0x1fc   : > { %v10182_v38 = vpop.f32.mrb[108].mxu1  ;;  %v9900_v40 = vmax.f32 %v14899_v34, %v9856_v17  ;;  %v11864_v52 = vpop.f32.mrb[111].mxu0 }
 0x1fd   : > { %10438 = vst.msk [vmem:[%s14482_s15 + $0x58] sm:$0xf] %vm10415_vm0, %v11489_v54  ;;  %v11490_v49 = vpack.c.bf16 %v10292_v23, %v10292_v23  ;;  %v10228_v6 = vmax.f32 %v9899_v1, %v10182_v38  ;;  %v11927_v30 = vpop.f32.mrb[109].mxu1 }
 0x1fe   : > { %v10185_v27 = vpop.f32.mrb[110].mxu1 }
 0x1ff   : > { %10439 = vst.msk [vmem:[%s14482_s15 + $0x5c] sm:$0xf] %vm10415_vm0, %v11490_v49  ;;  %v10264_v18 = vadd.f32 %v14472_v4, %v10228_v6  ;;  %v10229_v14 = vmax.f32 %v9900_v40, %v10185_v27  ;;  %v11928_v3 = vpop.f32.mrb[111].mxu1 }
 0x201   : > { %v10293_v25 = vmax.f32 %v10264_v18, 0.0  ;;  %v10265_v10 = vadd.f32 %v14472_v4, %v10229_v14  ;;  %v9861_v16 = vpop.f32.mrb[112].mxu0 }
 0x202   : > { %v9901_v5 = vmax.f32 %v14902_v24, %v9861_v16  ;;  %v11867_v46 = vpop.f32.mrb[113].mxu0 }
 0x203   : > { %v11491_v20 = vpack.c.bf16 %v10293_v25, %v10293_v25  ;;  %v10294_v32 = vmax.f32 %v10265_v10, 0.0  ;;  %v9864_v8 = vpop.f32.mrb[114].mxu0 }
 0x204   : > { %v10190_v63 = vpop.f32.mrb[112].mxu1  ;;  %v9902_v7 = vmax.f32 %v14905_v21, %v9864_v8  ;;  %v11868_v39 = vpop.f32.mrb[115].mxu0 }
 0x205   : > { %10440 = vst.msk [vmem:[%s14482_s15 + $0x60] sm:$0xf] %vm10415_vm0, %v11491_v20  ;;  %v11492_v36 = vpack.c.bf16 %v10294_v32, %v10294_v32  ;;  %v10230_v33 = vmax.f32 %v9901_v5, %v10190_v63  ;;  %v11931_v22 = vpop.f32.mrb[113].mxu1 }
 0x206   : > { %v10193_v41 = vpop.f32.mrb[114].mxu1 }
 0x207   : > { %10441 = vst.msk [vmem:[%s14482_s15 + $0x64] sm:$0xf] %vm10415_vm0, %v11492_v36  ;;  %v10266_v61 = vadd.f32 %v14472_v4, %v10230_v33  ;;  %v10231_v53 = vmax.f32 %v9902_v7, %v10193_v41  ;;  %v11932_v57 = vpop.f32.mrb[115].mxu1 }
 0x209   : > { %v10295_v26 = vmax.f32 %v10266_v61, 0.0  ;;  %v10267_v47 = vadd.f32 %v14472_v4, %v10231_v53  ;;  %v9869_v43 = vpop.f32.mrb[116].mxu0 }
 0x20a   : > { %v9903_v9 = vmax.f32 %v14908_v12, %v9869_v43  ;;  %v11871_v56 = vpop.f32.mrb[117].mxu0 }
 0x20b   : > { %v11493_v2 = vpack.c.bf16 %v10295_v26, %v10295_v26  ;;  %v10296_v15 = vmax.f32 %v10267_v47, 0.0  ;;  %v9872_v42 = vpop.f32.mrb[118].mxu0 }
 0x20c   : > { %v10198_v0 = vpop.f32.mrb[116].mxu1  ;;  %v11872_v59 = vpop.f32.mrb[119].mxu0 }
 0x20d   : > { %10442 = vst.msk [vmem:[%s14482_s15 + $0x68] sm:$0xf] %vm10415_vm0, %v11493_v2  ;;  %v11494_v50 = vpack.c.bf16 %v10296_v15, %v10296_v15  ;;  %v10232_v31 = vmax.f32 %v9903_v9, %v10198_v0  ;;  %v11935_v51 = vpop.f32.mrb[117].mxu1 }
 0x20e   : > { %v10201_v19 = vpop.f32.mrb[118].mxu1 }
 0x20f   : > { %10443 = vst.msk [vmem:[%s14482_s15 + $0x6c] sm:$0xf] %vm10415_vm0, %v11494_v50  ;;  %v10268_v62 = vadd.f32 %v14472_v4, %v10232_v31  ;;  %v11936_v54 = vpop.f32.mrb[119].mxu1  ;;  %10451 = sbr.rel (!%p12275_p4) target bundleno = 615 (0x267), region = 48 }
 0x211   : > { %v10297_v23 = vmax.f32 %v10268_v62, 0.0 }
 0x213   : > { %v11495_v55 = vpack.c.bf16 %v10297_v23, %v10297_v23 }
 0x215   : > { %10444 = vst.msk [vmem:[%s14482_s15 + $0x70] sm:$0xf] %vm10415_vm0, %v11495_v55 }
 0x216   : > { %s14916_s23 = smov (!%p10454_p9, %s10453_s23), 29 }
 0x217   : > { %s11219_s12 = sshll.u32 %s14916_s23, 6 }
 0x218   : > { %p11222_p10 = scmp.eq.s32.totalorder %s11219_s12, 0 }
 0x219   : > { %12093 = sdivrem.u32 (!%p11222_p10), %s14916_s23, 29 }
 0x21a   : > { %10462 = sbr.rel (%p11222_p10) target bundleno = 615 (0x267), region = 52 }
 0x222   : > { %s14660_s21 = spop.drf %12093 }
 0x223   : > { %p11223_p11 = scmp.le.s32.totalorder %s14660_s21, 0 }
 0x224   : > { %s14909_s3 = smov (!%p11223_p11), %s14654_s11  ;;  %s14910_s26 = smov (!%p11223_p11), %s14482_s15 }
 0x225   : > { %10765 = sbr.rel (%p11223_p11) target bundleno = 586 (0x24a), region = 615  ;;  %s14669_s13 = smov (!%p11223_p11), 0  }
 0x226   : > { %s14671_s17 = smov (!%p11223_p11), 0  }
 0x22c LB: >> { %v10479_v4 = vld [vmem:[%s12159_s26] sm:$0xf]  ;;  %v10481_v29 = vld [vmem:[%s12159_s26 + $0x4] sm:$0xf]  ;;  %v10483_v48 = vld [vmem:[%s12159_s26 + $0x8] sm:$0xf]  ;;  %s12167_s17 = sphi %s14671_s17, %s10473_s17   ;;  %s12163_s13 = sphi %s14669_s13, %s14911_s13   ;;  %s12159_s26 = sphi %s14910_s26, %s10542_s26   ;;  %s12155_s3 = sphi %s14909_s3, %s10543_s3  }
 0x22d   : >> { %10480 = vst [vmem:[%s12155_s3] sm:$0xf] %v10479_v4  ;;  %10482 = vst [vmem:[%s12155_s3 + $0x4] sm:$0xf] %v10481_v29  ;;  %v10485_v1 = vld [vmem:[%s12159_s26 + $0xc] sm:$0xf]  ;;  %s10537_s18 = sadd.s32 1, %s12163_s13 }
 0x22e   : >> { %10484 = vst [vmem:[%s12155_s3 + $0x8] sm:$0xf] %v10483_v48  ;;  %v10487_v35 = vld [vmem:[%s12159_s26 + $0x10] sm:$0xf]  ;;  %v10489_v38 = vld [vmem:[%s12159_s26 + $0x14] sm:$0xf]  ;;  %p10538_p12 = scmp.ge.s32.totalorder %s10537_s18, %s14660_s21 }
 0x22f   : >> { %10486 = vst [vmem:[%s12155_s3 + $0xc] sm:$0xf] %v10485_v1  ;;  %10488 = vst [vmem:[%s12155_s3 + $0x10] sm:$0xf] %v10487_v35  ;;  %v10491_v17 = vld [vmem:[%s12159_s26 + $0x18] sm:$0xf] }
 0x230   : >> { %10490 = vst [vmem:[%s12155_s3 + $0x14] sm:$0xf] %v10489_v38  ;;  %v10493_v49 = vld [vmem:[%s12159_s26 + $0x1c] sm:$0xf]  ;;  %v10495_v6 = vld [vmem:[%s12159_s26 + $0x20] sm:$0xf] }
 0x231   : >> { %10492 = vst [vmem:[%s12155_s3 + $0x18] sm:$0xf] %v10491_v17  ;;  %10494 = vst [vmem:[%s12155_s3 + $0x1c] sm:$0xf] %v10493_v49  ;;  %v10497_v30 = vld [vmem:[%s12159_s26 + $0x24] sm:$0xf] }
 0x232   : >> { %10496 = vst [vmem:[%s12155_s3 + $0x20] sm:$0xf] %v10495_v6  ;;  %v10499_v60 = vld [vmem:[%s12159_s26 + $0x28] sm:$0xf]  ;;  %v10501_v13 = vld [vmem:[%s12159_s26 + $0x2c] sm:$0xf] }
 0x233   : >> { %10498 = vst [vmem:[%s12155_s3 + $0x24] sm:$0xf] %v10497_v30  ;;  %10500 = vst [vmem:[%s12155_s3 + $0x28] sm:$0xf] %v10499_v60  ;;  %v10503_v34 = vld [vmem:[%s12159_s26 + $0x30] sm:$0xf] }
 0x234   : >> { %10502 = vst [vmem:[%s12155_s3 + $0x2c] sm:$0xf] %v10501_v13  ;;  %v10505_v40 = vld [vmem:[%s12159_s26 + $0x34] sm:$0xf]  ;;  %v10507_v52 = vld [vmem:[%s12159_s26 + $0x38] sm:$0xf] }
 0x235   : >> { %10504 = vst [vmem:[%s12155_s3 + $0x30] sm:$0xf] %v10503_v34  ;;  %10506 = vst [vmem:[%s12155_s3 + $0x34] sm:$0xf] %v10505_v40  ;;  %v10509_v27 = vld [vmem:[%s12159_s26 + $0x3c] sm:$0xf] }
 0x236   : >> { %10508 = vst [vmem:[%s12155_s3 + $0x38] sm:$0xf] %v10507_v52  ;;  %v10511_v18 = vld [vmem:[%s12159_s26 + $0x40] sm:$0xf]  ;;  %v10513_v14 = vld [vmem:[%s12159_s26 + $0x44] sm:$0xf] }
 0x237   : >> { %10510 = vst [vmem:[%s12155_s3 + $0x3c] sm:$0xf] %v10509_v27  ;;  %10512 = vst [vmem:[%s12155_s3 + $0x40] sm:$0xf] %v10511_v18  ;;  %v10515_v3 = vld [vmem:[%s12159_s26 + $0x48] sm:$0xf] }
 0x238   : >> { %10514 = vst [vmem:[%s12155_s3 + $0x44] sm:$0xf] %v10513_v14  ;;  %v10517_v25 = vld [vmem:[%s12159_s26 + $0x4c] sm:$0xf]  ;;  %v10519_v10 = vld [vmem:[%s12159_s26 + $0x50] sm:$0xf] }
 0x239   : >> { %10516 = vst [vmem:[%s12155_s3 + $0x48] sm:$0xf] %v10515_v3  ;;  %10518 = vst [vmem:[%s12155_s3 + $0x4c] sm:$0xf] %v10517_v25  ;;  %v10521_v16 = vld [vmem:[%s12159_s26 + $0x54] sm:$0xf] }
 0x23a   : >> { %10520 = vst [vmem:[%s12155_s3 + $0x50] sm:$0xf] %v10519_v10  ;;  %v10523_v20 = vld [vmem:[%s12159_s26 + $0x58] sm:$0xf]  ;;  %v10525_v32 = vld [vmem:[%s12159_s26 + $0x5c] sm:$0xf] }
 0x23b   : >> { %10522 = vst [vmem:[%s12155_s3 + $0x54] sm:$0xf] %v10521_v16  ;;  %10524 = vst [vmem:[%s12155_s3 + $0x58] sm:$0xf] %v10523_v20  ;;  %v10527_v58 = vld [vmem:[%s12159_s26 + $0x60] sm:$0xf] }
 0x23c   : >> { %10526 = vst [vmem:[%s12155_s3 + $0x5c] sm:$0xf] %v10525_v32  ;;  %v10529_v37 = vld [vmem:[%s12159_s26 + $0x64] sm:$0xf]  ;;  %v10531_v24 = vld [vmem:[%s12159_s26 + $0x68] sm:$0xf] }
 0x23d   : >> { %10528 = vst [vmem:[%s12155_s3 + $0x60] sm:$0xf] %v10527_v58  ;;  %10530 = vst [vmem:[%s12155_s3 + $0x64] sm:$0xf] %v10529_v37  ;;  %v10533_v5 = vld [vmem:[%s12159_s26 + $0x6c] sm:$0xf] }
 0x23e   : >> { %10532 = vst [vmem:[%s12155_s3 + $0x68] sm:$0xf] %v10531_v24  ;;  %v10535_v46 = vld [vmem:[%s12159_s26 + $0x70] sm:$0xf]  ;;  %10534 = vst [vmem:[%s12155_s3 + $0x6c] sm:$0xf] %v10533_v5 }
 0x23f   : >> { %10536 = vst [vmem:[%s12155_s3 + $0x70] sm:$0xf] %v10535_v46  ;;  %s14918_s18 = smov (%p10538_p12, %s10537_s18), 0  ;;  %s10473_s17 = sadd.s32 1, %s12167_s17  }
 0x240   : >> { %s10540_s19 = smul.u32 116, %s14918_s18  ;;  %p10472_p13 = scmp.ge.s32.totalorder %s10473_s17, %s14660_s21 }
 0x241   : >> { %s14911_s13 = smov %s14918_s18 }
 0x242   : >> { %s10542_s26 = scalar_lea.vmem %s14482_s15, %s10540_s19 [#allocation22]   ;;  %s10543_s3 = scalar_lea.vmem %s14654_s11, %s10540_s19  }
 0x243   : > { %10475 = sbr.rel (!%p10472_p13) target bundleno = 556 (0x22c), region = 621 }
 0x24a PF: > { %12095 = sdivrem.u32 %s14916_s23, 29 }
 0x24b   : > { %s11224_s14 = smul.u32 116, %s14660_s21 }
 0x24d   : > { %s10548_s27 = scalar_lea.vmem %s14482_s15, %s11224_s14 [#allocation22]   ;;  %s10550_s22 = scalar_lea.vmem %s14654_s11, %s11224_s14  }
 0x253   : > { %s12096_s25 = spop.drf %12095 }
 0x254   : > { %p11226_p0 = scmp.le.s32.totalorder %s12096_s25, 0 }
 0x255   : > { %s12169_s29 = smov (!%p11226_p0), %s10550_s22   ;;  %s12173_s30 = smov (!%p11226_p0), %s10548_s27  }
 0x256   : > { %10779 = sbr.rel (%p11226_p0) target bundleno = 615 (0x267), region = 626  ;;  %s12177_s24 = smov (!%p11226_p0), 0  }
 0x257   : > { %s12181_s28 = smov (!%p11226_p0), 0  }
 0x25d LB: >> { %v10560_v63 = vld [vmem:[%s12175_s30] sm:$0xf]  ;;  %s10562_s10 = sadd.s32 1, %s12179_s24  ;;  %s10554_s28 = sadd.s32 1, %s12183_s28   ;;  %s12183_s28 = sphi %s12181_s28, %s10554_s28   ;;  %s12179_s24 = sphi %s12177_s24, %s12178_s24   ;;  %s12175_s30 = sphi %s12173_s30, %s10567_s30   ;;  %s12171_s29 = sphi %s12169_s29, %s10568_s29  }
 0x25e   : >> { %10561 = vst [vmem:[%s12171_s29] sm:$0xf] %v10560_v63  ;;  %p10563_p1 = scmp.ge.s32.totalorder %s10562_s10, %s12096_s25  ;;  %p10553_p2 = scmp.ge.s32.totalorder %s10554_s28, %s12096_s25 }
 0x260   : >> { %s14920_s10 = smov (%p10563_p1, %s10562_s10), 0  ;;  %10556 = sbr.rel (!%p10553_p2) target bundleno = 605 (0x25d), region = 632 }
 0x261   : >> { %s11227_s15 = sshll.u32 %s14920_s10, 2  ;;  %s12178_s24 = smov %s14920_s10  }
 0x262   : >> { %s10567_s30 = scalar_lea.vmem %s10548_s27, %s11227_s15 [#allocation22]   ;;  %s10568_s29 = scalar_lea.vmem %s10550_s22, %s11227_s15  }
 0x267 PF: > { %p42_p3 = scmp.ge.s32.totalorder %s12265_s8, 4   ;;  %s14912_s15 = smov %s12147_s16 }
 0x268   : > { %s14913_s16 = smov %s12273_s20  ;;  %s14914_s17 = smov %s12265_s8 }
 0x269   :  { %44 = sbr.rel (!%p42_p3) target bundleno = 7 (0x7), region = 643 }

// kernel: cnn_cifar_dropout_forward.7
= control target key start
LH: loop header
LB: loop body
LE: loop exit
PB: predicated region body
PF: predicated region fallthrough
CT: control target
= control target key end

     0   :  { %s5794_s0 = inlined_call_operand.vmem [shape: bf16[288,64], index: 0, kind: input, shape index: {}]   ;;  %s5795_s1 = inlined_call_operand.vmem [shape: f32[1,64], index: 1, kind: input, shape index: {}]   ;;  %s5796_s2 = inlined_call_operand.vmem [shape: bf16[1,72,288], index: 2, kind: input, shape index: {}]   ;;  %s5797_s3 = inlined_call_operand.<no memory space> [shape: bf16[], index: 3, kind: input, shape index: {}]   ;;  %s5798_s4 = inlined_call_operand.vmem [shape: bf16[1,72,288], index: 4, kind: input, shape index: {}]   ;;  %s5799_s5 = inlined_call_operand.vmem [shape: bf16[1,72,288], index: 5, kind: input, shape index: {}]   ;;  %s5800_s6 = inlined_call_operand.vmem [shape: bf16[1,72,288], index: 6, kind: input, shape index: {}]   ;;  %s5801_s7 = inlined_call_operand.vmem [shape: bf16[72,64], index: 7, kind: output, shape index: {}]  }
   0x1   :  { %v12_v0 = vstv %s5797_s3 }
   0x2   :  { %v5008_v1 = vunpack.i.l.bf16 %v12_v0 }
   0x3   :  { %s5010_s26 = smov 0   ;;  %s5012_s27 = smov 0  }
   0x4   :  { %s5014_s28 = smov 0  }
   0x5 LB: > { %s5023_s3 = sadd.s32 4294967295, %s4929_s28   ;;  %s5025_s29 = sadd.s32 1, %s4929_s28   ;;  %s4929_s28 = sphi %s5014_s28, %s5818_s28   ;;  %s4925_s27 = sphi %s5012_s27, %s5817_s27   ;;  %s4921_s26 = sphi %s5010_s26, %s5816_s26  }
   0x6   : > { %s199_s30 = ssub.s32 %s4929_s28, %s5025_s29  ;;  %s202_s8 = sadd.s32 1, %s4925_s27 }
   0x7   : > { %p200_p0 = scmp.eq.s32.totalorder %s199_s30, 0  ;;  %p212_p1 = scmp.ne.s32.totalorder %s4925_s27, %s4921_s26 }
   0x8   : > { %p213_p2 = scmp.eq.s32.totalorder %s5023_s3, 1  ;;  %p4235_p3 = scmp.ge.s32.totalorder %s4929_s28, 1 }
   0x9   : > { %s5033_s9 = scalar_select %p200_p0, %s4925_s27, %s202_s8  }
   0xa   : > { %p5035_p4 = por %p213_p2, %p212_p1  ;;  %p353_p5 = scmp.lt.s32.totalorder %s4929_s28, 3 }
   0xc   : > { %p354_p6 = pnand %p4235_p3, %p353_p5 }
   0xe   : > { %357 = sbr.rel (%p354_p6) target bundleno = 453 (0x1c5), region = 44 }
  0x15   : > { %v5042_v2 = vld [vmem:[%s5794_s0 + $0x40] sm:$0xff]   ;;  %v4963_v4 = vmov 0.0   ;;  %v766_v5 = vlaneseq  ;;  %v5054_v6 = vld [vmem:[%s5794_s0 + $0x48] sm:$0xff]   ;;  %vm4964_vm0 = vmmov 0   ;;  %s5059_s17 = smul.u32 5, %s5023_s3  ;;  %v5071_v8 = vld [vmem:[%s5794_s0 + $0x50] sm:$0xff]   ;;  %v5148_v20 = vpack.c.bf16 %v5008_v1, %v5008_v1 }
  0x16   : > { %v5047_v3 = vld [vmem:[%s5794_s0] sm:$0xff]   ;;  %4670 = vmatprep.subr.bf16.mxu1 %v4963_v4  ;;  %4514 = vmatprep.subr.bf16.mxu0 %v5042_v2  ;;  %v5065_v7 = vld [vmem:[%s5794_s0 + $0x8] sm:$0xff]   ;;  %v5079_v10 = vld [vmem:[%s5794_s0 + $0x10] sm:$0xff]   ;;  %vm3240_vm5 = vcmask 261120   ;;  %vm3931_vm6 = vcmask 519168  }
  0x17   : > { %4674 = vmatprep.mubr.msk.bf16.mxu1 %vm4964_vm0, %v4963_v4  ;;  %4515 = vmatpush3.bf16.msra.mxu0 %v5047_v3  ;;  %p453_p7 = scmp.lt.s32.totalorder %s5059_s17, 8  ;;  %v767_v9 = vand.u32 127, %v766_v5  ;;  %v5085_v11 = vld [vmem:[%s5794_s0 + $0x58] sm:$0xff]   ;;  %v5100_v14 = vld [vmem:[%s5794_s0 + $0x80] sm:$0xff]   ;;  %s1516_s14 = sadd.s32 4, %s5059_s17  ;;  %v5117_v16 = vld [vmem:[%s5794_s0 + $0x88] sm:$0xff]   ;;  %v5184_v36 = vmax.bf16 %v5148_v20, %v5148_v20 }
  0x18   : > { %4516 = vmatprep.subr.bf16.mxu0 %v5054_v6  ;;  %v5092_v13 = vld [vmem:[%s5794_s0 + $0x18] sm:$0xff]   ;;  %v5107_v15 = vld [vmem:[%s5794_s0 + $0x60] sm:$0xff]   ;;  %s5109_s18 = ssub.s32 8, %s1516_s14  ;;  %4671 = vmatpush3.bf16.msra.mxu1 %v5100_v14  ;;  %v5137_v18 = vld [vmem:[%s5794_s0 + $0x68] sm:$0xff]   ;;  %s439_s14 = sand.u32 1, %s4921_s26  }
  0x19   : > { %s454_s22 = scalar_select %p453_p7, %s5059_s17, 8  ;;  %v5087_v12 = vadd.s32 256, %v767_v9  ;;  %4672 = vmatprep.subr.bf16.mxu1 %v4963_v4  ;;  %v5130_v17 = vld [vmem:[%s5794_s0 + $0x20] sm:$0xff]   ;;  %v5143_v19 = vld [vmem:[%s5794_s0 + $0x28] sm:$0xff]   ;;  %v5159_v24 = vld [vmem:[%s5794_s0 + $0x70] sm:$0xff]   ;;  %v1615_v35 = vstv %s5109_s18 }
  0x1a   : > { %p1520_p8 = scmp.lt.s32.totalorder %s5109_s18, 0  ;;  %s1536_s24 = sor.u32 4294967293, %s5109_s18  ;;  %v5194_v43 = vld [vmem:[%s5794_s0 + $0x30] sm:$0xff]   ;;  %v5203_v48 = vld [vmem:[%s5794_s0 + $0x78] sm:$0xff]   ;;  %vm5217_vm4 = vcmp.lt.s32.totalorder %v1615_v35, 0 }
  0x1b   : > { %4517 = vmatpush3.bf16.msra.mxu0 %v5065_v7  ;;  %s5094_s11 = smul.u32 12, %s454_s22  ;;  %vm769_vm1 = vcmp.lt.s32.totalorder %v5087_v12, 288  ;;  %s1566_s12 = sor.u32 4294967294, %s5109_s18  ;;  %v5154_v23 = vstv %s1536_s24 }
  0x1c   : > { %4518 = vmatprep.subr.bf16.mxu0 %v5071_v8  ;;  %4673 = vmatpush3.bf16.msra.mxu1 %v5117_v16  ;;  %s1521_s15 = scalar_select %p1520_p8, 0, 255  ;;  %v5170_v30 = vstv %s1566_s12  ;;  %vm1538_vm2 = vcmp.lt.s32.totalorder %v5154_v23, 0 }
  0x1d   : > { %s5123_s23 = scalar_lea.vmem %s5800_s6, %s5094_s11  ;;  %4553 = vmatprep.subr.bf16.mxu1 %v5042_v2  ;;  %s5166_s22 = scalar_lea.vmem %s5799_s5, %s5094_s11  ;;  %vm1568_vm3 = vcmp.lt.s32.totalorder %v5170_v30, 0 }
  0x1e   : > { %v4248_v21 = vld [vmem:[%s5123_s23 + $0x8] sm:$0xff]   ;;  %v4256_v22 = vld [vmem:[%s5123_s23 + $0x10] sm:$0xff]   ;;  %v4846_v29 = vld [vmem:[%s5123_s23] sm:$0xff]   ;;  %s1522_s24 = sshrl.u32 %s1521_s15, 1  ;;  %s5215_s16 = scalar_lea.vmem %s5798_s4, %s5094_s11 }
  0x1f   : > { %4519 = vmatpush3.bf16.msra.mxu0 %v5079_v10  ;;  %v764_v25 = vunpack.c.l.bf16 %v4248_v21  ;;  %v830_v26 = vunpack.c.h.bf16 %v4248_v21  ;;  %v926_v27 = vunpack.c.l.bf16 %v4256_v22  ;;  %v992_v28 = vunpack.c.h.bf16 %v4256_v22  ;;  %v4847_v33 = vld [vmem:[%s5123_s23 + $0x18] sm:$0xff]   ;;  %v4273_v34 = vld [vmem:[%s5123_s23 + $0x20] sm:$0xff]   ;;  %s1523_s25 = sor.u32 %s1522_s24, %s1521_s15  ;;  %v4281_v41 = vld [vmem:[%s5123_s23 + $0x28] sm:$0xff]  }
  0x20   : > { %4520 = vmatprep.subr.bf16.mxu0 %v5085_v11  ;;  %v686_v39 = vmax.bf16 %v4846_v29, %v5148_v20  ;;  %v1250_v40 = vunpack.c.l.bf16 %v4273_v34  ;;  %s1524_s28 = sand.u32 85, %s1523_s25  ;;  %v5189_v42 = vld [vmem:[%s5166_s22] sm:$0xff]   ;;  %v1171_v44 = vmax.bf16 %v4847_v33, %v5148_v20  ;;  %v1316_v45 = vunpack.c.h.bf16 %v4273_v34  ;;  %v5222_v54 = vld [vmem:[%s5166_s22 + $0x8] ss:$36 sps:$4 sm:$0xff]   ;;  %v5239_v0 = vld [vmem:[%s5166_s22 + $0x14] sm:$0xff]  }
  0x21   : > { %v770_v31 = vsel %vm769_vm1, %v764_v25, %v5008_v1  ;;  %v998_v32 = vsel %vm769_vm1, %v992_v28, %v5008_v1  ;;  %v1412_v46 = vunpack.c.l.bf16 %v4281_v41  ;;  %v1478_v47 = vunpack.c.h.bf16 %v4281_v41  ;;  %s1525_s18 = sshrl.u32 %s1524_s28, 1  ;;  %v5231_v59 = vld [vmem:[%s5166_s22 + $0xc] sm:$0xff]   ;;  %v4852_v23 = vld [vmem:[%s5166_s22 + $0x24] sm:$0xff]  }
  0x22   : > { %v843_v37 = vpack.c.bf16 %v830_v26, %v770_v31  ;;  %v1005_v38 = vpack.c.bf16 %v998_v32, %v926_v27  ;;  %v690_v51 = vmax.bf16 %v686_v39, %v5148_v20  ;;  %v1256_v52 = vsel %vm769_vm1, %v1250_v40, %v5008_v1  ;;  %s1526_s19 = sor.u32 %s1525_s18, %s1524_s28  ;;  %v5255_v27 = vld [vmem:[%s5794_s0 + $0x38] sm:$0xff]   ;;  %s5262_s18 = scalar_lea.vmem %s5796_s2, %s5094_s11 }
  0x23   : > { %4521 = vmatpush3.bf16.msra.mxu0 %v5092_v13  ;;  %v1175_v55 = vmax.bf16 %v1171_v44, %v5148_v20  ;;  %v1329_v56 = vpack.c.bf16 %v1316_v45, %v1256_v52  ;;  %v1484_v57 = vsel %vm769_vm1, %v1478_v47, %v5008_v1  ;;  %s1527_s20 = sand.u32 51, %s1526_s19  ;;  %v590_v58 = vunpack.c.l.bf16 %v5189_v42  ;;  %s4734_s19 = smul.u32 20, %s439_s14 }
  0x24   : > { %4522 = vmatprep.subr.bf16.mxu0 %v5107_v15  ;;  %v847_v49 = vmax.bf16 %v843_v37, %v5148_v20  ;;  %v1009_v50 = vmax.bf16 %v1005_v38, %v5148_v20  ;;  %v5236_v62 = vmax.bf16 %v690_v51, %v5148_v20  ;;  %v1491_v63 = vpack.c.bf16 %v1484_v57, %v1412_v46  ;;  %s1528_s21 = sshrl.u32 %s1527_s20, 2 }
  0x25   : > { %v5242_v5 = vmax.bf16 %v1175_v55, %v5148_v20  ;;  %v1333_v9 = vmax.bf16 %v1329_v56, %v5148_v20  ;;  %s1529_s24 = sor.u32 %s1528_s21, %s1527_s20  ;;  %v5246_v21 = vpack.c.bf16 %v590_v58, %v5008_v1  ;;  %v656_v22 = vunpack.c.h.bf16 %v5189_v42  ;;  %s5726_s26 = scalar_lea.vmem [#allocation22], %s4734_s19  }
  0x26   : > { %v851_v60 = vmax.bf16 %v847_v49, %v5148_v20  ;;  %v1013_v61 = vmax.bf16 %v1009_v50, %v5148_v20  ;;  %v1495_v28 = vmax.bf16 %v1491_v63, %v5148_v20  ;;  %s5264_s12 = sand.u32 15, %s1529_s24  ;;  %v751_v29 = vunpack.c.l.bf16 %v5222_v54  ;;  %s3945_s20 = ssub.s32 (%p5035_p4), 9, %s5059_s17 }
  0x27   : > { %4523 = vmatpush3.bf16.msra.mxu0 %v5130_v17  ;;  %v1337_v31 = vmax.bf16 %v1333_v9, %v5148_v20  ;;  %v4286_v32 = vld [vmem:[%s5262_s18 + $0x30] sm:%s5264_s12]  ;;  %v1976_v34 = vmax.bf16 %v5231_v59, %v5148_v20  ;;  %v979_v35 = vunpack.c.l.bf16 %v5239_v0  ;;  %v1075_v37 = vunpack.c.h.bf16 %v5239_v0  ;;  %v4294_v58 = vld [vmem:[%s5262_s18 + $0x38] sm:%s5264_s12]  ;;  %s4393_s21 = smul.u32 (%p5035_p4), 20, %s5023_s3  ;;  %p3946_p9 = scmp.lt.s32.totalorder (%p5035_p4), %s3945_s20, 5 }
  0x28   : > { %4524 = vmatprep.subr.bf16.mxu0 %v5137_v18  ;;  %v855_v25 = vmax.bf16 %v851_v60, %v5148_v20  ;;  %v1017_v26 = vmax.bf16 %v1013_v61, %v5148_v20  ;;  %v5273_v33 = vld [vmem:[%s5215_s16 + $0x30] sm:%s5264_s12]  ;;  %v1499_v38 = vmax.bf16 %v1495_v28, %v5148_v20  ;;  %v5280_v39 = vunpack.c.l.bf16 %v4286_v32  ;;  %v5315_v59 = vld [vmem:[%s5215_s16 + $0x38] sm:%s5264_s12] }
  0x29   : > { %v1562_v40 = vunpack.c.l.bf16 %v5273_v33  ;;  %v4289_v41 = vld [vmem:[%s5123_s23 + $0x30] sm:%s5264_s12]  ;;  %v1919_v44 = vsel %vm769_vm1, %v751_v29, %v5008_v1  ;;  %v1341_v45 = vmax.bf16 %v1337_v31, %v5148_v20  ;;  %v5324_v9 = vunpack.c.l.bf16 %v4294_v58  ;;  %s5745_s28 = scalar_lea.vmem (%p5035_p4), %s5801_s7, %s4393_s21  }
  0x2a   : > { %4401 = vst [vmem:[#allocation23 + $0x8] sm:$0xff] %v855_v25   ;;  %4405 = vst [vmem:[#allocation23 + $0x10] sm:$0xff] %v1017_v26   ;;  %v4290_v42 = vld [vmem:[%s5262_s18 + $0x34] sm:%s5264_s12]  ;;  %v1611_v46 = vunpack.c.l.bf16 %v4289_v41  ;;  %v1924_v51 = vpack.c.bf16 %v1919_v44, %v656_v22  ;;  %v1503_v52 = vmax.bf16 %v1499_v38, %v5148_v20  ;;  %v1539_v55 = vsel %vm1538_vm2, %v5008_v1, %v5280_v39 }
  0x2b   : > { %4525 = vmatpush3.bf16.msra.mxu0 %v5143_v19  ;;  %v5291_v47 = vunpack.c.l.bf16 %v4290_v42  ;;  %v5295_v49 = vld [vmem:[%s5215_s16 + $0x34] sm:%s5264_s12]  ;;  %v1569_v56 = vsel %vm1568_vm3, %v5008_v1, %v1562_v40  ;;  %4413 = vst [vmem:[#allocation23 + $0x20] sm:$0xff] %v1341_v45   ;;  %v5805_v28 = vunpack.c.l.bf16 %v5315_v59  ;;  %v1785_v38 = vsel %vm1538_vm2, %v5008_v1, %v5324_v9 }
  0x2c   : > { %4526 = vmatprep.subr.bf16.mxu0 %v5159_v24  ;;  %v4293_v50 = vld [vmem:[%s5123_s23 + $0x34] sm:%s5264_s12]  ;;  %v1670_v57 = vunpack.c.l.bf16 %v5295_v49  ;;  %v1617_v60 = vsel %vm5217_vm4, %v5008_v1, %v1611_v46  ;;  %4417 = vst [vmem:[#allocation23 + $0x28] sm:$0xff] %v1503_v52   ;;  %v1930_v41 = vmax.bf16 %v1924_v51, %v5148_v20  ;;  %v1790_v44 = vsel %vm769_vm1, %v1785_v38, %v5008_v1 }
  0x2d   : > { %v1647_v61 = vsel %vm1538_vm2, %v5008_v1, %v5291_v47  ;;  %v1719_v63 = vunpack.c.l.bf16 %v4293_v50  ;;  %v4297_v22 = vld [vmem:[%s5123_s23 + $0x38] sm:%s5264_s12]  ;;  %v1815_v45 = vsel %vm1568_vm3, %v5008_v1, %v5805_v28  ;;  %v2699_v49 = vmax.bf16 %v5184_v36, %v5148_v20 }
  0x2e   : > { %v1677_v25 = vsel %vm1568_vm3, %v5008_v1, %v1670_v57  ;;  %v1731_v26 = vpack.c.bf16 %v1647_v61, %v1539_v55  ;;  %v1857_v29 = vunpack.c.l.bf16 %v4297_v22  ;;  %v1820_v51 = vsel %vm769_vm1, %v1815_v45, %v5008_v1 }
  0x2f   : > { %4527 = vmatpush3.bf16.msra.mxu0 %v5194_v43  ;;  %v1725_v31 = vsel %vm5217_vm4, %v5008_v1, %v1719_v63  ;;  %v1733_v32 = vpack.c.bf16 %v1677_v25, %v1569_v56  ;;  %v1874_v55 = vpack.c.bf16 %v5008_v1, %v1790_v44  ;;  %v1934_v56 = vmax.bf16 %v1930_v41, %v5148_v20  ;;  %v4267_v25 = vld [vmem:[%s5166_s22 + $0x1c] sm:$0xff]  }
  0x30   : > { %4528 = vmatprep.subr.bf16.mxu0 %v5203_v48  ;;  %v1737_v42 = vpack.c.bf16 %v1725_v31, %v1617_v60  ;;  %v1863_v46 = vsel %vm5217_vm4, %v5008_v1, %v1857_v29  ;;  %v1876_v61 = vpack.c.bf16 %v5008_v1, %v1820_v51  ;;  %v1980_v22 = vmax.bf16 %v1976_v34, %v5148_v20 }
  0x31   : > { %v4844_v50 = vld [vmem:[#allocation23 + $0x8] ss:$12 sps:$4 sm:$0xff]   ;;  %v1868_v52 = vsel %vm769_vm1, %v1863_v46, %v5008_v1  ;;  %v3084_v58 = vld [vmem:[#allocation23 + $0xc] sm:$0xff]  ;;  %v1938_v38 = vmax.bf16 %v1934_v56, %v5148_v20  ;;  %v2003_v41 = vsel %vm769_vm1, %v979_v35, %v5008_v1  ;;  %v1141_v46 = vunpack.c.l.bf16 %v4267_v25 }
  0x32   : > { %v1741_v60 = vmax.bf16 %v1737_v42, %v5148_v20  ;;  %v1880_v63 = vpack.c.bf16 %v5008_v1, %v1868_v52  ;;  %4675 = vmatmul.mubr.msk.bf16.vlgmr.msra.gmra.mrb[0].mxu1 %vm3240_vm5, %v4844_v50  ;;  %v4304_v29 = vcombine.low %v5236_v62, %v3084_v58  ;;  %v4305_v31 = vcombine.high %v5236_v62, %v3084_v58  ;;  %v5384_v62 = vld [vmem:[%s5166_s22 + $0x30] sm:%s5264_s12] }
  0x33   : > { %4529 = vmatpush3.bf16.msra.mxu0 %v5255_v27  ;;  %4554 = vmatpush3.bf16.msra.mxu1 %v5047_v3  ;;  %v5380_v44 = vmax.bf16 %v1980_v22, %v5148_v20  ;;  %v3088_v45 = vld [vmem:[#allocation23 + $0x24] sm:$0xff]  ;;  %4429 = vst [vmem:[#allocation23 + $0x40] sm:$0xff] %v1938_v38   ;;  %v2016_v35 = vpack.c.bf16 %v1075_v37, %v2003_v41  ;;  %v1237_v50 = vunpack.c.h.bf16 %v4267_v25  ;;  %v1465_v58 = vunpack.c.h.bf16 %v5222_v54 }
  0x34   : > { %4686 = vmatprep.subr.bf16.mxu0 %v4963_v4  ;;  %4678 = vmatprep.mubr.msk.bf16.mxu1 %vm4964_vm0, %v4963_v4  ;;  %v1745_v34 = vmax.bf16 %v1741_v60, %v1733_v32  ;;  %v1884_v42 = vmax.bf16 %v1880_v63, %v5246_v21  ;;  %v2114_v32 = vmax.bf16 %v4852_v23, %v5148_v20  ;;  %v5392_v21 = vld [vmem:[%s5166_s22 + $0x34] sm:%s5264_s12] }
  0x35   : > { %3282 = vmatprep.mubr.bf16.mxu0 %v4305_v31  ;;  %4555 = vmatprep.subr.bf16.mxu1 %v5054_v6  ;;  %v4308_v51 = vcombine.high %v5242_v5, %v3088_v45  ;;  %v5400_v60 = vld [vmem:[%s5166_s22 + $0x38] sm:%s5264_s12]  ;;  %v4848_v63 = vld [vmem:[#allocation23 + $0x20] ss:$12 sps:$4 sm:$0xff]   ;;  %v2022_v0 = vmax.bf16 %v2016_v35, %v5148_v20  ;;  %v2057_v37 = vsel %vm769_vm1, %v1237_v50, %v5008_v1  ;;  %v5803_v25 = vunpack.c.l.bf16 %v5392_v21 }
  0x36   : > { %3283 = vmatmul.mubr.bf16.vlgmr.msra.gmra.mrb[0].mxu0 %v4304_v29  ;;  %v5395_v52 = vmax.bf16 %v1745_v34, %v1731_v26  ;;  %v1888_v56 = vmax.bf16 %v1884_v42, %v1876_v61  ;;  %v2118_v23 = vmax.bf16 %v2114_v32, %v5148_v20  ;;  %v5804_v26 = vunpack.c.l.bf16 %v5384_v62  ;;  %v4246_v29 = vld [vmem:[%s5215_s16 + $0x8] sm:$0xff]   ;;  %v4254_v35 = vld [vmem:[%s5215_s16 + $0x10] sm:$0xff]  }
  0x37   : > { %4687 = vmatpush3.bf16.msra.mxu0 %v5100_v14  ;;  %4556 = vmatpush3.bf16.msra.mxu1 %v5065_v7  ;;  %v4307_v54 = vcombine.low %v5242_v5, %v3088_v45  ;;  %v2026_v31 = vmax.bf16 %v2022_v0, %v5148_v20  ;;  %v2062_v38 = vpack.c.bf16 %v2057_v37, %v1141_v46  ;;  %v5802_v5 = vunpack.c.l.bf16 %v5400_v60 }
  0x38   : > { %3290 = vmatprep.mubr.bf16.mxu0 %v4308_v51  ;;  %v4311_v61 = vcombine.high %v5395_v52, %v5395_v52  ;;  %v1892_v22 = vmax.bf16 %v1888_v56, %v1874_v55  ;;  %4557 = vmatprep.subr.bf16.mxu1 %v5071_v8  ;;  %v5419_v41 = vmax.bf16 %v2118_v23, %v5148_v20  ;;  %v735_v51 = vunpack.c.l.bf16 %v4246_v29  ;;  %v4857_v56 = vld [vmem:[%s5215_s16] sm:$0xff]  }
  0x39   : > { %4688 = vmatprep.subr.bf16.mxu0 %v4963_v4  ;;  %v2141_v55 = vsel %vm769_vm1, %v1465_v58, %v5008_v1  ;;  %v2148_v34 = vsel %vm1568_vm3, %v5008_v1, %v5280_v39  ;;  %v2162_v42 = vsel %vm5217_vm4, %v5008_v1, %v5804_v26  ;;  %v5438_v45 = vsel %vm1568_vm3, %v5008_v1, %v5291_v47 }
  0x3a   : > { %4425 = vst [vmem:[#allocation23 + $0x38] sm:$0xff] %v1892_v22   ;;  %4679 = vmatmul.mubr.msk.bf16.gmra.mrb[4].mxu1 %vm3240_vm5, %v4848_v63  ;;  %v2030_v46 = vmax.bf16 %v2026_v31, %v5148_v20  ;;  %v2068_v50 = vmax.bf16 %v2062_v38, %v5148_v20  ;;  %v2168_v32 = vpack.c.bf16 %v2148_v34, %v5008_v1  ;;  %v801_v37 = vunpack.c.h.bf16 %v4246_v29 }
  0x3b   : > { %4689 = vmatpush3.bf16.msra.mxu0 %v5117_v16  ;;  %4558 = vmatpush3.bf16.msra.mxu1 %v5079_v10  ;;  %v2172_v58 = vpack.c.bf16 %v2162_v42, %v2141_v55  ;;  %v2218_v63 = vsel %vm5217_vm4, %v5008_v1, %v5803_v25  ;;  %v2230_v0 = vsel %vm1568_vm3, %v5008_v1, %v5324_v9  ;;  %v897_v38 = vunpack.c.l.bf16 %v4254_v35  ;;  %v4271_v55 = vld [vmem:[%s5215_s16 + $0x20] sm:$0xff]  }
  0x3c   : > { %4682 = vmatprep.mubr.msk.bf16.mxu1 %vm4964_vm0, %v4963_v4  ;;  %4559 = vmatprep.subr.bf16.mxu1 %v5085_v11  ;;  %4437 = vst [vmem:[#allocation23 + $0x50] sm:$0xff] %v2030_v46   ;;  %v2072_v23 = vmax.bf16 %v2068_v50, %v5148_v20  ;;  %v2235_v22 = vsel %vm769_vm1, %v2230_v0, %v5008_v1  ;;  %v963_v46 = vunpack.c.h.bf16 %v4254_v35  ;;  %v1221_v35 = vunpack.c.l.bf16 %v4271_v55 }
  0x3d   : > { %v2244_v31 = vsel %vm5217_vm4, %v5008_v1, %v5802_v5  ;;  %4702 = vmatprep.subr.bf16.mxu0 %v4963_v4  ;;  %v2178_v29 = vmax.bf16 %v2172_v58, %v5148_v20  ;;  %v2250_v42 = vpack.c.bf16 %v2235_v22, %v5438_v45  ;;  %v2307_v5 = vmax.bf16 %v4857_v56, %v5184_v36  ;;  %v4859_v22 = vld [vmem:[%s5215_s16 + $0x18] sm:$0xff]  }
  0x3e   : > { %3291 = vmatmul.mubr.bf16.gmra.mrb[4].mxu0 %v4307_v54  ;;  %v2249_v34 = vsel %vm769_vm1, %v2244_v31, %v5008_v1  ;;  %v2076_v50 = vmax.bf16 %v2072_v23, %v5148_v20  ;;  %v2329_v54 = vsel %vm769_vm1, %v735_v51, %v5008_v1  ;;  %v2383_v45 = vsel %vm769_vm1, %v963_v46, %v5008_v1  ;;  %v5489_v23 = vld [vmem:[%s5262_s18] sm:$0xff]  }
  0x3f   : > { %3298 = vmatprep.mubr.bf16.mxu0 %v4311_v61  ;;  %v2254_v0 = vpack.c.bf16 %v2249_v34, %v2218_v63  ;;  %4560 = vmatpush3.bf16.msra.mxu1 %v5092_v13  ;;  %v2182_v58 = vmax.bf16 %v2178_v29, %v5148_v20  ;;  %v2341_v25 = vpack.c.bf16 %v801_v37, %v2329_v54  ;;  %v4279_v61 = vld [vmem:[%s5215_s16 + $0x28] sm:$0xff]   ;;  %v1287_v29 = vunpack.c.h.bf16 %v4271_v55 }
  0x40   : > { %4561 = vmatprep.subr.bf16.mxu1 %v5107_v15  ;;  %4441 = vst [vmem:[#allocation23 + $0x58] sm:$0xff] %v2076_v50   ;;  %v5496_v31 = vmax.bf16 %v2307_v5, %v5148_v20  ;;  %v2387_v37 = vpack.c.bf16 %v2383_v45, %v897_v38  ;;  %v4310_v34 = vcombine.low %v5395_v52, %v5395_v52  ;;  %v1383_v5 = vunpack.c.l.bf16 %v4279_v61 }
  0x41   : > { %v4849_v56 = vld [vmem:[#allocation23 + $0x38] ss:$0 sps:$4 sm:$0xff]   ;;  %v5492_v63 = vld [vmem:[#allocation23 + $0x3c] sm:$0xff]  ;;  %v2260_v51 = vmax.bf16 %v2254_v0, %v5148_v20  ;;  %v2186_v54 = vmax.bf16 %v2182_v58, %v2168_v32  ;;  %v2353_v26 = vmax.bf16 %v2341_v25, %v5184_v36  ;;  %v1449_v28 = vunpack.c.h.bf16 %v4279_v61 }
  0x42   : > { %v4335_v46 = vcombine.high %v5492_v63, %v5380_v44  ;;  %4683 = vmatmul.mubr.msk.bf16.gmra.mrb[8].mxu1 %vm3240_vm5, %v4849_v56  ;;  %v2399_v0 = vmax.bf16 %v2387_v37, %v5184_v36  ;;  %v2445_v32 = vmax.bf16 %v4859_v22, %v5184_v36  ;;  %v2467_v25 = vsel %vm769_vm1, %v1221_v35, %v5008_v1  ;;  %v4862_v56 = vld [vmem:[%s5262_s18 + $0xc] sm:$0xff]  }
  0x43   : > { %v2264_v50 = vmax.bf16 %v2260_v51, %v5148_v20  ;;  %4562 = vmatpush3.bf16.msra.mxu1 %v5130_v17  ;;  %4449 = vst [vmem:[#allocation23 + $0x68] sm:$0xff] %v2186_v54   ;;  %v2357_v52 = vmax.bf16 %v2353_v26, %v5148_v20  ;;  %v558_v38 = vunpack.c.l.bf16 %v5489_v23  ;;  %v2479_v45 = vpack.c.bf16 %v1287_v29, %v2467_v25  ;;  %v5519_v26 = vld [vmem:[%s5262_s18 + $0x8] ss:$36 sps:$4 sm:$0xff]  }
  0x44   : > { %3454 = vmatprep.mubr.bf16.mxu1 %v4335_v46  ;;  %4563 = vmatprep.subr.bf16.mxu1 %v5137_v18  ;;  %v2403_v58 = vmax.bf16 %v2399_v0, %v5148_v20  ;;  %v2521_v61 = vsel %vm769_vm1, %v1449_v28, %v5008_v1  ;;  %v5522_v22 = vmax.bf16 %v2445_v32, %v5148_v20  ;;  %v5809_v37 = vunpack.c.l.bf16 %v5315_v59  ;;  %v4257_v59 = vld [vmem:[%s5262_s18 + $0x14] sm:$0xff]   ;;  %v4864_v54 = vld [vmem:[%s5262_s18 + $0x24] sm:$0xff]  }
  0x45   : > { %v2268_v55 = vmax.bf16 %v2264_v50, %v2250_v42  ;;  %4461 = vst [vmem:[#allocation23 + $0x80] sm:$0xff] %v2357_v52   ;;  %v2525_v35 = vpack.c.bf16 %v2521_v61, %v1383_v5  ;;  %v2561_v42 = vsel %vm5217_vm4, %v5008_v1, %v1562_v40  ;;  %v2578_v28 = vsel %vm5217_vm4, %v5008_v1, %v1670_v57  ;;  %v4265_v52 = vld [vmem:[%s5262_s18 + $0x1c] sm:$0xff]   ;;  %v4851_v32 = vld [vmem:[#allocation23 + $0x44] ss:$12 sps:$4 sm:$0xff]  }
  0x46   : > { %3299 = vmatmul.mubr.bf16.gmra.mrb[8].mxu0 %v4310_v34  ;;  %4465 = vst [vmem:[#allocation23 + $0x88] sm:$0xff] %v2403_v58   ;;  %v2491_v33 = vmax.bf16 %v2479_v45, %v5184_v36  ;;  %v2589_v51 = vpack.c.bf16 %v2578_v28, %v2561_v42  ;;  %v2625_v40 = vsel %vm5217_vm4, %v5008_v1, %v5809_v37  ;;  %v624_v34 = vunpack.c.h.bf16 %v5489_v23 }
  0x47   : > { %4690 = vmatprep.mubr.msk.bf16.mxu0 %vm4964_vm0, %v4963_v4  ;;  %4453 = vst [vmem:[#allocation23 + $0x70] sm:$0xff] %v2268_v55   ;;  %4564 = vmatpush3.bf16.msra.mxu1 %v5143_v19  ;;  %v2537_v57 = vmax.bf16 %v2525_v35, %v5184_v36  ;;  %v2630_v29 = vsel %vm769_vm1, %v2625_v40, %v5008_v1  ;;  %v719_v46 = vunpack.c.l.bf16 %v5519_v26  ;;  %v947_v35 = vunpack.c.l.bf16 %v4257_v59 }
  0x48   : > { %4565 = vmatprep.subr.bf16.mxu1 %v5159_v24  ;;  %v2495_v50 = vmax.bf16 %v2491_v33, %v5148_v20  ;;  %v2601_v0 = vmax.bf16 %v2589_v51, %v5184_v36  ;;  %v2639_v5 = vpack.c.bf16 %v558_v38, %v5008_v1  ;;  %v2641_v55 = vpack.c.bf16 %v5008_v1, %v2630_v29 }
  0x49   : > { %v2541_v25 = vmax.bf16 %v2537_v57, %v5148_v20  ;;  %v2682_v23 = vsel %vm769_vm1, %v719_v46, %v5008_v1  ;;  %v5564_v58 = vmax.bf16 %v4862_v56, %v2699_v49  ;;  %v1043_v42 = vunpack.c.h.bf16 %v4257_v59  ;;  %v3367_v56 = vld [vmem:[#allocation23 + $0x54] sm:$0xff] }
  0x4a   : > { %4473 = vst [vmem:[#allocation23 + $0x98] sm:$0xff] %v2495_v50   ;;  %v5567_v45 = vmax.bf16 %v2601_v0, %v5148_v20  ;;  %v2685_v61 = vpack.c.bf16 %v2682_v23, %v624_v34  ;;  %v2653_v38 = vmax.bf16 %v2641_v55, %v5184_v36  ;;  %v1109_v28 = vunpack.c.l.bf16 %v4265_v52 }
  0x4b   : > { %4566 = vmatpush3.bf16.msra.mxu1 %v5194_v43  ;;  %4477 = vst [vmem:[#allocation23 + $0xa0] sm:$0xff] %v2541_v25   ;;  %v1205_v33 = vunpack.c.h.bf16 %v4265_v52  ;;  %v5571_v51 = vmax.bf16 %v4864_v54, %v2699_v49  ;;  %v2766_v40 = vsel %vm769_vm1, %v947_v35, %v5008_v1  ;;  %v1433_v34 = vunpack.c.h.bf16 %v5519_v26  ;;  %v4853_v52 = vld [vmem:[#allocation23 + $0x5c] ss:$12 sps:$4 sm:$0xff]  }
  0x4c   : > { %4567 = vmatprep.subr.bf16.mxu1 %v5203_v48  ;;  %v2703_v37 = vmax.bf16 %v2699_v49, %v2685_v61  ;;  %v2657_v57 = vmax.bf16 %v2653_v38, %v2639_v5  ;;  %v2777_v29 = vpack.c.bf16 %v1043_v42, %v2766_v40  ;;  %v4334_v46 = vcombine.low %v5492_v63, %v5380_v44 }
  0x4d   : > { %v2820_v36 = vsel %vm769_vm1, %v1205_v33, %v5008_v1  ;;  %v4338_v54 = vcombine.high %v3367_v56, %v5419_v41  ;;  %v2904_v44 = vsel %vm769_vm1, %v1433_v34, %v5008_v1  ;;  %v2912_v63 = vsel %vm5217_vm4, %v5008_v1, %v5280_v39  ;;  %v3542_v33 = vld [vmem:[#allocation23 + $0x84] sm:$0xff]  ;;  %v4870_v34 = vld [vmem:[%s5794_s0] sm:$0xff]  }
  0x4e   : > { %4691 = vmatmul.mubr.msk.bf16.vlgmr.msra.gmra.mrb[12].mxu0 %vm3240_vm5, %v4851_v32  ;;  %4489 = vst [vmem:[#allocation23 + $0xb8] sm:$0xff] %v2703_v37   ;;  %v2823_v59 = vpack.c.bf16 %v2820_v36, %v1109_v28  ;;  %4485 = vst [vmem:[#allocation23 + $0xb0] sm:$0xff] %v2657_v57   ;;  %v2795_v50 = vmax.bf16 %v2777_v29, %v2699_v49  ;;  %v5810_v0 = vunpack.c.l.bf16 %v5384_v62  ;;  %v5812_v32 = vunpack.c.l.bf16 %v5400_v60  ;;  %v3371_v23 = vld [vmem:[#allocation23 + $0x6c] sm:$0xff]  ;;  %v4856_v12 = vld [vmem:[#allocation23 + $0x74] ss:$0 sps:$4 sm:$0xff]  }
  0x4f   : > { %4694 = vmatprep.mubr.msk.bf16.mxu0 %vm4964_vm0, %v4963_v4  ;;  %4703 = vmatpush3.bf16.msra.mxu0 %v5100_v14  ;;  %v2994_v62 = vsel %vm5217_vm4, %v5008_v1, %v5324_v9  ;;  %v2933_v55 = vpack.c.bf16 %v2912_v63, %v2904_v44  ;;  %v2968_v9 = vsel %vm5217_vm4, %v5008_v1, %v5291_v47 }
  0x50   : > { %4568 = vmatpush3.bf16.msra.mxu1 %v5255_v27  ;;  %4704 = vmatprep.subr.bf16.mxu0 %v4963_v4  ;;  %v2841_v26 = vmax.bf16 %v2823_v59, %v2699_v49  ;;  %v2927_v5 = vsel %vm1568_vm3, %v5008_v1, %v5810_v0  ;;  %4497 = vst [vmem:[#allocation23 + $0xc8] sm:$0xff] %v2795_v50   ;;  %v5811_v49 = vunpack.c.l.bf16 %v5392_v21 }
  0x51   : > { %4592 = vmatprep.subr.bf16.mxu1 %v5042_v2  ;;  %v2937_v2 = vpack.c.bf16 %v2927_v5, %v5008_v1  ;;  %v3009_v25 = vsel %vm1568_vm3, %v5008_v1, %v5812_v32  ;;  %v2999_v30 = vsel %vm769_vm1, %v2994_v62, %v5008_v1  ;;  %v4337_v35 = vcombine.low %v3367_v56, %v5419_v41 }
  0x52   : > { %4501 = vst [vmem:[#allocation23 + $0xd0] sm:$0xff] %v2841_v26   ;;  %v2983_v39 = vsel %vm1568_vm3, %v5008_v1, %v5811_v49  ;;  %v4341_v53 = vcombine.high %v3371_v23, %v3371_v23  ;;  %v3015_v42 = vpack.c.bf16 %v2999_v30, %v2968_v9  ;;  %v4340_v56 = vcombine.low %v3371_v23, %v3371_v23  ;;  %v4860_v40 = vld [vmem:[#allocation23 + $0x98] ss:$12 sps:$4 sm:$0xff]   ;;  %v3546_v57 = vld [vmem:[#allocation23 + $0x9c] sm:$0xff] }
  0x53   : > { %3455 = vmatmul.mubr.bf16.vlgmr.msra.gmra.mrb[12].mxu1 %v4334_v46  ;;  %4705 = vmatpush3.bf16.msra.mxu0 %v5117_v16  ;;  %v2943_v21 = vmax.bf16 %v2937_v2, %v5148_v20  ;;  %v4347_v37 = vcombine.high %v5496_v31, %v3542_v33  ;;  %v4346_v29 = vcombine.low %v5496_v31, %v3542_v33 }
  0x54   : > { %4593 = vmatpush3.bf16.msra.mxu1 %v5047_v3  ;;  %3462 = vmatprep.mubr.bf16.mxu1 %v4338_v54  ;;  %v3014_v3 = vsel %vm769_vm1, %v3009_v25, %v5008_v1  ;;  %v4349_v31 = vcombine.low %v5522_v22, %v3546_v57  ;;  %v4353_v46 = vcombine.high %v5567_v45, %v5567_v45 }
  0x55   : > { %4594 = vmatprep.subr.bf16.mxu1 %v5054_v6  ;;  %4718 = vmatprep.subr.bf16.mxu0 %v4963_v4  ;;  %v2947_v60 = vmax.bf16 %v2943_v21, %v5148_v20  ;;  %v3019_v61 = vpack.c.bf16 %v3014_v3, %v2983_v39  ;;  %v4861_v36 = vld [vmem:[#allocation23 + $0xb0] ss:$0 sps:$4 sm:$0xff]  }
  0x56   : > { %4695 = vmatmul.mubr.msk.bf16.gmra.mrb[16].mxu0 %vm3240_vm5, %v4853_v52 }
  0x57   : > { %4698 = vmatprep.mubr.msk.bf16.mxu0 %vm4964_vm0, %v4963_v4  ;;  %v2951_v47 = vmax.bf16 %v2947_v60, %v2933_v55  ;;  %v3025_v38 = vmax.bf16 %v3019_v61, %v5148_v20  ;;  %v4863_v59 = vld [vmem:[#allocation23 + $0xbc] ss:$12 sps:$4 sm:$0xff]  }
  0x58   : > { %4595 = vmatpush3.bf16.msra.mxu1 %v5065_v7 }
  0x59   : > { %4596 = vmatprep.subr.bf16.mxu1 %v5071_v8  ;;  %4509 = vst [vmem:[#allocation23 + $0xe0] sm:$0xff] %v2951_v47   ;;  %v3029_v28 = vmax.bf16 %v3025_v38, %v5148_v20  ;;  %v4858_v20 = vld [vmem:[#allocation23 + $0x80] ss:$12 sps:$4 sm:$0xff]  }
  0x5b   : > { %3463 = vmatmul.mubr.bf16.gmra.mrb[16].mxu1 %v4337_v35  ;;  %v3033_v41 = vmax.bf16 %v3029_v28, %v3015_v42 }
  0x5c   : > { %4597 = vmatpush3.bf16.msra.mxu1 %v5079_v10  ;;  %3470 = vmatprep.mubr.bf16.mxu1 %v4341_v53 }
  0x5d   : > { %4598 = vmatprep.subr.bf16.mxu1 %v5085_v11  ;;  %4513 = vst [vmem:[#allocation23 + $0xe8] sm:$0xff] %v3033_v41  }
  0x5e   : > { %4699 = vmatmul.mubr.msk.bf16.gmra.mrb[20].mxu0 %vm3240_vm5, %v4856_v12 }
  0x5f   : > { %4706 = vmatprep.mubr.msk.bf16.mxu0 %vm4964_vm0, %v4963_v4 }
  0x60   : > { %4599 = vmatpush3.bf16.msra.mxu1 %v5092_v13 }
  0x61   : > { %4600 = vmatprep.subr.bf16.mxu1 %v5107_v15 }
  0x63   : > { %3471 = vmatmul.mubr.bf16.gmra.mrb[20].mxu1 %v4340_v56 }
  0x64   : > { %4601 = vmatpush3.bf16.msra.mxu1 %v5130_v17  ;;  %3631 = vmatprep.mubr.bf16.mxu1 %v4347_v37 }
  0x65   : > { %4602 = vmatprep.subr.bf16.mxu1 %v5137_v18 }
  0x66   : > { %4707 = vmatmul.mubr.msk.bf16.vlgmr.msra.gmra.mrb[24].mxu0 %vm3240_vm5, %v4858_v20 }
  0x67   : > { %4710 = vmatprep.mubr.msk.bf16.mxu0 %vm4964_vm0, %v4963_v4  ;;  %4719 = vmatpush3.bf16.msra.mxu0 %v5100_v14  ;;  %v4350_v14 = vcombine.high %v5522_v22, %v3546_v57  ;;  %v4352_v22 = vcombine.low %v5567_v45, %v5567_v45 }
  0x68   : > { %4603 = vmatpush3.bf16.msra.mxu1 %v5143_v19  ;;  %4720 = vmatprep.subr.bf16.mxu0 %v4963_v4 }
  0x69   : > { %4604 = vmatprep.subr.bf16.mxu1 %v5159_v24 }
  0x6b   : > { %4721 = vmatpush3.bf16.msra.mxu0 %v5117_v16  ;;  %v4869_v16 = vld [vmem:[%s5794_s0 + $0x40] sm:$0xff]  }
  0x6c   : > { %4605 = vmatpush3.bf16.msra.mxu1 %v5194_v43 }
  0x6d   : > { %4606 = vmatprep.subr.bf16.mxu1 %v5203_v48 }
  0x6e   : > { %4711 = vmatmul.mubr.msk.bf16.gmra.mrb[28].mxu0 %vm3240_vm5, %v4860_v40 }
  0x6f   : > { %4714 = vmatprep.mubr.msk.bf16.mxu0 %vm4964_vm0, %v4963_v4 }
  0x70   : > { %4607 = vmatpush3.bf16.msra.mxu1 %v5255_v27 }
  0x71   : > { %4631 = vmatprep.subr.bf16.mxu1 %v4869_v16 }
  0x73   : > { %3632 = vmatmul.mubr.bf16.vlgmr.msra.gmra.mrb[24].mxu1 %v4346_v29 }
  0x74   : > { %4632 = vmatpush3.bf16.msra.mxu1 %v4870_v34  ;;  %3639 = vmatprep.mubr.bf16.mxu1 %v4350_v14 }
  0x75   : > { %4633 = vmatprep.subr.bf16.mxu1 %v5054_v6  ;;  %v3717_v6 = vld [vmem:[#allocation23 + $0xb4] sm:$0xff] }
  0x76   : > { %4715 = vmatmul.mubr.msk.bf16.gmra.mrb[32].mxu0 %vm3240_vm5, %v4861_v36 }
  0x77   : > { %4722 = vmatprep.mubr.msk.bf16.mxu0 %vm4964_vm0, %v4963_v4 }
  0x78   : > { %4634 = vmatpush3.bf16.msra.mxu1 %v5065_v7  ;;  %v4359_v7 = vcombine.high %v3717_v6, %v5564_v58 }
  0x79   : > { %4635 = vmatprep.subr.bf16.mxu1 %v5071_v8  ;;  %v4865_v8 = vld [vmem:[#allocation23 + $0xd4] ss:$12 sps:$4 sm:$0xff]  }
  0x7b   : > { %3640 = vmatmul.mubr.bf16.gmra.mrb[28].mxu1 %v4349_v31 }
  0x7c   : > { %4636 = vmatpush3.bf16.msra.mxu1 %v5079_v10  ;;  %3647 = vmatprep.mubr.bf16.mxu1 %v4353_v46  ;;  %v4868_v10 = vld [vmem:[#allocation23 + $0xec] ss:$0 sps:$4 sm:$0xff]  }
  0x7d   : > { %4637 = vmatprep.subr.bf16.mxu1 %v5085_v11  ;;  %v3721_v11 = vld [vmem:[#allocation23 + $0xcc] sm:$0xff] }
  0x7e   : > { %4723 = vmatmul.mubr.msk.bf16.vlgmr.msra.gmra.mrb[36].mxu0 %vm3240_vm5, %v4863_v59 }
  0x7f   : > { %4726 = vmatprep.mubr.msk.bf16.mxu0 %vm4964_vm0, %v4963_v4 }
  0x80   : > { %4638 = vmatpush3.bf16.msra.mxu1 %v5092_v13  ;;  %v4358_v13 = vcombine.low %v3717_v6, %v5564_v58 }
  0x81   : > { %4639 = vmatprep.subr.bf16.mxu1 %v5107_v15  ;;  %v4362_v15 = vcombine.high %v3721_v11, %v5571_v51 }
  0x83   : > { %3648 = vmatmul.mubr.bf16.gmra.mrb[32].mxu1 %v4352_v22 }
  0x84   : > { %4640 = vmatpush3.bf16.msra.mxu1 %v5130_v17  ;;  %3808 = vmatprep.mubr.bf16.mxu1 %v4359_v7  ;;  %v4361_v17 = vcombine.low %v3721_v11, %v5571_v51 }
  0x85   : > { %4641 = vmatprep.subr.bf16.mxu1 %v5137_v18 }
  0x86   : > { %4727 = vmatmul.mubr.msk.bf16.gmra.mrb[40].mxu0 %vm3240_vm5, %v4865_v8 }
  0x87   : > { %4730 = vmatprep.mubr.msk.bf16.mxu0 %vm4964_vm0, %v4963_v4  ;;  %v3725_v4 = vld [vmem:[#allocation23 + $0xe4] sm:$0xff] }
  0x88   : > { %4642 = vmatpush3.bf16.msra.mxu1 %v5143_v19  ;;  %v4365_v18 = vcombine.high %v3725_v4, %v3725_v4  ;;  %v4364_v19 = vcombine.low %v3725_v4, %v3725_v4 }
  0x89   : > { %4643 = vmatprep.subr.bf16.mxu1 %v5159_v24 }
  0x8c   : > { %4644 = vmatpush3.bf16.msra.mxu1 %v5194_v43 }
  0x8d   : > { %4645 = vmatprep.subr.bf16.mxu1 %v5203_v48 }
  0x8e   : > { %4731 = vmatmul.mubr.msk.bf16.gmra.mrb[44].mxu0 %vm3240_vm5, %v4868_v10 }
  0x90   : > { %4646 = vmatpush3.bf16.msra.mxu1 %v5255_v27 }
  0x93   : > { %3809 = vmatmul.mubr.bf16.vlgmr.msra.gmra.mrb[36].mxu1 %v4358_v13 }
  0x94   : > { %3816 = vmatprep.mubr.bf16.mxu1 %v4362_v15 }
  0x9b   : > { %3817 = vmatmul.mubr.bf16.gmra.mrb[40].mxu1 %v4361_v17 }
  0x9c   : > { %3824 = vmatprep.mubr.bf16.mxu1 %v4365_v18 }
  0xa3   : > { %3825 = vmatmul.mubr.bf16.gmra.mrb[44].mxu1 %v4364_v19 }
 0x105   : > { %v3340_v24 = vpop.f32.mrb[0].mxu1 }
 0x106   : > { %v4676_v43 = vpop.f32.mrb[1].mxu1 }
 0x107   : > { %v3343_v48 = vpop.f32.mrb[2].mxu1 }
 0x108   : > { %v4677_v45 = vpop.f32.mrb[3].mxu1 }
 0x109   : > { %v4530_v54 = vpop.f32.mrb[0].mxu0 }
 0x10a   : > { %v4531_v58 = vpop.f32.mrb[1].mxu0 }
 0x10b   : > { %v4532_v50 = vadd.f32 %v4531_v58, %v4530_v54  ;;  %v4533_v27 = vpop.f32.mrb[2].mxu0 }
 0x10c   : > { %v4534_v26 = vpop.f32.mrb[3].mxu0 }
 0x10d   : > { %v5707_v44 = vadd.f32 %v4532_v50, %v3340_v24  ;;  %v4535_v63 = vadd.f32 %v4534_v26, %v4533_v27  ;;  %v3348_v0 = vpop.f32.mrb[4].mxu1 }
 0x10e   : > { %v4680_v51 = vpop.f32.mrb[5].mxu1 }
 0x10f   : > { %v5709_v5 = vadd.f32 %v4535_v63, %v3343_v48  ;;  %v3351_v52 = vpop.f32.mrb[6].mxu1 }
 0x110   : > { %v4681_v49 = vpop.f32.mrb[7].mxu1 }
 0x111   : > { %v4536_v2 = vpop.f32.mrb[4].mxu0 }
 0x112   : > { %v4537_v39 = vpop.f32.mrb[5].mxu0 }
 0x113   : > { %v4538_v62 = vadd.f32 %v4537_v39, %v4536_v2  ;;  %v4539_v32 = vpop.f32.mrb[6].mxu0 }
 0x114   : > { %v4540_v25 = vpop.f32.mrb[7].mxu0 }
 0x115   : > { %v5711_v55 = vadd.f32 %v4538_v62, %v3348_v0  ;;  %v4541_v21 = vadd.f32 %v4540_v25, %v4539_v32  ;;  %v3356_v23 = vpop.f32.mrb[8].mxu1 }
 0x116   : > { %v4684_v30 = vpop.f32.mrb[9].mxu1 }
 0x117   : > { %v5713_v9 = vadd.f32 %v4541_v21, %v3351_v52  ;;  %v3359_v3 = vpop.f32.mrb[10].mxu1 }
 0x118   : > { %v4685_v61 = vpop.f32.mrb[11].mxu1 }
 0x119   : > { %v4542_v60 = vpop.f32.mrb[8].mxu0 }
 0x11a   : > { %v4543_v35 = vpop.f32.mrb[9].mxu0 }
 0x11b   : > { %v4544_v53 = vadd.f32 %v4543_v35, %v4542_v60  ;;  %v4545_v47 = vpop.f32.mrb[10].mxu0 }
 0x11c   : > { %v4546_v42 = vpop.f32.mrb[11].mxu0 }
 0x11d   : > { %v5715_v38 = vadd.f32 %v4544_v53, %v3356_v23 }
 0x121   : > { %v3512_v12 = vpop.f32.mrb[12].mxu0 }
 0x122   : > { %v4692_v28 = vpop.f32.mrb[13].mxu0 }
 0x123   : > { %v3515_v41 = vpop.f32.mrb[14].mxu0 }
 0x124   : > { %v4693_v33 = vpop.f32.mrb[15].mxu0 }
 0x126   : > { %v4569_v56 = vpop.f32.mrb[12].mxu1 }
 0x127   : > { %v4570_v37 = vpop.f32.mrb[13].mxu1 }
 0x128   : > { %v4571_v20 = vadd.f32 %v4570_v37, %v4569_v56  ;;  %v4572_v40 = vpop.f32.mrb[14].mxu1 }
 0x129   : > { %v4573_v57 = vpop.f32.mrb[15].mxu1  ;;  %v3520_v29 = vpop.f32.mrb[16].mxu0 }
 0x12a   : > { %v4574_v14 = vadd.f32 %v4573_v57, %v4572_v40  ;;  %v3513_v16 = vadd.f32 %v4571_v20, %v3512_v12  ;;  %v4696_v36 = vpop.f32.mrb[17].mxu0 }
 0x12b   : > { %v3523_v34 = vpop.f32.mrb[18].mxu0 }
 0x12c   : > { %v3534_v31 = vmax.f32 %v5707_v44, %v3513_v16  ;;  %v3516_v46 = vadd.f32 %v4574_v14, %v3515_v41  ;;  %v4697_v59 = vpop.f32.mrb[19].mxu0 }
 0x12e   : > { %v3535_v6 = vmax.f32 %v5709_v5, %v3516_v46  ;;  %v4575_v22 = vpop.f32.mrb[16].mxu1 }
 0x12f   : > { %v4576_v7 = vpop.f32.mrb[17].mxu1 }
 0x130   : > { %v4577_v8 = vadd.f32 %v4576_v7, %v4575_v22  ;;  %v4578_v10 = vpop.f32.mrb[18].mxu1 }
 0x131   : > { %v4579_v11 = vpop.f32.mrb[19].mxu1  ;;  %v3528_v13 = vpop.f32.mrb[20].mxu0 }
 0x132   : > { %v4580_v15 = vadd.f32 %v4579_v11, %v4578_v10  ;;  %v3521_v4 = vadd.f32 %v4577_v8, %v3520_v29  ;;  %v4700_v17 = vpop.f32.mrb[21].mxu0 }
 0x133   : > { %v3531_v18 = vpop.f32.mrb[22].mxu0 }
 0x134   : > { %v3536_v19 = vmax.f32 %v5711_v55, %v3521_v4  ;;  %v3524_v24 = vadd.f32 %v4580_v15, %v3523_v34  ;;  %v4701_v43 = vpop.f32.mrb[23].mxu0 }
 0x136   : > { %v3537_v48 = vmax.f32 %v5713_v9, %v3524_v24  ;;  %v4581_v45 = vpop.f32.mrb[20].mxu1 }
 0x137   : > { %v4582_v54 = vpop.f32.mrb[21].mxu1 }
 0x138   : > { %v4583_v58 = vadd.f32 %v4582_v54, %v4581_v45  ;;  %v4584_v50 = vpop.f32.mrb[22].mxu1 }
 0x139   : > { %v4585_v27 = vpop.f32.mrb[23].mxu1  ;;  %v3689_v26 = vpop.f32.mrb[24].mxu0 }
 0x13a   : > { %v3529_v44 = vadd.f32 %v4583_v58, %v3528_v13  ;;  %v4708_v63 = vpop.f32.mrb[25].mxu0  ;;  %v4370_v58 = vld [vmem:[%s5795_s1] ss:$0 sm:$0xff] }
 0x13b   : > { %v3692_v0 = vpop.f32.mrb[26].mxu0 }
 0x13c   : > { %v3538_v5 = vmax.f32 %v5715_v38, %v3529_v44  ;;  %v4709_v51 = vpop.f32.mrb[27].mxu0 }
 0x141   : > { %v3697_v52 = vpop.f32.mrb[28].mxu0 }
 0x142   : > { %v4712_v2 = vpop.f32.mrb[29].mxu0 }
 0x143   : > { %v3700_v49 = vpop.f32.mrb[30].mxu0 }
 0x144   : > { %v4713_v39 = vpop.f32.mrb[31].mxu0 }
 0x146   : > { %v4608_v62 = vpop.f32.mrb[24].mxu1 }
 0x147   : > { %v4609_v32 = vpop.f32.mrb[25].mxu1 }
 0x148   : > { %v4610_v25 = vadd.f32 %v4609_v32, %v4608_v62  ;;  %v4611_v55 = vpop.f32.mrb[26].mxu1 }
 0x149   : > { %v4612_v21 = vpop.f32.mrb[27].mxu1  ;;  %v3705_v23 = vpop.f32.mrb[32].mxu0 }
 0x14a   : > { %v4613_v9 = vadd.f32 %v4612_v21, %v4611_v55  ;;  %v3690_v30 = vadd.f32 %v4610_v25, %v3689_v26  ;;  %v4716_v3 = vpop.f32.mrb[33].mxu0 }
 0x14b   : > { %v3708_v60 = vpop.f32.mrb[34].mxu0 }
 0x14c   : > { %v3711_v61 = vmax.f32 %v3534_v31, %v3690_v30  ;;  %v3693_v35 = vadd.f32 %v4613_v9, %v3692_v0  ;;  %v4717_v53 = vpop.f32.mrb[35].mxu0 }
 0x14e   : > { %v3712_v47 = vmax.f32 %v3535_v6, %v3693_v35  ;;  %v4614_v42 = vpop.f32.mrb[28].mxu1 }
 0x14f   : > { %v4615_v38 = vpop.f32.mrb[29].mxu1 }
 0x150   : > { %v4616_v12 = vadd.f32 %v4615_v38, %v4614_v42  ;;  %v4617_v28 = vpop.f32.mrb[30].mxu1 }
 0x151   : > { %v4618_v41 = vpop.f32.mrb[31].mxu1  ;;  %v3866_v33 = vpop.f32.mrb[36].mxu0 }
 0x152   : > { %v4619_v56 = vadd.f32 %v4618_v41, %v4617_v28  ;;  %v3698_v37 = vadd.f32 %v4616_v12, %v3697_v52  ;;  %v4724_v20 = vpop.f32.mrb[37].mxu0 }
 0x153   : > { %v3869_v40 = vpop.f32.mrb[38].mxu0 }
 0x154   : > { %v3713_v57 = vmax.f32 %v3536_v19, %v3698_v37  ;;  %v3701_v29 = vadd.f32 %v4619_v56, %v3700_v49  ;;  %v4725_v14 = vpop.f32.mrb[39].mxu0 }
 0x156   : > { %v3714_v16 = vmax.f32 %v3537_v48, %v3701_v29  ;;  %v4620_v36 = vpop.f32.mrb[32].mxu1 }
 0x157   : > { %v4621_v34 = vpop.f32.mrb[33].mxu1 }
 0x158   : > { %v4622_v31 = vadd.f32 %v4621_v34, %v4620_v36  ;;  %v4623_v46 = vpop.f32.mrb[34].mxu1 }
 0x159   : > { %v4624_v59 = vpop.f32.mrb[35].mxu1  ;;  %v3874_v6 = vpop.f32.mrb[40].mxu0 }
 0x15a   : > { %v3706_v22 = vadd.f32 %v4622_v31, %v3705_v23  ;;  %v4728_v7 = vpop.f32.mrb[41].mxu0 }
 0x15b   : > { %v3877_v8 = vpop.f32.mrb[42].mxu0 }
 0x15c   : > { %v3715_v10 = vmax.f32 %v3538_v5, %v3706_v22  ;;  %v4729_v11 = vpop.f32.mrb[43].mxu0 }
 0x161   : > { %v3882_v13 = vpop.f32.mrb[44].mxu0 }
 0x162   : > { %v4732_v15 = vpop.f32.mrb[45].mxu0 }
 0x163   : > { %v3885_v4 = vpop.f32.mrb[46].mxu0 }
 0x164   : > { %v4733_v17 = vpop.f32.mrb[47].mxu0 }
 0x166   : > { %v4647_v18 = vpop.f32.mrb[36].mxu1 }
 0x167   : > { %v4648_v19 = vpop.f32.mrb[37].mxu1 }
 0x168   : > { %v4649_v24 = vadd.f32 %v4648_v19, %v4647_v18  ;;  %v4650_v43 = vpop.f32.mrb[38].mxu1 }
 0x169   : > { %v4651_v48 = vpop.f32.mrb[39].mxu1 }
 0x16a   : > { %v3867_v45 = vadd.f32 %v4649_v24, %v3866_v33  ;;  %v4652_v54 = vadd.f32 %v4651_v48, %v4650_v43 }
 0x16c   : > { %v3888_v50 = vmax.f32 %v3711_v61, %v3867_v45  ;;  %v3870_v27 = vadd.f32 %v4652_v54, %v3869_v40 }
 0x16e   : > { %v3900_v26 = vadd.f32 %v4370_v58, %v3888_v50  ;;  %v3889_v44 = vmax.f32 %v3712_v47, %v3870_v27  ;;  %v4653_v63 = vpop.f32.mrb[40].mxu1 }
 0x16f   : > { %v4654_v0 = vpop.f32.mrb[41].mxu1 }
 0x170   : > { %v3905_v5 = vmax.f32 %v3900_v26, 0.0  ;;  %v3901_v51 = vadd.f32 %v4370_v58, %v3889_v44  ;;  %v4655_v52 = vadd.f32 %v4654_v0, %v4653_v63  ;;  %v4656_v2 = vpop.f32.mrb[42].mxu1 }
 0x171   : > { %v4657_v49 = vpop.f32.mrb[43].mxu1 }
 0x172   : > { %v4388_v39 = vpack.c.bf16 %v3905_v5, %v3905_v5  ;;  %v3906_v62 = vmax.f32 %v3901_v51, 0.0  ;;  %v3875_v32 = vadd.f32 %v4655_v52, %v3874_v6  ;;  %v4658_v25 = vadd.f32 %v4657_v49, %v4656_v2 }
 0x174   : > { %3932 = vst.msk [vmem:[%s5726_s26] sm:$0xf] %vm3931_vm6, %v4388_v39  ;;  %v4389_v55 = vpack.c.bf16 %v3906_v62, %v3906_v62  ;;  %v3890_v21 = vmax.f32 %v3713_v57, %v3875_v32  ;;  %v3878_v23 = vadd.f32 %v4658_v25, %v3877_v8 }
 0x176   : > { %3933 = vst.msk [vmem:[%s5726_s26 + $0x4] sm:$0xf] %vm3931_vm6, %v4389_v55  ;;  %v3902_v9 = vadd.f32 %v4370_v58, %v3890_v21  ;;  %v3891_v30 = vmax.f32 %v3714_v16, %v3878_v23  ;;  %v4659_v3 = vpop.f32.mrb[44].mxu1 }
 0x177   : > { %v4660_v60 = vpop.f32.mrb[45].mxu1 }
 0x178   : > { %v3907_v61 = vmax.f32 %v3902_v9, 0.0  ;;  %v3903_v35 = vadd.f32 %v4370_v58, %v3891_v30  ;;  %v4661_v53 = vadd.f32 %v4660_v60, %v4659_v3  ;;  %v4662_v47 = vpop.f32.mrb[46].mxu1 }
 0x179   : > { %v4663_v42 = vpop.f32.mrb[47].mxu1 }
 0x17a   : > { %v4390_v38 = vpack.c.bf16 %v3907_v61, %v3907_v61  ;;  %v3908_v12 = vmax.f32 %v3903_v35, 0.0  ;;  %v3883_v28 = vadd.f32 %v4661_v53, %v3882_v13 }
 0x17c   : > { %3934 = vst.msk [vmem:[%s5726_s26 + $0x8] sm:$0xf] %vm3931_vm6, %v4390_v38  ;;  %v4391_v41 = vpack.c.bf16 %v3908_v12, %v3908_v12  ;;  %v3892_v33 = vmax.f32 %v3715_v10, %v3883_v28 }
 0x17e   : > { %3935 = vst.msk [vmem:[%s5726_s26 + $0xc] sm:$0xf] %vm3931_vm6, %v4391_v41  ;;  %v3904_v56 = vadd.f32 %v4370_v58, %v3892_v33  ;;  %3943 = sbr.rel (!%p5035_p4) target bundleno = 453 (0x1c5), region = 48 }
 0x180   : > { %v3909_v37 = vmax.f32 %v3904_v56, 0.0 }
 0x182   : > { %v4392_v20 = vpack.c.bf16 %v3909_v37, %v3909_v37 }
 0x184   : > { %3936 = vst.msk [vmem:[%s5726_s26 + $0x10] sm:$0xf] %vm3931_vm6, %v4392_v20 }
 0x185   : > { %s5820_s20 = smov (!%p3946_p9, %s3945_s20), 5 }
 0x186   : > { %s4376_s30 = sshll.u32 %s5820_s20, 6 }
 0x187   : > { %p4379_p10 = scmp.eq.s32.totalorder %s4376_s30, 0 }
 0x188   : > { %4871 = sdivrem.u32 (!%p4379_p10), %s5820_s20, 5 }
 0x189   : > { %3954 = sbr.rel (%p4379_p10) target bundleno = 453 (0x1c5), region = 52 }
 0x191   : > { %s5751_s10 = spop.drf %4871 }
 0x192   : > { %p4380_p11 = scmp.le.s32.totalorder %s5751_s10, 0 }
 0x193   : > { %s5813_s3 = smov (!%p4380_p11), %s5745_s28  ;;  %s5814_s17 = smov (!%p4380_p11), %s5726_s26 }
 0x194   : > { %4170 = sbr.rel (%p4380_p11) target bundleno = 424 (0x1a8), region = 377  ;;  %s5760_s8 = smov (!%p4380_p11), 0  }
 0x195   : > { %s5762_s18 = smov (!%p4380_p11), 0  }
 0x19b LB: >> { %v3971_v40 = vld [vmem:[%s4937_s17] sm:$0xf]  ;;  %v3973_v57 = vld [vmem:[%s4937_s17 + $0x4] sm:$0xf]  ;;  %v3975_v29 = vld [vmem:[%s4937_s17 + $0x8] sm:$0xf]  ;;  %s4945_s18 = sphi %s5762_s18, %s3965_s18   ;;  %s4941_s8 = sphi %s5760_s8, %s5815_s8   ;;  %s4937_s17 = sphi %s5814_s17, %s3986_s17   ;;  %s4933_s3 = sphi %s5813_s3, %s3987_s3  }
 0x19c   : >> { %3972 = vst [vmem:[%s4933_s3] sm:$0xf] %v3971_v40  ;;  %3974 = vst [vmem:[%s4933_s3 + $0x4] sm:$0xf] %v3973_v57  ;;  %v3977_v14 = vld [vmem:[%s4937_s17 + $0xc] sm:$0xf]  ;;  %s3981_s12 = sadd.s32 1, %s4941_s8 }
 0x19d   : >> { %3976 = vst [vmem:[%s4933_s3 + $0x8] sm:$0xf] %v3975_v29  ;;  %v3979_v16 = vld [vmem:[%s4937_s17 + $0x10] sm:$0xf]  ;;  %3978 = vst [vmem:[%s4933_s3 + $0xc] sm:$0xf] %v3977_v14  ;;  %p3982_p12 = scmp.ge.s32.totalorder %s3981_s12, %s5751_s10 }
 0x19e   : >> { %3980 = vst [vmem:[%s4933_s3 + $0x10] sm:$0xf] %v3979_v16  ;;  %s3965_s18 = sadd.s32 1, %s4945_s18  }
 0x19f   : >> { %s5822_s12 = smov (%p3982_p12, %s3981_s12), 0  ;;  %p3964_p13 = scmp.ge.s32.totalorder %s3965_s18, %s5751_s10 }
 0x1a0   : >> { %s3984_s11 = smul.u32 20, %s5822_s12  ;;  %s5815_s8 = smov %s5822_s12 }
 0x1a1   : > { %3967 = sbr.rel (!%p3964_p13) target bundleno = 411 (0x19b), region = 383 }
 0x1a2   : >> { %s3986_s17 = scalar_lea.vmem %s5726_s26, %s3984_s11 [#allocation22]   ;;  %s3987_s3 = scalar_lea.vmem %s5745_s28, %s3984_s11  }
 0x1a8 PF: > { %4873 = sdivrem.u32 %s5820_s20, 5 }
 0x1a9   : > { %s4381_s23 = smul.u32 20, %s5751_s10 }
 0x1ab   : > { %s3992_s22 = scalar_lea.vmem %s5726_s26, %s4381_s23 [#allocation22]   ;;  %s3994_s13 = scalar_lea.vmem %s5745_s28, %s4381_s23  }
 0x1b1   : > { %s4874_s14 = spop.drf %4873 }
 0x1b2   : > { %p4383_p0 = scmp.le.s32.totalorder %s4874_s14, 0 }
 0x1b3   : > { %s4947_s15 = smov (!%p4383_p0), %s3994_s13   ;;  %s4951_s16 = smov (!%p4383_p0), %s3992_s22  }
 0x1b4   : > { %4184 = sbr.rel (%p4383_p0) target bundleno = 453 (0x1c5), region = 388  ;;  %s4955_s19 = smov (!%p4383_p0), 0  }
 0x1b5   : > { %s4959_s21 = smov (!%p4383_p0), 0  }
 0x1bb LB: >> { %v4004_v36 = vld [vmem:[%s4953_s16] sm:$0xf]  ;;  %s4006_s24 = sadd.s32 1, %s4957_s19  ;;  %s3998_s21 = sadd.s32 1, %s4961_s21   ;;  %s4961_s21 = sphi %s4959_s21, %s3998_s21   ;;  %s4957_s19 = sphi %s4955_s19, %s4956_s19   ;;  %s4953_s16 = sphi %s4951_s16, %s4011_s16   ;;  %s4949_s15 = sphi %s4947_s15, %s4012_s15  }
 0x1bc   : >> { %4005 = vst [vmem:[%s4949_s15] sm:$0xf] %v4004_v36  ;;  %p4007_p1 = scmp.ge.s32.totalorder %s4006_s24, %s4874_s14  ;;  %p3997_p2 = scmp.ge.s32.totalorder %s3998_s21, %s4874_s14 }
 0x1be   : >> { %s5824_s24 = smov (%p4007_p1, %s4006_s24), 0  ;;  %4000 = sbr.rel (!%p3997_p2) target bundleno = 443 (0x1bb), region = 394 }
 0x1bf   : >> { %s4384_s26 = sshll.u32 %s5824_s24, 2  ;;  %s4956_s19 = smov %s5824_s24  }
 0x1c0   : >> { %s4011_s16 = scalar_lea.vmem %s3992_s22, %s4384_s26 [#allocation22]   ;;  %s4012_s15 = scalar_lea.vmem %s3994_s13, %s4384_s26  }
 0x1c5 PF: > { %p34_p3 = scmp.ge.s32.totalorder %s5025_s29, 4   ;;  %s5816_s26 = smov %s4925_s27 }
 0x1c6   : > { %s5817_s27 = smov %s5033_s9  ;;  %s5818_s28 = smov %s5025_s29 }
 0x1c7   :  { %36 = sbr.rel (!%p34_p3) target bundleno = 5 (0x5), region = 405 }

// kernel: cnn_cifar_dropout_forward.5
= control target key start
LH: loop header
LB: loop body
LE: loop exit
PB: predicated region body
PF: predicated region fallthrough
CT: control target
= control target key end

     0   :  { %v1203_v28 = vlaneseq  ;;  %v8717_v36 = vmov 1966171168   ;;  %s10667_s0 = inlined_call_operand.vmem [shape: bf16[2,9216], index: 0, kind: input, shape index: {}]   ;;  %s10668_s1 = inlined_call_operand.vmem [shape: bf16[9216,64], index: 1, kind: input, shape index: {}]   ;;  %s10669_s2 = inlined_call_operand.vmem [shape: f32[1,64], index: 2, kind: input, shape index: {}]   ;;  %s10670_s3 = inlined_call_operand.vmem [shape: bf16[64,128], index: 3, kind: input, shape index: {}]   ;;  %s10671_s4 = inlined_call_operand.vmem [shape: f32[1,128], index: 4, kind: input, shape index: {}]   ;;  %s10672_s5 = inlined_call_operand.hbm [shape: f32[2,128], index: 5, kind: output, shape index: {}]  }
   0x1   :  { %v8104_v0 = vld [vmem:[%s10668_s1 + $0x40] sm:$0xff]   ;;  %v8108_v4 = vld [vmem:[%s10668_s1 + $0x48] sm:$0xff]   ;;  %v8112_v8 = vld [vmem:[%s10668_s1 + $0x50] sm:$0xff]   ;;  %v1201_v37 = vunpack.c.l.s4 %v8717_v36 }
   0x2   :  { %v8105_v1 = vld [vmem:[%s10668_s1 + $0xc0] sm:$0xff]   ;;  %7291 = vmatprep.subr.bf16.mxu0 %v8104_v0  ;;  %v8109_v5 = vld [vmem:[%s10668_s1 + $0xc8] sm:$0xff]   ;;  %v8113_v9 = vld [vmem:[%s10668_s1 + $0xd0] sm:$0xff]   ;;  %v1204_v33 = vshrl.u32 %v1203_v28, 7 }
   0x3   :  { %v8106_v2 = vld [vmem:[%s10668_s1] sm:$0xff]   ;;  %7313 = vmatprep.subr.bf16.mxu1 %v8105_v1  ;;  %v8110_v6 = vld [vmem:[%s10668_s1 + $0x8] sm:$0xff]   ;;  %v8114_v10 = vld [vmem:[%s10668_s1 + $0x10] sm:$0xff]   ;;  %v1202_v40 = vunpack.c.0.s8 %v1201_v37 }
   0x4   :  { %v8107_v3 = vld [vmem:[%s10668_s1 + $0x80] sm:$0xff]   ;;  %7292 = vmatpush3.bf16.msra.mxu0 %v8106_v2  ;;  %v8111_v7 = vld [vmem:[%s10668_s1 + $0x88] sm:$0xff]   ;;  %v8115_v11 = vld [vmem:[%s10668_s1 + $0x90] sm:$0xff]  }
   0x5   :  { %7314 = vmatpush3.bf16.msra.mxu1 %v8107_v3  ;;  %7293 = vmatprep.subr.bf16.mxu0 %v8108_v4  ;;  %v8116_v12 = vld [vmem:[%s10668_s1 + $0x58] sm:$0xff]   ;;  %v8120_v16 = vld [vmem:[%s10668_s1 + $0x60] sm:$0xff]   ;;  %v8124_v20 = vld [vmem:[%s10668_s1 + $0x68] sm:$0xff]   ;;  %v8856_v41 = vsub.s32 %v1202_v40, %v1204_v33 }
   0x6   :  { %7315 = vmatprep.subr.bf16.mxu1 %v8109_v5  ;;  %v8117_v13 = vld [vmem:[%s10668_s1 + $0xd8] sm:$0xff]   ;;  %v8121_v17 = vld [vmem:[%s10668_s1 + $0xe0] sm:$0xff]   ;;  %v8125_v21 = vld [vmem:[%s10668_s1 + $0xe8] sm:$0xff]  }
   0x7   :  { %v8118_v14 = vld [vmem:[%s10668_s1 + $0x18] sm:$0xff]   ;;  %v8122_v18 = vld [vmem:[%s10668_s1 + $0x20] sm:$0xff]   ;;  %v8126_v22 = vld [vmem:[%s10668_s1 + $0x28] sm:$0xff]  }
   0x8   :  { %7294 = vmatpush3.bf16.msra.mxu0 %v8110_v6  ;;  %v8119_v15 = vld [vmem:[%s10668_s1 + $0x98] sm:$0xff]   ;;  %v8123_v19 = vld [vmem:[%s10668_s1 + $0xa0] sm:$0xff]   ;;  %v8127_v23 = vld [vmem:[%s10668_s1 + $0xa8] sm:$0xff]  }
   0x9   :  { %7316 = vmatpush3.bf16.msra.mxu1 %v8111_v7  ;;  %7295 = vmatprep.subr.bf16.mxu0 %v8112_v8  ;;  %v8128_v24 = vld [vmem:[%s10668_s1 + $0x70] sm:$0xff]   ;;  %v8132_v29 = vld [vmem:[%s10668_s1 + $0x78] sm:$0xff]   ;;  %v22_v34 = vld [vmem:[%s10667_s0] sm:$0xff] }
   0xa   :  { %7317 = vmatprep.subr.bf16.mxu1 %v8113_v9  ;;  %v8129_v25 = vld [vmem:[%s10668_s1 + $0xf0] sm:$0xff]   ;;  %v8133_v30 = vld [vmem:[%s10668_s1 + $0xf8] sm:$0xff]   ;;  %v8137_v35 = vld [vmem:[%s10668_s1 + $0x140] sm:$0xff]   ;;  %v1199_v39 = vcombine.high %v22_v34, %v22_v34  ;;  %v1206_v42 = vrot.slane %v22_v34, %v8856_v41 }
   0xb   :  { %v8130_v26 = vld [vmem:[%s10668_s1 + $0x30] sm:$0xff]   ;;  %v8134_v31 = vld [vmem:[%s10668_s1 + $0x38] sm:$0xff]   ;;  %v8138_v38 = vld [vmem:[%s10668_s1 + $0x1c0] sm:$0xff]  }
   0xc   :  { %7296 = vmatpush3.bf16.msra.mxu0 %v8114_v10  ;;  %v8131_v27 = vld [vmem:[%s10668_s1 + $0xb0] sm:$0xff]   ;;  %v8135_v32 = vld [vmem:[%s10668_s1 + $0xb8] sm:$0xff]   ;;  %v8860_v43 = vrot.slane %v1199_v39, %v8856_v41  ;;  %v1214_v44 = vcombine.high %v1206_v42, %v1206_v42  ;;  %v1222_v45 = vrot.slane %v1206_v42, %v8856_v41  ;;  %v8139_v47 = vld [vmem:[%s10668_s1 + $0x100] sm:$0xff]  }
   0xd   :  { %7318 = vmatpush3.bf16.msra.mxu1 %v8115_v11  ;;  %7297 = vmatprep.subr.bf16.mxu0 %v8116_v12  ;;  %v8140_v49 = vld [vmem:[%s10668_s1 + $0x180] sm:$0xff]   ;;  %v8141_v52 = vld [vmem:[%s10668_s1 + $0x148] sm:$0xff]   ;;  %v8145_v58 = vld [vmem:[%s10668_s1 + $0x150] sm:$0xff]  }
   0xe   :  { %7319 = vmatprep.subr.bf16.mxu1 %v8117_v13  ;;  %v1215_v46 = vcombine.high %v8860_v43, %v8860_v43  ;;  %v1236_v48 = vrot.slane %v1214_v44, %v8856_v41  ;;  %v1244_v51 = vcombine.high %v1222_v45, %v1222_v45  ;;  %v8142_v54 = vld [vmem:[%s10668_s1 + $0x1c8] sm:$0xff]   ;;  %v8146_v59 = vld [vmem:[%s10668_s1 + $0x1d0] sm:$0xff]   ;;  %v8149_v62 = vld [vmem:[%s10668_s1 + $0x158] sm:$0xff]  }
   0xf   :  { %v8143_v55 = vld [vmem:[%s10668_s1 + $0x108] sm:$0xff]   ;;  %v8147_v60 = vld [vmem:[%s10668_s1 + $0x110] sm:$0xff]   ;;  %v8150_v63 = vld [vmem:[%s10668_s1 + $0x1d8] sm:$0xff]  }
  0x10   :  { %7298 = vmatpush3.bf16.msra.mxu0 %v8118_v14  ;;  %v1243_v50 = vrot.slane %v1215_v46, %v8856_v41  ;;  %5200 = vmatprep.mubr.bf16.mxu0 %v1236_v48  ;;  %v1246_v53 = vcombine.high %v1236_v48, %v1236_v48  ;;  %v8144_v57 = vld [vmem:[%s10668_s1 + $0x188] sm:$0xff]   ;;  %v8148_v61 = vld [vmem:[%s10668_s1 + $0x190] sm:$0xff]   ;;  %v8151_v0 = vld [vmem:[%s10668_s1 + $0x118] sm:$0xff]  }
  0x11   :  { %7320 = vmatpush3.bf16.msra.mxu1 %v8119_v15  ;;  %7299 = vmatprep.subr.bf16.mxu0 %v8120_v16  ;;  %v8152_v1 = vld [vmem:[%s10668_s1 + $0x198] sm:$0xff]   ;;  %v8153_v2 = vld [vmem:[%s10668_s1 + $0x160] sm:$0xff]   ;;  %v8157_v6 = vld [vmem:[%s10668_s1 + $0x168] sm:$0xff]  }
  0x12   :  { %7321 = vmatprep.subr.bf16.mxu1 %v8121_v17  ;;  %v1247_v56 = vcombine.high %v1243_v50, %v1243_v50  ;;  %5240 = vmatprep.mubr.bf16.mxu1 %v1246_v53  ;;  %v8154_v3 = vld [vmem:[%s10668_s1 + $0x1e0] sm:$0xff]   ;;  %v8158_v7 = vld [vmem:[%s10668_s1 + $0x1e8] sm:$0xff]   ;;  %v8161_v10 = vld [vmem:[%s10668_s1 + $0x170] sm:$0xff]  }
  0x13   :  { %v8155_v4 = vld [vmem:[%s10668_s1 + $0x120] sm:$0xff]   ;;  %v8159_v8 = vld [vmem:[%s10668_s1 + $0x128] sm:$0xff]   ;;  %v8162_v11 = vld [vmem:[%s10668_s1 + $0x1f0] sm:$0xff]  }
  0x14   :  { %7300 = vmatpush3.bf16.msra.mxu0 %v8122_v18  ;;  %v8156_v5 = vld [vmem:[%s10668_s1 + $0x1a0] sm:$0xff]   ;;  %v8160_v9 = vld [vmem:[%s10668_s1 + $0x1a8] sm:$0xff]   ;;  %v8163_v12 = vld [vmem:[%s10668_s1 + $0x130] sm:$0xff]   ;;  %v1229_v18 = vrot.slane %v8860_v43, %v8856_v41 }
  0x15   :  { %7322 = vmatpush3.bf16.msra.mxu1 %v8123_v19  ;;  %7301 = vmatprep.subr.bf16.mxu0 %v8124_v20  ;;  %v8164_v13 = vld [vmem:[%s10668_s1 + $0x1b0] sm:$0xff]   ;;  %v8165_v14 = vld [vmem:[%s10668_s1 + $0x178] sm:$0xff]   ;;  %v8169_v19 = vld [vmem:[%s10668_s1 + $0x240] sm:$0xff]  }
  0x16   :  { %7323 = vmatprep.subr.bf16.mxu1 %v8125_v21  ;;  %v8166_v15 = vld [vmem:[%s10668_s1 + $0x1f8] sm:$0xff]   ;;  %v8170_v20 = vld [vmem:[%s10668_s1 + $0x2c0] sm:$0xff]   ;;  %v8177_v28 = vld [vmem:[%s10668_s1 + $0x250] sm:$0xff]  }
  0x17   :  { %v8167_v16 = vld [vmem:[%s10668_s1 + $0x138] sm:$0xff]   ;;  %v8171_v21 = vld [vmem:[%s10668_s1 + $0x200] sm:$0xff]   ;;  %v8189_v40 = vld [vmem:[%s10668_s1 + $0x268] sm:$0xff]  }
  0x18   :  { %7302 = vmatpush3.bf16.msra.mxu0 %v8126_v22  ;;  %v8168_v17 = vld [vmem:[%s10668_s1 + $0x1b8] sm:$0xff]   ;;  %v8172_v22 = vld [vmem:[%s10668_s1 + $0x280] sm:$0xff]   ;;  %v8190_v42 = vld [vmem:[%s10668_s1 + $0x2e8] sm:$0xff]  }
  0x19   :  { %7324 = vmatpush3.bf16.msra.mxu1 %v8127_v23  ;;  %7303 = vmatprep.subr.bf16.mxu0 %v8128_v24  ;;  %v1245_v23 = vcombine.high %v1229_v18, %v1229_v18  ;;  %v8173_v24 = vld [vmem:[%s10668_s1 + $0x248] sm:$0xff]   ;;  %v8182_v33 = vld [vmem:[%s10668_s1 + $0x2d8] sm:$0xff]   ;;  %v8185_v36 = vld [vmem:[%s10668_s1 + $0x260] sm:$0xff]  }
  0x1a   :  { %7325 = vmatprep.subr.bf16.mxu1 %v8129_v25  ;;  %v8174_v25 = vld [vmem:[%s10668_s1 + $0x2c8] sm:$0xff]   ;;  %v8183_v34 = vld [vmem:[%s10668_s1 + $0x218] sm:$0xff]   ;;  %v8186_v37 = vld [vmem:[%s10668_s1 + $0x2e0] sm:$0xff]  }
  0x1b   :  { %v8188_v39 = vld [vmem:[%s10668_s1 + $0x2a0] sm:$0xff]   ;;  %v8191_v43 = vld [vmem:[%s10668_s1 + $0x228] sm:$0xff]  }
  0x1c   :  { %7304 = vmatpush3.bf16.msra.mxu0 %v8130_v26  ;;  %v8175_v26 = vld [vmem:[%s10668_s1 + $0x208] sm:$0xff]  }
  0x1d   :  { %7326 = vmatpush3.bf16.msra.mxu1 %v8131_v27  ;;  %7305 = vmatprep.subr.bf16.mxu0 %v8132_v29  ;;  %v8176_v27 = vld [vmem:[%s10668_s1 + $0x288] sm:$0xff]   ;;  %v8178_v29 = vld [vmem:[%s10668_s1 + $0x2d0] sm:$0xff]  }
  0x1e   :  { %7327 = vmatprep.subr.bf16.mxu1 %v8133_v30  ;;  %v8179_v30 = vld [vmem:[%s10668_s1 + $0x210] sm:$0xff]   ;;  %v8192_v44 = vld [vmem:[%s10668_s1 + $0x2a8] sm:$0xff]  }
  0x1f   :  { %v23_v46 = vld [vmem:[%s10667_s0 + $0x8] sm:$0xff] }
  0x20   :  { %7306 = vmatpush3.bf16.msra.mxu0 %v8134_v31  ;;  %v8180_v31 = vld [vmem:[%s10668_s1 + $0x290] sm:$0xff]   ;;  %v1255_v48 = vrot.slane %v23_v46, %v8856_v41 }
  0x21   :  { %7328 = vmatpush3.bf16.msra.mxu1 %v8135_v32  ;;  %7335 = vmatprep.subr.bf16.mxu0 %v8137_v35  ;;  %v8181_v32 = vld [vmem:[%s10668_s1 + $0x258] sm:$0xff]  }
  0x22   :  { %7357 = vmatprep.subr.bf16.mxu1 %v8138_v38  ;;  %v8184_v35 = vld [vmem:[%s10668_s1 + $0x298] sm:$0xff]   ;;  %v8187_v38 = vld [vmem:[%s10668_s1 + $0x220] sm:$0xff]  }
  0x23   :  { %5201 = vmatmul.mubr.bf16.vlgmr.msra.gmra.mrb[0].mxu0 %v1222_v45  ;;  %v8193_v45 = vld [vmem:[%s10668_s1 + $0x270] sm:$0xff]  }
  0x24   :  { %7336 = vmatpush3.bf16.msra.mxu0 %v8139_v47  ;;  %5241 = vmatmul.mubr.bf16.vlgmr.msra.gmra.mrb[0].mxu1 %v1244_v51  ;;  %v8194_v47 = vld [vmem:[%s10668_s1 + $0x2f0] sm:$0xff]  }
  0x25   :  { %7337 = vmatprep.subr.bf16.mxu0 %v8141_v52  ;;  %7358 = vmatpush3.bf16.msra.mxu1 %v8140_v49  ;;  %v1248_v49 = vcombine.high %v23_v46, %v23_v46  ;;  %v8196_v51 = vld [vmem:[%s10668_s1 + $0x2b0] sm:$0xff]   ;;  %v1263_v52 = vcombine.high %v1255_v48, %v1255_v48 }
  0x26   :  { %5280 = vmatprep.mubr.bf16.mxu0 %v1243_v50  ;;  %7359 = vmatprep.subr.bf16.mxu1 %v8142_v54  ;;  %v8195_v50 = vld [vmem:[%s10668_s1 + $0x230] sm:$0xff]   ;;  %v8197_v54 = vld [vmem:[%s10668_s1 + $0x278] sm:$0xff]  }
  0x27   :  { %5320 = vmatprep.mubr.bf16.mxu1 %v1247_v56  ;;  %v9048_v53 = vrot.slane %v1248_v49, %v8856_v41  ;;  %v1285_v56 = vrot.slane %v1263_v52, %v8856_v41  ;;  %v8244_v46 = vld [vmem:[%s10668_s1 + $0x410] sm:$0xff]   ;;  %v8247_v49 = vld [vmem:[%s10668_s1 + $0x4d8] sm:$0xff]   ;;  %v8250_v52 = vld [vmem:[%s10668_s1 + $0x460] sm:$0xff]  }
  0x28   :  { %7338 = vmatpush3.bf16.msra.mxu0 %v8143_v55  ;;  %v8198_v55 = vld [vmem:[%s10668_s1 + $0x2f8] sm:$0xff]  }
  0x29   :  { %7339 = vmatprep.subr.bf16.mxu0 %v8145_v58  ;;  %7360 = vmatpush3.bf16.msra.mxu1 %v8144_v57  ;;  %v1264_v57 = vcombine.high %v9048_v53, %v9048_v53  ;;  %v8199_v58 = vld [vmem:[%s10668_s1 + $0x238] sm:$0xff]  }
  0x2a   :  { %7361 = vmatprep.subr.bf16.mxu1 %v8146_v59  ;;  %v8200_v59 = vld [vmem:[%s10668_s1 + $0x2b8] sm:$0xff]  }
  0x2c   :  { %7340 = vmatpush3.bf16.msra.mxu0 %v8147_v60  ;;  %v1295_v60 = vcombine.high %v1285_v56, %v1285_v56 }
  0x2d   :  { %7341 = vmatprep.subr.bf16.mxu0 %v8149_v62  ;;  %7362 = vmatpush3.bf16.msra.mxu1 %v8148_v61  ;;  %v1271_v61 = vrot.slane %v1255_v48, %v8856_v41  ;;  %v8201_v62 = vld [vmem:[%s10668_s1 + $0x340] sm:$0xff]   ;;  %v8246_v48 = vld [vmem:[%s10668_s1 + $0x458] sm:$0xff]  }
  0x2e   :  { %7363 = vmatprep.subr.bf16.mxu1 %v8150_v63  ;;  %v8202_v63 = vld [vmem:[%s10668_s1 + $0x3c0] sm:$0xff]  }
  0x30   :  { %7342 = vmatpush3.bf16.msra.mxu0 %v8151_v0  ;;  %v1292_v0 = vrot.slane %v1264_v57, %v8856_v41  ;;  %v8255_v57 = vld [vmem:[%s10668_s1 + $0x4e8] sm:$0xff]  }
  0x31   :  { %7343 = vmatprep.subr.bf16.mxu0 %v8153_v2  ;;  %7364 = vmatpush3.bf16.msra.mxu1 %v8152_v1  ;;  %v8203_v1 = vld [vmem:[%s10668_s1 + $0x300] sm:$0xff]  }
  0x32   :  { %7365 = vmatprep.subr.bf16.mxu1 %v8154_v3  ;;  %v8204_v2 = vld [vmem:[%s10668_s1 + $0x380] sm:$0xff]   ;;  %v1293_v3 = vcombine.high %v1271_v61, %v1271_v61 }
  0x34   :  { %7344 = vmatpush3.bf16.msra.mxu0 %v8155_v4  ;;  %v8205_v4 = vld [vmem:[%s10668_s1 + $0x348] sm:$0xff]  }
  0x35   :  { %7345 = vmatprep.subr.bf16.mxu0 %v8157_v6  ;;  %7366 = vmatpush3.bf16.msra.mxu1 %v8156_v5  ;;  %v8206_v5 = vld [vmem:[%s10668_s1 + $0x3c8] sm:$0xff]   ;;  %v1296_v6 = vcombine.high %v1292_v0, %v1292_v0 }
  0x36   :  { %7367 = vmatprep.subr.bf16.mxu1 %v8158_v7  ;;  %v8207_v7 = vld [vmem:[%s10668_s1 + $0x308] sm:$0xff]  }
  0x38   :  { %7346 = vmatpush3.bf16.msra.mxu0 %v8159_v8  ;;  %v8208_v8 = vld [vmem:[%s10668_s1 + $0x388] sm:$0xff]  }
  0x39   :  { %7347 = vmatprep.subr.bf16.mxu0 %v8161_v10  ;;  %7368 = vmatpush3.bf16.msra.mxu1 %v8160_v9  ;;  %v8209_v9 = vld [vmem:[%s10668_s1 + $0x350] sm:$0xff]  }
  0x3a   :  { %7369 = vmatprep.subr.bf16.mxu1 %v8162_v11  ;;  %v8210_v10 = vld [vmem:[%s10668_s1 + $0x3d0] sm:$0xff]  }
  0x3b   :  { %v8211_v11 = vld [vmem:[%s10668_s1 + $0x310] sm:$0xff]  }
  0x3c   :  { %7348 = vmatpush3.bf16.msra.mxu0 %v8163_v12  ;;  %v8212_v12 = vld [vmem:[%s10668_s1 + $0x390] sm:$0xff]  }
  0x3d   :  { %7349 = vmatprep.subr.bf16.mxu0 %v8165_v14  ;;  %7370 = vmatpush3.bf16.msra.mxu1 %v8164_v13  ;;  %v8213_v13 = vld [vmem:[%s10668_s1 + $0x358] sm:$0xff]  }
  0x3e   :  { %7371 = vmatprep.subr.bf16.mxu1 %v8166_v15  ;;  %v8214_v14 = vld [vmem:[%s10668_s1 + $0x3d8] sm:$0xff]  }
  0x3f   :  { %v8215_v15 = vld [vmem:[%s10668_s1 + $0x318] sm:$0xff]  }
  0x40   :  { %7350 = vmatpush3.bf16.msra.mxu0 %v8167_v16  ;;  %v8216_v16 = vld [vmem:[%s10668_s1 + $0x398] sm:$0xff]  }
  0x41   :  { %7379 = vmatprep.subr.bf16.mxu0 %v8169_v19  ;;  %7372 = vmatpush3.bf16.msra.mxu1 %v8168_v17  ;;  %v8217_v17 = vld [vmem:[%s10668_s1 + $0x360] sm:$0xff]  }
  0x42   :  { %7401 = vmatprep.subr.bf16.mxu1 %v8170_v20  ;;  %v8219_v19 = vld [vmem:[%s10668_s1 + $0x320] sm:$0xff]  }
  0x43   :  { %5281 = vmatmul.mubr.bf16.vlgmr.msra.gmra.mrb[4].mxu0 %v1229_v18  ;;  %v8218_v18 = vld [vmem:[%s10668_s1 + $0x3e0] sm:$0xff]  }
  0x44   :  { %7380 = vmatpush3.bf16.msra.mxu0 %v8171_v21  ;;  %5321 = vmatmul.mubr.bf16.vlgmr.msra.gmra.mrb[4].mxu1 %v1245_v23  ;;  %v8220_v20 = vld [vmem:[%s10668_s1 + $0x3a0] sm:$0xff]   ;;  %v8221_v21 = vld [vmem:[%s10668_s1 + $0x368] sm:$0xff]  }
  0x45   :  { %7381 = vmatprep.subr.bf16.mxu0 %v8173_v24  ;;  %7402 = vmatpush3.bf16.msra.mxu1 %v8172_v22  ;;  %v8222_v22 = vld [vmem:[%s10668_s1 + $0x3e8] sm:$0xff]  }
  0x46   :  { %7403 = vmatprep.subr.bf16.mxu1 %v8174_v25  ;;  %5360 = vmatprep.mubr.bf16.mxu0 %v1285_v56  ;;  %v8223_v23 = vld [vmem:[%s10668_s1 + $0x328] sm:$0xff]   ;;  %v8225_v25 = vld [vmem:[%s10668_s1 + $0x370] sm:$0xff]  }
  0x47   :  { %5400 = vmatprep.mubr.bf16.mxu1 %v1295_v60  ;;  %v8224_v24 = vld [vmem:[%s10668_s1 + $0x3a8] sm:$0xff]   ;;  %v8258_v60 = vld [vmem:[%s10668_s1 + $0x470] sm:$0xff]  }
  0x48   :  { %7382 = vmatpush3.bf16.msra.mxu0 %v8175_v26  ;;  %v8226_v26 = vld [vmem:[%s10668_s1 + $0x3f0] sm:$0xff]   ;;  %v8254_v56 = vld [vmem:[%s10668_s1 + $0x468] sm:$0xff]  }
  0x49   :  { %7383 = vmatprep.subr.bf16.mxu0 %v8177_v28  ;;  %7404 = vmatpush3.bf16.msra.mxu1 %v8176_v27  ;;  %v8227_v27 = vld [vmem:[%s10668_s1 + $0x330] sm:$0xff]  }
  0x4a   :  { %7405 = vmatprep.subr.bf16.mxu1 %v8178_v29  ;;  %v8228_v28 = vld [vmem:[%s10668_s1 + $0x3b0] sm:$0xff]   ;;  %v8229_v29 = vld [vmem:[%s10668_s1 + $0x378] sm:$0xff]  }
  0x4c   :  { %7384 = vmatpush3.bf16.msra.mxu0 %v8179_v30  ;;  %v8230_v30 = vld [vmem:[%s10668_s1 + $0x3f8] sm:$0xff]  }
  0x4d   :  { %7385 = vmatprep.subr.bf16.mxu0 %v8181_v32  ;;  %7406 = vmatpush3.bf16.msra.mxu1 %v8180_v31  ;;  %v8231_v31 = vld [vmem:[%s10668_s1 + $0x338] sm:$0xff]  }
  0x4e   :  { %7407 = vmatprep.subr.bf16.mxu1 %v8182_v33  ;;  %v8232_v32 = vld [vmem:[%s10668_s1 + $0x3b8] sm:$0xff]   ;;  %v1278_v33 = vrot.slane %v9048_v53, %v8856_v41  ;;  %v8251_v53 = vld [vmem:[%s10668_s1 + $0x4e0] sm:$0xff]  }
  0x50   :  { %7386 = vmatpush3.bf16.msra.mxu0 %v8183_v34  ;;  %v8234_v34 = vld [vmem:[%s10668_s1 + $0x440] sm:$0xff]  }
  0x51   :  { %7387 = vmatprep.subr.bf16.mxu0 %v8185_v36  ;;  %7408 = vmatpush3.bf16.msra.mxu1 %v8184_v35  ;;  %v8235_v35 = vld [vmem:[%s10668_s1 + $0x4c0] sm:$0xff]  }
  0x52   :  { %7409 = vmatprep.subr.bf16.mxu1 %v8186_v37  ;;  %v8236_v36 = vld [vmem:[%s10668_s1 + $0x400] sm:$0xff]  }
  0x53   :  { %v8237_v37 = vld [vmem:[%s10668_s1 + $0x480] sm:$0xff]  }
  0x54   :  { %7388 = vmatpush3.bf16.msra.mxu0 %v8187_v38  ;;  %v1294_v38 = vcombine.high %v1278_v33, %v1278_v33 }
  0x55   :  { %7389 = vmatprep.subr.bf16.mxu0 %v8189_v40  ;;  %7410 = vmatpush3.bf16.msra.mxu1 %v8188_v39  ;;  %v8238_v39 = vld [vmem:[%s10668_s1 + $0x448] sm:$0xff]  }
  0x56   :  { %7411 = vmatprep.subr.bf16.mxu1 %v8190_v42  ;;  %v8239_v40 = vld [vmem:[%s10668_s1 + $0x4c8] sm:$0xff]  }
  0x57   :  { %v8240_v42 = vld [vmem:[%s10668_s1 + $0x408] sm:$0xff]  }
  0x58   :  { %7390 = vmatpush3.bf16.msra.mxu0 %v8191_v43  ;;  %v8241_v43 = vld [vmem:[%s10668_s1 + $0x488] sm:$0xff]  }
  0x59   :  { %7391 = vmatprep.subr.bf16.mxu0 %v8193_v45  ;;  %7412 = vmatpush3.bf16.msra.mxu1 %v8192_v44  ;;  %v8242_v44 = vld [vmem:[%s10668_s1 + $0x450] sm:$0xff]  }
  0x5a   :  { %7413 = vmatprep.subr.bf16.mxu1 %v8194_v47  ;;  %v8243_v45 = vld [vmem:[%s10668_s1 + $0x4d0] sm:$0xff]  }
  0x5b   :  { %v8245_v47 = vld [vmem:[%s10668_s1 + $0x490] sm:$0xff]  }
  0x5c   :  { %7392 = vmatpush3.bf16.msra.mxu0 %v8195_v50  ;;  %v8248_v50 = vld [vmem:[%s10668_s1 + $0x418] sm:$0xff]  }
  0x5d   :  { %7393 = vmatprep.subr.bf16.mxu0 %v8197_v54  ;;  %7414 = vmatpush3.bf16.msra.mxu1 %v8196_v51  ;;  %v8249_v51 = vld [vmem:[%s10668_s1 + $0x498] sm:$0xff]   ;;  %v8252_v54 = vld [vmem:[%s10668_s1 + $0x420] sm:$0xff]  }
  0x5e   :  { %7415 = vmatprep.subr.bf16.mxu1 %v8198_v55  ;;  %v8253_v55 = vld [vmem:[%s10668_s1 + $0x4a0] sm:$0xff]  }
  0x60   :  { %7394 = vmatpush3.bf16.msra.mxu0 %v8199_v58  ;;  %v8256_v58 = vld [vmem:[%s10668_s1 + $0x428] sm:$0xff]  }
  0x61   :  { %7423 = vmatprep.subr.bf16.mxu0 %v8201_v62  ;;  %7416 = vmatpush3.bf16.msra.mxu1 %v8200_v59  ;;  %v8257_v59 = vld [vmem:[%s10668_s1 + $0x4a8] sm:$0xff]   ;;  %v8259_v62 = vld [vmem:[%s10668_s1 + $0x4f0] sm:$0xff]  }
  0x62   :  { %7445 = vmatprep.subr.bf16.mxu1 %v8202_v63 }
  0x63   :  { %5361 = vmatmul.mubr.bf16.vlgmr.msra.gmra.mrb[8].mxu0 %v1271_v61  ;;  %v24_v61 = vld [vmem:[%s10667_s0 + $0x10] sm:$0xff] }
  0x64   :  { %7424 = vmatpush3.bf16.msra.mxu0 %v8203_v1  ;;  %5440 = vmatprep.mubr.bf16.mxu0 %v1292_v0  ;;  %v1304_v63 = vrot.slane %v24_v61, %v8856_v41  ;;  %v1297_v0 = vcombine.high %v24_v61, %v24_v61  ;;  %v8260_v1 = vld [vmem:[%s10668_s1 + $0x430] sm:$0xff]  }
  0x65   :  { %5401 = vmatmul.mubr.bf16.vlgmr.msra.gmra.mrb[8].mxu1 %v1293_v3  ;;  %7425 = vmatprep.subr.bf16.mxu0 %v8205_v4  ;;  %v8309_v61 = vld [vmem:[%s10668_s1 + $0x610] sm:$0xff]  }
  0x66   :  { %7446 = vmatpush3.bf16.msra.mxu1 %v8204_v2  ;;  %5480 = vmatprep.mubr.bf16.mxu1 %v1296_v6  ;;  %v8261_v2 = vld [vmem:[%s10668_s1 + $0x4b0] sm:$0xff]   ;;  %v1312_v3 = vcombine.high %v1304_v63, %v1304_v63  ;;  %v9254_v4 = vrot.slane %v1297_v0, %v8856_v41  ;;  %v8263_v6 = vld [vmem:[%s10668_s1 + $0x4f8] sm:$0xff]  }
  0x67   :  { %7447 = vmatprep.subr.bf16.mxu1 %v8206_v5  ;;  %v8262_v5 = vld [vmem:[%s10668_s1 + $0x478] sm:$0xff]  }
  0x68   :  { %7426 = vmatpush3.bf16.msra.mxu0 %v8207_v7  ;;  %v1334_v7 = vrot.slane %v1312_v3, %v8856_v41  ;;  %v8312_v0 = vld [vmem:[%s10668_s1 + $0x6d8] sm:$0xff]   ;;  %v8315_v3 = vld [vmem:[%s10668_s1 + $0x660] sm:$0xff]  }
  0x69   :  { %7427 = vmatprep.subr.bf16.mxu0 %v8209_v9  ;;  %v8264_v9 = vld [vmem:[%s10668_s1 + $0x438] sm:$0xff]  }
  0x6a   :  { %7448 = vmatpush3.bf16.msra.mxu1 %v8208_v8  ;;  %v1313_v8 = vcombine.high %v9254_v4, %v9254_v4 }
  0x6b   :  { %7449 = vmatprep.subr.bf16.mxu1 %v8210_v10  ;;  %v8265_v10 = vld [vmem:[%s10668_s1 + $0x4b8] sm:$0xff]  }
  0x6c   :  { %7428 = vmatpush3.bf16.msra.mxu0 %v8211_v11  ;;  %v1344_v11 = vcombine.high %v1334_v7, %v1334_v7 }
  0x6d   :  { %7429 = vmatprep.subr.bf16.mxu0 %v8213_v13  ;;  %v8266_v13 = vld [vmem:[%s10668_s1 + $0x540] sm:$0xff]  }
  0x6e   :  { %7450 = vmatpush3.bf16.msra.mxu1 %v8212_v12  ;;  %v1320_v12 = vrot.slane %v1304_v63, %v8856_v41  ;;  %v8311_v63 = vld [vmem:[%s10668_s1 + $0x658] sm:$0xff]  }
  0x6f   :  { %7451 = vmatprep.subr.bf16.mxu1 %v8214_v14  ;;  %v8267_v14 = vld [vmem:[%s10668_s1 + $0x5c0] sm:$0xff]  }
  0x70   :  { %7430 = vmatpush3.bf16.msra.mxu0 %v8215_v15  ;;  %v1341_v15 = vrot.slane %v1313_v8, %v8856_v41  ;;  %v8320_v8 = vld [vmem:[%s10668_s1 + $0x6e8] sm:$0xff]  }
  0x71   :  { %7431 = vmatprep.subr.bf16.mxu0 %v8217_v17  ;;  %v8269_v17 = vld [vmem:[%s10668_s1 + $0x580] sm:$0xff]  }
  0x72   :  { %7452 = vmatpush3.bf16.msra.mxu1 %v8216_v16  ;;  %v8268_v16 = vld [vmem:[%s10668_s1 + $0x500] sm:$0xff]  }
  0x73   :  { %7453 = vmatprep.subr.bf16.mxu1 %v8218_v18  ;;  %v1342_v18 = vcombine.high %v1320_v12, %v1320_v12 }
  0x74   :  { %7432 = vmatpush3.bf16.msra.mxu0 %v8219_v19  ;;  %v8270_v19 = vld [vmem:[%s10668_s1 + $0x548] sm:$0xff]  }
  0x75   :  { %7433 = vmatprep.subr.bf16.mxu0 %v8221_v21  ;;  %v1345_v21 = vcombine.high %v1341_v15, %v1341_v15 }
  0x76   :  { %7454 = vmatpush3.bf16.msra.mxu1 %v8220_v20  ;;  %v8271_v20 = vld [vmem:[%s10668_s1 + $0x5c8] sm:$0xff]  }
  0x77   :  { %7455 = vmatprep.subr.bf16.mxu1 %v8222_v22  ;;  %v8272_v22 = vld [vmem:[%s10668_s1 + $0x508] sm:$0xff]  }
  0x78   :  { %7434 = vmatpush3.bf16.msra.mxu0 %v8223_v23  ;;  %v8273_v23 = vld [vmem:[%s10668_s1 + $0x588] sm:$0xff]  }
  0x79   :  { %7435 = vmatprep.subr.bf16.mxu0 %v8225_v25  ;;  %v8275_v25 = vld [vmem:[%s10668_s1 + $0x5d0] sm:$0xff]  }
  0x7a   :  { %7456 = vmatpush3.bf16.msra.mxu1 %v8224_v24  ;;  %v8274_v24 = vld [vmem:[%s10668_s1 + $0x550] sm:$0xff]  }
  0x7b   :  { %7457 = vmatprep.subr.bf16.mxu1 %v8226_v26  ;;  %v8276_v26 = vld [vmem:[%s10668_s1 + $0x510] sm:$0xff]  }
  0x7c   :  { %7436 = vmatpush3.bf16.msra.mxu0 %v8227_v27  ;;  %v8277_v27 = vld [vmem:[%s10668_s1 + $0x590] sm:$0xff]  }
  0x7d   :  { %7437 = vmatprep.subr.bf16.mxu0 %v8229_v29  ;;  %v8279_v29 = vld [vmem:[%s10668_s1 + $0x5d8] sm:$0xff]  }
  0x7e   :  { %7458 = vmatpush3.bf16.msra.mxu1 %v8228_v28  ;;  %v8278_v28 = vld [vmem:[%s10668_s1 + $0x558] sm:$0xff]  }
  0x7f   :  { %7459 = vmatprep.subr.bf16.mxu1 %v8230_v30  ;;  %v8280_v30 = vld [vmem:[%s10668_s1 + $0x518] sm:$0xff]  }
  0x80   :  { %7438 = vmatpush3.bf16.msra.mxu0 %v8231_v31  ;;  %v8281_v31 = vld [vmem:[%s10668_s1 + $0x598] sm:$0xff]  }
  0x81   :  { %7467 = vmatprep.subr.bf16.mxu0 %v8234_v34  ;;  %v8284_v34 = vld [vmem:[%s10668_s1 + $0x520] sm:$0xff]  }
  0x82   :  { %7460 = vmatpush3.bf16.msra.mxu1 %v8232_v32  ;;  %v8282_v32 = vld [vmem:[%s10668_s1 + $0x560] sm:$0xff]  }
  0x83   :  { %5441 = vmatmul.mubr.bf16.vlgmr.msra.gmra.mrb[12].mxu0 %v1278_v33  ;;  %7489 = vmatprep.subr.bf16.mxu1 %v8235_v35  ;;  %v8283_v33 = vld [vmem:[%s10668_s1 + $0x5e0] sm:$0xff]  }
  0x84   :  { %7468 = vmatpush3.bf16.msra.mxu0 %v8236_v36  ;;  %5520 = vmatprep.mubr.bf16.mxu0 %v1334_v7  ;;  %v8285_v35 = vld [vmem:[%s10668_s1 + $0x5a0] sm:$0xff]   ;;  %v8286_v36 = vld [vmem:[%s10668_s1 + $0x568] sm:$0xff]  }
  0x85   :  { %5481 = vmatmul.mubr.bf16.vlgmr.msra.gmra.mrb[12].mxu1 %v1294_v38  ;;  %7469 = vmatprep.subr.bf16.mxu0 %v8238_v39  ;;  %v8288_v38 = vld [vmem:[%s10668_s1 + $0x528] sm:$0xff]  }
  0x86   :  { %7490 = vmatpush3.bf16.msra.mxu1 %v8237_v37  ;;  %5560 = vmatprep.mubr.bf16.mxu1 %v1344_v11  ;;  %v8287_v37 = vld [vmem:[%s10668_s1 + $0x5e8] sm:$0xff]   ;;  %v8323_v11 = vld [vmem:[%s10668_s1 + $0x670] sm:$0xff]  }
  0x87   :  { %7491 = vmatprep.subr.bf16.mxu1 %v8239_v40  ;;  %v8289_v39 = vld [vmem:[%s10668_s1 + $0x5a8] sm:$0xff]   ;;  %v8290_v40 = vld [vmem:[%s10668_s1 + $0x570] sm:$0xff]  }
  0x88   :  { %7470 = vmatpush3.bf16.msra.mxu0 %v8240_v42  ;;  %v8291_v42 = vld [vmem:[%s10668_s1 + $0x5f0] sm:$0xff]   ;;  %v8319_v7 = vld [vmem:[%s10668_s1 + $0x668] sm:$0xff]  }
  0x89   :  { %7471 = vmatprep.subr.bf16.mxu0 %v8242_v44  ;;  %v8293_v44 = vld [vmem:[%s10668_s1 + $0x5b0] sm:$0xff]  }
  0x8a   :  { %7492 = vmatpush3.bf16.msra.mxu1 %v8241_v43  ;;  %v8292_v43 = vld [vmem:[%s10668_s1 + $0x530] sm:$0xff]  }
  0x8b   :  { %7493 = vmatprep.subr.bf16.mxu1 %v8243_v45  ;;  %v8294_v45 = vld [vmem:[%s10668_s1 + $0x578] sm:$0xff]  }
  0x8c   :  { %7472 = vmatpush3.bf16.msra.mxu0 %v8244_v46  ;;  %v8295_v46 = vld [vmem:[%s10668_s1 + $0x5f8] sm:$0xff]  }
  0x8d   :  { %7473 = vmatprep.subr.bf16.mxu0 %v8246_v48  ;;  %v8297_v48 = vld [vmem:[%s10668_s1 + $0x5b8] sm:$0xff]  }
  0x8e   :  { %7494 = vmatpush3.bf16.msra.mxu1 %v8245_v47  ;;  %v8296_v47 = vld [vmem:[%s10668_s1 + $0x538] sm:$0xff]  }
  0x8f   :  { %7495 = vmatprep.subr.bf16.mxu1 %v8247_v49  ;;  %v1327_v49 = vrot.slane %v9254_v4, %v8856_v41  ;;  %v8316_v4 = vld [vmem:[%s10668_s1 + $0x6e0] sm:$0xff]  }
  0x90   :  { %7474 = vmatpush3.bf16.msra.mxu0 %v8248_v50  ;;  %v8299_v50 = vld [vmem:[%s10668_s1 + $0x640] sm:$0xff]  }
  0x91   :  { %7475 = vmatprep.subr.bf16.mxu0 %v8250_v52  ;;  %v8301_v52 = vld [vmem:[%s10668_s1 + $0x600] sm:$0xff]  }
  0x92   :  { %7496 = vmatpush3.bf16.msra.mxu1 %v8249_v51  ;;  %v8300_v51 = vld [vmem:[%s10668_s1 + $0x6c0] sm:$0xff]  }
  0x93   :  { %7497 = vmatprep.subr.bf16.mxu1 %v8251_v53  ;;  %v8302_v53 = vld [vmem:[%s10668_s1 + $0x680] sm:$0xff]  }
  0x94   :  { %7476 = vmatpush3.bf16.msra.mxu0 %v8252_v54  ;;  %v1343_v54 = vcombine.high %v1327_v49, %v1327_v49 }
  0x95   :  { %7477 = vmatprep.subr.bf16.mxu0 %v8254_v56  ;;  %v8304_v56 = vld [vmem:[%s10668_s1 + $0x6c8] sm:$0xff]  }
  0x96   :  { %7498 = vmatpush3.bf16.msra.mxu1 %v8253_v55  ;;  %v8303_v55 = vld [vmem:[%s10668_s1 + $0x648] sm:$0xff]  }
  0x97   :  { %7499 = vmatprep.subr.bf16.mxu1 %v8255_v57  ;;  %v8305_v57 = vld [vmem:[%s10668_s1 + $0x608] sm:$0xff]  }
  0x98   :  { %7478 = vmatpush3.bf16.msra.mxu0 %v8256_v58  ;;  %v8306_v58 = vld [vmem:[%s10668_s1 + $0x688] sm:$0xff]  }
  0x99   :  { %7479 = vmatprep.subr.bf16.mxu0 %v8258_v60  ;;  %v8308_v60 = vld [vmem:[%s10668_s1 + $0x6d0] sm:$0xff]  }
  0x9a   :  { %7500 = vmatpush3.bf16.msra.mxu1 %v8257_v59  ;;  %v8307_v59 = vld [vmem:[%s10668_s1 + $0x650] sm:$0xff]  }
  0x9b   :  { %7501 = vmatprep.subr.bf16.mxu1 %v8259_v62  ;;  %v8310_v62 = vld [vmem:[%s10668_s1 + $0x690] sm:$0xff]  }
  0x9c   :  { %7480 = vmatpush3.bf16.msra.mxu0 %v8260_v1  ;;  %v8313_v1 = vld [vmem:[%s10668_s1 + $0x618] sm:$0xff]  }
  0x9d   :  { %7481 = vmatprep.subr.bf16.mxu0 %v8262_v5  ;;  %v8317_v5 = vld [vmem:[%s10668_s1 + $0x620] sm:$0xff]  }
  0x9e   :  { %7502 = vmatpush3.bf16.msra.mxu1 %v8261_v2  ;;  %v8314_v2 = vld [vmem:[%s10668_s1 + $0x698] sm:$0xff]  }
  0x9f   :  { %7503 = vmatprep.subr.bf16.mxu1 %v8263_v6  ;;  %v8318_v6 = vld [vmem:[%s10668_s1 + $0x6a0] sm:$0xff]  }
  0xa0   :  { %7482 = vmatpush3.bf16.msra.mxu0 %v8264_v9  ;;  %v8321_v9 = vld [vmem:[%s10668_s1 + $0x628] sm:$0xff]  }
  0xa1   :  { %7511 = vmatprep.subr.bf16.mxu0 %v8266_v13  ;;  %v8324_v13 = vld [vmem:[%s10668_s1 + $0x6f0] sm:$0xff]  }
  0xa2   :  { %7504 = vmatpush3.bf16.msra.mxu1 %v8265_v10  ;;  %v8322_v10 = vld [vmem:[%s10668_s1 + $0x6a8] sm:$0xff]  }
  0xa3   :  { %5521 = vmatmul.mubr.bf16.vlgmr.msra.gmra.mrb[16].mxu0 %v1320_v12  ;;  %7533 = vmatprep.subr.bf16.mxu1 %v8267_v14  ;;  %v25_v12 = vld [vmem:[%s10667_s0 + $0x18] sm:$0xff] }
  0xa4   :  { %7512 = vmatpush3.bf16.msra.mxu0 %v8268_v16  ;;  %5600 = vmatprep.mubr.bf16.mxu0 %v1341_v15  ;;  %v1353_v14 = vrot.slane %v25_v12, %v8856_v41  ;;  %v1346_v15 = vcombine.high %v25_v12, %v25_v12  ;;  %v8325_v16 = vld [vmem:[%s10668_s1 + $0x630] sm:$0xff]   ;;  %v8362_v12 = vld [vmem:[%s10668_s1 + $0x7b8] sm:$0xff]  }
  0xa5   :  { %5561 = vmatmul.mubr.bf16.vlgmr.msra.gmra.mrb[16].mxu1 %v1342_v18  ;;  %7513 = vmatprep.subr.bf16.mxu0 %v8270_v19 }
  0xa6   :  { %7534 = vmatpush3.bf16.msra.mxu1 %v8269_v17  ;;  %5640 = vmatprep.mubr.bf16.mxu1 %v1345_v21  ;;  %v8327_v17 = vld [vmem:[%s10668_s1 + $0x678] sm:$0xff]   ;;  %v1361_v18 = vcombine.high %v1353_v14, %v1353_v14  ;;  %v9460_v19 = vrot.slane %v1346_v15, %v8856_v41  ;;  %v8365_v15 = vld [vmem:[%s10668_s1 + $0x8c0] sm:$0xff]  }
  0xa7   :  { %7535 = vmatprep.subr.bf16.mxu1 %v8271_v20  ;;  %v8326_v20 = vld [vmem:[%s10668_s1 + $0x6b0] sm:$0xff]   ;;  %v8328_v21 = vld [vmem:[%s10668_s1 + $0x6f8] sm:$0xff]  }
  0xa8   :  { %7514 = vmatpush3.bf16.msra.mxu0 %v8272_v22  ;;  %v1383_v22 = vrot.slane %v1361_v18, %v8856_v41 }
  0xa9   :  { %7515 = vmatprep.subr.bf16.mxu0 %v8274_v24  ;;  %v8329_v24 = vld [vmem:[%s10668_s1 + $0x638] sm:$0xff]  }
  0xaa   :  { %7536 = vmatpush3.bf16.msra.mxu1 %v8273_v23  ;;  %v1362_v23 = vcombine.high %v9460_v19, %v9460_v19 }
  0xab   :  { %7537 = vmatprep.subr.bf16.mxu1 %v8275_v25  ;;  %v1393_v25 = vcombine.high %v1383_v22, %v1383_v22 }
  0xac   :  { %7516 = vmatpush3.bf16.msra.mxu0 %v8276_v26  ;;  %v1369_v26 = vrot.slane %v1353_v14, %v8856_v41  ;;  %v8364_v14 = vld [vmem:[%s10668_s1 + $0x840] sm:$0xff]  }
  0xad   :  { %7517 = vmatprep.subr.bf16.mxu0 %v8278_v28  ;;  %v8330_v28 = vld [vmem:[%s10668_s1 + $0x6b8] sm:$0xff]  }
  0xae   :  { %7538 = vmatpush3.bf16.msra.mxu1 %v8277_v27  ;;  %v8331_v27 = vld [vmem:[%s10668_s1 + $0x740] sm:$0xff]  }
  0xaf   :  { %7539 = vmatprep.subr.bf16.mxu1 %v8279_v29  ;;  %v1390_v29 = vrot.slane %v1362_v23, %v8856_v41  ;;  %v8372_v23 = vld [vmem:[%s10668_s1 + $0x850] sm:$0xff]  }
  0xb0   :  { %7518 = vmatpush3.bf16.msra.mxu0 %v8280_v30  ;;  %v8332_v30 = vld [vmem:[%s10668_s1 + $0x7c0] sm:$0xff]  }
  0xb1   :  { %7519 = vmatprep.subr.bf16.mxu0 %v8282_v32  ;;  %v1391_v32 = vcombine.high %v1369_v26, %v1369_v26 }
  0xb2   :  { %7540 = vmatpush3.bf16.msra.mxu1 %v8281_v31  ;;  %v8333_v31 = vld [vmem:[%s10668_s1 + $0x700] sm:$0xff]  }
  0xb3   :  { %7541 = vmatprep.subr.bf16.mxu1 %v8283_v33  ;;  %v8335_v33 = vld [vmem:[%s10668_s1 + $0x748] sm:$0xff]  }
  0xb4   :  { %7520 = vmatpush3.bf16.msra.mxu0 %v8284_v34  ;;  %v8334_v34 = vld [vmem:[%s10668_s1 + $0x780] sm:$0xff]  }
  0xb5   :  { %7521 = vmatprep.subr.bf16.mxu0 %v8286_v36  ;;  %v8336_v36 = vld [vmem:[%s10668_s1 + $0x7c8] sm:$0xff]  }
  0xb6   :  { %7542 = vmatpush3.bf16.msra.mxu1 %v8285_v35  ;;  %v1394_v35 = vcombine.high %v1390_v29, %v1390_v29 }
  0xb7   :  { %7543 = vmatprep.subr.bf16.mxu1 %v8287_v37  ;;  %v8337_v37 = vld [vmem:[%s10668_s1 + $0x708] sm:$0xff]  }
  0xb8   :  { %7522 = vmatpush3.bf16.msra.mxu0 %v8288_v38  ;;  %v8339_v38 = vld [vmem:[%s10668_s1 + $0x750] sm:$0xff]  }
  0xb9   :  { %7523 = vmatprep.subr.bf16.mxu0 %v8290_v40  ;;  %v8340_v40 = vld [vmem:[%s10668_s1 + $0x7d0] sm:$0xff]  }
  0xba   :  { %7544 = vmatpush3.bf16.msra.mxu1 %v8289_v39  ;;  %v8338_v39 = vld [vmem:[%s10668_s1 + $0x788] sm:$0xff]  }
  0xbb   :  { %7545 = vmatprep.subr.bf16.mxu1 %v8291_v42  ;;  %v8341_v42 = vld [vmem:[%s10668_s1 + $0x710] sm:$0xff]  }
  0xbc   :  { %7524 = vmatpush3.bf16.msra.mxu0 %v8292_v43  ;;  %v8343_v43 = vld [vmem:[%s10668_s1 + $0x758] sm:$0xff]  }
  0xbd   :  { %7525 = vmatprep.subr.bf16.mxu0 %v8294_v45  ;;  %v8344_v45 = vld [vmem:[%s10668_s1 + $0x7d8] sm:$0xff]  }
  0xbe   :  { %7546 = vmatpush3.bf16.msra.mxu1 %v8293_v44  ;;  %v8342_v44 = vld [vmem:[%s10668_s1 + $0x790] sm:$0xff]  }
  0xbf   :  { %7547 = vmatprep.subr.bf16.mxu1 %v8295_v46  ;;  %v8345_v46 = vld [vmem:[%s10668_s1 + $0x718] sm:$0xff]  }
  0xc0   :  { %7526 = vmatpush3.bf16.msra.mxu0 %v8296_v47  ;;  %v8346_v47 = vld [vmem:[%s10668_s1 + $0x798] sm:$0xff]  }
  0xc1   :  { %7555 = vmatprep.subr.bf16.mxu0 %v8299_v50  ;;  %v8349_v50 = vld [vmem:[%s10668_s1 + $0x720] sm:$0xff]  }
  0xc2   :  { %7548 = vmatpush3.bf16.msra.mxu1 %v8297_v48  ;;  %v8347_v48 = vld [vmem:[%s10668_s1 + $0x760] sm:$0xff]  }
  0xc3   :  { %5601 = vmatmul.mubr.bf16.vlgmr.msra.gmra.mrb[20].mxu0 %v1327_v49  ;;  %7577 = vmatprep.subr.bf16.mxu1 %v8300_v51  ;;  %v8348_v49 = vld [vmem:[%s10668_s1 + $0x7e0] sm:$0xff]  }
  0xc4   :  { %7556 = vmatpush3.bf16.msra.mxu0 %v8301_v52  ;;  %5680 = vmatprep.mubr.bf16.mxu0 %v1383_v22  ;;  %v8350_v51 = vld [vmem:[%s10668_s1 + $0x7a0] sm:$0xff]   ;;  %v8351_v52 = vld [vmem:[%s10668_s1 + $0x768] sm:$0xff]  }
  0xc5   :  { %5641 = vmatmul.mubr.bf16.vlgmr.msra.gmra.mrb[20].mxu1 %v1343_v54  ;;  %7557 = vmatprep.subr.bf16.mxu0 %v8303_v55  ;;  %v8353_v54 = vld [vmem:[%s10668_s1 + $0x728] sm:$0xff]  }
  0xc6   :  { %7578 = vmatpush3.bf16.msra.mxu1 %v8302_v53  ;;  %5720 = vmatprep.mubr.bf16.mxu1 %v1393_v25  ;;  %v8352_v53 = vld [vmem:[%s10668_s1 + $0x7e8] sm:$0xff]   ;;  %v8374_v25 = vld [vmem:[%s10668_s1 + $0x810] sm:$0xff]  }
  0xc7   :  { %7579 = vmatprep.subr.bf16.mxu1 %v8304_v56  ;;  %v8354_v55 = vld [vmem:[%s10668_s1 + $0x7a8] sm:$0xff]   ;;  %v6708_v56 = vld [vmem:[%s10669_s2] ss:$0 sm:$0xff] }
  0xc8   :  { %7558 = vmatpush3.bf16.msra.mxu0 %v8305_v57  ;;  %v8355_v57 = vld [vmem:[%s10668_s1 + $0x770] sm:$0xff]   ;;  %v8371_v22 = vld [vmem:[%s10668_s1 + $0x888] sm:$0xff]  }
  0xc9   :  { %7559 = vmatprep.subr.bf16.mxu0 %v8307_v59  ;;  %v8356_v59 = vld [vmem:[%s10668_s1 + $0x7f0] sm:$0xff]  }
  0xca   :  { %7580 = vmatpush3.bf16.msra.mxu1 %v8306_v58 }
  0xcb   :  { %7581 = vmatprep.subr.bf16.mxu1 %v8308_v60 }
  0xcc   :  { %7560 = vmatpush3.bf16.msra.mxu0 %v8309_v61  ;;  %v8357_v61 = vld [vmem:[%s10668_s1 + $0x730] sm:$0xff]  }
  0xcd   :  { %7561 = vmatprep.subr.bf16.mxu0 %v8311_v63 }
  0xce   :  { %7582 = vmatpush3.bf16.msra.mxu1 %v8310_v62 }
  0xcf   :  { %7583 = vmatprep.subr.bf16.mxu1 %v8312_v0 }
  0xd0   :  { %7562 = vmatpush3.bf16.msra.mxu0 %v8313_v1  ;;  %v8358_v1 = vld [vmem:[%s10668_s1 + $0x7b0] sm:$0xff]  }
  0xd1   :  { %7563 = vmatprep.subr.bf16.mxu0 %v8315_v3 }
  0xd2   :  { %7584 = vmatpush3.bf16.msra.mxu1 %v8314_v2  ;;  %v8359_v2 = vld [vmem:[%s10668_s1 + $0x778] sm:$0xff]  }
  0xd3   :  { %7585 = vmatprep.subr.bf16.mxu1 %v8316_v4 }
  0xd4   :  { %7564 = vmatpush3.bf16.msra.mxu0 %v8317_v5 }
  0xd5   :  { %7565 = vmatprep.subr.bf16.mxu0 %v8319_v7 }
  0xd6   :  { %7586 = vmatpush3.bf16.msra.mxu1 %v8318_v6 }
  0xd7   :  { %7587 = vmatprep.subr.bf16.mxu1 %v8320_v8  ;;  %v8360_v8 = vld [vmem:[%s10668_s1 + $0x7f8] sm:$0xff]  }
  0xd8   :  { %7566 = vmatpush3.bf16.msra.mxu0 %v8321_v9 }
  0xd9   :  { %7567 = vmatprep.subr.bf16.mxu0 %v8323_v11 }
  0xda   :  { %7588 = vmatpush3.bf16.msra.mxu1 %v8322_v10  ;;  %v8361_v10 = vld [vmem:[%s10668_s1 + $0x738] sm:$0xff]  }
  0xdb   :  { %7589 = vmatprep.subr.bf16.mxu1 %v8324_v13  ;;  %v1376_v13 = vrot.slane %v9460_v19, %v8856_v41  ;;  %v8368_v19 = vld [vmem:[%s10668_s1 + $0x848] sm:$0xff]  }
  0xdc   :  { %7568 = vmatpush3.bf16.msra.mxu0 %v8325_v16  ;;  %v8366_v16 = vld [vmem:[%s10668_s1 + $0x800] sm:$0xff]  }
  0xdd   :  { %7569 = vmatprep.subr.bf16.mxu0 %v8327_v17  ;;  %v8367_v17 = vld [vmem:[%s10668_s1 + $0x880] sm:$0xff]   ;;  %v1392_v18 = vcombine.high %v1376_v13, %v1376_v13 }
  0xde   :  { %7590 = vmatpush3.bf16.msra.mxu1 %v8326_v20  ;;  %v8369_v20 = vld [vmem:[%s10668_s1 + $0x8c8] sm:$0xff]  }
  0xdf   :  { %7591 = vmatprep.subr.bf16.mxu1 %v8328_v21  ;;  %v8370_v21 = vld [vmem:[%s10668_s1 + $0x808] sm:$0xff]  }
  0xe0   :  { %7570 = vmatpush3.bf16.msra.mxu0 %v8329_v24  ;;  %v8373_v24 = vld [vmem:[%s10668_s1 + $0x8d0] sm:$0xff]  }
  0xe1   :  { %7599 = vmatprep.subr.bf16.mxu0 %v8331_v27  ;;  %v8376_v27 = vld [vmem:[%s10668_s1 + $0x858] sm:$0xff]  }
  0xe2   :  { %7592 = vmatpush3.bf16.msra.mxu1 %v8330_v28  ;;  %v8377_v28 = vld [vmem:[%s10668_s1 + $0x8d8] sm:$0xff]  }
  0xe3   :  { %5681 = vmatmul.mubr.bf16.vlgmr.msra.gmra.mrb[24].mxu0 %v1369_v26  ;;  %7621 = vmatprep.subr.bf16.mxu1 %v8332_v30  ;;  %v8375_v26 = vld [vmem:[%s10668_s1 + $0x890] sm:$0xff]   ;;  %v8379_v30 = vld [vmem:[%s10668_s1 + $0x898] sm:$0xff]  }
  0xe4   :  { %7600 = vmatpush3.bf16.msra.mxu0 %v8333_v31  ;;  %5760 = vmatprep.mubr.bf16.mxu0 %v1390_v29  ;;  %v8378_v29 = vld [vmem:[%s10668_s1 + $0x818] sm:$0xff]   ;;  %v8380_v31 = vld [vmem:[%s10668_s1 + $0x860] sm:$0xff]  }
  0xe5   :  { %5721 = vmatmul.mubr.bf16.vlgmr.msra.gmra.mrb[24].mxu1 %v1391_v32  ;;  %7601 = vmatprep.subr.bf16.mxu0 %v8335_v33  ;;  %v8381_v32 = vld [vmem:[%s10668_s1 + $0x8e0] sm:$0xff]  }
  0xe6   :  { %7622 = vmatpush3.bf16.msra.mxu1 %v8334_v34  ;;  %5800 = vmatprep.mubr.bf16.mxu1 %v1394_v35  ;;  %v8382_v33 = vld [vmem:[%s10668_s1 + $0x820] sm:$0xff]   ;;  %v8384_v35 = vld [vmem:[%s10668_s1 + $0x868] sm:$0xff]  }
  0xe7   :  { %7623 = vmatprep.subr.bf16.mxu1 %v8336_v36  ;;  %v8383_v34 = vld [vmem:[%s10668_s1 + $0x8a0] sm:$0xff]   ;;  %v8385_v36 = vld [vmem:[%s10668_s1 + $0x8e8] sm:$0xff]  }
  0xe8   :  { %7602 = vmatpush3.bf16.msra.mxu0 %v8337_v37  ;;  %v8386_v37 = vld [vmem:[%s10668_s1 + $0x828] sm:$0xff]  }
  0xe9   :  { %7603 = vmatprep.subr.bf16.mxu0 %v8339_v38  ;;  %v8387_v38 = vld [vmem:[%s10668_s1 + $0x8a8] sm:$0xff]  }
  0xea   :  { %7624 = vmatpush3.bf16.msra.mxu1 %v8338_v39  ;;  %v8388_v39 = vld [vmem:[%s10668_s1 + $0x870] sm:$0xff]  }
  0xeb   :  { %7625 = vmatprep.subr.bf16.mxu1 %v8340_v40  ;;  %v8389_v40 = vld [vmem:[%s10668_s1 + $0x8f0] sm:$0xff]  }
  0xec   :  { %7604 = vmatpush3.bf16.msra.mxu0 %v8341_v42 }
  0xed   :  { %7605 = vmatprep.subr.bf16.mxu0 %v8343_v43  ;;  %v8390_v43 = vld [vmem:[%s10668_s1 + $0x830] sm:$0xff]  }
  0xee   :  { %7626 = vmatpush3.bf16.msra.mxu1 %v8342_v44 }
  0xef   :  { %7627 = vmatprep.subr.bf16.mxu1 %v8344_v45  ;;  %v26_v45 = vld [vmem:[%s10667_s0 + $0x20] sm:$0xff] }
  0xf0   :  { %7606 = vmatpush3.bf16.msra.mxu0 %v8345_v46 }
  0xf1   :  { %7607 = vmatprep.subr.bf16.mxu0 %v8347_v48 }
  0xf2   :  { %7628 = vmatpush3.bf16.msra.mxu1 %v8346_v47 }
  0xf3   :  { %7629 = vmatprep.subr.bf16.mxu1 %v8348_v49  ;;  %v8391_v49 = vld [vmem:[%s10668_s1 + $0x8b0] sm:$0xff]  }
  0xf4   :  { %7608 = vmatpush3.bf16.msra.mxu0 %v8349_v50  ;;  %v8392_v50 = vld [vmem:[%s10668_s1 + $0x878] sm:$0xff]  }
  0xf5   :  { %7609 = vmatprep.subr.bf16.mxu0 %v8351_v52  ;;  %v1395_v52 = vcombine.high %v26_v45, %v26_v45 }
  0xf6   :  { %7630 = vmatpush3.bf16.msra.mxu1 %v8350_v51  ;;  %v7307_v58 = vpop.f32.mrb[0].mxu0  ;;  %v1402_v51 = vrot.slane %v26_v45, %v8856_v41 }
  0xf7   :  { %v7308_v60 = vpop.f32.mrb[1].mxu0  ;;  %7631 = vmatprep.subr.bf16.mxu1 %v8352_v53  ;;  %v7329_v62 = vpop.f32.mrb[0].mxu1 }
  0xf8   :  { %v7309_v63 = vadd.f32 %v7308_v60, %v7307_v58  ;;  %v7310_v0 = vpop.f32.mrb[2].mxu0  ;;  %7610 = vmatpush3.bf16.msra.mxu0 %v8353_v54  ;;  %v7330_v3 = vpop.f32.mrb[1].mxu1  ;;  %v8393_v58 = vld [vmem:[%s10668_s1 + $0x8f8] sm:$0xff]  }
  0xf9   :  { %v7311_v4 = vpop.f32.mrb[3].mxu0  ;;  %7611 = vmatprep.subr.bf16.mxu0 %v8355_v57  ;;  %v7331_v6 = vadd.f32 %v7330_v3, %v7329_v62  ;;  %v7332_v7 = vpop.f32.mrb[2].mxu1  ;;  %v9681_v62 = vrot.slane %v1395_v52, %v8856_v41  ;;  %v8395_v0 = vld [vmem:[%s10668_s1 + $0x8b8] sm:$0xff]   ;;  %v8396_v3 = vld [vmem:[%s10668_s1 + $0x940] sm:$0xff]  }
  0xfa   :  { %v5203_v5 = vadd.f32 %v7309_v63, %v6708_v56  ;;  %7632 = vmatpush3.bf16.msra.mxu1 %v8354_v55  ;;  %v7333_v9 = vpop.f32.mrb[3].mxu1  ;;  %v8398_v7 = vld [vmem:[%s10668_s1 + $0x900] sm:$0xff]   ;;  %v8427_v52 = vld [vmem:[%s10668_s1 + $0x9b8] sm:$0xff]  }
  0xfb   :  { %7633 = vmatprep.subr.bf16.mxu1 %v8356_v59  ;;  %v1410_v59 = vcombine.high %v1402_v51, %v1402_v51  ;;  %v1411_v4 = vcombine.high %v9681_v62, %v9681_v62  ;;  %v8399_v9 = vld [vmem:[%s10668_s1 + $0x980] sm:$0xff]  }
  0xfc   :  { %v9575_v11 = vadd.f32 %v7331_v6, %v5203_v5  ;;  %7612 = vmatpush3.bf16.msra.mxu0 %v8357_v61  ;;  %v8394_v61 = vld [vmem:[%s10668_s1 + $0x838] sm:$0xff]   ;;  %v8397_v6 = vld [vmem:[%s10668_s1 + $0x9c0] sm:$0xff]  }
  0xfd   :  { %7613 = vmatprep.subr.bf16.mxu0 %v8359_v2  ;;  %v1418_v2 = vrot.slane %v1402_v51, %v8856_v41 }
  0xfe   :  { %7634 = vmatpush3.bf16.msra.mxu1 %v8358_v1  ;;  %v1432_v1 = vrot.slane %v1410_v59, %v8856_v41  ;;  %v8433_v59 = vld [vmem:[%s10668_s1 + $0xa48] sm:$0xff]  }
  0xff   :  { %7635 = vmatprep.subr.bf16.mxu1 %v8360_v8  ;;  %v1439_v8 = vrot.slane %v1411_v4, %v8856_v41  ;;  %v8442_v4 = vld [vmem:[%s10668_s1 + $0xad8] sm:$0xff]  }
 0x100   :  { %7614 = vmatpush3.bf16.msra.mxu0 %v8361_v10  ;;  %v1442_v5 = vcombine.high %v1432_v1, %v1432_v1  ;;  %v1440_v10 = vcombine.high %v1418_v2, %v1418_v2 }
 0x101   :  { %7643 = vmatprep.subr.bf16.mxu0 %v8364_v14  ;;  %v8402_v14 = vld [vmem:[%s10668_s1 + $0x908] sm:$0xff]  }
 0x102   :  { %7636 = vmatpush3.bf16.msra.mxu1 %v8362_v12  ;;  %v8401_v12 = vld [vmem:[%s10668_s1 + $0x9c8] sm:$0xff]  }
 0x103   :  { %5761 = vmatmul.mubr.bf16.vlgmr.msra.gmra.mrb[28].mxu0 %v1376_v13  ;;  %7665 = vmatprep.subr.bf16.mxu1 %v8365_v15  ;;  %v1443_v13 = vcombine.high %v1439_v8, %v1439_v8  ;;  %v8403_v15 = vld [vmem:[%s10668_s1 + $0x988] sm:$0xff]  }
 0x104   :  { %7644 = vmatpush3.bf16.msra.mxu0 %v8366_v16  ;;  %5840 = vmatprep.mubr.bf16.mxu0 %v1432_v1  ;;  %v8404_v16 = vld [vmem:[%s10668_s1 + $0x950] sm:$0xff]  }
 0x105   :  { %5801 = vmatmul.mubr.bf16.vlgmr.msra.gmra.mrb[28].mxu1 %v1392_v18  ;;  %7645 = vmatprep.subr.bf16.mxu0 %v8368_v19  ;;  %v8406_v18 = vld [vmem:[%s10668_s1 + $0x910] sm:$0xff]  }
 0x106   :  { %7666 = vmatpush3.bf16.msra.mxu1 %v8367_v17  ;;  %5880 = vmatprep.mubr.bf16.mxu1 %v1442_v5  ;;  %v8405_v17 = vld [vmem:[%s10668_s1 + $0x9d0] sm:$0xff]   ;;  %v8443_v5 = vld [vmem:[%s10668_s1 + $0xa18] sm:$0xff]  }
 0x107   :  { %7667 = vmatprep.subr.bf16.mxu1 %v8369_v20  ;;  %v8407_v19 = vld [vmem:[%s10668_s1 + $0x990] sm:$0xff]   ;;  %v8408_v20 = vld [vmem:[%s10668_s1 + $0x958] sm:$0xff]  }
 0x108   :  { %7646 = vmatpush3.bf16.msra.mxu0 %v8370_v21  ;;  %v8409_v21 = vld [vmem:[%s10668_s1 + $0x9d8] sm:$0xff]   ;;  %v8439_v1 = vld [vmem:[%s10668_s1 + $0xa10] sm:$0xff]  }
 0x109   :  { %7647 = vmatprep.subr.bf16.mxu0 %v8372_v23  ;;  %v8411_v23 = vld [vmem:[%s10668_s1 + $0x998] sm:$0xff]  }
 0x10a   :  { %7668 = vmatpush3.bf16.msra.mxu1 %v8371_v22  ;;  %v8410_v22 = vld [vmem:[%s10668_s1 + $0x918] sm:$0xff]  }
 0x10b   :  { %7669 = vmatprep.subr.bf16.mxu1 %v8373_v24  ;;  %v8412_v24 = vld [vmem:[%s10668_s1 + $0x960] sm:$0xff]  }
 0x10c   :  { %7648 = vmatpush3.bf16.msra.mxu0 %v8374_v25  ;;  %v8413_v25 = vld [vmem:[%s10668_s1 + $0x9e0] sm:$0xff]  }
 0x10d   :  { %7649 = vmatprep.subr.bf16.mxu0 %v8376_v27  ;;  %v8415_v27 = vld [vmem:[%s10668_s1 + $0x9a0] sm:$0xff]  }
 0x10e   :  { %7670 = vmatpush3.bf16.msra.mxu1 %v8375_v26  ;;  %v8414_v26 = vld [vmem:[%s10668_s1 + $0x920] sm:$0xff]  }
 0x10f   :  { %7671 = vmatprep.subr.bf16.mxu1 %v8377_v28  ;;  %v8416_v28 = vld [vmem:[%s10668_s1 + $0x968] sm:$0xff]  }
 0x110   :  { %7650 = vmatpush3.bf16.msra.mxu0 %v8378_v29  ;;  %v8417_v29 = vld [vmem:[%s10668_s1 + $0x9e8] sm:$0xff]  }
 0x111   :  { %7651 = vmatprep.subr.bf16.mxu0 %v8380_v31  ;;  %v8419_v31 = vld [vmem:[%s10668_s1 + $0x9a8] sm:$0xff]  }
 0x112   :  { %7672 = vmatpush3.bf16.msra.mxu1 %v8379_v30  ;;  %v8418_v30 = vld [vmem:[%s10668_s1 + $0x928] sm:$0xff]  }
 0x113   :  { %7673 = vmatprep.subr.bf16.mxu1 %v8381_v32  ;;  %v8420_v32 = vld [vmem:[%s10668_s1 + $0x970] sm:$0xff]  }
 0x114   :  { %7652 = vmatpush3.bf16.msra.mxu0 %v8382_v33 }
 0x115   :  { %7653 = vmatprep.subr.bf16.mxu0 %v8384_v35 }
 0x116   :  { %7674 = vmatpush3.bf16.msra.mxu1 %v8383_v34  ;;  %v7351_v42 = vpop.f32.mrb[4].mxu0  ;;  %v8421_v34 = vld [vmem:[%s10668_s1 + $0x9f0] sm:$0xff]  }
 0x117   :  { %v7352_v44 = vpop.f32.mrb[5].mxu0  ;;  %7675 = vmatprep.subr.bf16.mxu1 %v8385_v36  ;;  %v7373_v46 = vpop.f32.mrb[4].mxu1  ;;  %v8422_v36 = vld [vmem:[%s10668_s1 + $0x930] sm:$0xff]  }
 0x118   :  { %v7353_v47 = vadd.f32 %v7352_v44, %v7351_v42  ;;  %v7354_v48 = vpop.f32.mrb[6].mxu0  ;;  %7654 = vmatpush3.bf16.msra.mxu0 %v8386_v37  ;;  %v7374_v53 = vpop.f32.mrb[5].mxu1  ;;  %v8424_v42 = vld [vmem:[%s10668_s1 + $0x978] sm:$0xff]  }
 0x119   :  { %v7355_v54 = vpop.f32.mrb[7].mxu0  ;;  %7655 = vmatprep.subr.bf16.mxu0 %v8388_v39  ;;  %v7375_v56 = vadd.f32 %v7374_v53, %v7373_v46  ;;  %v7376_v57 = vpop.f32.mrb[6].mxu1  ;;  %v8425_v48 = vld [vmem:[%s10668_s1 + $0x9f8] sm:$0xff]   ;;  %v1425_v53 = vrot.slane %v9681_v62, %v8856_v41  ;;  %v8436_v62 = vld [vmem:[%s10668_s1 + $0xa88] sm:$0xff]  }
 0x11a   :  { %v5283_v55 = vadd.f32 %v7353_v47, %v9575_v11  ;;  %7676 = vmatpush3.bf16.msra.mxu1 %v8387_v38  ;;  %v7377_v60 = vpop.f32.mrb[7].mxu1  ;;  %v8400_v11 = vld [vmem:[%s10668_s1 + $0x948] sm:$0xff]   ;;  %v8429_v54 = vld [vmem:[%s10668_s1 + $0xa40] sm:$0xff]  }
 0x11b   :  { %7677 = vmatprep.subr.bf16.mxu1 %v8389_v40  ;;  %v8423_v40 = vld [vmem:[%s10668_s1 + $0x9b0] sm:$0xff]   ;;  %v8432_v57 = vld [vmem:[%s10668_s1 + $0xa80] sm:$0xff]   ;;  %v8434_v60 = vld [vmem:[%s10668_s1 + $0xac8] sm:$0xff]  }
 0x11c   :  { %v9683_v63 = vadd.f32 %v7375_v56, %v5283_v55  ;;  %7656 = vmatpush3.bf16.msra.mxu0 %v8390_v43  ;;  %v8430_v55 = vld [vmem:[%s10668_s1 + $0xac0] sm:$0xff]  }
 0x11d   :  { %7657 = vmatprep.subr.bf16.mxu0 %v8392_v50  ;;  %v8426_v50 = vld [vmem:[%s10668_s1 + $0x938] sm:$0xff]   ;;  %v8431_v56 = vld [vmem:[%s10668_s1 + $0xa00] sm:$0xff]  }
 0x11e   :  { %7678 = vmatpush3.bf16.msra.mxu1 %v8391_v49 }
 0x11f   :  { %7679 = vmatprep.subr.bf16.mxu1 %v8393_v58  ;;  %v1441_v58 = vcombine.high %v1425_v53, %v1425_v53 }
 0x120   :  { %7658 = vmatpush3.bf16.msra.mxu0 %v8394_v61  ;;  %v8435_v61 = vld [vmem:[%s10668_s1 + $0xa08] sm:$0xff]  }
 0x121   :  { %7687 = vmatprep.subr.bf16.mxu0 %v8396_v3  ;;  %v8441_v3 = vld [vmem:[%s10668_s1 + $0xa58] sm:$0xff]  }
 0x122   :  { %7680 = vmatpush3.bf16.msra.mxu1 %v8395_v0  ;;  %v8438_v0 = vld [vmem:[%s10668_s1 + $0xad0] sm:$0xff]  }
 0x123   :  { %5841 = vmatmul.mubr.bf16.vlgmr.msra.gmra.mrb[32].mxu0 %v1418_v2  ;;  %7709 = vmatprep.subr.bf16.mxu1 %v8397_v6  ;;  %v8440_v2 = vld [vmem:[%s10668_s1 + $0xa90] sm:$0xff]   ;;  %v8444_v6 = vld [vmem:[%s10668_s1 + $0xa98] sm:$0xff]  }
 0x124   :  { %7688 = vmatpush3.bf16.msra.mxu0 %v8398_v7  ;;  %5920 = vmatprep.mubr.bf16.mxu0 %v1439_v8  ;;  %v8445_v7 = vld [vmem:[%s10668_s1 + $0xa60] sm:$0xff]  }
 0x125   :  { %5881 = vmatmul.mubr.bf16.vlgmr.msra.gmra.mrb[32].mxu1 %v1440_v10  ;;  %7689 = vmatprep.subr.bf16.mxu0 %v8400_v11  ;;  %v8446_v8 = vld [vmem:[%s10668_s1 + $0xae0] sm:$0xff]   ;;  %v8449_v11 = vld [vmem:[%s10668_s1 + $0xa68] sm:$0xff]  }
 0x126   :  { %7710 = vmatpush3.bf16.msra.mxu1 %v8399_v9  ;;  %5960 = vmatprep.mubr.bf16.mxu1 %v1443_v13  ;;  %v8447_v9 = vld [vmem:[%s10668_s1 + $0xa20] sm:$0xff]   ;;  %v8451_v13 = vld [vmem:[%s10668_s1 + $0xa28] sm:$0xff]  }
 0x127   :  { %7711 = vmatprep.subr.bf16.mxu1 %v8401_v12  ;;  %v8448_v10 = vld [vmem:[%s10668_s1 + $0xaa0] sm:$0xff]   ;;  %v8450_v12 = vld [vmem:[%s10668_s1 + $0xae8] sm:$0xff]  }
 0x128   :  { %7690 = vmatpush3.bf16.msra.mxu0 %v8402_v14  ;;  %v8452_v14 = vld [vmem:[%s10668_s1 + $0xaa8] sm:$0xff]  }
 0x129   :  { %7691 = vmatprep.subr.bf16.mxu0 %v8404_v16 }
 0x12a   :  { %7712 = vmatpush3.bf16.msra.mxu1 %v8403_v15  ;;  %v8453_v15 = vld [vmem:[%s10668_s1 + $0xa70] sm:$0xff]  }
 0x12b   :  { %7713 = vmatprep.subr.bf16.mxu1 %v8405_v17  ;;  %v8454_v17 = vld [vmem:[%s10668_s1 + $0xaf0] sm:$0xff]  }
 0x12c   :  { %7692 = vmatpush3.bf16.msra.mxu0 %v8406_v18 }
 0x12d   :  { %7693 = vmatprep.subr.bf16.mxu0 %v8408_v20 }
 0x12e   :  { %7714 = vmatpush3.bf16.msra.mxu1 %v8407_v19  ;;  %v8455_v19 = vld [vmem:[%s10668_s1 + $0xa30] sm:$0xff]  }
 0x12f   :  { %7715 = vmatprep.subr.bf16.mxu1 %v8409_v21 }
 0x130   :  { %7694 = vmatpush3.bf16.msra.mxu0 %v8410_v22 }
 0x131   :  { %7695 = vmatprep.subr.bf16.mxu0 %v8412_v24  ;;  %v8457_v24 = vld [vmem:[%s10668_s1 + $0xa78] sm:$0xff]  }
 0x132   :  { %7716 = vmatpush3.bf16.msra.mxu1 %v8411_v23  ;;  %v8456_v23 = vld [vmem:[%s10668_s1 + $0xab0] sm:$0xff]  }
 0x133   :  { %7717 = vmatprep.subr.bf16.mxu1 %v8413_v25  ;;  %v27_v25 = vld [vmem:[%s10667_s0 + $0x28] sm:$0xff] }
 0x134   :  { %7696 = vmatpush3.bf16.msra.mxu0 %v8414_v26 }
 0x135   :  { %7697 = vmatprep.subr.bf16.mxu0 %v8416_v28  ;;  %v1451_v28 = vrot.slane %v27_v25, %v8856_v41 }
 0x136   :  { %7718 = vmatpush3.bf16.msra.mxu1 %v8415_v27  ;;  %v7395_v33 = vpop.f32.mrb[8].mxu0 }
 0x137   :  { %v7396_v35 = vpop.f32.mrb[9].mxu0  ;;  %7719 = vmatprep.subr.bf16.mxu1 %v8417_v29  ;;  %v1444_v29 = vcombine.high %v27_v25, %v27_v25  ;;  %v8491_v25 = vld [vmem:[%s10668_s1 + $0xb38] sm:$0xff]  }
 0x138   :  { %v7417_v37 = vpop.f32.mrb[8].mxu1  ;;  %v7397_v38 = vadd.f32 %v7396_v35, %v7395_v33  ;;  %v7398_v39 = vpop.f32.mrb[10].mxu0  ;;  %7698 = vmatpush3.bf16.msra.mxu0 %v8418_v30  ;;  %v8458_v33 = vld [vmem:[%s10668_s1 + $0xaf8] sm:$0xff]  }
 0x139   :  { %v7418_v43 = vpop.f32.mrb[9].mxu1  ;;  %v7399_v44 = vpop.f32.mrb[11].mxu0  ;;  %7699 = vmatprep.subr.bf16.mxu0 %v8420_v32  ;;  %v8459_v35 = vld [vmem:[%s10668_s1 + $0xa38] sm:$0xff]  }
 0x13a   :  { %v5363_v45 = vadd.f32 %v7397_v38, %v9683_v63  ;;  %v7419_v46 = vadd.f32 %v7418_v43, %v7417_v37  ;;  %v7420_v47 = vpop.f32.mrb[10].mxu1  ;;  %7720 = vmatpush3.bf16.msra.mxu1 %v8419_v31  ;;  %v8437_v63 = vld [vmem:[%s10668_s1 + $0xa50] sm:$0xff]   ;;  %v9893_v37 = vrot.slane %v1444_v29, %v8856_v41  ;;  %v8460_v39 = vld [vmem:[%s10668_s1 + $0xab8] sm:$0xff]   ;;  %v8461_v43 = vld [vmem:[%s10668_s1 + $0xb40] sm:$0xff]  }
 0x13b   :  { %v7421_v49 = vpop.f32.mrb[11].mxu1  ;;  %7721 = vmatprep.subr.bf16.mxu1 %v8421_v34  ;;  %v8463_v47 = vld [vmem:[%s10668_s1 + $0xb00] sm:$0xff]  }
 0x13c   :  { %v9787_v51 = vadd.f32 %v7419_v46, %v5363_v45  ;;  %7700 = vmatpush3.bf16.msra.mxu0 %v8422_v36  ;;  %v1459_v36 = vcombine.high %v1451_v28, %v1451_v28  ;;  %v1460_v44 = vcombine.high %v9893_v37, %v9893_v37  ;;  %v8462_v45 = vld [vmem:[%s10668_s1 + $0xbc0] sm:$0xff]  }
 0x13d   :  { %7701 = vmatprep.subr.bf16.mxu0 %v8424_v42  ;;  %v1467_v42 = vrot.slane %v1451_v28, %v8856_v41  ;;  %v8464_v49 = vld [vmem:[%s10668_s1 + $0xb80] sm:$0xff]   ;;  %v1474_v28 = vrot.slane %v9893_v37, %v8856_v41  ;;  %v8501_v37 = vld [vmem:[%s10668_s1 + $0xc88] sm:$0xff]  }
 0x13e   :  { %7722 = vmatpush3.bf16.msra.mxu1 %v8423_v40  ;;  %v1481_v40 = vrot.slane %v1459_v36, %v8856_v41  ;;  %v8494_v29 = vld [vmem:[%s10668_s1 + $0xc40] sm:$0xff]   ;;  %v8500_v36 = vld [vmem:[%s10668_s1 + $0xc08] sm:$0xff]  }
 0x13f   :  { %7723 = vmatprep.subr.bf16.mxu1 %v8425_v48  ;;  %v1488_v48 = vrot.slane %v1460_v44, %v8856_v41  ;;  %v8507_v44 = vld [vmem:[%s10668_s1 + $0xcd8] sm:$0xff]  }
 0x140   :  { %7702 = vmatpush3.bf16.msra.mxu0 %v8426_v50  ;;  %v1491_v46 = vcombine.high %v1481_v40, %v1481_v40  ;;  %v1489_v50 = vcombine.high %v1467_v42, %v1467_v42 }
 0x141   :  { %7731 = vmatprep.subr.bf16.mxu0 %v8429_v54  ;;  %v8467_v54 = vld [vmem:[%s10668_s1 + $0xb08] sm:$0xff]  }
 0x142   :  { %7724 = vmatpush3.bf16.msra.mxu1 %v8427_v52  ;;  %v8466_v52 = vld [vmem:[%s10668_s1 + $0xbc8] sm:$0xff]  }
 0x143   :  { %5921 = vmatmul.mubr.bf16.vlgmr.msra.gmra.mrb[36].mxu0 %v1425_v53  ;;  %7753 = vmatprep.subr.bf16.mxu1 %v8430_v55  ;;  %v1492_v53 = vcombine.high %v1488_v48, %v1488_v48  ;;  %v8468_v55 = vld [vmem:[%s10668_s1 + $0xb88] sm:$0xff]  }
 0x144   :  { %7732 = vmatpush3.bf16.msra.mxu0 %v8431_v56  ;;  %6000 = vmatprep.mubr.bf16.mxu0 %v1481_v40  ;;  %v8469_v56 = vld [vmem:[%s10668_s1 + $0xb50] sm:$0xff]  }
 0x145   :  { %5961 = vmatmul.mubr.bf16.vlgmr.msra.gmra.mrb[36].mxu1 %v1441_v58  ;;  %7733 = vmatprep.subr.bf16.mxu0 %v8433_v59  ;;  %v8471_v58 = vld [vmem:[%s10668_s1 + $0xb10] sm:$0xff]  }
 0x146   :  { %7754 = vmatpush3.bf16.msra.mxu1 %v8432_v57  ;;  %6040 = vmatprep.mubr.bf16.mxu1 %v1491_v46  ;;  %v8470_v57 = vld [vmem:[%s10668_s1 + $0xbd0] sm:$0xff]   ;;  %v8509_v46 = vld [vmem:[%s10668_s1 + $0xc98] sm:$0xff]  }
 0x147   :  { %7755 = vmatprep.subr.bf16.mxu1 %v8434_v60  ;;  %v8472_v59 = vld [vmem:[%s10668_s1 + $0xb90] sm:$0xff]   ;;  %v8473_v60 = vld [vmem:[%s10668_s1 + $0xb58] sm:$0xff]  }
 0x148   :  { %7734 = vmatpush3.bf16.msra.mxu0 %v8435_v61  ;;  %v8474_v61 = vld [vmem:[%s10668_s1 + $0xbd8] sm:$0xff]   ;;  %v8504_v40 = vld [vmem:[%s10668_s1 + $0xc10] sm:$0xff]  }
 0x149   :  { %7735 = vmatprep.subr.bf16.mxu0 %v8437_v63  ;;  %v8476_v63 = vld [vmem:[%s10668_s1 + $0xb98] sm:$0xff]  }
 0x14a   :  { %7756 = vmatpush3.bf16.msra.mxu1 %v8436_v62  ;;  %v8475_v62 = vld [vmem:[%s10668_s1 + $0xb18] sm:$0xff]  }
 0x14b   :  { %7757 = vmatprep.subr.bf16.mxu1 %v8438_v0  ;;  %v8477_v0 = vld [vmem:[%s10668_s1 + $0xb60] sm:$0xff]  }
 0x14c   :  { %7736 = vmatpush3.bf16.msra.mxu0 %v8439_v1  ;;  %v8478_v1 = vld [vmem:[%s10668_s1 + $0xbe0] sm:$0xff]  }
 0x14d   :  { %7737 = vmatprep.subr.bf16.mxu0 %v8441_v3  ;;  %v8480_v3 = vld [vmem:[%s10668_s1 + $0xba0] sm:$0xff]  }
 0x14e   :  { %7758 = vmatpush3.bf16.msra.mxu1 %v8440_v2  ;;  %v8479_v2 = vld [vmem:[%s10668_s1 + $0xb20] sm:$0xff]  }
 0x14f   :  { %7759 = vmatprep.subr.bf16.mxu1 %v8442_v4  ;;  %v8481_v4 = vld [vmem:[%s10668_s1 + $0xb68] sm:$0xff]  }
 0x150   :  { %7738 = vmatpush3.bf16.msra.mxu0 %v8443_v5  ;;  %v8482_v5 = vld [vmem:[%s10668_s1 + $0xbe8] sm:$0xff]  }
 0x151   :  { %7739 = vmatprep.subr.bf16.mxu0 %v8445_v7  ;;  %v8484_v7 = vld [vmem:[%s10668_s1 + $0xba8] sm:$0xff]  }
 0x152   :  { %7760 = vmatpush3.bf16.msra.mxu1 %v8444_v6  ;;  %v8483_v6 = vld [vmem:[%s10668_s1 + $0xb28] sm:$0xff]  }
 0x153   :  { %7761 = vmatprep.subr.bf16.mxu1 %v8446_v8  ;;  %v8485_v8 = vld [vmem:[%s10668_s1 + $0xb70] sm:$0xff]  }
 0x154   :  { %7740 = vmatpush3.bf16.msra.mxu0 %v8447_v9 }
 0x155   :  { %7741 = vmatprep.subr.bf16.mxu0 %v8449_v11 }
 0x156   :  { %7762 = vmatpush3.bf16.msra.mxu1 %v8448_v10  ;;  %v7439_v16 = vpop.f32.mrb[12].mxu0  ;;  %v8486_v10 = vld [vmem:[%s10668_s1 + $0xbf0] sm:$0xff]  }
 0x157   :  { %v7440_v18 = vpop.f32.mrb[13].mxu0  ;;  %7763 = vmatprep.subr.bf16.mxu1 %v8450_v12  ;;  %v8487_v12 = vld [vmem:[%s10668_s1 + $0xb30] sm:$0xff]  }
 0x158   :  { %v7461_v20 = vpop.f32.mrb[12].mxu1  ;;  %v7441_v21 = vadd.f32 %v7440_v18, %v7439_v16  ;;  %v7442_v22 = vpop.f32.mrb[14].mxu0  ;;  %7742 = vmatpush3.bf16.msra.mxu0 %v8451_v13  ;;  %v8488_v16 = vld [vmem:[%s10668_s1 + $0xbb0] sm:$0xff]  }
 0x159   :  { %v7462_v26 = vpop.f32.mrb[13].mxu1  ;;  %v7443_v27 = vpop.f32.mrb[15].mxu0  ;;  %7743 = vmatprep.subr.bf16.mxu0 %v8453_v15 }
 0x15a   :  { %v5443_v30 = vadd.f32 %v7441_v21, %v9787_v51  ;;  %v7463_v31 = vadd.f32 %v7462_v26, %v7461_v20  ;;  %v7464_v32 = vpop.f32.mrb[14].mxu1  ;;  %7764 = vmatpush3.bf16.msra.mxu1 %v8452_v14  ;;  %v8465_v51 = vld [vmem:[%s10668_s1 + $0xb48] sm:$0xff]   ;;  %v8492_v27 = vld [vmem:[%s10668_s1 + $0xbb8] sm:$0xff]  }
 0x15b   :  { %v7465_v34 = vpop.f32.mrb[15].mxu1  ;;  %7765 = vmatprep.subr.bf16.mxu1 %v8454_v17  ;;  %v8489_v17 = vld [vmem:[%s10668_s1 + $0xb78] sm:$0xff]   ;;  %v8497_v32 = vld [vmem:[%s10668_s1 + $0xc80] sm:$0xff]  }
 0x15c   :  { %v9895_v38 = vadd.f32 %v7463_v31, %v5443_v30  ;;  %7744 = vmatpush3.bf16.msra.mxu0 %v8455_v19  ;;  %v8495_v30 = vld [vmem:[%s10668_s1 + $0xcc0] sm:$0xff]   ;;  %v8498_v34 = vld [vmem:[%s10668_s1 + $0xc48] sm:$0xff]  }
 0x15d   :  { %7745 = vmatprep.subr.bf16.mxu0 %v8457_v24  ;;  %v8496_v31 = vld [vmem:[%s10668_s1 + $0xc00] sm:$0xff]  }
 0x15e   :  { %7766 = vmatpush3.bf16.msra.mxu1 %v8456_v23  ;;  %v8490_v23 = vld [vmem:[%s10668_s1 + $0xbf8] sm:$0xff]  }
 0x15f   :  { %7767 = vmatprep.subr.bf16.mxu1 %v8458_v33  ;;  %v1490_v33 = vcombine.high %v1474_v28, %v1474_v28 }
 0x160   :  { %7746 = vmatpush3.bf16.msra.mxu0 %v8459_v35  ;;  %v8499_v35 = vld [vmem:[%s10668_s1 + $0xcc8] sm:$0xff]  }
 0x161   :  { %7775 = vmatprep.subr.bf16.mxu0 %v8461_v43  ;;  %v8506_v43 = vld [vmem:[%s10668_s1 + $0xc58] sm:$0xff]  }
 0x162   :  { %7768 = vmatpush3.bf16.msra.mxu1 %v8460_v39  ;;  %v8503_v39 = vld [vmem:[%s10668_s1 + $0xcd0] sm:$0xff]  }
 0x163   :  { %6001 = vmatmul.mubr.bf16.vlgmr.msra.gmra.mrb[40].mxu0 %v1467_v42  ;;  %7797 = vmatprep.subr.bf16.mxu1 %v8462_v45  ;;  %v8505_v42 = vld [vmem:[%s10668_s1 + $0xc90] sm:$0xff]   ;;  %v8508_v45 = vld [vmem:[%s10668_s1 + $0xc18] sm:$0xff]  }
 0x164   :  { %7776 = vmatpush3.bf16.msra.mxu0 %v8463_v47  ;;  %6080 = vmatprep.mubr.bf16.mxu0 %v1488_v48  ;;  %v8510_v47 = vld [vmem:[%s10668_s1 + $0xc60] sm:$0xff]  }
 0x165   :  { %6041 = vmatmul.mubr.bf16.vlgmr.msra.gmra.mrb[40].mxu1 %v1489_v50  ;;  %7777 = vmatprep.subr.bf16.mxu0 %v8465_v51  ;;  %v8511_v48 = vld [vmem:[%s10668_s1 + $0xce0] sm:$0xff]   ;;  %v8514_v51 = vld [vmem:[%s10668_s1 + $0xc68] sm:$0xff]  }
 0x166   :  { %7798 = vmatpush3.bf16.msra.mxu1 %v8464_v49  ;;  %6120 = vmatprep.mubr.bf16.mxu1 %v1492_v53  ;;  %v8512_v49 = vld [vmem:[%s10668_s1 + $0xc20] sm:$0xff]   ;;  %v8516_v53 = vld [vmem:[%s10668_s1 + $0xc28] sm:$0xff]  }
 0x167   :  { %7799 = vmatprep.subr.bf16.mxu1 %v8466_v52  ;;  %v8513_v50 = vld [vmem:[%s10668_s1 + $0xca0] sm:$0xff]   ;;  %v8515_v52 = vld [vmem:[%s10668_s1 + $0xce8] sm:$0xff]  }
 0x168   :  { %7778 = vmatpush3.bf16.msra.mxu0 %v8467_v54  ;;  %v8517_v54 = vld [vmem:[%s10668_s1 + $0xca8] sm:$0xff]  }
 0x169   :  { %7779 = vmatprep.subr.bf16.mxu0 %v8469_v56 }
 0x16a   :  { %7800 = vmatpush3.bf16.msra.mxu1 %v8468_v55  ;;  %v8518_v55 = vld [vmem:[%s10668_s1 + $0xc70] sm:$0xff]  }
 0x16b   :  { %7801 = vmatprep.subr.bf16.mxu1 %v8470_v57  ;;  %v8519_v57 = vld [vmem:[%s10668_s1 + $0xcf0] sm:$0xff]  }
 0x16c   :  { %7780 = vmatpush3.bf16.msra.mxu0 %v8471_v58 }
 0x16d   :  { %7781 = vmatprep.subr.bf16.mxu0 %v8473_v60 }
 0x16e   :  { %7802 = vmatpush3.bf16.msra.mxu1 %v8472_v59  ;;  %v8520_v59 = vld [vmem:[%s10668_s1 + $0xc30] sm:$0xff]  }
 0x16f   :  { %7803 = vmatprep.subr.bf16.mxu1 %v8474_v61 }
 0x170   :  { %7782 = vmatpush3.bf16.msra.mxu0 %v8475_v62 }
 0x171   :  { %7783 = vmatprep.subr.bf16.mxu0 %v8477_v0 }
 0x172   :  { %7804 = vmatpush3.bf16.msra.mxu1 %v8476_v63  ;;  %v8521_v63 = vld [vmem:[%s10668_s1 + $0xcb0] sm:$0xff]  }
 0x173   :  { %7805 = vmatprep.subr.bf16.mxu1 %v8478_v1 }
 0x174   :  { %7784 = vmatpush3.bf16.msra.mxu0 %v8479_v2  ;;  %v8522_v2 = vld [vmem:[%s10668_s1 + $0xc78] sm:$0xff]  }
 0x175   :  { %7785 = vmatprep.subr.bf16.mxu0 %v8481_v4 }
 0x176   :  { %7806 = vmatpush3.bf16.msra.mxu1 %v8480_v3  ;;  %v7483_v9 = vpop.f32.mrb[16].mxu0  ;;  %v28_v3 = vld [vmem:[%s10667_s0 + $0x30] sm:$0xff] }
 0x177   :  { %v7484_v11 = vpop.f32.mrb[17].mxu0  ;;  %7807 = vmatprep.subr.bf16.mxu1 %v8482_v5 }
 0x178   :  { %v7505_v13 = vpop.f32.mrb[16].mxu1  ;;  %v7485_v14 = vadd.f32 %v7484_v11, %v7483_v9  ;;  %v7486_v15 = vpop.f32.mrb[18].mxu0  ;;  %7786 = vmatpush3.bf16.msra.mxu0 %v8483_v6  ;;  %v1493_v9 = vcombine.high %v28_v3, %v28_v3  ;;  %v8524_v11 = vld [vmem:[%s10668_s1 + $0xc38] sm:$0xff]  }
 0x179   :  { %v7506_v18 = vpop.f32.mrb[17].mxu1  ;;  %v7487_v19 = vpop.f32.mrb[19].mxu0  ;;  %7787 = vmatprep.subr.bf16.mxu0 %v8485_v8  ;;  %v1500_v8 = vrot.slane %v28_v3, %v8856_v41  ;;  %v8557_v3 = vld [vmem:[%s10668_s1 + $0xdb8] sm:$0xff]  }
 0x17a   :  { %v5523_v20 = vadd.f32 %v7485_v14, %v9895_v38  ;;  %v7507_v21 = vadd.f32 %v7506_v18, %v7505_v13  ;;  %v7508_v22 = vpop.f32.mrb[18].mxu1  ;;  %7808 = vmatpush3.bf16.msra.mxu1 %v8484_v7  ;;  %v8502_v38 = vld [vmem:[%s10668_s1 + $0xc50] sm:$0xff]   ;;  %v8523_v7 = vld [vmem:[%s10668_s1 + $0xcf8] sm:$0xff]   ;;  %v10110_v15 = vrot.slane %v1493_v9, %v8856_v41  ;;  %v8527_v19 = vld [vmem:[%s10668_s1 + $0xdc0] sm:$0xff]  }
 0x17b   :  { %v7509_v24 = vpop.f32.mrb[19].mxu1  ;;  %7809 = vmatprep.subr.bf16.mxu1 %v8486_v10  ;;  %v8525_v13 = vld [vmem:[%s10668_s1 + $0xcb8] sm:$0xff]   ;;  %v1508_v14 = vcombine.high %v1500_v8, %v1500_v8 }
 0x17c   :  { %v9999_v26 = vadd.f32 %v7507_v21, %v5523_v20  ;;  %7788 = vmatpush3.bf16.msra.mxu0 %v8487_v12  ;;  %v1509_v20 = vcombine.high %v10110_v15, %v10110_v15  ;;  %v8528_v21 = vld [vmem:[%s10668_s1 + $0xd00] sm:$0xff]  }
 0x17d   :  { %7789 = vmatprep.subr.bf16.mxu0 %v8489_v17  ;;  %v8526_v17 = vld [vmem:[%s10668_s1 + $0xd40] sm:$0xff]   ;;  %v1530_v18 = vrot.slane %v1508_v14, %v8856_v41  ;;  %v8567_v14 = vld [vmem:[%s10668_s1 + $0xe50] sm:$0xff]  }
 0x17e   :  { %7810 = vmatpush3.bf16.msra.mxu1 %v8488_v16  ;;  %v1516_v16 = vrot.slane %v1500_v8, %v8856_v41  ;;  %v1537_v24 = vrot.slane %v1509_v20, %v8856_v41  ;;  %v8562_v8 = vld [vmem:[%s10668_s1 + $0xe80] sm:$0xff]   ;;  %v8573_v20 = vld [vmem:[%s10668_s1 + $0xe18] sm:$0xff]  }
 0x17f   :  { %7811 = vmatprep.subr.bf16.mxu1 %v8490_v23  ;;  %v1540_v22 = vcombine.high %v1530_v18, %v1530_v18  ;;  %v8529_v23 = vld [vmem:[%s10668_s1 + $0xd80] sm:$0xff]  }
 0x180   :  { %7790 = vmatpush3.bf16.msra.mxu0 %v8491_v25  ;;  %v1538_v25 = vcombine.high %v1516_v16, %v1516_v16 }
 0x181   :  { %7819 = vmatprep.subr.bf16.mxu0 %v8494_v29  ;;  %v8532_v29 = vld [vmem:[%s10668_s1 + $0xd08] sm:$0xff]  }
 0x182   :  { %7812 = vmatpush3.bf16.msra.mxu1 %v8492_v27  ;;  %v8531_v27 = vld [vmem:[%s10668_s1 + $0xdc8] sm:$0xff]  }
 0x183   :  { %6081 = vmatmul.mubr.bf16.vlgmr.msra.gmra.mrb[44].mxu0 %v1474_v28  ;;  %7841 = vmatprep.subr.bf16.mxu1 %v8495_v30  ;;  %v1541_v28 = vcombine.high %v1537_v24, %v1537_v24  ;;  %v8533_v30 = vld [vmem:[%s10668_s1 + $0xd88] sm:$0xff]  }
 0x184   :  { %7820 = vmatpush3.bf16.msra.mxu0 %v8496_v31  ;;  %6160 = vmatprep.mubr.bf16.mxu0 %v1530_v18  ;;  %v8534_v31 = vld [vmem:[%s10668_s1 + $0xd50] sm:$0xff]   ;;  %v8571_v18 = vld [vmem:[%s10668_s1 + $0xe58] sm:$0xff]  }
 0x185   :  { %6121 = vmatmul.mubr.bf16.vlgmr.msra.gmra.mrb[44].mxu1 %v1490_v33  ;;  %7821 = vmatprep.subr.bf16.mxu0 %v8498_v34  ;;  %v8536_v33 = vld [vmem:[%s10668_s1 + $0xd10] sm:$0xff]  }
 0x186   :  { %7842 = vmatpush3.bf16.msra.mxu1 %v8497_v32  ;;  %6200 = vmatprep.mubr.bf16.mxu1 %v1540_v22  ;;  %v8535_v32 = vld [vmem:[%s10668_s1 + $0xdd0] sm:$0xff]   ;;  %v8575_v22 = vld [vmem:[%s10668_s1 + $0xe60] sm:$0xff]  }
 0x187   :  { %7843 = vmatprep.subr.bf16.mxu1 %v8499_v35  ;;  %v8537_v34 = vld [vmem:[%s10668_s1 + $0xd90] sm:$0xff]   ;;  %v8538_v35 = vld [vmem:[%s10668_s1 + $0xd58] sm:$0xff]  }
 0x188   :  { %7822 = vmatpush3.bf16.msra.mxu0 %v8500_v36  ;;  %v8539_v36 = vld [vmem:[%s10668_s1 + $0xdd8] sm:$0xff]  }
 0x189   :  { %7823 = vmatprep.subr.bf16.mxu0 %v8502_v38  ;;  %v8541_v38 = vld [vmem:[%s10668_s1 + $0xd98] sm:$0xff]  }
 0x18a   :  { %7844 = vmatpush3.bf16.msra.mxu1 %v8501_v37  ;;  %v8540_v37 = vld [vmem:[%s10668_s1 + $0xd18] sm:$0xff]  }
 0x18b   :  { %7845 = vmatprep.subr.bf16.mxu1 %v8503_v39  ;;  %v8542_v39 = vld [vmem:[%s10668_s1 + $0xd60] sm:$0xff]  }
 0x18c   :  { %7824 = vmatpush3.bf16.msra.mxu0 %v8504_v40  ;;  %v8543_v40 = vld [vmem:[%s10668_s1 + $0xde0] sm:$0xff]  }
 0x18d   :  { %7825 = vmatprep.subr.bf16.mxu0 %v8506_v43  ;;  %v8545_v43 = vld [vmem:[%s10668_s1 + $0xda0] sm:$0xff]  }
 0x18e   :  { %7846 = vmatpush3.bf16.msra.mxu1 %v8505_v42  ;;  %v8544_v42 = vld [vmem:[%s10668_s1 + $0xd20] sm:$0xff]  }
 0x18f   :  { %7847 = vmatprep.subr.bf16.mxu1 %v8507_v44  ;;  %v8546_v44 = vld [vmem:[%s10668_s1 + $0xd68] sm:$0xff]  }
 0x190   :  { %7826 = vmatpush3.bf16.msra.mxu0 %v8508_v45  ;;  %v8547_v45 = vld [vmem:[%s10668_s1 + $0xde8] sm:$0xff]  }
 0x191   :  { %7827 = vmatprep.subr.bf16.mxu0 %v8510_v47  ;;  %v8549_v47 = vld [vmem:[%s10668_s1 + $0xda8] sm:$0xff]  }
 0x192   :  { %7848 = vmatpush3.bf16.msra.mxu1 %v8509_v46  ;;  %v8548_v46 = vld [vmem:[%s10668_s1 + $0xd28] sm:$0xff]  }
 0x193   :  { %7849 = vmatprep.subr.bf16.mxu1 %v8511_v48  ;;  %v8550_v48 = vld [vmem:[%s10668_s1 + $0xd70] sm:$0xff]  }
 0x194   :  { %7828 = vmatpush3.bf16.msra.mxu0 %v8512_v49 }
 0x195   :  { %7829 = vmatprep.subr.bf16.mxu0 %v8514_v51 }
 0x196   :  { %7850 = vmatpush3.bf16.msra.mxu1 %v8513_v50  ;;  %v7527_v56 = vpop.f32.mrb[20].mxu0  ;;  %v8551_v50 = vld [vmem:[%s10668_s1 + $0xdf0] sm:$0xff]  }
 0x197   :  { %v7528_v58 = vpop.f32.mrb[21].mxu0  ;;  %7851 = vmatprep.subr.bf16.mxu1 %v8515_v52  ;;  %v8552_v52 = vld [vmem:[%s10668_s1 + $0xd30] sm:$0xff]  }
 0x198   :  { %v7549_v60 = vpop.f32.mrb[20].mxu1  ;;  %v7529_v61 = vadd.f32 %v7528_v58, %v7527_v56  ;;  %v7530_v62 = vpop.f32.mrb[22].mxu0  ;;  %7830 = vmatpush3.bf16.msra.mxu0 %v8516_v53  ;;  %v8553_v56 = vld [vmem:[%s10668_s1 + $0xdb0] sm:$0xff]  }
 0x199   :  { %v7550_v0 = vpop.f32.mrb[21].mxu1  ;;  %v7531_v1 = vpop.f32.mrb[23].mxu0  ;;  %7831 = vmatprep.subr.bf16.mxu0 %v8518_v55 }
 0x19a   :  { %v5603_v4 = vadd.f32 %v7529_v61, %v9999_v26  ;;  %v7551_v5 = vadd.f32 %v7550_v0, %v7549_v60  ;;  %v7552_v6 = vpop.f32.mrb[22].mxu1  ;;  %7852 = vmatpush3.bf16.msra.mxu1 %v8517_v54  ;;  %v8530_v26 = vld [vmem:[%s10668_s1 + $0xd48] sm:$0xff]   ;;  %v8556_v1 = vld [vmem:[%s10668_s1 + $0xd38] sm:$0xff]  }
 0x19b   :  { %v7553_v10 = vpop.f32.mrb[23].mxu1  ;;  %7853 = vmatprep.subr.bf16.mxu1 %v8519_v57  ;;  %v8554_v57 = vld [vmem:[%s10668_s1 + $0xd78] sm:$0xff]   ;;  %v8560_v6 = vld [vmem:[%s10668_s1 + $0xec0] sm:$0xff]  }
 0x19c   :  { %v10104_v12 = vadd.f32 %v7551_v5, %v5603_v4  ;;  %7832 = vmatpush3.bf16.msra.mxu0 %v8520_v59  ;;  %v1523_v4 = vrot.slane %v10110_v15, %v8856_v41  ;;  %v8559_v5 = vld [vmem:[%s10668_s1 + $0xe40] sm:$0xff]   ;;  %v8563_v10 = vld [vmem:[%s10668_s1 + $0xe48] sm:$0xff]   ;;  %v8568_v15 = vld [vmem:[%s10668_s1 + $0xed0] sm:$0xff]  }
 0x19d   :  { %7833 = vmatprep.subr.bf16.mxu0 %v8522_v2 }
 0x19e   :  { %7854 = vmatpush3.bf16.msra.mxu1 %v8521_v63  ;;  %v8555_v63 = vld [vmem:[%s10668_s1 + $0xdf8] sm:$0xff]   ;;  %v1539_v9 = vcombine.high %v1523_v4, %v1523_v4 }
 0x19f   :  { %7855 = vmatprep.subr.bf16.mxu1 %v8523_v7  ;;  %v8561_v7 = vld [vmem:[%s10668_s1 + $0xe00] sm:$0xff]  }
 0x1a0   :  { %7834 = vmatpush3.bf16.msra.mxu0 %v8524_v11  ;;  %v8564_v11 = vld [vmem:[%s10668_s1 + $0xec8] sm:$0xff]  }
 0x1a1   :  { %7863 = vmatprep.subr.bf16.mxu0 %v8526_v17  ;;  %v8570_v17 = vld [vmem:[%s10668_s1 + $0xe90] sm:$0xff]  }
 0x1a2   :  { %7856 = vmatpush3.bf16.msra.mxu1 %v8525_v13  ;;  %v8566_v13 = vld [vmem:[%s10668_s1 + $0xe88] sm:$0xff]  }
 0x1a3   :  { %6161 = vmatmul.mubr.bf16.vlgmr.msra.gmra.mrb[48].mxu0 %v1516_v16  ;;  %7885 = vmatprep.subr.bf16.mxu1 %v8527_v19  ;;  %v8569_v16 = vld [vmem:[%s10668_s1 + $0xe10] sm:$0xff]   ;;  %v8572_v19 = vld [vmem:[%s10668_s1 + $0xed8] sm:$0xff]  }
 0x1a4   :  { %7864 = vmatpush3.bf16.msra.mxu0 %v8528_v21  ;;  %6240 = vmatprep.mubr.bf16.mxu0 %v1537_v24  ;;  %v8574_v21 = vld [vmem:[%s10668_s1 + $0xe98] sm:$0xff]   ;;  %v8577_v24 = vld [vmem:[%s10668_s1 + $0xe20] sm:$0xff]  }
 0x1a5   :  { %6201 = vmatmul.mubr.bf16.vlgmr.msra.gmra.mrb[48].mxu1 %v1538_v25  ;;  %7865 = vmatprep.subr.bf16.mxu0 %v8530_v26  ;;  %v8578_v25 = vld [vmem:[%s10668_s1 + $0xea0] sm:$0xff]   ;;  %v8579_v26 = vld [vmem:[%s10668_s1 + $0xe68] sm:$0xff]  }
 0x1a6   :  { %7886 = vmatpush3.bf16.msra.mxu1 %v8529_v23  ;;  %6280 = vmatprep.mubr.bf16.mxu1 %v1541_v28  ;;  %v8576_v23 = vld [vmem:[%s10668_s1 + $0xee0] sm:$0xff]   ;;  %v8581_v28 = vld [vmem:[%s10668_s1 + $0xe28] sm:$0xff]  }
 0x1a7   :  { %7887 = vmatprep.subr.bf16.mxu1 %v8531_v27  ;;  %v8580_v27 = vld [vmem:[%s10668_s1 + $0xee8] sm:$0xff]  }
 0x1a8   :  { %7866 = vmatpush3.bf16.msra.mxu0 %v8532_v29  ;;  %v8582_v29 = vld [vmem:[%s10668_s1 + $0xea8] sm:$0xff]  }
 0x1a9   :  { %7867 = vmatprep.subr.bf16.mxu0 %v8534_v31 }
 0x1aa   :  { %7888 = vmatpush3.bf16.msra.mxu1 %v8533_v30  ;;  %v8583_v30 = vld [vmem:[%s10668_s1 + $0xe70] sm:$0xff]  }
 0x1ab   :  { %7889 = vmatprep.subr.bf16.mxu1 %v8535_v32  ;;  %v8584_v32 = vld [vmem:[%s10668_s1 + $0xef0] sm:$0xff]  }
 0x1ac   :  { %7868 = vmatpush3.bf16.msra.mxu0 %v8536_v33 }
 0x1ad   :  { %7869 = vmatprep.subr.bf16.mxu0 %v8538_v35 }
 0x1ae   :  { %7890 = vmatpush3.bf16.msra.mxu1 %v8537_v34  ;;  %v8585_v34 = vld [vmem:[%s10668_s1 + $0xe30] sm:$0xff]  }
 0x1af   :  { %7891 = vmatprep.subr.bf16.mxu1 %v8539_v36 }
 0x1b0   :  { %7870 = vmatpush3.bf16.msra.mxu0 %v8540_v37 }
 0x1b1   :  { %7871 = vmatprep.subr.bf16.mxu0 %v8542_v39 }
 0x1b2   :  { %7892 = vmatpush3.bf16.msra.mxu1 %v8541_v38  ;;  %v8586_v38 = vld [vmem:[%s10668_s1 + $0xeb0] sm:$0xff]  }
 0x1b3   :  { %7893 = vmatprep.subr.bf16.mxu1 %v8543_v40 }
 0x1b4   :  { %7872 = vmatpush3.bf16.msra.mxu0 %v8544_v42  ;;  %v8587_v42 = vld [vmem:[%s10668_s1 + $0xe78] sm:$0xff]  }
 0x1b5   :  { %7873 = vmatprep.subr.bf16.mxu0 %v8546_v44 }
 0x1b6   :  { %7894 = vmatpush3.bf16.msra.mxu1 %v8545_v43  ;;  %v7571_v49 = vpop.f32.mrb[24].mxu0  ;;  %v8588_v43 = vld [vmem:[%s10668_s1 + $0xef8] sm:$0xff]  }
 0x1b7   :  { %v7572_v51 = vpop.f32.mrb[25].mxu0  ;;  %7895 = vmatprep.subr.bf16.mxu1 %v8547_v45 }
 0x1b8   :  { %v7593_v53 = vpop.f32.mrb[24].mxu1  ;;  %v7573_v54 = vadd.f32 %v7572_v51, %v7571_v49  ;;  %v7574_v55 = vpop.f32.mrb[26].mxu0  ;;  %7874 = vmatpush3.bf16.msra.mxu0 %v8548_v46  ;;  %v8589_v49 = vld [vmem:[%s10668_s1 + $0xe38] sm:$0xff]  }
 0x1b9   :  { %v7594_v58 = vpop.f32.mrb[25].mxu1  ;;  %v7575_v59 = vpop.f32.mrb[27].mxu0  ;;  %7875 = vmatprep.subr.bf16.mxu0 %v8550_v48 }
 0x1ba   :  { %v5683_v60 = vadd.f32 %v7573_v54, %v10104_v12  ;;  %v7595_v61 = vadd.f32 %v7594_v58, %v7593_v53  ;;  %v7596_v62 = vpop.f32.mrb[26].mxu1  ;;  %7896 = vmatpush3.bf16.msra.mxu1 %v8549_v47  ;;  %v8565_v12 = vld [vmem:[%s10668_s1 + $0xe08] sm:$0xff]   ;;  %v29_v47 = vld [vmem:[%s10667_s0 + $0x38] sm:$0xff]  ;;  %v8592_v58 = vld [vmem:[%s10668_s1 + $0xfc0] sm:$0xff]  }
 0x1bb   :  { %v7597_v0 = vpop.f32.mrb[27].mxu1  ;;  %7897 = vmatprep.subr.bf16.mxu1 %v8551_v50  ;;  %v1549_v50 = vrot.slane %v29_v47, %v8856_v41  ;;  %v1542_v51 = vcombine.high %v29_v47, %v29_v47  ;;  %v8590_v53 = vld [vmem:[%s10668_s1 + $0xeb8] sm:$0xff]   ;;  %v8594_v62 = vld [vmem:[%s10668_s1 + $0xf80] sm:$0xff]  }
 0x1bc   :  { %v10211_v2 = vadd.f32 %v7595_v61, %v5683_v60  ;;  %7876 = vmatpush3.bf16.msra.mxu0 %v8552_v52  ;;  %v8593_v60 = vld [vmem:[%s10668_s1 + $0xf00] sm:$0xff]  }
 0x1bd   :  { %7877 = vmatprep.subr.bf16.mxu0 %v8554_v57  ;;  %v1557_v54 = vcombine.high %v1549_v50, %v1549_v50  ;;  %v1565_v55 = vrot.slane %v1549_v50, %v8856_v41  ;;  %v10326_v57 = vrot.slane %v1542_v51, %v8856_v41  ;;  %v8626_v47 = vld [vmem:[%s10668_s1 + $0x1000] sm:$0xff]   ;;  %v8628_v50 = vld [vmem:[%s10668_s1 + $0x1048] sm:$0xff]  }
 0x1be   :  { %7898 = vmatpush3.bf16.msra.mxu1 %v8553_v56  ;;  %v8591_v56 = vld [vmem:[%s10668_s1 + $0xf40] sm:$0xff]   ;;  %v8629_v51 = vld [vmem:[%s10668_s1 + $0x10c8] sm:$0xff]  }
 0x1bf   :  { %7899 = vmatprep.subr.bf16.mxu1 %v8555_v63  ;;  %v1579_v59 = vrot.slane %v1557_v54, %v8856_v41  ;;  %v1558_v61 = vcombine.high %v10326_v57, %v10326_v57  ;;  %v1587_v0 = vcombine.high %v1565_v55, %v1565_v55  ;;  %v8632_v54 = vld [vmem:[%s10668_s1 + $0x1050] sm:$0xff]  }
 0x1c0   :  { %7878 = vmatpush3.bf16.msra.mxu0 %v8556_v1  ;;  %v8595_v1 = vld [vmem:[%s10668_s1 + $0xf48] sm:$0xff]  }
 0x1c1   :  { %7907 = vmatprep.subr.bf16.mxu0 %v8559_v5  ;;  %v1589_v63 = vcombine.high %v1579_v59, %v1579_v59 }
 0x1c2   :  { %7900 = vmatpush3.bf16.msra.mxu1 %v8557_v3  ;;  %v8596_v3 = vld [vmem:[%s10668_s1 + $0xfc8] sm:$0xff]  }
 0x1c3   :  { %6241 = vmatmul.mubr.bf16.vlgmr.msra.gmra.mrb[52].mxu0 %v1523_v4  ;;  %7929 = vmatprep.subr.bf16.mxu1 %v8560_v6  ;;  %v8597_v4 = vld [vmem:[%s10668_s1 + $0xf08] sm:$0xff]  }
 0x1c4   :  { %7908 = vmatpush3.bf16.msra.mxu0 %v8561_v7  ;;  %6320 = vmatprep.mubr.bf16.mxu0 %v1579_v59  ;;  %v8598_v6 = vld [vmem:[%s10668_s1 + $0xf88] sm:$0xff]   ;;  %v8599_v7 = vld [vmem:[%s10668_s1 + $0xf50] sm:$0xff]   ;;  %v8637_v59 = vld [vmem:[%s10668_s1 + $0x10d8] sm:$0xff]  }
 0x1c5   :  { %6281 = vmatmul.mubr.bf16.vlgmr.msra.gmra.mrb[52].mxu1 %v1539_v9  ;;  %7909 = vmatprep.subr.bf16.mxu0 %v8563_v10  ;;  %v8601_v9 = vld [vmem:[%s10668_s1 + $0xf10] sm:$0xff]  }
 0x1c6   :  { %7930 = vmatpush3.bf16.msra.mxu1 %v8562_v8  ;;  %6360 = vmatprep.mubr.bf16.mxu1 %v1589_v63  ;;  %v8600_v8 = vld [vmem:[%s10668_s1 + $0xfd0] sm:$0xff]   ;;  %v8641_v63 = vld [vmem:[%s10668_s1 + $0x10e0] sm:$0xff]  }
 0x1c7   :  { %7931 = vmatprep.subr.bf16.mxu1 %v8564_v11  ;;  %v8602_v10 = vld [vmem:[%s10668_s1 + $0xf90] sm:$0xff]   ;;  %v8603_v11 = vld [vmem:[%s10668_s1 + $0xf58] sm:$0xff]  }
 0x1c8   :  { %7910 = vmatpush3.bf16.msra.mxu0 %v8565_v12  ;;  %v8604_v12 = vld [vmem:[%s10668_s1 + $0xfd8] sm:$0xff]  }
 0x1c9   :  { %7911 = vmatprep.subr.bf16.mxu0 %v8567_v14  ;;  %v8606_v14 = vld [vmem:[%s10668_s1 + $0xf98] sm:$0xff]  }
 0x1ca   :  { %7932 = vmatpush3.bf16.msra.mxu1 %v8566_v13  ;;  %v8605_v13 = vld [vmem:[%s10668_s1 + $0xf18] sm:$0xff]  }
 0x1cb   :  { %7933 = vmatprep.subr.bf16.mxu1 %v8568_v15  ;;  %v8607_v15 = vld [vmem:[%s10668_s1 + $0xf60] sm:$0xff]  }
 0x1cc   :  { %7912 = vmatpush3.bf16.msra.mxu0 %v8569_v16  ;;  %v8608_v16 = vld [vmem:[%s10668_s1 + $0xfe0] sm:$0xff]  }
 0x1cd   :  { %7913 = vmatprep.subr.bf16.mxu0 %v8571_v18  ;;  %v8610_v18 = vld [vmem:[%s10668_s1 + $0xfa0] sm:$0xff]  }
 0x1ce   :  { %7934 = vmatpush3.bf16.msra.mxu1 %v8570_v17  ;;  %v8609_v17 = vld [vmem:[%s10668_s1 + $0xf20] sm:$0xff]  }
 0x1cf   :  { %7935 = vmatprep.subr.bf16.mxu1 %v8572_v19  ;;  %v8611_v19 = vld [vmem:[%s10668_s1 + $0xf68] sm:$0xff]  }
 0x1d0   :  { %7914 = vmatpush3.bf16.msra.mxu0 %v8573_v20  ;;  %v8612_v20 = vld [vmem:[%s10668_s1 + $0xfe8] sm:$0xff]  }
 0x1d1   :  { %7915 = vmatprep.subr.bf16.mxu0 %v8575_v22  ;;  %v8614_v22 = vld [vmem:[%s10668_s1 + $0xfa8] sm:$0xff]  }
 0x1d2   :  { %7936 = vmatpush3.bf16.msra.mxu1 %v8574_v21  ;;  %v8613_v21 = vld [vmem:[%s10668_s1 + $0xf28] sm:$0xff]  }
 0x1d3   :  { %7937 = vmatprep.subr.bf16.mxu1 %v8576_v23  ;;  %v8615_v23 = vld [vmem:[%s10668_s1 + $0xf70] sm:$0xff]  }
 0x1d4   :  { %7916 = vmatpush3.bf16.msra.mxu0 %v8577_v24 }
 0x1d5   :  { %7917 = vmatprep.subr.bf16.mxu0 %v8579_v26 }
 0x1d6   :  { %7938 = vmatpush3.bf16.msra.mxu1 %v8578_v25  ;;  %v7615_v31 = vpop.f32.mrb[28].mxu0  ;;  %v8616_v25 = vld [vmem:[%s10668_s1 + $0xff0] sm:$0xff]  }
 0x1d7   :  { %v7616_v33 = vpop.f32.mrb[29].mxu0  ;;  %7939 = vmatprep.subr.bf16.mxu1 %v8580_v27  ;;  %v8617_v27 = vld [vmem:[%s10668_s1 + $0xf30] sm:$0xff]  }
 0x1d8   :  { %v7637_v35 = vpop.f32.mrb[28].mxu1  ;;  %v7617_v36 = vadd.f32 %v7616_v33, %v7615_v31  ;;  %v7618_v37 = vpop.f32.mrb[30].mxu0  ;;  %7918 = vmatpush3.bf16.msra.mxu0 %v8581_v28  ;;  %v8618_v31 = vld [vmem:[%s10668_s1 + $0xfb0] sm:$0xff]  }
 0x1d9   :  { %v7638_v39 = vpop.f32.mrb[29].mxu1  ;;  %v7619_v40 = vpop.f32.mrb[31].mxu0  ;;  %7919 = vmatprep.subr.bf16.mxu0 %v8583_v30 }
 0x1da   :  { %v5763_v44 = vadd.f32 %v7617_v36, %v10211_v2  ;;  %v7639_v45 = vadd.f32 %v7638_v39, %v7637_v35  ;;  %v7640_v46 = vpop.f32.mrb[30].mxu1  ;;  %7940 = vmatpush3.bf16.msra.mxu1 %v8582_v29  ;;  %v1586_v2 = vrot.slane %v1558_v61, %v8856_v41  ;;  %v8621_v40 = vld [vmem:[%s10668_s1 + $0xf38] sm:$0xff]  }
 0x1db   :  { %v7641_v48 = vpop.f32.mrb[31].mxu1  ;;  %7941 = vmatprep.subr.bf16.mxu1 %v8584_v32  ;;  %v8619_v32 = vld [vmem:[%s10668_s1 + $0xf78] sm:$0xff]   ;;  %v8625_v46 = vld [vmem:[%s10668_s1 + $0x10c0] sm:$0xff]  }
 0x1dc   :  { %v10316_v52 = vadd.f32 %v7639_v45, %v5763_v44  ;;  %7920 = vmatpush3.bf16.msra.mxu0 %v8585_v34  ;;  %v1590_v5 = vcombine.high %v1586_v2, %v1586_v2  ;;  %v1572_v44 = vrot.slane %v10326_v57, %v8856_v41  ;;  %v8624_v45 = vld [vmem:[%s10668_s1 + $0x1040] sm:$0xff]   ;;  %v8635_v57 = vld [vmem:[%s10668_s1 + $0x1090] sm:$0xff]   ;;  %v8639_v61 = vld [vmem:[%s10668_s1 + $0x1098] sm:$0xff]  }
 0x1dd   :  { %7921 = vmatprep.subr.bf16.mxu0 %v8587_v42  ;;  %v8627_v48 = vld [vmem:[%s10668_s1 + $0x1080] sm:$0xff]  }
 0x1de   :  { %7942 = vmatpush3.bf16.msra.mxu1 %v8586_v38  ;;  %v8620_v38 = vld [vmem:[%s10668_s1 + $0xff8] sm:$0xff]  }
 0x1df   :  { %7943 = vmatprep.subr.bf16.mxu1 %v8588_v43  ;;  %v8622_v43 = vld [vmem:[%s10668_s1 + $0xfb8] sm:$0xff]  }
 0x1e0   :  { %7922 = vmatpush3.bf16.msra.mxu0 %v8589_v49  ;;  %v1588_v49 = vcombine.high %v1572_v44, %v1572_v44 }
 0x1e1   :  { %7951 = vmatprep.subr.bf16.mxu0 %v8591_v56  ;;  %v8634_v56 = vld [vmem:[%s10668_s1 + $0x1010] sm:$0xff]  }
 0x1e2   :  { %7944 = vmatpush3.bf16.msra.mxu1 %v8590_v53  ;;  %v8631_v53 = vld [vmem:[%s10668_s1 + $0x1088] sm:$0xff]  }
 0x1e3   :  { %6321 = vmatmul.mubr.bf16.vlgmr.msra.gmra.mrb[56].mxu0 %v1565_v55  ;;  %7973 = vmatprep.subr.bf16.mxu1 %v8592_v58  ;;  %v8633_v55 = vld [vmem:[%s10668_s1 + $0x10d0] sm:$0xff]   ;;  %v8636_v58 = vld [vmem:[%s10668_s1 + $0x1058] sm:$0xff]  }
 0x1e4   :  { %7952 = vmatpush3.bf16.msra.mxu0 %v8593_v60  ;;  %6400 = vmatprep.mubr.bf16.mxu0 %v1586_v2  ;;  %v8638_v60 = vld [vmem:[%s10668_s1 + $0x1018] sm:$0xff]   ;;  %v8644_v2 = vld [vmem:[%s10668_s1 + $0x1068] sm:$0xff]  }
 0x1e5   :  { %6361 = vmatmul.mubr.bf16.vlgmr.msra.gmra.mrb[56].mxu1 %v1587_v0  ;;  %7953 = vmatprep.subr.bf16.mxu0 %v8595_v1  ;;  %v8642_v0 = vld [vmem:[%s10668_s1 + $0x1020] sm:$0xff]  }
 0x1e6   :  { %7974 = vmatpush3.bf16.msra.mxu1 %v8594_v62  ;;  %6440 = vmatprep.mubr.bf16.mxu1 %v1590_v5  ;;  %v8640_v62 = vld [vmem:[%s10668_s1 + $0x1060] sm:$0xff]   ;;  %v8647_v5 = vld [vmem:[%s10668_s1 + $0x10a8] sm:$0xff]  }
 0x1e7   :  { %7975 = vmatprep.subr.bf16.mxu1 %v8596_v3  ;;  %v8643_v1 = vld [vmem:[%s10668_s1 + $0x10a0] sm:$0xff]   ;;  %v8645_v3 = vld [vmem:[%s10668_s1 + $0x10e8] sm:$0xff]  }
 0x1e8   :  { %7954 = vmatpush3.bf16.msra.mxu0 %v8597_v4  ;;  %v8646_v4 = vld [vmem:[%s10668_s1 + $0x1028] sm:$0xff]  }
 0x1e9   :  { %7955 = vmatprep.subr.bf16.mxu0 %v8599_v7 }
 0x1ea   :  { %7976 = vmatpush3.bf16.msra.mxu1 %v8598_v6  ;;  %v8648_v6 = vld [vmem:[%s10668_s1 + $0x1070] sm:$0xff]  }
 0x1eb   :  { %7977 = vmatprep.subr.bf16.mxu1 %v8600_v8  ;;  %v8649_v8 = vld [vmem:[%s10668_s1 + $0x10f0] sm:$0xff]  }
 0x1ec   :  { %7956 = vmatpush3.bf16.msra.mxu0 %v8601_v9 }
 0x1ed   :  { %7957 = vmatprep.subr.bf16.mxu0 %v8603_v11 }
 0x1ee   :  { %7978 = vmatpush3.bf16.msra.mxu1 %v8602_v10  ;;  %v8650_v10 = vld [vmem:[%s10668_s1 + $0x1030] sm:$0xff]  }
 0x1ef   :  { %7979 = vmatprep.subr.bf16.mxu1 %v8604_v12 }
 0x1f0   :  { %7958 = vmatpush3.bf16.msra.mxu0 %v8605_v13 }
 0x1f1   :  { %7959 = vmatprep.subr.bf16.mxu0 %v8607_v15 }
 0x1f2   :  { %7980 = vmatpush3.bf16.msra.mxu1 %v8606_v14  ;;  %v8651_v14 = vld [vmem:[%s10668_s1 + $0x10b0] sm:$0xff]  }
 0x1f3   :  { %7981 = vmatprep.subr.bf16.mxu1 %v8608_v16 }
 0x1f4   :  { %7960 = vmatpush3.bf16.msra.mxu0 %v8609_v17  ;;  %v8652_v17 = vld [vmem:[%s10668_s1 + $0x1078] sm:$0xff]  }
 0x1f5   :  { %7961 = vmatprep.subr.bf16.mxu0 %v8611_v19 }
 0x1f6   :  { %7982 = vmatpush3.bf16.msra.mxu1 %v8610_v18  ;;  %v7659_v24 = vpop.f32.mrb[32].mxu0  ;;  %v8653_v18 = vld [vmem:[%s10668_s1 + $0x10f8] sm:$0xff]  }
 0x1f7   :  { %v7660_v26 = vpop.f32.mrb[33].mxu0  ;;  %7983 = vmatprep.subr.bf16.mxu1 %v8612_v20 }
 0x1f8   :  { %v7681_v28 = vpop.f32.mrb[32].mxu1  ;;  %v7661_v29 = vadd.f32 %v7660_v26, %v7659_v24  ;;  %v7662_v30 = vpop.f32.mrb[34].mxu0  ;;  %7962 = vmatpush3.bf16.msra.mxu0 %v8613_v21  ;;  %v30_v24 = vld [vmem:[%s10667_s0 + $0x40] sm:$0xff]  ;;  %v8655_v26 = vld [vmem:[%s10668_s1 + $0x10b8] sm:$0xff]  }
 0x1f9   :  { %v7682_v33 = vpop.f32.mrb[33].mxu1  ;;  %v7663_v34 = vpop.f32.mrb[35].mxu0  ;;  %7963 = vmatprep.subr.bf16.mxu0 %v8615_v23 }
 0x1fa   :  { %v5843_v35 = vadd.f32 %v7661_v29, %v10316_v52  ;;  %v7683_v36 = vadd.f32 %v7682_v33, %v7681_v28  ;;  %v7684_v37 = vpop.f32.mrb[34].mxu1  ;;  %7984 = vmatpush3.bf16.msra.mxu1 %v8614_v22  ;;  %v8630_v52 = vld [vmem:[%s10668_s1 + $0x1008] sm:$0xff]   ;;  %v8654_v22 = vld [vmem:[%s10668_s1 + $0x1038] sm:$0xff]   ;;  %v1591_v28 = vcombine.high %v30_v24, %v30_v24  ;;  %v8656_v29 = vld [vmem:[%s10668_s1 + $0x1140] sm:$0xff]  }
 0x1fb   :  { %v7685_v39 = vpop.f32.mrb[35].mxu1  ;;  %7985 = vmatprep.subr.bf16.mxu1 %v8616_v25  ;;  %v8658_v34 = vld [vmem:[%s10668_s1 + $0x1100] sm:$0xff]  }
 0x1fc   :  { %v10423_v42 = vadd.f32 %v7683_v36, %v5843_v35  ;;  %7964 = vmatpush3.bf16.msra.mxu0 %v8617_v27  ;;  %v1598_v27 = vrot.slane %v30_v24, %v8856_v41  ;;  %v10541_v33 = vrot.slane %v1591_v28, %v8856_v41  ;;  %v8659_v36 = vld [vmem:[%s10668_s1 + $0x1180] sm:$0xff]   ;;  %v8660_v39 = vld [vmem:[%s10668_s1 + $0x1148] sm:$0xff]  }
 0x1fd   :  { %7965 = vmatprep.subr.bf16.mxu0 %v8619_v32  ;;  %v8657_v32 = vld [vmem:[%s10668_s1 + $0x11c0] sm:$0xff]  }
 0x1fe   :  { %7986 = vmatpush3.bf16.msra.mxu1 %v8618_v31  ;;  %v1606_v30 = vcombine.high %v1598_v27, %v1598_v27  ;;  %v1614_v31 = vrot.slane %v1598_v27, %v8856_v41  ;;  %v1607_v37 = vcombine.high %v10541_v33, %v10541_v33 }
 0x1ff   :  { %7987 = vmatprep.subr.bf16.mxu1 %v8620_v38 }
 0x200   :  { %7966 = vmatpush3.bf16.msra.mxu0 %v8621_v40  ;;  %v1628_v35 = vrot.slane %v1606_v30, %v8856_v41  ;;  %v1636_v38 = vcombine.high %v1614_v31, %v1614_v31 }
 0x201   :  { %7995 = vmatprep.subr.bf16.mxu0 %v8624_v45  ;;  %v8663_v45 = vld [vmem:[%s10668_s1 + $0x1188] sm:$0xff]  }
 0x202   :  { %7988 = vmatpush3.bf16.msra.mxu1 %v8622_v43  ;;  %v1638_v40 = vcombine.high %v1628_v35, %v1628_v35  ;;  %v1635_v43 = vrot.slane %v1607_v37, %v8856_v41 }
 0x203   :  { %6401 = vmatmul.mubr.bf16.vlgmr.msra.gmra.mrb[60].mxu0 %v1572_v44  ;;  %8017 = vmatprep.subr.bf16.mxu1 %v8625_v46  ;;  %v8662_v44 = vld [vmem:[%s10668_s1 + $0x1108] sm:$0xff]  }
 0x204   :  { %7996 = vmatpush3.bf16.msra.mxu0 %v8626_v47  ;;  %6480 = vmatprep.mubr.bf16.mxu0 %v1628_v35  ;;  %v1639_v46 = vcombine.high %v1635_v43, %v1635_v43  ;;  %v8664_v47 = vld [vmem:[%s10668_s1 + $0x1150] sm:$0xff]  }
 0x205   :  { %6441 = vmatmul.mubr.bf16.vlgmr.msra.gmra.mrb[60].mxu1 %v1588_v49  ;;  %7997 = vmatprep.subr.bf16.mxu0 %v8628_v50  ;;  %v8666_v49 = vld [vmem:[%s10668_s1 + $0x1110] sm:$0xff]  }
 0x206   :  { %8018 = vmatpush3.bf16.msra.mxu1 %v8627_v48  ;;  %6520 = vmatprep.mubr.bf16.mxu1 %v1638_v40  ;;  %v8665_v48 = vld [vmem:[%s10668_s1 + $0x11d0] sm:$0xff]  }
 0x207   :  { %8019 = vmatprep.subr.bf16.mxu1 %v8629_v51  ;;  %v8667_v50 = vld [vmem:[%s10668_s1 + $0x1190] sm:$0xff]   ;;  %v8668_v51 = vld [vmem:[%s10668_s1 + $0x1158] sm:$0xff]  }
 0x208   :  { %7998 = vmatpush3.bf16.msra.mxu0 %v8630_v52  ;;  %v8669_v52 = vld [vmem:[%s10668_s1 + $0x11d8] sm:$0xff]  }
 0x209   :  { %7999 = vmatprep.subr.bf16.mxu0 %v8632_v54  ;;  %v8671_v54 = vld [vmem:[%s10668_s1 + $0x1198] sm:$0xff]  }
 0x20a   :  { %8020 = vmatpush3.bf16.msra.mxu1 %v8631_v53  ;;  %v8670_v53 = vld [vmem:[%s10668_s1 + $0x1118] sm:$0xff]  }
 0x20b   :  { %8021 = vmatprep.subr.bf16.mxu1 %v8633_v55  ;;  %v8672_v55 = vld [vmem:[%s10668_s1 + $0x1160] sm:$0xff]  }
 0x20c   :  { %8000 = vmatpush3.bf16.msra.mxu0 %v8634_v56  ;;  %v8673_v56 = vld [vmem:[%s10668_s1 + $0x11e0] sm:$0xff]  }
 0x20d   :  { %8001 = vmatprep.subr.bf16.mxu0 %v8636_v58  ;;  %v8675_v58 = vld [vmem:[%s10668_s1 + $0x11a0] sm:$0xff]  }
 0x20e   :  { %8022 = vmatpush3.bf16.msra.mxu1 %v8635_v57  ;;  %v8674_v57 = vld [vmem:[%s10668_s1 + $0x1120] sm:$0xff]  }
 0x20f   :  { %8023 = vmatprep.subr.bf16.mxu1 %v8637_v59  ;;  %v8676_v59 = vld [vmem:[%s10668_s1 + $0x1168] sm:$0xff]  }
 0x210   :  { %8002 = vmatpush3.bf16.msra.mxu0 %v8638_v60  ;;  %v8677_v60 = vld [vmem:[%s10668_s1 + $0x11e8] sm:$0xff]  }
 0x211   :  { %8003 = vmatprep.subr.bf16.mxu0 %v8640_v62  ;;  %v8679_v62 = vld [vmem:[%s10668_s1 + $0x11a8] sm:$0xff]  }
 0x212   :  { %8024 = vmatpush3.bf16.msra.mxu1 %v8639_v61  ;;  %v8678_v61 = vld [vmem:[%s10668_s1 + $0x1128] sm:$0xff]  }
 0x213   :  { %8025 = vmatprep.subr.bf16.mxu1 %v8641_v63  ;;  %v8680_v63 = vld [vmem:[%s10668_s1 + $0x1170] sm:$0xff]  }
 0x214   :  { %8004 = vmatpush3.bf16.msra.mxu0 %v8642_v0 }
 0x215   :  { %8005 = vmatprep.subr.bf16.mxu0 %v8644_v2 }
 0x216   :  { %8026 = vmatpush3.bf16.msra.mxu1 %v8643_v1  ;;  %v7703_v7 = vpop.f32.mrb[36].mxu0  ;;  %v8681_v1 = vld [vmem:[%s10668_s1 + $0x11f0] sm:$0xff]  }
 0x217   :  { %v7704_v9 = vpop.f32.mrb[37].mxu0  ;;  %8027 = vmatprep.subr.bf16.mxu1 %v8645_v3  ;;  %v8682_v3 = vld [vmem:[%s10668_s1 + $0x1130] sm:$0xff]  }
 0x218   :  { %v7725_v11 = vpop.f32.mrb[36].mxu1  ;;  %v7705_v12 = vadd.f32 %v7704_v9, %v7703_v7  ;;  %v7706_v13 = vpop.f32.mrb[38].mxu0  ;;  %8006 = vmatpush3.bf16.msra.mxu0 %v8646_v4  ;;  %v8683_v7 = vld [vmem:[%s10668_s1 + $0x11b0] sm:$0xff]  }
 0x219   :  { %v7726_v15 = vpop.f32.mrb[37].mxu1  ;;  %v7707_v16 = vpop.f32.mrb[39].mxu0  ;;  %8007 = vmatprep.subr.bf16.mxu0 %v8648_v6 }
 0x21a   :  { %v5923_v19 = vadd.f32 %v7705_v12, %v10423_v42  ;;  %v7727_v20 = vadd.f32 %v7726_v15, %v7725_v11  ;;  %v7728_v21 = vpop.f32.mrb[38].mxu1  ;;  %8028 = vmatpush3.bf16.msra.mxu1 %v8647_v5  ;;  %v8661_v42 = vld [vmem:[%s10668_s1 + $0x11c8] sm:$0xff]   ;;  %v8686_v16 = vld [vmem:[%s10668_s1 + $0x1138] sm:$0xff]  }
 0x21b   :  { %v7729_v23 = vpop.f32.mrb[39].mxu1  ;;  %8029 = vmatprep.subr.bf16.mxu1 %v8649_v8  ;;  %v8684_v8 = vld [vmem:[%s10668_s1 + $0x1178] sm:$0xff]  }
 0x21c   :  { %v10527_v25 = vadd.f32 %v7727_v20, %v5923_v19  ;;  %8008 = vmatpush3.bf16.msra.mxu0 %v8650_v10  ;;  %v1621_v19 = vrot.slane %v10541_v33, %v8856_v41 }
 0x21d   :  { %8009 = vmatprep.subr.bf16.mxu0 %v8652_v17 }
 0x21e   :  { %8030 = vmatpush3.bf16.msra.mxu1 %v8651_v14  ;;  %v8685_v14 = vld [vmem:[%s10668_s1 + $0x11f8] sm:$0xff]  }
 0x21f   :  { %8031 = vmatprep.subr.bf16.mxu1 %v8653_v18  ;;  %v8687_v18 = vld [vmem:[%s10668_s1 + $0x11b8] sm:$0xff]  }
 0x220   :  { %8010 = vmatpush3.bf16.msra.mxu0 %v8654_v22 }
 0x221   :  { %8039 = vmatprep.subr.bf16.mxu0 %v8656_v29 }
 0x222   :  { %8032 = vmatpush3.bf16.msra.mxu1 %v8655_v26 }
 0x223   :  { %6481 = vmatmul.mubr.bf16.vlgmr.msra.gmra.mrb[64].mxu0 %v1614_v31  ;;  %8061 = vmatprep.subr.bf16.mxu1 %v8657_v32 }
 0x224   :  { %8040 = vmatpush3.bf16.msra.mxu0 %v8658_v34  ;;  %6560 = vmatprep.mubr.bf16.mxu0 %v1635_v43 }
 0x225   :  { %6521 = vmatmul.mubr.bf16.vlgmr.msra.gmra.mrb[64].mxu1 %v1636_v38  ;;  %8041 = vmatprep.subr.bf16.mxu0 %v8660_v39 }
 0x226   :  { %8062 = vmatpush3.bf16.msra.mxu1 %v8659_v36  ;;  %6600 = vmatprep.mubr.bf16.mxu1 %v1639_v46 }
 0x227   :  { %8063 = vmatprep.subr.bf16.mxu1 %v8661_v42 }
 0x228   :  { %8042 = vmatpush3.bf16.msra.mxu0 %v8662_v44 }
 0x229   :  { %8043 = vmatprep.subr.bf16.mxu0 %v8664_v47 }
 0x22a   :  { %8064 = vmatpush3.bf16.msra.mxu1 %v8663_v45 }
 0x22b   :  { %8065 = vmatprep.subr.bf16.mxu1 %v8665_v48 }
 0x22c   :  { %8044 = vmatpush3.bf16.msra.mxu0 %v8666_v49 }
 0x22d   :  { %8045 = vmatprep.subr.bf16.mxu0 %v8668_v51 }
 0x22e   :  { %8066 = vmatpush3.bf16.msra.mxu1 %v8667_v50 }
 0x22f   :  { %8067 = vmatprep.subr.bf16.mxu1 %v8669_v52 }
 0x230   :  { %8046 = vmatpush3.bf16.msra.mxu0 %v8670_v53 }
 0x231   :  { %8047 = vmatprep.subr.bf16.mxu0 %v8672_v55 }
 0x232   :  { %8068 = vmatpush3.bf16.msra.mxu1 %v8671_v54 }
 0x233   :  { %8069 = vmatprep.subr.bf16.mxu1 %v8673_v56 }
 0x234   :  { %8048 = vmatpush3.bf16.msra.mxu0 %v8674_v57 }
 0x235   :  { %8049 = vmatprep.subr.bf16.mxu0 %v8676_v59 }
 0x236   :  { %8070 = vmatpush3.bf16.msra.mxu1 %v8675_v58  ;;  %v7747_v0 = vpop.f32.mrb[40].mxu0 }
 0x237   :  { %v7748_v2 = vpop.f32.mrb[41].mxu0  ;;  %8071 = vmatprep.subr.bf16.mxu1 %v8677_v60 }
 0x238   :  { %v7769_v4 = vpop.f32.mrb[40].mxu1  ;;  %v7749_v5 = vadd.f32 %v7748_v2, %v7747_v0  ;;  %v7750_v6 = vpop.f32.mrb[42].mxu0  ;;  %8050 = vmatpush3.bf16.msra.mxu0 %v8678_v61 }
 0x239   :  { %v7770_v9 = vpop.f32.mrb[41].mxu1  ;;  %v7751_v10 = vpop.f32.mrb[43].mxu0  ;;  %8051 = vmatprep.subr.bf16.mxu0 %v8680_v63 }
 0x23a   :  { %v6003_v11 = vadd.f32 %v7749_v5, %v10527_v25  ;;  %v7771_v12 = vadd.f32 %v7770_v9, %v7769_v4  ;;  %v7772_v13 = vpop.f32.mrb[42].mxu1  ;;  %8072 = vmatpush3.bf16.msra.mxu1 %v8679_v62 }
 0x23b   :  { %v7773_v15 = vpop.f32.mrb[43].mxu1  ;;  %8073 = vmatprep.subr.bf16.mxu1 %v8681_v1 }
 0x23c   :  { %v6043_v17 = vadd.f32 %v7771_v12, %v6003_v11  ;;  %8052 = vmatpush3.bf16.msra.mxu0 %v8682_v3 }
 0x23d   :  { %8053 = vmatprep.subr.bf16.mxu0 %v8684_v8 }
 0x23e   :  { %8074 = vmatpush3.bf16.msra.mxu1 %v8683_v7 }
 0x23f   :  { %10 = vsyncpa [#allocation3], 0  ;;  %8075 = vmatprep.subr.bf16.mxu1 %v8685_v14  ;;  %v1637_v20 = vcombine.high %v1621_v19, %v1621_v19  ;;  %v8689_v45 = vld [vmem:[%s10670_s3] sm:$0xff]   ;;  %v8718_v46 = vmov 0.0   ;;  %v8690_v49 = vld [vmem:[%s10670_s3 + $0x8] sm:$0xff]   ;;  %vm8719_vm0 = vmmov 0  }
 0x240   :  { %8054 = vmatpush3.bf16.msra.mxu0 %v8686_v16  ;;  %v8691_v59 = vld [vmem:[%s10670_s3 + $0x10] sm:$0xff]   ;;  %v8692_v61 = vld [vmem:[%s10670_s3 + $0x18] sm:$0xff]   ;;  %vm6649_vm1 = vcmask 523264   ;;  %s8720_s19 = smov [#allocation2]  }
 0x241   :  { %8088 = vmatprep.subr.bf16.mxu0 %v8718_v46  ;;  %s6700_s20 = sshll.u32 %s8720_s19, 4  ;;  %s6701_s20 = int_to_ptr.vmem [resolvable:$true] %s6700_s20 }
 0x242   :  { %8076 = vmatpush3.bf16.msra.mxu1 %v8687_v18  ;;  %s8693_s21 = scalar_lea.vmem %s6701_s20, 32  ;;  %p8698_p1 = scmp.lt.s32.totalorder %s6701_s20, %s6701_s20 }
 0x243   :  { %6561 = vmatmul.mubr.bf16.vlgmr.msra.gmra.mrb[68].mxu0 %v1621_v19  ;;  %p8694_p0 = scmp.ne.s32.totalorder %s6701_s20, %s8693_s21  ;;  %p8699_p2 = scmp.lt.s32.totalorder %s8693_s21, %s8693_s21 }
 0x244   :  { %8089 = vmatpush3.bf16.msra.mxu0 %v8689_v45  ;;  %8096 = vmatprep.mubr.msk.bf16.mxu0 %vm8719_vm0, %v8718_v46 }
 0x245   :  { %6601 = vmatmul.mubr.bf16.vlgmr.msra.gmra.mrb[68].mxu1 %v1637_v20  ;;  %8090 = vmatprep.subr.bf16.mxu0 %v8718_v46  ;;  %p8700_p3 = por %p8699_p2, %p8698_p1 }
 0x247   :  { %p8701_p4 = pnand %p8700_p3, %p8694_p0 }
 0x248   :  { %8091 = vmatpush3.bf16.msra.mxu0 %v8690_v49 }
 0x249   :  { %8092 = vmatprep.subr.bf16.mxu0 %v8718_v46 }
 0x24c   :  { %8093 = vmatpush3.bf16.msra.mxu0 %v8691_v59 }
 0x24d   :  { %8094 = vmatprep.subr.bf16.mxu0 %v8718_v46 }
 0x250   :  { %8095 = vmatpush3.bf16.msra.mxu0 %v8692_v61 }
 0x256   :  { %v7791_v21 = vpop.f32.mrb[44].mxu0 }
 0x257   :  { %v7792_v22 = vpop.f32.mrb[45].mxu0 }
 0x258   :  { %v7813_v23 = vpop.f32.mrb[44].mxu1  ;;  %v7793_v24 = vadd.f32 %v7792_v22, %v7791_v21  ;;  %v7794_v25 = vpop.f32.mrb[46].mxu0 }
 0x259   :  { %v7814_v26 = vpop.f32.mrb[45].mxu1  ;;  %v7795_v27 = vpop.f32.mrb[47].mxu0 }
 0x25a   :  { %v6083_v28 = vadd.f32 %v7793_v24, %v6043_v17  ;;  %v7815_v29 = vadd.f32 %v7814_v26, %v7813_v23  ;;  %v7816_v30 = vpop.f32.mrb[46].mxu1 }
 0x25b   :  { %v7817_v31 = vpop.f32.mrb[47].mxu1 }
 0x25c   :  { %v6123_v41 = vadd.f32 %v7815_v29, %v6083_v28 }
 0x276   :  { %v7835_v32 = vpop.f32.mrb[48].mxu0 }
 0x277   :  { %v7836_v33 = vpop.f32.mrb[49].mxu0 }
 0x278   :  { %v7857_v34 = vpop.f32.mrb[48].mxu1  ;;  %v7837_v35 = vadd.f32 %v7836_v33, %v7835_v32  ;;  %v7838_v36 = vpop.f32.mrb[50].mxu0 }
 0x279   :  { %v7858_v37 = vpop.f32.mrb[49].mxu1  ;;  %v7839_v38 = vpop.f32.mrb[51].mxu0 }
 0x27a   :  { %v6163_v39 = vadd.f32 %v7837_v35, %v6123_v41  ;;  %v7859_v40 = vadd.f32 %v7858_v37, %v7857_v34  ;;  %v7860_v42 = vpop.f32.mrb[50].mxu1 }
 0x27b   :  { %v7861_v43 = vpop.f32.mrb[51].mxu1 }
 0x27c   :  { %v6203_v44 = vadd.f32 %v7859_v40, %v6163_v39 }
 0x296   :  { %v7879_v47 = vpop.f32.mrb[52].mxu0 }
 0x297   :  { %v7880_v48 = vpop.f32.mrb[53].mxu0 }
 0x298   :  { %v7901_v50 = vpop.f32.mrb[52].mxu1  ;;  %v7881_v51 = vadd.f32 %v7880_v48, %v7879_v47  ;;  %v7882_v52 = vpop.f32.mrb[54].mxu0  ;;  %v7285_v48 = vld [vmem:[%s10671_s4] ss:$0 sm:$0xff] }
 0x299   :  { %v7902_v53 = vpop.f32.mrb[53].mxu1  ;;  %v7883_v54 = vpop.f32.mrb[55].mxu0 }
 0x29a   :  { %v6243_v55 = vadd.f32 %v7881_v51, %v6203_v44  ;;  %v7903_v56 = vadd.f32 %v7902_v53, %v7901_v50  ;;  %v7904_v57 = vpop.f32.mrb[54].mxu1 }
 0x29b   :  { %v7905_v58 = vpop.f32.mrb[55].mxu1 }
 0x29c   :  { %v6283_v60 = vadd.f32 %v7903_v56, %v6243_v55 }
 0x2b6   :  { %v7923_v62 = vpop.f32.mrb[56].mxu0 }
 0x2b7   :  { %v7924_v63 = vpop.f32.mrb[57].mxu0 }
 0x2b8   :  { %v7945_v0 = vpop.f32.mrb[56].mxu1  ;;  %v7925_v1 = vadd.f32 %v7924_v63, %v7923_v62  ;;  %v7926_v2 = vpop.f32.mrb[58].mxu0 }
 0x2b9   :  { %v7946_v3 = vpop.f32.mrb[57].mxu1  ;;  %v7927_v4 = vpop.f32.mrb[59].mxu0 }
 0x2ba   :  { %v6323_v5 = vadd.f32 %v7925_v1, %v6283_v60  ;;  %v7947_v6 = vadd.f32 %v7946_v3, %v7945_v0  ;;  %v7948_v7 = vpop.f32.mrb[58].mxu1 }
 0x2bb   :  { %v7949_v8 = vpop.f32.mrb[59].mxu1 }
 0x2bc   :  { %v6363_v9 = vadd.f32 %v7947_v6, %v6323_v5 }
 0x2d6   :  { %v7967_v10 = vpop.f32.mrb[60].mxu0 }
 0x2d7   :  { %v7968_v11 = vpop.f32.mrb[61].mxu0 }
 0x2d8   :  { %v7989_v12 = vpop.f32.mrb[60].mxu1  ;;  %v7969_v13 = vadd.f32 %v7968_v11, %v7967_v10  ;;  %v7970_v14 = vpop.f32.mrb[62].mxu0 }
 0x2d9   :  { %v7990_v15 = vpop.f32.mrb[61].mxu1  ;;  %v7971_v16 = vpop.f32.mrb[63].mxu0 }
 0x2da   :  { %v6403_v17 = vadd.f32 %v7969_v13, %v6363_v9  ;;  %v7991_v18 = vadd.f32 %v7990_v15, %v7989_v12  ;;  %v7992_v19 = vpop.f32.mrb[62].mxu1 }
 0x2db   :  { %v7993_v20 = vpop.f32.mrb[63].mxu1 }
 0x2dc   :  { %v6443_v21 = vadd.f32 %v7991_v18, %v6403_v17 }
 0x2f6   :  { %v8011_v22 = vpop.f32.mrb[64].mxu0 }
 0x2f7   :  { %v8012_v23 = vpop.f32.mrb[65].mxu0 }
 0x2f8   :  { %v8033_v24 = vpop.f32.mrb[64].mxu1  ;;  %v8013_v25 = vadd.f32 %v8012_v23, %v8011_v22  ;;  %v8014_v26 = vpop.f32.mrb[66].mxu0 }
 0x2f9   :  { %v8034_v27 = vpop.f32.mrb[65].mxu1  ;;  %v8015_v28 = vpop.f32.mrb[67].mxu0 }
 0x2fa   :  { %v6483_v29 = vadd.f32 %v8013_v25, %v6443_v21  ;;  %v8035_v30 = vadd.f32 %v8034_v27, %v8033_v24  ;;  %v8036_v31 = vpop.f32.mrb[66].mxu1 }
 0x2fb   :  { %v8037_v41 = vpop.f32.mrb[67].mxu1 }
 0x2fc   :  { %v6523_v32 = vadd.f32 %v8035_v30, %v6483_v29 }
 0x316   :  { %v8055_v33 = vpop.f32.mrb[68].mxu0 }
 0x317   :  { %v8056_v34 = vpop.f32.mrb[69].mxu0 }
 0x318   :  { %v8077_v35 = vpop.f32.mrb[68].mxu1  ;;  %v8057_v36 = vadd.f32 %v8056_v34, %v8055_v33  ;;  %v8058_v37 = vpop.f32.mrb[70].mxu0 }
 0x319   :  { %v8078_v38 = vpop.f32.mrb[69].mxu1  ;;  %v8059_v39 = vpop.f32.mrb[71].mxu0 }
 0x31a   :  { %v6563_v40 = vadd.f32 %v8057_v36, %v6523_v32  ;;  %v8079_v42 = vadd.f32 %v8078_v38, %v8077_v35  ;;  %v8080_v43 = vpop.f32.mrb[70].mxu1 }
 0x31b   :  { %v8081_v44 = vpop.f32.mrb[71].mxu1 }
 0x31c   :  { %v6603_v45 = vadd.f32 %v8079_v42, %v6563_v40 }
 0x31e   :  { %v6608_v46 = vmax.f32 %v6603_v45, 0.0 }
 0x320   :  { %v6609_v47 = vpack.c.bf16 %v6608_v46, %v6608_v46 }
 0x322   :  { %8097 = vmatmul.mubr.msk.bf16.vlgmr.msra.gmra.mrb[72].mxu0 %vm6649_vm1, %v6609_v47 }
 0x3f5   :  { %v6687_v49 = vpop.f32.mrb[72].mxu0 }
 0x3f6   :  { %v6688_v50 = vadd.f32 %v7285_v48, %v6687_v49  ;;  %v8098_v51 = vpop.f32.mrb[73].mxu0 }
 0x3f7   :  { %v6690_v52 = vpop.f32.mrb[74].mxu0 }
 0x3f8   :  { %6693 = vst [vmem:[#allocation2] sm:$0x3] %v6688_v50  ;;  %v8099_v53 = vpop.f32.mrb[75].mxu0 }
 0x3f9   :  { %8704 = shalt.err (!%p8701_p4)
}
 0x3fa   :  { %s8705_s4 = scalar_lea.hbm %s10672_s5, 32 }
 0x3fb   :  { %p8706_p5 = scmp.ne.s32.totalorder %s10672_s5, %s8705_s4  ;;  %p8709_p6 = scmp.lt.u32.totalorder %s8705_s4, %s10672_s5 }
 0x3fd   :  { %p8711_p7 = pnand %p8709_p6, %p8706_p5 }
 0x3ff   :  { %8714 = shalt.err (!%p8711_p7)
}
 0x400   :  { %6703 = dma.vmem_to_hbm [thread:$0]  %s6701_s20, 32, %s10672_s5, [#allocation3]  }
 0x401   :  { %8715 = dma.done.wait [#allocation3], 32  }
 0x402   :  { %8716 = vsyncadd [#allocation3], 4294967264 }
 0x403   :  { %6707 = vsyncpa [#allocation3], 1 }

</bundles_post_ra>
